<compile_context>
chip_gen: v7x
topology: tpu7x:2x2x1
jax: 0.10.0
libtpu: 0.0.40
codegen_flags: <defaults>
</compile_context>

<pallas_src>
import functools

import jax
import jax.numpy as jnp
import numpy as np
from jax import lax
from jax.experimental import pallas as pl
from jax.experimental.pallas import tpu as pltpu


def bottleneck_kernel(Nb, H, W,
                      x_ref, w1_ref, b1_ref,
                      w2_ref, b2_ref,
                      w3_ref, b3_ref,
                      out_ref, pad_ref):
    """One grid step = Nb batch elements; channel dims padded to 128 lanes.

    x_ref   : (Nb, H*W, Cp)       bf16  NHWC input, flattened, channel-padded
    w1_ref  : (Cp, Wp)            bf16  1x1 conv weight (bn1 scale folded in)
    w2_ref  : (9*Wp, Wp)          bf16  3x3 conv weight, (kh, kw, ci) tap-major
    w3_ref  : (Wp, Cp)            bf16  1x1 conv weight (bn3 scale folded in)
    b*_ref  : (1, C)              f32   folded BatchNorm bias
    out_ref : (Nb, H*W, Cp)       bf16
    pad_ref : (Nb, H+2, W+2, Wp)  bf16  VMEM scratch (zero-padded conv2 input)
    """
    f32, bf16 = jnp.float32, jnp.bfloat16
    Cp, Wp = w1_ref.shape
    M = Nb * H * W

    x2d = x_ref[...].reshape(M, Cp)                               # bf16

    # ---- conv1 (1x1) + bn1 + relu : bf16 MXU matmul, f32 accumulate ----
    t1 = jnp.dot(x2d, w1_ref[...], preferred_element_type=f32)
    t1 = jnp.maximum(t1 + b1_ref[...], 0.0)                       # (M, Wp) f32

    # ---- conv2 (3x3, stride 1, pad 1) + bn2 + relu ----
    # Build the zero-padded bf16 slab as one value and store it with a single
    # lane-dense store (no masked per-row border stores). Re-built every step:
    # with a 'parallel' batch axis each TensorCore owns uninitialized scratch.
    t1b = t1.astype(bf16).reshape(Nb, H, W, Wp)
    zcol = jnp.zeros((Nb, H, 1, Wp), bf16)
    zrow = jnp.zeros((Nb, 1, W + 2, Wp), bf16)
    mid = jnp.concatenate([zcol, t1b, zcol], axis=2)              # (Nb,H,W+2,Wp)
    pad_ref[...] = jnp.concatenate([zrow, mid, zrow], axis=1)

    # Nine accumulating taps directly off the bf16 pad scratch (no im2col).
    # Tap ordering (kh, kw) matches the (3,3,Wp,Wp)->(9*Wp,Wp) weight reshape.
    acc = jnp.zeros((M, Wp), f32)
    for tap in range(9):
        kh, kw = divmod(tap, 3)
        patch = pad_ref[:, kh:kh + H, kw:kw + W, :].reshape(M, Wp)
        acc = acc + jnp.dot(patch, w2_ref[tap * Wp:(tap + 1) * Wp, :],
                            preferred_element_type=f32)
    t2 = jnp.maximum(acc + b2_ref[...], 0.0)                      # (M, Wp) f32

    # ---- conv3 (1x1) + bn3 + identity residual + relu ----
    # Residual adds the bf16-rounded input (intentional precision choice,
    # matches the bf16 reference).
    t3 = jnp.dot(t2.astype(bf16), w3_ref[...], preferred_element_type=f32)
    t3 = t3 + b3_ref[...]
    out = jnp.maximum(t3 + x2d.astype(f32), 0.0)                  # (M, Cp) f32
    out_ref[...] = out.reshape(Nb, H * W, Cp).astype(out_ref.dtype)


def fold_bn(gamma, beta, mean, var, eps=1e-5):
    """Fold eval-mode BatchNorm into per-channel scale & bias, shaped (1, C)."""
    scale = gamma / jnp.sqrt(var + eps)
    bias = beta - mean * scale
    return scale.reshape(1, -1), bias.reshape(1, -1)


def _round_up(x, m):
    return (x + m - 1) // m * m


def _pad_last(a, size, value=0.0):
    pad = size - a.shape[-1]
    if pad == 0:
        return a
    cfg = [(0, 0)] * (a.ndim - 1) + [(0, pad)]
    return jnp.pad(a, cfg, constant_values=value)


@functools.partial(jax.jit, static_argnames=("batch_block",))
def bottleneck_forward_nhwc(x, w1, s1, b1, w2, s2, b2, w3, s3, b3,
                            *, batch_block=1):
    """x: (N,H,W,Cin); w1 (Cin,width); w2 HWIO (3,3,width,width); w3 (width,Cout).

    s*/b* are folded eval-mode BatchNorm scale/bias of shape (1, C).
    """
    N, H, W, Cin = x.shape
    width = w1.shape[1]
    Cout = w3.shape[1]
    assert w1.shape[0] == Cin and w2.shape == (3, 3, width, width)
    # Identity residual (stride=1, groups=1, downsample=None).
    assert Cin == Cout, "identity residual needs in_channel == out_channel*expansion"
    Nb = batch_block
    assert N % Nb == 0, "batch must be divisible by batch_block"

    LANE = 128
    Cp = _round_up(Cin, LANE)       # padded in/out channels
    Wp = _round_up(width, LANE)     # padded bottleneck width
    bf16, f32 = jnp.bfloat16, jnp.float32

    # Fold BN scale into the conv weights in f32 (mathematically exact), then
    # cast to bf16 MXU operands. Only the bias add remains in the kernel.
    w1f = w1.astype(f32) * s1.reshape(1, -1)
    w2f = w2.astype(f32) * s2.reshape(1, 1, 1, -1)
    w3f = w3.astype(f32) * s3.reshape(1, -1)

    # Channel-padded, lane-dense, bf16 operands. Padded weight rows/cols are
    # zero and padded biases are zero, so padded lanes stay exactly zero.
    x_p = _pad_last(x.reshape(N, H * W, Cin), Cp).astype(bf16)
    w1_p = jnp.zeros((Cp, Wp), bf16).at[:Cin, :width].set(w1f.astype(bf16))
    w2_p = (jnp.zeros((3, 3, Wp, Wp), bf16)
            .at[:, :, :width, :width].set(w2f.astype(bf16))
            .reshape(9 * Wp, Wp))
    w3_p = jnp.zeros((Wp, Cp), bf16).at[:width, :Cout].set(w3f.astype(bf16))
    b1_p = _pad_last(b1.astype(f32), Wp)
    b2_p = _pad_last(b2.astype(f32), Wp)
    b3_p = _pad_last(b3.astype(f32), Cp)

    kernel = functools.partial(bottleneck_kernel, Nb, H, W)
    const = lambda n: (0, 0)

    out_p = pl.pallas_call(
        kernel,
        out_shape=jax.ShapeDtypeStruct((N, H * W, Cp), bf16),
        grid_spec=pltpu.PrefetchScalarGridSpec(
            num_scalar_prefetch=0,
            grid=(N // Nb,),
            in_specs=[
                pl.BlockSpec((Nb, H * W, Cp), lambda n: (n, 0, 0)),
                pl.BlockSpec((Cp, Wp), const),
                pl.BlockSpec((1, Wp), const),
                pl.BlockSpec((9 * Wp, Wp), const),
                pl.BlockSpec((1, Wp), const),
                pl.BlockSpec((Wp, Cp), const),
                pl.BlockSpec((1, Cp), const),
            ],
            out_specs=pl.BlockSpec((Nb, H * W, Cp), lambda n: (n, 0, 0)),
            scratch_shapes=[
                pltpu.VMEM((Nb, H + 2, W + 2, Wp), bf16),  # zero-padded conv2 in
            ],
        ),
        compiler_params=pltpu.CompilerParams(
            dimension_semantics=("parallel",),
            vmem_limit_bytes=32 * 1024 * 1024),
    )(x_p, w1_p, b1_p, w2_p, b2_p, w3_p, b3_p)

    # Drop the channel padding; cast back to f32 NHWC for callers.
    return out_p[:, :, :Cout].astype(f32).reshape(N, H, W, Cout)


def bottleneck_forward_nchw(x_nchw, *params, batch_block=1):
    # PyTorch-layout parity only; prefer NHWC end-to-end (the transposes cost
    # an extra HBM round trip).
    out = bottleneck_forward_nhwc(jnp.transpose(x_nchw, (0, 2, 3, 1)), *params,
                                  batch_block=batch_block)
    return jnp.transpose(out, (0, 3, 1, 2))


def reference_forward_nhwc(x, w1, s1, b1, w2, s2, b2, w3, s3, b3):
    """Pure-JAX reference (lax conv) mirroring the kernel's precision choices:
    BN scale folded into weights in f32, bf16 conv operands, f32 accumulate."""
    bf16, f32 = jnp.bfloat16, jnp.float32
    dn = ('NHWC', 'HWIO', 'NHWC')
    w1f = (w1 * s1.reshape(1, -1)).astype(bf16).reshape(1, 1, *w1.shape)
    w2f = (w2 * s2.reshape(1, 1, 1, -1)).astype(bf16)
    w3f = (w3 * s3.reshape(1, -1)).astype(bf16).reshape(1, 1, *w3.shape)
    xb = x.astype(bf16)
    t = lax.conv_general_dilated(xb, w1f, (1, 1), 'VALID', dimension_numbers=dn,
                                 preferred_element_type=f32)
    t = jnp.maximum(t + b1.reshape(1, 1, 1, -1), 0.0)
    t = lax.conv_general_dilated(t.astype(bf16), w2f, (1, 1), 'SAME',
                                 dimension_numbers=dn, preferred_element_type=f32)
    t = jnp.maximum(t + b2.reshape(1, 1, 1, -1), 0.0)
    t = lax.conv_general_dilated(t.astype(bf16), w3f, (1, 1), 'VALID',
                                 dimension_numbers=dn, preferred_element_type=f32)
    t = t + b3.reshape(1, 1, 1, -1)
    return jnp.maximum(t + xb.astype(f32), 0.0)


if __name__ == "__main__":
    # Module config (stride=1, groups=1, width_per_group=64, downsample=None):
    #   out_channel = 4 -> width = 4, expanded output channels = 16;
    #   in_channel must equal out_channel * expansion = 16 for the identity add.
    N, H, W = 2, 16, 16
    out_channel, expansion = 4, 4
    in_channel = out_channel * expansion          # 16
    width = int(out_channel * (64 / 64.0)) * 1    # 4
    Cout = out_channel * expansion                # 16

    key = jax.random.PRNGKey(0)
    keys = jax.random.split(key, 8)

    x = jax.random.normal(keys[0], (N, H, W, in_channel), jnp.float32)  # NHWC

    w1 = 0.2 * jax.random.normal(keys[1], (in_channel, width), jnp.float32)
    w2 = 0.2 * jax.random.normal(keys[2], (3, 3, width, width), jnp.float32)  # HWIO
    w3 = 0.2 * jax.random.normal(keys[3], (width, Cout), jnp.float32)

    def bn_params(k, c):
        kg, kb, km, kv = jax.random.split(k, 4)
        gamma = 1.0 + 0.1 * jax.random.normal(kg, (c,), jnp.float32)
        beta = 0.1 * jax.random.normal(kb, (c,), jnp.float32)
        mean = 0.1 * jax.random.normal(km, (c,), jnp.float32)
        var = 1.0 + 0.1 * jnp.abs(jax.random.normal(kv, (c,), jnp.float32))
        return fold_bn(gamma, beta, mean, var)

    s1, b1 = bn_params(keys[4], width)
    s2, b2 = bn_params(keys[5], width)
    s3, b3 = bn_params(keys[6], Cout)

    # Pack both batch elements into one grid step (tiny per-image work here).
    out = bottleneck_forward_nhwc(x, w1, s1, b1, w2, s2, b2, w3, s3, b3,
                                  batch_block=2)
    out = jax.block_until_ready(out)

    ref = jax.block_until_ready(
        reference_forward_nhwc(x, w1, s1, b1, w2, s2, b2, w3, s3, b3))

    np.testing.assert_allclose(np.asarray(out), np.asarray(ref),
                               rtol=2e-2, atol=2e-2)
    print("KERNEL_OK")
</pallas_src>

<mosaic_0001>
module attributes {stable_mosaic.version = 11 : i64} {
  func.func @bottleneck_kernel(%arg0: i32, %arg1: memref<2x256x128xbf16, #tpu.memory_space<vmem>>, %arg2: memref<128x128xbf16, #tpu.memory_space<vmem>>, %arg3: memref<1x128xf32, #tpu.memory_space<vmem>>, %arg4: memref<1152x128xbf16, #tpu.memory_space<vmem>>, %arg5: memref<1x128xf32, #tpu.memory_space<vmem>>, %arg6: memref<128x128xbf16, #tpu.memory_space<vmem>>, %arg7: memref<1x128xf32, #tpu.memory_space<vmem>>, %arg8: memref<2x256x128xbf16, #tpu.memory_space<vmem>>, %arg9: memref<2x18x18x128xbf16, #tpu.memory_space<vmem>>) attributes {dimension_semantics = [#tpu.dimension_semantics<parallel>], iteration_bounds = array<i64: 1>, scalar_prefetch = 0 : i64, scratch_operands = 1 : i64, tpu.core_type = #tpu.core_type<tc>, window_params = [{transform_indices = @transform_0, window_bounds = array<i64: 2, 256, 128>}, {pipeline_mode = #tpu.pipeline_mode<synchronous>, transform_indices = @transform_1, window_bounds = array<i64: 128, 128>}, {pipeline_mode = #tpu.pipeline_mode<synchronous>, transform_indices = @transform_2, window_bounds = array<i64: 1, 128>}, {pipeline_mode = #tpu.pipeline_mode<synchronous>, transform_indices = @transform_3, window_bounds = array<i64: 1152, 128>}, {pipeline_mode = #tpu.pipeline_mode<synchronous>, transform_indices = @transform_4, window_bounds = array<i64: 1, 128>}, {pipeline_mode = #tpu.pipeline_mode<synchronous>, transform_indices = @transform_5, window_bounds = array<i64: 128, 128>}, {pipeline_mode = #tpu.pipeline_mode<synchronous>, transform_indices = @transform_6, window_bounds = array<i64: 1, 128>}, {transform_indices = @transform_7, window_bounds = array<i64: 2, 256, 128>}]} {
    %c0 = arith.constant 0 : index
    %c0_0 = arith.constant 0 : index
    %c0_1 = arith.constant 0 : index
    %0 = vector.load %arg1[%c0, %c0_0, %c0_1] : memref<2x256x128xbf16, #tpu.memory_space<vmem>>, vector<2x256x128xbf16>
    %1 = vector.shape_cast %0 : vector<2x256x128xbf16> to vector<512x128xbf16>
    %c0_2 = arith.constant 0 : index
    %c0_3 = arith.constant 0 : index
    %2 = vector.load %arg2[%c0_2, %c0_3] : memref<128x128xbf16, #tpu.memory_space<vmem>>, vector<128x128xbf16>
    %cst = arith.constant dense<0.000000e+00> : vector<512x128xf32>
    %3 = tpu.matmul %1, %2, %cst {dimension_numbers = #tpu.dot_dimension_numbers<[1], [0], [0], [1], [0, 0, 1, 1], [], []>} : vector<512x128xbf16>, vector<128x128xbf16>, vector<512x128xf32> -> vector<512x128xf32>
    %c0_4 = arith.constant 0 : index
    %c0_5 = arith.constant 0 : index
    %4 = vector.load %arg3[%c0_4, %c0_5] : memref<1x128xf32, #tpu.memory_space<vmem>>, vector<1x128xf32>
    %5 = vector.broadcast %4 : vector<1x128xf32> to vector<512x128xf32>
    %6 = arith.addf %3, %5 : vector<512x128xf32>
    %cst_6 = arith.constant 0.000000e+00 : f32
    %7 = vector.broadcast %cst_6 : f32 to vector<512x128xf32>
    %8 = arith.maximumf %6, %7 : vector<512x128xf32>
    %9 = arith.truncf %8 : vector<512x128xf32> to vector<512x128xbf16>
    %10 = vector.shape_cast %9 : vector<512x128xbf16> to vector<2x16x16x128xbf16>
    %cst_7 = arith.constant 0.000000e+00 : bf16
    %11 = vector.broadcast %cst_7 : bf16 to vector<2x16x1x128xbf16>
    %cst_8 = arith.constant 0.000000e+00 : bf16
    %12 = vector.broadcast %cst_8 : bf16 to vector<2x1x18x128xbf16>
    %13 = tpu.concatenate %11, %10, %11 in 2 : vector<2x16x1x128xbf16>, vector<2x16x16x128xbf16>, vector<2x16x1x128xbf16> -> vector<2x16x18x128xbf16>
    %14 = tpu.concatenate %12, %13, %12 in 1 : vector<2x1x18x128xbf16>, vector<2x16x18x128xbf16>, vector<2x1x18x128xbf16> -> vector<2x18x18x128xbf16>
    %c0_9 = arith.constant 0 : index
    %c0_10 = arith.constant 0 : index
    %c0_11 = arith.constant 0 : index
    %c0_12 = arith.constant 0 : index
    %15 = vector.load %arg9[%c0_9, %c0_10, %c0_11, %c0_12] : memref<2x18x18x128xbf16, #tpu.memory_space<vmem>>, vector<2x18x18x128xbf16>
    tpu.vector_store %arg9[%c0_9, %c0_10, %c0_11, %c0_12], %14 {strides = array<i32>} : memref<2x18x18x128xbf16, #tpu.memory_space<vmem>>, vector<2x18x18x128xbf16>,
    %cst_13 = arith.constant 0.000000e+00 : f32
    %16 = vector.broadcast %cst_13 : f32 to vector<512x128xf32>
    %c0_14 = arith.constant 0 : index
    %c0_15 = arith.constant 0 : index
    %c0_16 = arith.constant 0 : index
    %c0_17 = arith.constant 0 : index
    %17 = vector.load %arg9[%c0_14, %c0_15, %c0_16, %c0_17] : memref<2x18x18x128xbf16, #tpu.memory_space<vmem>>, vector<2x16x16x128xbf16>
    %18 = vector.shape_cast %17 : vector<2x16x16x128xbf16> to vector<512x128xbf16>
    %c0_18 = arith.constant 0 : index
    %c0_19 = arith.constant 0 : index
    %19 = vector.load %arg4[%c0_18, %c0_19] : memref<1152x128xbf16, #tpu.memory_space<vmem>>, vector<128x128xbf16>
    %cst_20 = arith.constant dense<0.000000e+00> : vector<512x128xf32>
    %20 = tpu.matmul %18, %19, %cst_20 {dimension_numbers = #tpu.dot_dimension_numbers<[1], [0], [0], [1], [0, 0, 1, 1], [], []>} : vector<512x128xbf16>, vector<128x128xbf16>, vector<512x128xf32> -> vector<512x128xf32>
    %21 = arith.addf %16, %20 : vector<512x128xf32>
    %c0_21 = arith.constant 0 : index
    %c0_22 = arith.constant 0 : index
    %c1 = arith.constant 1 : index
    %c0_23 = arith.constant 0 : index
    %22 = vector.load %arg9[%c0_21, %c0_22, %c1, %c0_23] : memref<2x18x18x128xbf16, #tpu.memory_space<vmem>>, vector<2x16x16x128xbf16>
    %23 = vector.shape_cast %22 : vector<2x16x16x128xbf16> to vector<512x128xbf16>
    %c128 = arith.constant 128 : index
    %c0_24 = arith.constant 0 : index
    %24 = vector.load %arg4[%c128, %c0_24] : memref<1152x128xbf16, #tpu.memory_space<vmem>>, vector<128x128xbf16>
    %cst_25 = arith.constant dense<0.000000e+00> : vector<512x128xf32>
    %25 = tpu.matmul %23, %24, %cst_25 {dimension_numbers = #tpu.dot_dimension_numbers<[1], [0], [0], [1], [0, 0, 1, 1], [], []>} : vector<512x128xbf16>, vector<128x128xbf16>, vector<512x128xf32> -> vector<512x128xf32>
    %26 = arith.addf %21, %25 : vector<512x128xf32>
    %c0_26 = arith.constant 0 : index
    %c0_27 = arith.constant 0 : index
    %c2 = arith.constant 2 : index
    %c0_28 = arith.constant 0 : index
    %27 = vector.load %arg9[%c0_26, %c0_27, %c2, %c0_28] : memref<2x18x18x128xbf16, #tpu.memory_space<vmem>>, vector<2x16x16x128xbf16>
    %28 = vector.shape_cast %27 : vector<2x16x16x128xbf16> to vector<512x128xbf16>
    %c256 = arith.constant 256 : index
    %c0_29 = arith.constant 0 : index
    %29 = vector.load %arg4[%c256, %c0_29] : memref<1152x128xbf16, #tpu.memory_space<vmem>>, vector<128x128xbf16>
    %cst_30 = arith.constant dense<0.000000e+00> : vector<512x128xf32>
    %30 = tpu.matmul %28, %29, %cst_30 {dimension_numbers = #tpu.dot_dimension_numbers<[1], [0], [0], [1], [0, 0, 1, 1], [], []>} : vector<512x128xbf16>, vector<128x128xbf16>, vector<512x128xf32> -> vector<512x128xf32>
    %31 = arith.addf %26, %30 : vector<512x128xf32>
    %c0_31 = arith.constant 0 : index
    %c1_32 = arith.constant 1 : index
    %c0_33 = arith.constant 0 : index
    %c0_34 = arith.constant 0 : index
    %32 = vector.load %arg9[%c0_31, %c1_32, %c0_33, %c0_34] : memref<2x18x18x128xbf16, #tpu.memory_space<vmem>>, vector<2x16x16x128xbf16>
    %33 = vector.shape_cast %32 : vector<2x16x16x128xbf16> to vector<512x128xbf16>
    %c384 = arith.constant 384 : index
    %c0_35 = arith.constant 0 : index
    %34 = vector.load %arg4[%c384, %c0_35] : memref<1152x128xbf16, #tpu.memory_space<vmem>>, vector<128x128xbf16>
    %cst_36 = arith.constant dense<0.000000e+00> : vector<512x128xf32>
    %35 = tpu.matmul %33, %34, %cst_36 {dimension_numbers = #tpu.dot_dimension_numbers<[1], [0], [0], [1], [0, 0, 1, 1], [], []>} : vector<512x128xbf16>, vector<128x128xbf16>, vector<512x128xf32> -> vector<512x128xf32>
    %36 = arith.addf %31, %35 : vector<512x128xf32>
    %c0_37 = arith.constant 0 : index
    %c1_38 = arith.constant 1 : index
    %c1_39 = arith.constant 1 : index
    %c0_40 = arith.constant 0 : index
    %37 = vector.load %arg9[%c0_37, %c1_38, %c1_39, %c0_40] : memref<2x18x18x128xbf16, #tpu.memory_space<vmem>>, vector<2x16x16x128xbf16>
    %38 = vector.shape_cast %37 : vector<2x16x16x128xbf16> to vector<512x128xbf16>
    %c512 = arith.constant 512 : index
    %c0_41 = arith.constant 0 : index
    %39 = vector.load %arg4[%c512, %c0_41] : memref<1152x128xbf16, #tpu.memory_space<vmem>>, vector<128x128xbf16>
    %cst_42 = arith.constant dense<0.000000e+00> : vector<512x128xf32>
    %40 = tpu.matmul %38, %39, %cst_42 {dimension_numbers = #tpu.dot_dimension_numbers<[1], [0], [0], [1], [0, 0, 1, 1], [], []>} : vector<512x128xbf16>, vector<128x128xbf16>, vector<512x128xf32> -> vector<512x128xf32>
    %41 = arith.addf %36, %40 : vector<512x128xf32>
    %c0_43 = arith.constant 0 : index
    %c1_44 = arith.constant 1 : index
    %c2_45 = arith.constant 2 : index
    %c0_46 = arith.constant 0 : index
    %42 = vector.load %arg9[%c0_43, %c1_44, %c2_45, %c0_46] : memref<2x18x18x128xbf16, #tpu.memory_space<vmem>>, vector<2x16x16x128xbf16>
    %43 = vector.shape_cast %42 : vector<2x16x16x128xbf16> to vector<512x128xbf16>
    %c640 = arith.constant 640 : index
    %c0_47 = arith.constant 0 : index
    %44 = vector.load %arg4[%c640, %c0_47] : memref<1152x128xbf16, #tpu.memory_space<vmem>>, vector<128x128xbf16>
    %cst_48 = arith.constant dense<0.000000e+00> : vector<512x128xf32>
    %45 = tpu.matmul %43, %44, %cst_48 {dimension_numbers = #tpu.dot_dimension_numbers<[1], [0], [0], [1], [0, 0, 1, 1], [], []>} : vector<512x128xbf16>, vector<128x128xbf16>, vector<512x128xf32> -> vector<512x128xf32>
    %46 = arith.addf %41, %45 : vector<512x128xf32>
    %c0_49 = arith.constant 0 : index
    %c2_50 = arith.constant 2 : index
    %c0_51 = arith.constant 0 : index
    %c0_52 = arith.constant 0 : index
    %47 = vector.load %arg9[%c0_49, %c2_50, %c0_51, %c0_52] : memref<2x18x18x128xbf16, #tpu.memory_space<vmem>>, vector<2x16x16x128xbf16>
    %48 = vector.shape_cast %47 : vector<2x16x16x128xbf16> to vector<512x128xbf16>
    %c768 = arith.constant 768 : index
    %c0_53 = arith.constant 0 : index
    %49 = vector.load %arg4[%c768, %c0_53] : memref<1152x128xbf16, #tpu.memory_space<vmem>>, vector<128x128xbf16>
    %cst_54 = arith.constant dense<0.000000e+00> : vector<512x128xf32>
    %50 = tpu.matmul %48, %49, %cst_54 {dimension_numbers = #tpu.dot_dimension_numbers<[1], [0], [0], [1], [0, 0, 1, 1], [], []>} : vector<512x128xbf16>, vector<128x128xbf16>, vector<512x128xf32> -> vector<512x128xf32>
    %51 = arith.addf %46, %50 : vector<512x128xf32>
    %c0_55 = arith.constant 0 : index
    %c2_56 = arith.constant 2 : index
    %c1_57 = arith.constant 1 : index
    %c0_58 = arith.constant 0 : index
    %52 = vector.load %arg9[%c0_55, %c2_56, %c1_57, %c0_58] : memref<2x18x18x128xbf16, #tpu.memory_space<vmem>>, vector<2x16x16x128xbf16>
    %53 = vector.shape_cast %52 : vector<2x16x16x128xbf16> to vector<512x128xbf16>
    %c896 = arith.constant 896 : index
    %c0_59 = arith.constant 0 : index
    %54 = vector.load %arg4[%c896, %c0_59] : memref<1152x128xbf16, #tpu.memory_space<vmem>>, vector<128x128xbf16>
    %cst_60 = arith.constant dense<0.000000e+00> : vector<512x128xf32>
    %55 = tpu.matmul %53, %54, %cst_60 {dimension_numbers = #tpu.dot_dimension_numbers<[1], [0], [0], [1], [0, 0, 1, 1], [], []>} : vector<512x128xbf16>, vector<128x128xbf16>, vector<512x128xf32> -> vector<512x128xf32>
    %56 = arith.addf %51, %55 : vector<512x128xf32>
    %c0_61 = arith.constant 0 : index
    %c2_62 = arith.constant 2 : index
    %c2_63 = arith.constant 2 : index
    %c0_64 = arith.constant 0 : index
    %57 = vector.load %arg9[%c0_61, %c2_62, %c2_63, %c0_64] : memref<2x18x18x128xbf16, #tpu.memory_space<vmem>>, vector<2x16x16x128xbf16>
    %58 = vector.shape_cast %57 : vector<2x16x16x128xbf16> to vector<512x128xbf16>
    %c1024 = arith.constant 1024 : index
    %c0_65 = arith.constant 0 : index
    %59 = vector.load %arg4[%c1024, %c0_65] : memref<1152x128xbf16, #tpu.memory_space<vmem>>, vector<128x128xbf16>
    %cst_66 = arith.constant dense<0.000000e+00> : vector<512x128xf32>
    %60 = tpu.matmul %58, %59, %cst_66 {dimension_numbers = #tpu.dot_dimension_numbers<[1], [0], [0], [1], [0, 0, 1, 1], [], []>} : vector<512x128xbf16>, vector<128x128xbf16>, vector<512x128xf32> -> vector<512x128xf32>
    %61 = arith.addf %56, %60 : vector<512x128xf32>
    %c0_67 = arith.constant 0 : index
    %c0_68 = arith.constant 0 : index
    %62 = vector.load %arg5[%c0_67, %c0_68] : memref<1x128xf32, #tpu.memory_space<vmem>>, vector<1x128xf32>
    %63 = vector.broadcast %62 : vector<1x128xf32> to vector<512x128xf32>
    %64 = arith.addf %61, %63 : vector<512x128xf32>
    %cst_69 = arith.constant 0.000000e+00 : f32
    %65 = vector.broadcast %cst_69 : f32 to vector<512x128xf32>
    %66 = arith.maximumf %64, %65 : vector<512x128xf32>
    %67 = arith.truncf %66 : vector<512x128xf32> to vector<512x128xbf16>
    %c0_70 = arith.constant 0 : index
    %c0_71 = arith.constant 0 : index
    %68 = vector.load %arg6[%c0_70, %c0_71] : memref<128x128xbf16, #tpu.memory_space<vmem>>, vector<128x128xbf16>
    %cst_72 = arith.constant dense<0.000000e+00> : vector<512x128xf32>
    %69 = tpu.matmul %67, %68, %cst_72 {dimension_numbers = #tpu.dot_dimension_numbers<[1], [0], [0], [1], [0, 0, 1, 1], [], []>} : vector<512x128xbf16>, vector<128x128xbf16>, vector<512x128xf32> -> vector<512x128xf32>
    %c0_73 = arith.constant 0 : index
    %c0_74 = arith.constant 0 : index
    %70 = vector.load %arg7[%c0_73, %c0_74] : memref<1x128xf32, #tpu.memory_space<vmem>>, vector<1x128xf32>
    %71 = vector.broadcast %70 : vector<1x128xf32> to vector<512x128xf32>
    %72 = arith.addf %69, %71 : vector<512x128xf32>
    %73 = arith.extf %1 : vector<512x128xbf16> to vector<512x128xf32>
    %74 = arith.addf %72, %73 : vector<512x128xf32>
    %cst_75 = arith.constant 0.000000e+00 : f32
    %75 = vector.broadcast %cst_75 : f32 to vector<512x128xf32>
    %76 = arith.maximumf %74, %75 : vector<512x128xf32>
    %77 = vector.shape_cast %76 : vector<512x128xf32> to vector<2x256x128xf32>
    %78 = arith.truncf %77 : vector<2x256x128xf32> to vector<2x256x128xbf16>
    %c0_76 = arith.constant 0 : index
    %c0_77 = arith.constant 0 : index
    %c0_78 = arith.constant 0 : index
    %79 = vector.load %arg8[%c0_76, %c0_77, %c0_78] : memref<2x256x128xbf16, #tpu.memory_space<vmem>>, vector<2x256x128xbf16>
    tpu.vector_store %arg8[%c0_76, %c0_77, %c0_78], %78 {strides = array<i32>} : memref<2x256x128xbf16, #tpu.memory_space<vmem>>, vector<2x256x128xbf16>,
    return
  }
  func.func @transform_0(%arg0: i32) -> (i32, i32, i32) {
    %c0_i32 = arith.constant 0 : i32
    %c0_i32_0 = arith.constant 0 : i32
    %c0_i32_1 = arith.constant 0 : i32
    return %arg0, %c0_i32, %c0_i32_0 : i32, i32, i32
  }
  func.func @transform_1(%arg0: i32) -> (i32, i32) {
    %c0_i32 = arith.constant 0 : i32
    %c0_i32_0 = arith.constant 0 : i32
    %c0_i32_1 = arith.constant 0 : i32
    return %c0_i32, %c0_i32_0 : i32, i32
  }
  func.func @transform_2(%arg0: i32) -> (i32, i32) {
    %c0_i32 = arith.constant 0 : i32
    %c0_i32_0 = arith.constant 0 : i32
    %c0_i32_1 = arith.constant 0 : i32
    return %c0_i32, %c0_i32_0 : i32, i32
  }
  func.func @transform_3(%arg0: i32) -> (i32, i32) {
    %c0_i32 = arith.constant 0 : i32
    %c0_i32_0 = arith.constant 0 : i32
    %c0_i32_1 = arith.constant 0 : i32
    return %c0_i32, %c0_i32_0 : i32, i32
  }
  func.func @transform_4(%arg0: i32) -> (i32, i32) {
    %c0_i32 = arith.constant 0 : i32
    %c0_i32_0 = arith.constant 0 : i32
    %c0_i32_1 = arith.constant 0 : i32
    return %c0_i32, %c0_i32_0 : i32, i32
  }
  func.func @transform_5(%arg0: i32) -> (i32, i32) {
    %c0_i32 = arith.constant 0 : i32
    %c0_i32_0 = arith.constant 0 : i32
    %c0_i32_1 = arith.constant 0 : i32
    return %c0_i32, %c0_i32_0 : i32, i32
  }
  func.func @transform_6(%arg0: i32) -> (i32, i32) {
    %c0_i32 = arith.constant 0 : i32
    %c0_i32_0 = arith.constant 0 : i32
    %c0_i32_1 = arith.constant 0 : i32
    return %c0_i32, %c0_i32_0 : i32, i32
  }
  func.func @transform_7(%arg0: i32) -> (i32, i32, i32) {
    %c0_i32 = arith.constant 0 : i32
    %c0_i32_0 = arith.constant 0 : i32
    %c0_i32_1 = arith.constant 0 : i32
    return %arg0, %c0_i32, %c0_i32_0 : i32, i32, i32
  }
}

</mosaic_0001>

<bundles_post_ra>
// kernel: bottleneck_forward_nhwc.1
= control target key start
LH: loop header
LB: loop body
LE: loop exit
PB: predicated region body
PF: predicated region fallthrough
CT: control target
= control target key end

     0   :  { %v14627_v41 = vmov 0   ;;  %vm1673_vm0 = vsmask.f32 3328  ;;  %vm1674_vm1 = vsmask.f32 7440  ;;  %vm1027_vm3 = vcmask 1040384   ;;  %s17088_s1 = inlined_call_operand.vmem [shape: bf16[128,128], index: 1, kind: input, shape index: {}]   ;;  %s17089_s0 = inlined_call_operand.vmem [shape: bf16[2,256,128], index: 0, kind: input, shape index: {}]   ;;  %s17090_s3 = inlined_call_operand.vmem [shape: bf16[1152,128], index: 3, kind: input, shape index: {}]   ;;  %s17091_s2 = inlined_call_operand.vmem [shape: f32[1,128], index: 2, kind: input, shape index: {}]   ;;  %s17092_s5 = inlined_call_operand.vmem [shape: bf16[128,128], index: 5, kind: input, shape index: {}]   ;;  %s17093_s4 = inlined_call_operand.vmem [shape: f32[1,128], index: 4, kind: input, shape index: {}]   ;;  %s17094_s6 = inlined_call_operand.vmem [shape: f32[1,128], index: 6, kind: input, shape index: {}]   ;;  %s17095_s7 = inlined_call_operand.vmem [shape: bf16[2,256,128], index: 7, kind: output, shape index: {}]  }
   0x1   :  { %v14098_v0 = vld [vmem:[%s17088_s1] sm:$0xff]   ;;  %v14099_v1 = vld [vmem:[%s17088_s1 + $0x8] sm:$0xff]   ;;  %v14100_v2 = vld [vmem:[%s17088_s1 + $0x10] sm:$0xff]   ;;  %v11366_v42 = vcombine.low %v14627_v41, %v14627_v41  ;;  %v11367_v43 = vcombine.high %v14627_v41, %v14627_v41  ;;  %vm1028_vm4 = vsmask.f32 256  ;;  %vm3550_vm6 = vcmask 1042432  }
   0x2   :  { %12689 = vmatprep.subr.bf16.mxu0 %v14098_v0  ;;  %v14101_v3 = vld [vmem:[%s17088_s1 + $0x18] sm:$0xff]   ;;  %v27_v4 = vld [vmem:[%s17089_s0] sm:$0xff]   ;;  %v14103_v6 = vld [vmem:[%s17088_s1 + $0x28] sm:$0xff]   ;;  %vm3551_vm7 = vcmask 1046532  }
   0x3   :  { %12690 = vmatpush3.bf16.msra.mxu0 %v14098_v0  ;;  %12705 = vmatprep.mubr.bf16.mxu0 %v27_v4  ;;  %v14102_v5 = vld [vmem:[%s17088_s1 + $0x20] sm:$0xff]   ;;  %v14104_v7 = vld [vmem:[%s17088_s1 + $0x30] sm:$0xff]   ;;  %v14105_v8 = vld [vmem:[%s17088_s1 + $0x38] sm:$0xff]   ;;  %1453 = vst [vmem:[#allocation2] sm:$0xf] %v11366_v42 }
   0x4   :  { %12691 = vmatprep.subr.bf16.mxu0 %v14099_v1  ;;  %v29_v9 = vld [vmem:[%s17089_s0 + $0x8] sm:$0xff]   ;;  %v31_v10 = vld [vmem:[%s17089_s0 + $0x10] sm:$0xff]   ;;  %v33_v11 = vld [vmem:[%s17089_s0 + $0x18] sm:$0xff]   ;;  %1454 = vst [vmem:[#allocation2 + $0x4] sm:$0xf] %v11367_v43 }
   0x5   :  { %v35_v12 = vld [vmem:[%s17089_s0 + $0x20] sm:$0xff]   ;;  %v37_v13 = vld [vmem:[%s17089_s0 + $0x28] sm:$0xff]   ;;  %v39_v14 = vld [vmem:[%s17089_s0 + $0x30] sm:$0xff]   ;;  %1455 = vst [vmem:[#allocation2 + $0x8] sm:$0x1] %v11366_v42 }
   0x6   :  { %v41_v15 = vld [vmem:[%s17089_s0 + $0x38] sm:$0xff]   ;;  %v43_v16 = vld [vmem:[%s17089_s0 + $0x40] sm:$0xff]   ;;  %v45_v17 = vld [vmem:[%s17089_s0 + $0x48] sm:$0xff]   ;;  %1504 = vst [vmem:[#allocation2 + $0xcc] sm:$0xf] %v11366_v42 }
   0x7   :  { %12692 = vmatpush3.bf16.msra.mxu0 %v14099_v1  ;;  %v47_v18 = vld [vmem:[%s17089_s0 + $0x50] sm:$0xff]   ;;  %v49_v19 = vld [vmem:[%s17089_s0 + $0x58] sm:$0xff]   ;;  %v51_v20 = vld [vmem:[%s17089_s0 + $0x60] sm:$0xff]   ;;  %1505 = vst [vmem:[#allocation2 + $0xd0] sm:$0xf] %v11367_v43 }
   0x8   :  { %12693 = vmatprep.subr.bf16.mxu0 %v14100_v2  ;;  %v53_v21 = vld [vmem:[%s17089_s0 + $0x68] sm:$0xff]   ;;  %v55_v22 = vld [vmem:[%s17089_s0 + $0x70] sm:$0xff]   ;;  %v57_v23 = vld [vmem:[%s17089_s0 + $0x78] sm:$0xff]   ;;  %1506 = vst [vmem:[#allocation2 + $0xd4] sm:$0x1] %v11366_v42 }
   0x9   :  { %v59_v24 = vld [vmem:[%s17089_s0 + $0x80] sm:$0xff]   ;;  %v61_v25 = vld [vmem:[%s17089_s0 + $0x88] sm:$0xff]   ;;  %v63_v26 = vld [vmem:[%s17089_s0 + $0x90] sm:$0xff]   ;;  %1507 = vst [vmem:[#allocation2 + $0xd8] sm:$0xf] %v11366_v42 }
   0xa   :  { %v65_v27 = vld [vmem:[%s17089_s0 + $0x98] sm:$0xff]   ;;  %v67_v28 = vld [vmem:[%s17089_s0 + $0xa0] sm:$0xff]   ;;  %v69_v29 = vld [vmem:[%s17089_s0 + $0xa8] sm:$0xff]   ;;  %1508 = vst [vmem:[#allocation2 + $0xdc] sm:$0xf] %v11367_v43 }
   0xb   :  { %12694 = vmatpush3.bf16.msra.mxu0 %v14100_v2  ;;  %v71_v30 = vld [vmem:[%s17089_s0 + $0xb0] sm:$0xff]   ;;  %v73_v31 = vld [vmem:[%s17089_s0 + $0xb8] sm:$0xff]   ;;  %v75_v32 = vld [vmem:[%s17089_s0 + $0xc0] sm:$0xff]   ;;  %1509 = vst [vmem:[#allocation2 + $0xe0] sm:$0x1] %v11366_v42 }
   0xc   :  { %12695 = vmatprep.subr.bf16.mxu0 %v14101_v3  ;;  %v77_v33 = vld [vmem:[%s17089_s0 + $0xc8] sm:$0xff]   ;;  %v14138_v34 = vld [vmem:[%s17090_s3 + $0x40] sm:$0xff]   ;;  %v79_v35 = vld [vmem:[%s17089_s0 + $0xd0] sm:$0xff]   ;;  %1558 = vst [vmem:[#allocation2 + $0x1a4] sm:$0xf] %v11366_v42 }
   0xd   :  { %v14139_v36 = vld [vmem:[%s17090_s3 + $0x48] sm:$0xff]   ;;  %v81_v37 = vld [vmem:[%s17089_s0 + $0xd8] sm:$0xff]   ;;  %v14140_v38 = vld [vmem:[%s17090_s3 + $0x50] sm:$0xff]   ;;  %1559 = vst [vmem:[#allocation2 + $0x1a8] sm:$0xf] %v11367_v43 }
   0xe   :  { %v83_v39 = vld [vmem:[%s17089_s0 + $0xe0] sm:$0xff]   ;;  %v14141_v40 = vld [vmem:[%s17090_s3 + $0x58] sm:$0xff]   ;;  %1560 = vst [vmem:[#allocation2 + $0x1ac] sm:$0x1] %v11366_v42  ;;  %v85_v44 = vld [vmem:[%s17089_s0 + $0xe8] sm:$0xff]  }
   0xf   :  { %12696 = vmatpush3.bf16.msra.mxu0 %v14101_v3  ;;  %v87_v45 = vld [vmem:[%s17089_s0 + $0xf0] sm:$0xff]   ;;  %v14142_v46 = vld [vmem:[%s17090_s3 + $0x60] sm:$0xff]   ;;  %v14143_v47 = vld [vmem:[%s17090_s3 + $0x68] sm:$0xff]  }
  0x10   :  { %12697 = vmatprep.subr.bf16.mxu0 %v14102_v5  ;;  %v1561_v48 = vld [vmem:[#allocation2] sm:$0xf]  ;;  %v1562_v49 = vld [vmem:[#allocation2 + $0x4] sm:$0xf]  ;;  %v89_v54 = vld [vmem:[%s17089_s0 + $0xf8] sm:$0xff]  }
  0x11   :  { %v1677_v50 = vshrl.u32 %v1561_v48, 16  ;;  %v1680_v51 = vshll.u32 %v1561_v48, 16  ;;  %v1686_v52 = vshll.u32 %v1562_v49, 16  ;;  %v1690_v53 = vshrl.u32 %v1562_v49, 16  ;;  %v14144_v55 = vld [vmem:[%s17090_s3 + $0x70] sm:$0xff]   ;;  %v14145_v0 = vld [vmem:[%s17090_s3 + $0x78] sm:$0xff]   ;;  %vm14812_vm2 = vmor %vm1673_vm0, %vm1674_vm1 }
  0x12   :  { %v1641_v60 = vld [vmem:[#allocation2 + $0x8] sm:$0x1]  ;;  %vm14845_vm5 = vmand %vm1027_vm3, %vm1028_vm4 }
  0x13   :  { %12698 = vmatpush3.bf16.msra.mxu0 %v14102_v5  ;;  %v1679_v56 = vrot.slane %v1677_v50, 4  ;;  %v1682_v57 = vrot.slane %v1680_v51, 5  ;;  %v1688_v58 = vrot.slane %v1686_v52, 5  ;;  %v1692_v59 = vrot.slane %v1690_v53, 4  ;;  %vm15574_vm8 = vmor %vm3550_vm6, %vm3551_vm7 }
  0x14   :  { %12699 = vmatprep.subr.bf16.mxu0 %v14103_v6  ;;  %v1696_v63 = vshll.u32 %v1641_v60, 16 }
  0x15   :  { %v1683_v61 = vor.u32 %v1682_v57, %v1679_v56  ;;  %v1693_v62 = vor.u32 %v1692_v59, %v1688_v58  ;;  %v14152_v56 = vld [vmem:[%s17090_s3 + $0xf0] sm:$0xff]  }
  0x16   :  { %v1698_v4 = vrot.slane %v1696_v63, 5 }
  0x17   :  { %12700 = vmatpush3.bf16.msra.mxu0 %v14103_v6  ;;  %v1684_v1 = vrot.slane %v1683_v61, 4  ;;  %v1694_v3 = vrot.slane %v1693_v62, 4 }
  0x18   :  { %12701 = vmatprep.subr.bf16.mxu0 %v14104_v7 }
  0x19   :  { %v1689_v5 = vsel %vm14812_vm2, %v1684_v1, %v1688_v58  ;;  %v1699_v6 = vsel %vm14812_vm2, %v1694_v3, %v1698_v4 }
  0x1b   :  { %12702 = vmatpush3.bf16.msra.mxu0 %v14104_v7  ;;  %v11464_v7 = vcombine.low %v1689_v5, %v1699_v6 }
  0x1c   :  { %12703 = vmatprep.subr.bf16.mxu0 %v14105_v8 }
  0x1f   :  { %12704 = vmatpush3.bf16.msra.mxu0 %v14105_v8  ;;  %v14146_v8 = vld [vmem:[%s17090_s3 + $0xc0] sm:$0xff]  }
  0x20   :  { %12769 = vmatprep.subr.bf16.mxu0 %v14138_v34  ;;  %13569 = vmatprep.subr.bf16.mxu1 %v14146_v8 }
  0x21   :  { %13577 = vmatpush3.bf16.msra.mxu1 %v14146_v8 }
  0x22   :  { %12706 = vmatmul.mubr.bf16.vlgmr.msra.gmra.mrb[0].mxu0 %v29_v9  ;;  %v14147_v9 = vld [vmem:[%s17090_s3 + $0xc8] sm:$0xff]  }
  0x23   :  { %12709 = vmatprep.mubr.bf16.mxu0 %v31_v10  ;;  %12770 = vmatpush3.bf16.msra.mxu0 %v14138_v34  ;;  %v14148_v10 = vld [vmem:[%s17090_s3 + $0xd0] sm:$0xff]  }
  0x24   :  { %12771 = vmatprep.subr.bf16.mxu0 %v14139_v36  ;;  %13570 = vmatprep.subr.bf16.mxu1 %v14147_v9 }
  0x25   :  { %13578 = vmatpush3.bf16.msra.mxu1 %v14147_v9 }
  0x26   :  { %13571 = vmatprep.subr.bf16.mxu1 %v14148_v10 }
  0x27   :  { %12772 = vmatpush3.bf16.msra.mxu0 %v14139_v36  ;;  %v14151_v36 = vld [vmem:[%s17090_s3 + $0xe8] sm:$0xff]  }
  0x28   :  { %12773 = vmatprep.subr.bf16.mxu0 %v14140_v38 }
  0x29   :  { %13579 = vmatpush3.bf16.msra.mxu1 %v14148_v10 }
  0x2a   :  { %12710 = vmatmul.mubr.bf16.gmra.mrb[4].mxu0 %v33_v11  ;;  %v14149_v11 = vld [vmem:[%s17090_s3 + $0xd8] sm:$0xff]  }
  0x2b   :  { %12713 = vmatprep.mubr.bf16.mxu0 %v35_v12  ;;  %12774 = vmatpush3.bf16.msra.mxu0 %v14140_v38  ;;  %v14835_v12 = vld [vmem:[%s17091_s2] ss:$0 sm:$0xff] }
  0x2c   :  { %12775 = vmatprep.subr.bf16.mxu0 %v14141_v40  ;;  %13572 = vmatprep.subr.bf16.mxu1 %v14149_v11 }
  0x2d   :  { %13580 = vmatpush3.bf16.msra.mxu1 %v14149_v11 }
  0x2f   :  { %12776 = vmatpush3.bf16.msra.mxu0 %v14141_v40 }
  0x30   :  { %12777 = vmatprep.subr.bf16.mxu0 %v14142_v46 }
  0x32   :  { %12714 = vmatmul.mubr.bf16.gmra.mrb[8].mxu0 %v37_v13 }
  0x33   :  { %12717 = vmatprep.mubr.bf16.mxu0 %v39_v14  ;;  %12778 = vmatpush3.bf16.msra.mxu0 %v14142_v46  ;;  %v14150_v14 = vld [vmem:[%s17090_s3 + $0xe0] sm:$0xff]  }
  0x34   :  { %12779 = vmatprep.subr.bf16.mxu0 %v14143_v47  ;;  %13573 = vmatprep.subr.bf16.mxu1 %v14150_v14 }
  0x35   :  { %13581 = vmatpush3.bf16.msra.mxu1 %v14150_v14 }
  0x36   :  { %13574 = vmatprep.subr.bf16.mxu1 %v14151_v36 }
  0x37   :  { %12780 = vmatpush3.bf16.msra.mxu0 %v14143_v47 }
  0x38   :  { %12781 = vmatprep.subr.bf16.mxu0 %v14144_v55 }
  0x39   :  { %13582 = vmatpush3.bf16.msra.mxu1 %v14151_v36 }
  0x3a   :  { %12718 = vmatmul.mubr.bf16.gmra.mrb[12].mxu0 %v41_v15  ;;  %13575 = vmatprep.subr.bf16.mxu1 %v14152_v56 }
  0x3b   :  { %12721 = vmatprep.mubr.bf16.mxu0 %v43_v16  ;;  %12782 = vmatpush3.bf16.msra.mxu0 %v14144_v55 }
  0x3c   :  { %12783 = vmatprep.subr.bf16.mxu0 %v14145_v0 }
  0x3d   :  { %13583 = vmatpush3.bf16.msra.mxu1 %v14152_v56 }
  0x3f   :  { %12784 = vmatpush3.bf16.msra.mxu0 %v14145_v0 }
  0x42   :  { %12722 = vmatmul.mubr.bf16.gmra.mrb[16].mxu0 %v45_v17 }
  0x43   :  { %12725 = vmatprep.mubr.bf16.mxu0 %v47_v18 }
  0x4a   :  { %12726 = vmatmul.mubr.bf16.gmra.mrb[20].mxu0 %v49_v19 }
  0x4b   :  { %12729 = vmatprep.mubr.bf16.mxu0 %v51_v20 }
  0x52   :  { %12730 = vmatmul.mubr.bf16.gmra.mrb[24].mxu0 %v53_v21 }
  0x53   :  { %12733 = vmatprep.mubr.bf16.mxu0 %v55_v22 }
  0x5a   :  { %12734 = vmatmul.mubr.bf16.gmra.mrb[28].mxu0 %v57_v23 }
  0x5b   :  { %12737 = vmatprep.mubr.bf16.mxu0 %v59_v24 }
  0x62   :  { %12738 = vmatmul.mubr.bf16.gmra.mrb[32].mxu0 %v61_v25 }
  0x63   :  { %12741 = vmatprep.mubr.bf16.mxu0 %v63_v26 }
  0x6a   :  { %12742 = vmatmul.mubr.bf16.gmra.mrb[36].mxu0 %v65_v27 }
  0x6b   :  { %12745 = vmatprep.mubr.bf16.mxu0 %v67_v28 }
  0x72   :  { %12746 = vmatmul.mubr.bf16.gmra.mrb[40].mxu0 %v69_v29 }
  0x73   :  { %12749 = vmatprep.mubr.bf16.mxu0 %v71_v30 }
  0x7a   :  { %12750 = vmatmul.mubr.bf16.gmra.mrb[44].mxu0 %v73_v31 }
  0x7b   :  { %12753 = vmatprep.mubr.bf16.mxu0 %v75_v32 }
  0x82   :  { %12754 = vmatmul.mubr.bf16.gmra.mrb[48].mxu0 %v77_v33 }
  0x83   :  { %12757 = vmatprep.mubr.bf16.mxu0 %v79_v35 }
  0x8a   :  { %12758 = vmatmul.mubr.bf16.gmra.mrb[52].mxu0 %v81_v37 }
  0x8b   :  { %12761 = vmatprep.mubr.bf16.mxu0 %v83_v39 }
  0x92   :  { %12762 = vmatmul.mubr.bf16.gmra.mrb[56].mxu0 %v85_v44 }
  0x93   :  { %12765 = vmatprep.mubr.bf16.mxu0 %v87_v45 }
  0x9a   :  { %12766 = vmatmul.mubr.bf16.gmra.mrb[60].mxu0 %v89_v54 }
  0x9b   :  { %12785 = vmatprep.mubr.bf16.mxu0 %v11464_v7 }
  0xf5   :  { %v12707_v13 = vpop.f32.mrb[0].mxu0 }
  0xf6   :  { %v397_v15 = vadd.f32 %v12707_v13, %v14835_v12  ;;  %v388_v16 = vpop.f32.mrb[1].mxu0 }
  0xf7   :  { %v389_v17 = vadd.f32 %v14835_v12, %v388_v16  ;;  %v12708_v18 = vpop.f32.mrb[2].mxu0 }
  0xf8   :  { %v400_v19 = vadd.f32 %v12708_v18, %v14835_v12  ;;  %v391_v20 = vpop.f32.mrb[3].mxu0  ;;  %v645_v22 = vmax.f32 %v397_v15, 0.0 }
  0xf9   :  { %v392_v21 = vadd.f32 %v14835_v12, %v391_v20  ;;  %v643_v24 = vmax.f32 %v389_v17, 0.0 }
  0xfa   :  { %v646_v23 = vmax.f32 %v400_v19, 0.0 }
  0xfb   :  { %v644_v25 = vmax.f32 %v392_v21, 0.0 }
  0xfc   :  { %v708_v26 = vpack.c.bf16 %v646_v23, %v645_v22 }
  0xfd   :  { %v707_v27 = vpack.c.bf16 %v644_v25, %v643_v24  ;;  %v12711_v28 = vpop.f32.mrb[4].mxu0 }
  0xfe   :  { %v747_v29 = vshrl.u32 %v708_v26, 16  ;;  %v413_v30 = vadd.f32 %v12711_v28, %v14835_v12  ;;  %v404_v31 = vpop.f32.mrb[5].mxu0  ;;  %v750_v38 = vshll.u32 %v708_v26, 16 }
  0xff   :  { %v740_v33 = vshrl.u32 %v707_v27, 16  ;;  %v405_v34 = vadd.f32 %v14835_v12, %v404_v31  ;;  %v12712_v35 = vpop.f32.mrb[6].mxu0  ;;  %v743_v42 = vshll.u32 %v707_v27, 16 }
 0x100   :  { %v749_v37 = vrot.slane %v747_v29, 7  ;;  %v416_v39 = vadd.f32 %v12712_v35, %v14835_v12  ;;  %v407_v40 = vpop.f32.mrb[7].mxu0  ;;  %v649_v43 = vmax.f32 %v413_v30, 0.0 }
 0x101   :  { %v742_v41 = vrot.slane %v740_v33, 7  ;;  %v408_v44 = vadd.f32 %v14835_v12, %v407_v40  ;;  %v647_v47 = vmax.f32 %v405_v34, 0.0 }
 0x102   :  { %v752_v45 = vor.u32 %v750_v38, %v749_v37  ;;  %v1063_v46 = vsel %vm14845_vm5, %v749_v37, 0  ;;  %v650_v48 = vmax.f32 %v416_v39, 0.0  ;;  %v14153_v38 = vld [vmem:[%s17090_s3 + $0xf8] sm:$0xff]  }
 0x103   :  { %v11373_v49 = vcombine.low %v1063_v46, %v1063_v46  ;;  %v745_v50 = vor.u32 %v743_v42, %v742_v41  ;;  %v1062_v51 = vsel %vm14845_vm5, %v742_v41, 0  ;;  %v648_v52 = vmax.f32 %v408_v44, 0.0  ;;  %13576 = vmatprep.subr.bf16.mxu1 %v14153_v38 }
 0x104   :  { %v1031_v53 = vsel %vm14845_vm5, 0, %v752_v45  ;;  %v11370_v54 = vcombine.low %v1062_v51, %v1062_v51  ;;  %v710_v55 = vpack.c.bf16 %v650_v48, %v649_v43  ;;  %13584 = vmatpush3.bf16.msra.mxu1 %v14153_v38 }
 0x105   :  { %v11371_v57 = vcombine.low %v1031_v53, %v1031_v53  ;;  %v11372_v58 = vcombine.high %v1031_v53, %v1031_v53  ;;  %1461 = vst [vmem:[#allocation2 + $0x20] sm:$0x1] %v11373_v49  ;;  %v1030_v59 = vsel %vm14845_vm5, 0, %v745_v50  ;;  %v709_v60 = vpack.c.bf16 %v648_v52, %v647_v47  ;;  %v12715_v61 = vpop.f32.mrb[8].mxu0 }
 0x106   :  { %v11368_v62 = vcombine.low %v1030_v59, %v1030_v59  ;;  %v11369_v63 = vcombine.high %v1030_v59, %v1030_v59  ;;  %1458 = vst [vmem:[#allocation2 + $0x14] sm:$0x1] %v11370_v54  ;;  %v761_v0 = vshrl.u32 %v710_v55, 16  ;;  %v420_v1 = vpop.f32.mrb[9].mxu0  ;;  %v429_v4 = vadd.f32 %v12715_v61, %v14835_v12 }
 0x107   :  { %1459 = vst [vmem:[#allocation2 + $0x18] sm:$0xf] %v11371_v57  ;;  %1460 = vst [vmem:[#allocation2 + $0x1c] sm:$0xf] %v11372_v58  ;;  %v754_v3 = vshrl.u32 %v709_v60, 16  ;;  %v421_v5 = vadd.f32 %v14835_v12, %v420_v1  ;;  %v12716_v6 = vpop.f32.mrb[10].mxu0 }
 0x108   :  { %1456 = vst [vmem:[#allocation2 + $0xc] sm:$0xf] %v11368_v62  ;;  %1457 = vst [vmem:[#allocation2 + $0x10] sm:$0xf] %v11369_v63  ;;  %v763_v7 = vrot.slane %v761_v0, 7  ;;  %v764_v8 = vshll.u32 %v710_v55, 16  ;;  %v432_v9 = vadd.f32 %v12716_v6, %v14835_v12 }
 0x109   :  { %v423_v10 = vpop.f32.mrb[11].mxu0  ;;  %v756_v11 = vrot.slane %v754_v3, 7  ;;  %v757_v13 = vshll.u32 %v709_v60, 16  ;;  %v653_v14 = vmax.f32 %v429_v4, 0.0  ;;  %v651_v18 = vmax.f32 %v421_v5, 0.0  ;;  %v14155_v3 = vld [vmem:[%s17090_s3 + $0x100] sm:$0xff]  }
 0x10a   :  { %v424_v15 = vadd.f32 %v14835_v12, %v423_v10  ;;  %v766_v16 = vor.u32 %v764_v8, %v763_v7  ;;  %v1065_v17 = vsel %vm14845_vm5, %v763_v7, 0  ;;  %v654_v19 = vmax.f32 %v432_v9, 0.0  ;;  %13089 = vmatprep.subr.bf16.mxu1 %v14155_v3 }
 0x10b   :  { %v11379_v20 = vcombine.low %v1065_v17, %v1065_v17  ;;  %v759_v21 = vor.u32 %v757_v13, %v756_v11  ;;  %v1064_v22 = vsel %vm14845_vm5, %v756_v11, 0 }
 0x10c   :  { %v652_v23 = vmax.f32 %v424_v15, 0.0  ;;  %v1033_v24 = vsel %vm14845_vm5, 0, %v766_v16  ;;  %v11376_v25 = vcombine.low %v1064_v22, %v1064_v22  ;;  %v712_v26 = vpack.c.bf16 %v654_v19, %v653_v14 }
 0x10d   :  { %v11377_v27 = vcombine.low %v1033_v24, %v1033_v24  ;;  %v11378_v28 = vcombine.high %v1033_v24, %v1033_v24  ;;  %1467 = vst [vmem:[#allocation2 + $0x38] sm:$0x1] %v11379_v20  ;;  %v1032_v29 = vsel %vm14845_vm5, 0, %v759_v21  ;;  %v12719_v31 = vpop.f32.mrb[12].mxu0 }
 0x10e   :  { %v711_v30 = vpack.c.bf16 %v652_v23, %v651_v18  ;;  %v11374_v33 = vcombine.low %v1032_v29, %v1032_v29  ;;  %v11375_v34 = vcombine.high %v1032_v29, %v1032_v29  ;;  %1464 = vst [vmem:[#allocation2 + $0x2c] sm:$0x1] %v11376_v25  ;;  %v775_v35 = vshrl.u32 %v712_v26, 16  ;;  %v436_v37 = vpop.f32.mrb[13].mxu0 }
 0x10f   :  { %v778_v36 = vshll.u32 %v712_v26, 16  ;;  %1465 = vst [vmem:[#allocation2 + $0x30] sm:$0xf] %v11377_v27  ;;  %1466 = vst [vmem:[#allocation2 + $0x34] sm:$0xf] %v11378_v28  ;;  %v445_v41 = vadd.f32 %v12719_v31, %v14835_v12  ;;  %v437_v42 = vadd.f32 %v14835_v12, %v436_v37  ;;  %v12720_v43 = vpop.f32.mrb[14].mxu0 }
 0x110   :  { %v768_v39 = vshrl.u32 %v711_v30, 16  ;;  %v771_v40 = vshll.u32 %v711_v30, 16  ;;  %v1563_v44 = vld [vmem:[#allocation2 + $0xc] sm:$0xf]  ;;  %1462 = vst [vmem:[#allocation2 + $0x24] sm:$0xf] %v11374_v33  ;;  %v448_v46 = vadd.f32 %v12720_v43, %v14835_v12 }
 0x111   :  { %1463 = vst [vmem:[#allocation2 + $0x28] sm:$0xf] %v11375_v34  ;;  %v777_v45 = vrot.slane %v775_v35, 7  ;;  %v439_v47 = vpop.f32.mrb[15].mxu0  ;;  %v1701_v48 = vshrl.u32 %v1563_v44, 16  ;;  %v1704_v49 = vshll.u32 %v1563_v44, 16 }
 0x112   :  { %v770_v50 = vrot.slane %v768_v39, 7  ;;  %v657_v51 = vmax.f32 %v445_v41, 0.0  ;;  %v655_v52 = vmax.f32 %v437_v42, 0.0  ;;  %v440_v53 = vadd.f32 %v14835_v12, %v439_v47  ;;  %v14896_v9 = vld [vmem:[#allocation2 + $0x10] sm:$0xf] }
 0x113   :  { %v780_v54 = vor.u32 %v778_v36, %v777_v45  ;;  %v1067_v55 = vsel %vm14845_vm5, %v777_v45, 0  ;;  %v658_v56 = vmax.f32 %v448_v46, 0.0  ;;  %v1703_v57 = vrot.slane %v1701_v48, 4  ;;  %v1642_v42 = vld [vmem:[#allocation2 + $0x14] sm:$0x1] }
 0x114   :  { %v11385_v58 = vcombine.low %v1067_v55, %v1067_v55  ;;  %v773_v59 = vor.u32 %v771_v40, %v770_v50  ;;  %v1066_v60 = vsel %vm14845_vm5, %v770_v50, 0  ;;  %v656_v61 = vmax.f32 %v440_v53, 0.0  ;;  %v1565_v48 = vld [vmem:[#allocation2 + $0x18] sm:$0xf] }
 0x115   :  { %v1035_v62 = vsel %vm14845_vm5, 0, %v780_v54  ;;  %v11382_v63 = vcombine.low %v1066_v60, %v1066_v60  ;;  %v714_v0 = vpack.c.bf16 %v658_v56, %v657_v51  ;;  %v1706_v1 = vrot.slane %v1704_v49, 5  ;;  %v12723_v8 = vpop.f32.mrb[16].mxu0  ;;  %v1566_v54 = vld [vmem:[#allocation2 + $0x1c] sm:$0xf] }
 0x116   :  { %v11383_v4 = vcombine.low %v1035_v62, %v1035_v62  ;;  %v11384_v5 = vcombine.high %v1035_v62, %v1035_v62  ;;  %1473 = vst [vmem:[#allocation2 + $0x50] sm:$0x1] %v11385_v58  ;;  %v1034_v6 = vsel %vm14845_vm5, 0, %v773_v59  ;;  %v713_v7 = vpack.c.bf16 %v656_v61, %v655_v52  ;;  %v452_v15 = vpop.f32.mrb[17].mxu0 }
 0x117   :  { %v11380_v10 = vcombine.low %v1034_v6, %v1034_v6  ;;  %v11381_v11 = vcombine.high %v1034_v6, %v1034_v6  ;;  %1470 = vst [vmem:[#allocation2 + $0x44] sm:$0x1] %v11382_v63  ;;  %v789_v13 = vshrl.u32 %v714_v0, 16  ;;  %v792_v14 = vshll.u32 %v714_v0, 16  ;;  %v12724_v20 = vpop.f32.mrb[18].mxu0 }
 0x118   :  { %1471 = vst [vmem:[#allocation2 + $0x48] sm:$0xf] %v11383_v4  ;;  %1472 = vst [vmem:[#allocation2 + $0x4c] sm:$0xf] %v11384_v5  ;;  %v782_v16 = vshrl.u32 %v713_v7, 16  ;;  %v785_v17 = vshll.u32 %v713_v7, 16  ;;  %v461_v18 = vadd.f32 %v12723_v8, %v14835_v12  ;;  %v453_v19 = vadd.f32 %v14835_v12, %v452_v15 }
 0x119   :  { %1468 = vst [vmem:[#allocation2 + $0x3c] sm:$0xf] %v11380_v10  ;;  %1469 = vst [vmem:[#allocation2 + $0x40] sm:$0xf] %v11381_v11  ;;  %v791_v21 = vrot.slane %v789_v13, 7  ;;  %v464_v22 = vadd.f32 %v12724_v20, %v14835_v12  ;;  %v455_v23 = vpop.f32.mrb[19].mxu0  ;;  %v1707_v24 = vor.u32 %v1706_v1, %v1703_v57 }
 0x11a   :  { %v1710_v25 = vshll.u32 %v14896_v9, 16  ;;  %v784_v26 = vrot.slane %v782_v16, 7  ;;  %v661_v27 = vmax.f32 %v461_v18, 0.0  ;;  %v659_v28 = vmax.f32 %v453_v19, 0.0  ;;  %v1643_v18 = vld [vmem:[#allocation2 + $0x20] sm:$0x1] }
 0x11b   :  { %v456_v29 = vadd.f32 %v14835_v12, %v455_v23  ;;  %v794_v30 = vor.u32 %v792_v14, %v791_v21  ;;  %v1069_v31 = vsel %vm14845_vm5, %v791_v21, 0  ;;  %v662_v33 = vmax.f32 %v464_v22, 0.0 }
 0x11c   :  { %v14905_v34 = vrot.slane %v1707_v24, 4  ;;  %v11391_v35 = vcombine.low %v1069_v31, %v1069_v31  ;;  %v787_v36 = vor.u32 %v785_v17, %v784_v26  ;;  %v1068_v37 = vsel %vm14845_vm5, %v784_v26, 0 }
 0x11d   :  { %v660_v38 = vmax.f32 %v456_v29, 0.0  ;;  %v1037_v39 = vsel %vm14845_vm5, 0, %v794_v30  ;;  %v11388_v40 = vcombine.low %v1068_v37, %v1068_v37  ;;  %v716_v41 = vpack.c.bf16 %v662_v33, %v661_v27  ;;  %v12727_v49 = vpop.f32.mrb[20].mxu0  ;;  %v1568_v37 = vld [vmem:[#allocation2 + $0x28] sm:$0xf] }
 0x11e   :  { %v14911_v43 = vrot.slane %v1710_v25, 5  ;;  %v11389_v44 = vcombine.low %v1037_v39, %v1037_v39  ;;  %v11390_v45 = vcombine.high %v1037_v39, %v1037_v39  ;;  %1479 = vst [vmem:[#allocation2 + $0x68] sm:$0x1] %v11391_v35  ;;  %v1036_v46 = vsel %vm14845_vm5, 0, %v787_v36  ;;  %v468_v55 = vpop.f32.mrb[21].mxu0 }
 0x11f   :  { %v715_v47 = vpack.c.bf16 %v660_v38, %v659_v28  ;;  %v11386_v50 = vcombine.low %v1036_v46, %v1036_v46  ;;  %v11387_v51 = vcombine.high %v1036_v46, %v1036_v46  ;;  %1476 = vst [vmem:[#allocation2 + $0x5c] sm:$0x1] %v11388_v40  ;;  %v803_v52 = vshrl.u32 %v716_v41, 16  ;;  %v12728_v60 = vpop.f32.mrb[22].mxu0  ;;  %v1567_v36 = vld [vmem:[#allocation2 + $0x24] sm:$0xf] }
 0x120   :  { %v806_v53 = vshll.u32 %v716_v41, 16  ;;  %1477 = vst [vmem:[#allocation2 + $0x60] sm:$0xf] %v11389_v44  ;;  %1478 = vst [vmem:[#allocation2 + $0x64] sm:$0xf] %v11390_v45  ;;  %v1713_v58 = vsel %vm14812_vm2, %v14905_v34, %v14911_v43  ;;  %v1714_v59 = vshrl.u32 %v14896_v9, 16  ;;  %v477_v34 = vadd.f32 %v12727_v49, %v14835_v12 }
 0x121   :  { %v796_v56 = vshrl.u32 %v715_v47, 16  ;;  %v799_v57 = vshll.u32 %v715_v47, 16  ;;  %1474 = vst [vmem:[#allocation2 + $0x54] sm:$0xf] %v11386_v50  ;;  %1475 = vst [vmem:[#allocation2 + $0x58] sm:$0xf] %v11387_v51  ;;  %v469_v35 = vadd.f32 %v14835_v12, %v468_v55 }
 0x122   :  { %v805_v61 = vrot.slane %v803_v52, 7  ;;  %v1720_v62 = vshll.u32 %v1642_v42, 16  ;;  %v1725_v63 = vshrl.u32 %v1565_v48, 16  ;;  %v1728_v0 = vshll.u32 %v1565_v48, 16  ;;  %v471_v1 = vpop.f32.mrb[23].mxu0 }
 0x123   :  { %v798_v3 = vrot.slane %v796_v56, 7  ;;  %v1716_v4 = vrot.slane %v1714_v59, 4  ;;  %v1734_v5 = vshll.u32 %v1566_v54, 16  ;;  %v1738_v6 = vshrl.u32 %v1566_v54, 16  ;;  %v1644_v38 = vld [vmem:[#allocation2 + $0x2c] sm:$0x1] }
 0x124   :  { %v808_v7 = vor.u32 %v806_v53, %v805_v61  ;;  %v1071_v8 = vsel %vm14845_vm5, %v805_v61, 0  ;;  %v1722_v10 = vrot.slane %v1720_v62, 5  ;;  %v1727_v11 = vrot.slane %v1725_v63, 4  ;;  %v1569_v61 = vld [vmem:[#allocation2 + $0x30] sm:$0xf] }
 0x125   :  { %v11397_v13 = vcombine.low %v1071_v8, %v1071_v8  ;;  %v801_v9 = vor.u32 %v799_v57, %v798_v3  ;;  %v1070_v14 = vsel %vm14845_vm5, %v798_v3, 0  ;;  %v1717_v15 = vor.u32 %v1716_v4, %v14911_v43  ;;  %v14929_v25 = vpop.f32.mrb[24].mxu0  ;;  %v1570_v3 = vld [vmem:[#allocation2 + $0x34] sm:$0xf] }
 0x126   :  { %v1039_v16 = vsel %vm14845_vm5, 0, %v808_v7  ;;  %v11394_v17 = vcombine.low %v1070_v14, %v1070_v14  ;;  %v1730_v19 = vrot.slane %v1728_v0, 5  ;;  %v1736_v20 = vrot.slane %v1734_v5, 5  ;;  %v14931_v30 = vpop.f32.mrb[25].mxu0 }
 0x127   :  { %v11395_v21 = vcombine.low %v1039_v16, %v1039_v16  ;;  %v11396_v22 = vcombine.high %v1039_v16, %v1039_v16  ;;  %1485 = vst [vmem:[#allocation2 + $0x80] sm:$0x1] %v11397_v13  ;;  %v1038_v23 = vsel %vm14845_vm5, 0, %v801_v9  ;;  %v1718_v24 = vrot.slane %v1717_v15, 4  ;;  %v14937_v39 = vpop.f32.mrb[26].mxu0 }
 0x128   :  { %v11392_v26 = vcombine.low %v1038_v23, %v1038_v23  ;;  %v11393_v27 = vcombine.high %v1038_v23, %v1038_v23  ;;  %1482 = vst [vmem:[#allocation2 + $0x74] sm:$0x1] %v11394_v17  ;;  %v1731_v28 = vor.u32 %v1730_v19, %v1727_v11  ;;  %v1740_v29 = vrot.slane %v1738_v6, 4  ;;  %v14940_v44 = vpop.f32.mrb[27].mxu0 }
 0x129   :  { %1483 = vst [vmem:[#allocation2 + $0x78] sm:$0xf] %v11395_v21  ;;  %1484 = vst [vmem:[#allocation2 + $0x7c] sm:$0xf] %v11396_v22  ;;  %v1723_v31 = vsel %vm14812_vm2, %v1718_v24, %v1722_v10  ;;  %v1744_v33 = vshll.u32 %v1643_v18, 16  ;;  %v480_v43 = vadd.f32 %v12728_v60, %v14835_v12  ;;  %v665_v46 = vmax.f32 %v477_v34, 0.0 }
 0x12a   :  { %1480 = vst [vmem:[#allocation2 + $0x6c] sm:$0xf] %v11392_v26  ;;  %1481 = vst [vmem:[#allocation2 + $0x70] sm:$0xf] %v11393_v27  ;;  %v11465_v40 = vcombine.low %v1713_v58, %v1723_v31  ;;  %v1732_v41 = vrot.slane %v1731_v28, 4  ;;  %v1741_v42 = vor.u32 %v1740_v29, %v1736_v20  ;;  %v663_v47 = vmax.f32 %v469_v35, 0.0 }
 0x12b   :  { %v1746_v45 = vrot.slane %v1744_v33, 5  ;;  %v472_v48 = vadd.f32 %v14835_v12, %v471_v1  ;;  %v666_v51 = vmax.f32 %v480_v43, 0.0  ;;  %v1749_v52 = vshrl.u32 %v1567_v36, 16  ;;  %v1645_v29 = vld [vmem:[#allocation2 + $0x38] sm:$0x1] }
 0x12c   :  { %12786 = vmatmul.mubr.bf16.vlgmr.msra.gmra.mrb[64].mxu0 %v11465_v40  ;;  %v1737_v49 = vsel %vm14812_vm2, %v1732_v41, %v1736_v20  ;;  %v1742_v50 = vrot.slane %v1741_v42, 4  ;;  %v1752_v54 = vshll.u32 %v1567_v36, 16  ;;  %v1758_v55 = vshll.u32 %v1568_v37, 16 }
 0x12d   :  { %v664_v53 = vmax.f32 %v472_v48, 0.0  ;;  %v1762_v56 = vshrl.u32 %v1568_v37, 16  ;;  %v718_v58 = vpack.c.bf16 %v666_v51, %v665_v46  ;;  %v1751_v59 = vrot.slane %v1749_v52, 4  ;;  %v14947_v4 = vpop.f32.mrb[28].mxu0  ;;  %v1571_v37 = vld [vmem:[#allocation2 + $0x3c] sm:$0xf] }
 0x12e   :  { %v1747_v57 = vsel %vm14812_vm2, %v1742_v50, %v1746_v45  ;;  %v1768_v60 = vshll.u32 %v1644_v38, 16  ;;  %v1754_v0 = vrot.slane %v1752_v54, 5  ;;  %v1760_v1 = vrot.slane %v1758_v55, 5  ;;  %v14949_v10 = vpop.f32.mrb[29].mxu0  ;;  %v1646_v54 = vld [vmem:[#allocation2 + $0x44] sm:$0x1] }
 0x12f   :  { %v11466_v62 = vcombine.low %v1737_v49, %v1747_v57  ;;  %v717_v63 = vpack.c.bf16 %v664_v53, %v663_v47  ;;  %v817_v5 = vshrl.u32 %v718_v58, 16  ;;  %v820_v6 = vshll.u32 %v718_v58, 16  ;;  %v14951_v15 = vpop.f32.mrb[30].mxu0  ;;  %v1572_v53 = vld [vmem:[#allocation2 + $0x40] sm:$0xf] }
 0x130   :  { %v1764_v7 = vrot.slane %v1762_v56, 4  ;;  %v1770_v8 = vrot.slane %v1768_v60, 5  ;;  %v1755_v9 = vor.u32 %v1754_v0, %v1751_v59  ;;  %v1773_v14 = vshrl.u32 %v1569_v61, 16  ;;  %v14953_v20 = vpop.f32.mrb[31].mxu0  ;;  %v14975_v60 = vld [vmem:[#allocation2 + $0x48] sm:$0xf] }
 0x131   :  { %12789 = vmatprep.mubr.bf16.mxu0 %v11466_v62  ;;  %v810_v11 = vshrl.u32 %v717_v63, 16  ;;  %v813_v13 = vshll.u32 %v717_v63, 16  ;;  %v819_v16 = vrot.slane %v817_v5, 7  ;;  %v1776_v18 = vshll.u32 %v1569_v61, 16 }
 0x132   :  { %v1765_v17 = vor.u32 %v1764_v7, %v1760_v1  ;;  %v1782_v19 = vshll.u32 %v1570_v3, 16  ;;  %v1756_v22 = vrot.slane %v1755_v9, 4  ;;  %v1775_v23 = vrot.slane %v1773_v14, 4 }
 0x133   :  { %v812_v21 = vrot.slane %v810_v11, 7  ;;  %v1786_v24 = vshrl.u32 %v1570_v3, 16  ;;  %v822_v26 = vor.u32 %v820_v6, %v819_v16  ;;  %v1073_v27 = vsel %vm14845_vm5, %v819_v16, 0 }
 0x134   :  { %v1766_v28 = vrot.slane %v1765_v17, 4  ;;  %v1778_v31 = vrot.slane %v1776_v18, 5  ;;  %v11403_v33 = vcombine.low %v1073_v27, %v1073_v27  ;;  %v1761_v36 = vsel %vm14812_vm2, %v1756_v22, %v1760_v1 }
 0x135   :  { %v815_v34 = vor.u32 %v813_v13, %v812_v21  ;;  %v1072_v35 = vsel %vm14845_vm5, %v812_v21, 0  ;;  %v1041_v38 = vsel %vm14845_vm5, 0, %v822_v26  ;;  %v14967_v48 = vpop.f32.mrb[32].mxu0  ;;  %v1784_v52 = vrot.slane %v1782_v19, 5  ;;  %v1574_v26 = vld [vmem:[#allocation2 + $0x4c] sm:$0xf] }
 0x136   :  { %v11400_v40 = vcombine.low %v1072_v35, %v1072_v35  ;;  %v1771_v41 = vsel %vm14812_vm2, %v1766_v28, %v1770_v8  ;;  %v1779_v42 = vor.u32 %v1778_v31, %v1775_v23  ;;  %v11401_v43 = vcombine.low %v1041_v38, %v1041_v38  ;;  %1491 = vst [vmem:[#allocation2 + $0x98] sm:$0x1] %v11403_v33  ;;  %v14969_v55 = vpop.f32.mrb[33].mxu0 }
 0x137   :  { %v11402_v45 = vcombine.high %v1041_v38, %v1041_v38  ;;  %v1040_v46 = vsel %vm14845_vm5, 0, %v815_v34  ;;  %v11467_v47 = vcombine.low %v1761_v36, %v1771_v41  ;;  %v1788_v56 = vrot.slane %v1786_v24, 4  ;;  %v14977_v61 = vpop.f32.mrb[34].mxu0  ;;  %v1647_v34 = vld [vmem:[#allocation2 + $0x50] sm:$0x1] }
 0x138   :  { %v11398_v49 = vcombine.low %v1040_v46, %v1040_v46  ;;  %v11399_v50 = vcombine.high %v1040_v46, %v1040_v46  ;;  %1488 = vst [vmem:[#allocation2 + $0x8c] sm:$0x1] %v11400_v40  ;;  %v1780_v51 = vrot.slane %v1779_v42, 4  ;;  %1489 = vst [vmem:[#allocation2 + $0x90] sm:$0xf] %v11401_v43  ;;  %v1792_v57 = vshll.u32 %v1645_v29, 16 }
 0x139   :  { %1490 = vst [vmem:[#allocation2 + $0x94] sm:$0xf] %v11402_v45  ;;  %12790 = vmatmul.mubr.bf16.gmra.mrb[68].mxu0 %v11467_v47  ;;  %v493_v58 = vadd.f32 %v14929_v25, %v14835_v12  ;;  %v485_v59 = vadd.f32 %v14835_v12, %v14931_v30  ;;  %v496_v63 = vadd.f32 %v14937_v39, %v14835_v12  ;;  %v1797_v1 = vshrl.u32 %v1571_v37, 16  ;;  %v14985_v25 = vpop.f32.mrb[35].mxu0 }
 0x13a   :  { %1486 = vst [vmem:[#allocation2 + $0x84] sm:$0xf] %v11398_v49  ;;  %1487 = vst [vmem:[#allocation2 + $0x88] sm:$0xf] %v11399_v50  ;;  %v1785_v62 = vsel %vm14812_vm2, %v1780_v51, %v1784_v52  ;;  %v488_v0 = vadd.f32 %v14835_v12, %v14940_v44  ;;  %v1789_v3 = vor.u32 %v1788_v56, %v1784_v52  ;;  %v1794_v30 = vrot.slane %v1792_v57, 5 }
 0x13b   :  { %v669_v5 = vmax.f32 %v493_v58, 0.0  ;;  %v667_v6 = vmax.f32 %v485_v59, 0.0  ;;  %v670_v7 = vmax.f32 %v496_v63, 0.0  ;;  %v1799_v11 = vrot.slane %v1797_v1, 4  ;;  %v1575_v63 = vld [vmem:[#allocation2 + $0x54] sm:$0xf] }
 0x13c   :  { %v668_v8 = vmax.f32 %v488_v0, 0.0  ;;  %v1800_v13 = vshll.u32 %v1571_v37, 16  ;;  %v1790_v9 = vrot.slane %v1789_v3, 4  ;;  %v1806_v14 = vshll.u32 %v1572_v53, 16 }
 0x13d   :  { %v1810_v16 = vshrl.u32 %v1572_v53, 16  ;;  %v1816_v17 = vshll.u32 %v1646_v54, 16  ;;  %v720_v18 = vpack.c.bf16 %v670_v7, %v669_v5  ;;  %v1821_v44 = vshrl.u32 %v14975_v60, 16  ;;  %v14990_v27 = vpop.f32.mrb[36].mxu0 }
 0x13e   :  { %v719_v39 = vpack.c.bf16 %v668_v8, %v667_v6  ;;  %v1802_v19 = vrot.slane %v1800_v13, 5  ;;  %v1795_v21 = vsel %vm14812_vm2, %v1790_v9, %v1794_v30  ;;  %v1808_v22 = vrot.slane %v1806_v14, 5  ;;  %v14992_v35 = vpop.f32.mrb[37].mxu0 }
 0x13f   :  { %v1812_v23 = vrot.slane %v1810_v16, 4  ;;  %v1818_v24 = vrot.slane %v1816_v17, 5  ;;  %v11468_v28 = vcombine.low %v1785_v62, %v1795_v21  ;;  %v831_v29 = vshrl.u32 %v720_v18, 16  ;;  %v14994_v41 = vpop.f32.mrb[38].mxu0  ;;  %v1576_v17 = vld [vmem:[#allocation2 + $0x58] sm:$0xf] }
 0x140   :  { %v834_v31 = vshll.u32 %v720_v18, 16  ;;  %v824_v33 = vshrl.u32 %v719_v39, 16  ;;  %v827_v36 = vshll.u32 %v719_v39, 16  ;;  %v1803_v37 = vor.u32 %v1802_v19, %v1799_v11  ;;  %v14997_v47 = vpop.f32.mrb[39].mxu0 }
 0x141   :  { %v1813_v38 = vor.u32 %v1812_v23, %v1808_v22  ;;  %v1823_v40 = vrot.slane %v1821_v44, 4  ;;  %12793 = vmatprep.mubr.bf16.mxu0 %v11468_v28  ;;  %v833_v42 = vrot.slane %v831_v29, 7  ;;  %v1824_v45 = vshll.u32 %v14975_v60, 16  ;;  %v1577_v23 = vld [vmem:[#allocation2 + $0x60] sm:$0xf] }
 0x142   :  { %v826_v43 = vrot.slane %v824_v33, 7  ;;  %v1830_v46 = vshll.u32 %v1574_v26, 16  ;;  %v1804_v49 = vrot.slane %v1803_v37, 4  ;;  %v1834_v51 = vshrl.u32 %v1574_v26, 16 }
 0x143   :  { %v1814_v50 = vrot.slane %v1813_v38, 4  ;;  %v1840_v52 = vshll.u32 %v1647_v34, 16  ;;  %v836_v53 = vor.u32 %v834_v31, %v833_v42  ;;  %v1075_v54 = vsel %vm14845_vm5, %v833_v42, 0 }
 0x144   :  { %v829_v56 = vor.u32 %v827_v36, %v826_v43  ;;  %v1074_v57 = vsel %vm14845_vm5, %v826_v43, 0  ;;  %v11409_v58 = vcombine.low %v1075_v54, %v1075_v54  ;;  %v1809_v60 = vsel %vm14812_vm2, %v1804_v49, %v1808_v22  ;;  %v1648_v22 = vld [vmem:[#allocation2 + $0x5c] sm:$0x1] }
 0x145   :  { %v11406_v59 = vcombine.low %v1074_v57, %v1074_v57  ;;  %v1819_v62 = vsel %vm14812_vm2, %v1814_v50, %v1818_v24  ;;  %v1043_v0 = vsel %vm14845_vm5, 0, %v836_v53  ;;  %v1826_v30 = vrot.slane %v1824_v45, 5  ;;  %v15011_v11 = vpop.f32.mrb[40].mxu0  ;;  %v1578_v50 = vld [vmem:[#allocation2 + $0x64] sm:$0xf] }
 0x146   :  { %v1042_v1 = vsel %vm14845_vm5, 0, %v829_v56  ;;  %v11469_v3 = vcombine.low %v1809_v60, %v1819_v62  ;;  %v11407_v5 = vcombine.low %v1043_v0, %v1043_v0  ;;  %v11408_v6 = vcombine.high %v1043_v0, %v1043_v0  ;;  %1497 = vst [vmem:[#allocation2 + $0xb0] sm:$0x1] %v11409_v58  ;;  %v15013_v18 = vpop.f32.mrb[41].mxu0 }
 0x147   :  { %v11404_v7 = vcombine.low %v1042_v1, %v1042_v1  ;;  %v11405_v8 = vcombine.high %v1042_v1, %v1042_v1  ;;  %1494 = vst [vmem:[#allocation2 + $0xa4] sm:$0x1] %v11406_v59  ;;  %v1827_v13 = vor.u32 %v1826_v30, %v1823_v40  ;;  %v1832_v9 = vrot.slane %v1830_v46, 5  ;;  %v15023_v24 = vpop.f32.mrb[42].mxu0 }
 0x148   :  { %12794 = vmatmul.mubr.bf16.gmra.mrb[72].mxu0 %v11469_v3  ;;  %v1836_v14 = vrot.slane %v1834_v51, 4  ;;  %v1842_v16 = vrot.slane %v1840_v52, 5  ;;  %1495 = vst [vmem:[#allocation2 + $0xa8] sm:$0xf] %v11407_v5  ;;  %1496 = vst [vmem:[#allocation2 + $0xac] sm:$0xf] %v11408_v6  ;;  %v509_v39 = vadd.f32 %v14947_v4, %v14835_v12  ;;  %v501_v19 = vadd.f32 %v14835_v12, %v14949_v10 }
 0x149   :  { %1492 = vst [vmem:[#allocation2 + $0x9c] sm:$0xf] %v11404_v7  ;;  %1493 = vst [vmem:[#allocation2 + $0xa0] sm:$0xf] %v11405_v8  ;;  %v512_v44 = vadd.f32 %v14951_v15, %v14835_v12  ;;  %v504_v21 = vadd.f32 %v14835_v12, %v14953_v20  ;;  %v1828_v26 = vrot.slane %v1827_v13, 4  ;;  %v1845_v29 = vshrl.u32 %v1575_v63, 16 }
 0x14a   :  { %v1837_v28 = vor.u32 %v1836_v14, %v1832_v9  ;;  %v1848_v31 = vshll.u32 %v1575_v63, 16  ;;  %v15025_v33 = vpop.f32.mrb[43].mxu0  ;;  %v673_v4 = vmax.f32 %v509_v39, 0.0  ;;  %v671_v34 = vmax.f32 %v501_v19, 0.0  ;;  %v1649_v6 = vld [vmem:[#allocation2 + $0x68] sm:$0x1] }
 0x14b   :  { %v674_v36 = vmax.f32 %v512_v44, 0.0  ;;  %v672_v10 = vmax.f32 %v504_v21, 0.0  ;;  %v1833_v15 = vsel %vm14812_vm2, %v1828_v26, %v1832_v9  ;;  %v1847_v38 = vrot.slane %v1845_v29, 4 }
 0x14c   :  { %v1838_v37 = vrot.slane %v1837_v28, 4  ;;  %v1850_v12 = vrot.slane %v1848_v31, 5  ;;  %v1854_v42 = vshll.u32 %v1576_v17, 16  ;;  %v1858_v43 = vshrl.u32 %v1576_v17, 16  ;;  %v1579_v31 = vld [vmem:[#allocation2 + $0x6c] sm:$0xf] }
 0x14d   :  { %v722_v20 = vpack.c.bf16 %v674_v36, %v673_v4  ;;  %v721_v40 = vpack.c.bf16 %v672_v10, %v671_v34  ;;  %v1864_v49 = vshll.u32 %v1648_v22, 16  ;;  %v1869_v51 = vshrl.u32 %v1577_v23, 16  ;;  %v15031_v57 = vpop.f32.mrb[44].mxu0 }
 0x14e   :  { %v1843_v45 = vsel %vm14812_vm2, %v1838_v37, %v1842_v16  ;;  %v1851_v46 = vor.u32 %v1850_v12, %v1847_v38  ;;  %v1856_v60 = vrot.slane %v1854_v42, 5  ;;  %v1860_v62 = vrot.slane %v1858_v43, 4  ;;  %v15039_v17 = vpop.f32.mrb[45].mxu0 }
 0x14f   :  { %v11470_v52 = vcombine.low %v1833_v15, %v1843_v45  ;;  %v845_v53 = vshrl.u32 %v722_v20, 16  ;;  %v848_v54 = vshll.u32 %v722_v20, 16  ;;  %v838_v56 = vshrl.u32 %v721_v40, 16  ;;  %v15041_v22 = vpop.f32.mrb[46].mxu0  ;;  %v15056_v45 = vld [vmem:[%s17091_s2] ss:$0 sm:$0xff] }
 0x150   :  { %v841_v58 = vshll.u32 %v721_v40, 16  ;;  %v1852_v59 = vrot.slane %v1851_v46, 4  ;;  %v1866_v1 = vrot.slane %v1864_v49, 5  ;;  %v1871_v3 = vrot.slane %v1869_v51, 4  ;;  %v15047_v4 = vpop.f32.mrb[47].mxu0 }
 0x151   :  { %12797 = vmatprep.mubr.bf16.mxu0 %v11470_v52  ;;  %v847_v63 = vrot.slane %v845_v53, 7  ;;  %v840_v0 = vrot.slane %v838_v56, 7  ;;  %v1861_v5 = vor.u32 %v1860_v62, %v1856_v60  ;;  %v1872_v7 = vshll.u32 %v1577_v23, 16  ;;  %v1580_v40 = vld [vmem:[#allocation2 + $0x70] sm:$0xf] }
 0x152   :  { %v1857_v30 = vsel %vm14812_vm2, %v1852_v59, %v1856_v60  ;;  %v1878_v8 = vshll.u32 %v1578_v50, 16  ;;  %v1882_v29 = vshrl.u32 %v1578_v50, 16  ;;  %v1888_v20 = vshll.u32 %v1649_v6, 16  ;;  %v1650_v51 = vld [vmem:[#allocation2 + $0x74] sm:$0x1] }
 0x153   :  { %v850_v13 = vor.u32 %v848_v54, %v847_v63  ;;  %v1077_v9 = vsel %vm14845_vm5, %v847_v63, 0  ;;  %v843_v14 = vor.u32 %v841_v58, %v840_v0  ;;  %v1076_v16 = vsel %vm14845_vm5, %v840_v0, 0 }
 0x154   :  { %v11415_v39 = vcombine.low %v1077_v9, %v1077_v9  ;;  %v11412_v19 = vcombine.low %v1076_v16, %v1076_v16  ;;  %v1862_v44 = vrot.slane %v1861_v5, 4  ;;  %v1874_v21 = vrot.slane %v1872_v7, 5  ;;  %v15076_v16 = vld [vmem:[#allocation2 + $0x7c] sm:$0xf] }
 0x155   :  { %v1045_v23 = vsel %vm14845_vm5, 0, %v850_v13  ;;  %v1044_v26 = vsel %vm14845_vm5, 0, %v843_v14  ;;  %v1880_v28 = vrot.slane %v1878_v8, 5  ;;  %v1884_v12 = vrot.slane %v1882_v29, 4  ;;  %v15051_v42 = vpop.f32.mrb[48].mxu0 }
 0x156   :  { %v11413_v34 = vcombine.low %v1045_v23, %v1045_v23  ;;  %v11414_v36 = vcombine.high %v1045_v23, %v1045_v23  ;;  %1503 = vst [vmem:[#allocation2 + $0xc8] sm:$0x1] %v11415_v39  ;;  %v11410_v10 = vcombine.low %v1044_v26, %v1044_v26  ;;  %v11411_v15 = vcombine.high %v1044_v26, %v1044_v26  ;;  %v15064_v52 = vpop.f32.mrb[49].mxu0 }
 0x157   :  { %1500 = vst [vmem:[#allocation2 + $0xbc] sm:$0x1] %v11412_v19  ;;  %v1867_v37 = vsel %vm14812_vm2, %v1862_v44, %v1866_v1  ;;  %v1875_v38 = vor.u32 %v1874_v21, %v1871_v3  ;;  %v525_v46 = vadd.f32 %v15056_v45, %v14967_v48  ;;  %v517_v49 = vadd.f32 %v15056_v45, %v14969_v55  ;;  %v15068_v59 = vpop.f32.mrb[50].mxu0 }
 0x158   :  { %1501 = vst [vmem:[#allocation2 + $0xc0] sm:$0xf] %v11413_v34  ;;  %1502 = vst [vmem:[#allocation2 + $0xc4] sm:$0xf] %v11414_v36  ;;  %v11471_v43 = vcombine.low %v1857_v30, %v1867_v37  ;;  %v528_v50 = vadd.f32 %v15056_v45, %v14977_v61  ;;  %v1885_v54 = vor.u32 %v1884_v12, %v1880_v28  ;;  %v1890_v56 = vrot.slane %v1888_v20, 5  ;;  %v15070_v55 = vpop.f32.mrb[51].mxu0 }
 0x159   :  { %1498 = vst [vmem:[#allocation2 + $0xb4] sm:$0xf] %v11410_v10  ;;  %1499 = vst [vmem:[#allocation2 + $0xb8] sm:$0xf] %v11411_v15  ;;  %v1876_v53 = vrot.slane %v1875_v38, 4  ;;  %v520_v58 = vadd.f32 %v15056_v45, %v14985_v25  ;;  %v677_v60 = vmax.f32 %v525_v46, 0.0 }
 0x15a   :  { %12798 = vmatmul.mubr.bf16.gmra.mrb[76].mxu0 %v11471_v43  ;;  %v675_v48 = vmax.f32 %v517_v49, 0.0  ;;  %v678_v62 = vmax.f32 %v528_v50, 0.0  ;;  %v1893_v63 = vshrl.u32 %v1579_v31, 16  ;;  %v1886_v0 = vrot.slane %v1885_v54, 4  ;;  %v1581_v30 = vld [vmem:[#allocation2 + $0x78] sm:$0xf] }
 0x15b   :  { %v1881_v61 = vsel %vm14812_vm2, %v1876_v53, %v1880_v28  ;;  %v676_v1 = vmax.f32 %v520_v58, 0.0  ;;  %v1896_v3 = vshll.u32 %v1579_v31, 16  ;;  %v1902_v7 = vshll.u32 %v1580_v40, 16  ;;  %v14171_v43 = vld [vmem:[%s17090_s3] sm:$0xff]  }
 0x15c   :  { %v724_v5 = vpack.c.bf16 %v678_v62, %v677_v60  ;;  %v1895_v6 = vrot.slane %v1893_v63, 4  ;;  %v1906_v25 = vshrl.u32 %v1580_v40, 16  ;;  %v1891_v8 = vsel %vm14812_vm2, %v1886_v0, %v1890_v56  ;;  %v1651_v50 = vld [vmem:[#allocation2 + $0x80] sm:$0x1]  ;;  %12849 = vmatprep.subr.bf16.mxu0 %v14171_v43 }
 0x15d   :  { %v723_v13 = vpack.c.bf16 %v676_v1, %v675_v48  ;;  %v1898_v9 = vrot.slane %v1896_v3, 5  ;;  %v1912_v14 = vshll.u32 %v1650_v51, 16  ;;  %v11472_v39 = vcombine.low %v1881_v61, %v1891_v8  ;;  %v15078_v31 = vpop.f32.mrb[52].mxu0  ;;  %v1583_v3 = vld [vmem:[#allocation2 + $0x84] sm:$0xf]  ;;  %12850 = vmatpush3.bf16.msra.mxu0 %v14171_v43 }
 0x15e   :  { %v859_v19 = vshrl.u32 %v724_v5, 16  ;;  %v862_v44 = vshll.u32 %v724_v5, 16  ;;  %v1904_v21 = vrot.slane %v1902_v7, 5  ;;  %v1908_v29 = vrot.slane %v1906_v25, 4  ;;  %v15081_v40 = vpop.f32.mrb[53].mxu0 }
 0x15f   :  { %v852_v23 = vshrl.u32 %v723_v13, 16  ;;  %v855_v26 = vshll.u32 %v723_v13, 16  ;;  %v1899_v28 = vor.u32 %v1898_v9, %v1895_v6  ;;  %12801 = vmatprep.mubr.bf16.mxu0 %v11472_v39  ;;  %v1914_v36 = vrot.slane %v1912_v14, 5  ;;  %v15088_v54 = vpop.f32.mrb[54].mxu0 }
 0x160   :  { %v861_v34 = vrot.slane %v859_v19, 7  ;;  %v1917_v10 = vshrl.u32 %v1581_v30, 16  ;;  %v1920_v15 = vshll.u32 %v1581_v30, 16  ;;  %v1909_v12 = vor.u32 %v1908_v29, %v1904_v21  ;;  %v15094_v62 = vpop.f32.mrb[55].mxu0  ;;  %v14173_v30 = vld [vmem:[%s17090_s3 + $0x8] sm:$0xff]  }
 0x161   :  { %v854_v37 = vrot.slane %v852_v23, 7  ;;  %v1900_v38 = vrot.slane %v1899_v28, 4  ;;  %v1926_v20 = vshll.u32 %v15076_v16, 16  ;;  %12851 = vmatprep.subr.bf16.mxu0 %v14173_v30  ;;  %v1930_v19 = vshrl.u32 %v15076_v16, 16  ;;  %v1652_v23 = vld [vmem:[#allocation2 + $0x8c] sm:$0x1] }
 0x162   :  { %v864_v46 = vor.u32 %v862_v44, %v861_v34  ;;  %v1079_v49 = vsel %vm14845_vm5, %v861_v34, 0  ;;  %v1919_v51 = vrot.slane %v1917_v10, 4  ;;  %v1922_v53 = vrot.slane %v1920_v15, 5  ;;  %12852 = vmatpush3.bf16.msra.mxu0 %v14173_v30  ;;  %v15133_v30 = vld [vmem:[#allocation2 + $0x94] sm:$0xf] }
 0x163   :  { %v11421_v56 = vcombine.low %v1079_v49, %v1079_v49  ;;  %v857_v58 = vor.u32 %v855_v26, %v854_v37  ;;  %v1078_v60 = vsel %vm14845_vm5, %v854_v37, 0  ;;  %v1905_v48 = vsel %vm14812_vm2, %v1900_v38, %v1904_v21 }
 0x164   :  { %v1047_v63 = vsel %vm14845_vm5, 0, %v864_v46  ;;  %v11418_v61 = vcombine.low %v1078_v60, %v1078_v60  ;;  %v1910_v0 = vrot.slane %v1909_v12, 4  ;;  %v1923_v1 = vor.u32 %v1922_v53, %v1919_v51 }
 0x165   :  { %v11419_v5 = vcombine.low %v1047_v63, %v1047_v63  ;;  %v11420_v6 = vcombine.high %v1047_v63, %v1047_v63  ;;  %1515 = vst [vmem:[#allocation2 + $0xf8] sm:$0x1] %v11421_v56  ;;  %v1046_v7 = vsel %vm14845_vm5, 0, %v857_v58  ;;  %v15103_v25 = vrot.slane %v1926_v20, 5  ;;  %v15110_v26 = vpop.f32.mrb[56].mxu0 }
 0x166   :  { %v11416_v8 = vcombine.low %v1046_v7, %v1046_v7  ;;  %v11417_v13 = vcombine.high %v1046_v7, %v1046_v7  ;;  %1512 = vst [vmem:[#allocation2 + $0xec] sm:$0x1] %v11418_v61  ;;  %v1915_v9 = vsel %vm14812_vm2, %v1910_v0, %v1914_v36  ;;  %v1924_v14 = vrot.slane %v1923_v1, 4  ;;  %v1584_v36 = vld [vmem:[#allocation2 + $0x88] sm:$0xf]  ;;  %v15123_v10 = vpop.f32.mrb[57].mxu0 }
 0x167   :  { %1513 = vst [vmem:[#allocation2 + $0xf0] sm:$0xf] %v11419_v5  ;;  %1514 = vst [vmem:[#allocation2 + $0xf4] sm:$0xf] %v11420_v6  ;;  %v11473_v39 = vcombine.low %v1905_v48, %v1915_v9  ;;  %v1936_v44 = vshll.u32 %v1651_v50, 16  ;;  %v541_v21 = vadd.f32 %v15056_v45, %v14990_v27  ;;  %v533_v29 = vadd.f32 %v15056_v45, %v14992_v35  ;;  %v15125_v20 = vpop.f32.mrb[58].mxu0 }
 0x168   :  { %1510 = vst [vmem:[#allocation2 + $0xe4] sm:$0xf] %v11416_v8  ;;  %1511 = vst [vmem:[#allocation2 + $0xe8] sm:$0xf] %v11417_v13  ;;  %v1929_v28 = vsel %vm14812_vm2, %v1924_v14, %v15103_v25  ;;  %v544_v34 = vadd.f32 %v15056_v45, %v14994_v41  ;;  %v536_v16 = vadd.f32 %v15056_v45, %v14997_v47  ;;  %v15121_v27 = vld [vmem:[#allocation2 + $0x90] sm:$0xf] }
 0x169   :  { %12802 = vmatmul.mubr.bf16.gmra.mrb[80].mxu0 %v11473_v39  ;;  %v1932_v15 = vrot.slane %v1930_v19, 4  ;;  %v1938_v37 = vrot.slane %v1936_v44, 5  ;;  %v681_v38 = vmax.f32 %v541_v21, 0.0  ;;  %v1941_v12 = vshrl.u32 %v1583_v3, 16  ;;  %v14176_v35 = vld [vmem:[%s17090_s3 + $0x10] sm:$0xff]   ;;  %v15130_v49 = vpop.f32.mrb[59].mxu0 }
 0x16a   :  { %v679_v41 = vmax.f32 %v533_v29, 0.0  ;;  %v682_v43 = vmax.f32 %v544_v34, 0.0  ;;  %v680_v47 = vmax.f32 %v536_v16, 0.0  ;;  %v1944_v46 = vshll.u32 %v1583_v3, 16  ;;  %12853 = vmatprep.subr.bf16.mxu0 %v14176_v35  ;;  %v15139_v8 = vld [vmem:[%s17090_s3 + $0x108] sm:$0xff]  }
 0x16b   :  { %v1933_v50 = vor.u32 %v1932_v15, %v15103_v25  ;;  %v1943_v51 = vrot.slane %v1941_v12, 4  ;;  %v1950_v53 = vshll.u32 %v1584_v36, 16  ;;  %v1954_v56 = vshrl.u32 %v1584_v36, 16  ;;  %12854 = vmatpush3.bf16.msra.mxu0 %v14176_v35 }
 0x16c   :  { %v726_v58 = vpack.c.bf16 %v682_v43, %v681_v38  ;;  %v725_v60 = vpack.c.bf16 %v680_v47, %v679_v41  ;;  %v1946_v48 = vrot.slane %v1944_v46, 5  ;;  %v1960_v63 = vshll.u32 %v1652_v23, 16  ;;  %v1653_v46 = vld [vmem:[#allocation2 + $0x98] sm:$0x1] }
 0x16d   :  { %v1934_v61 = vrot.slane %v1933_v50, 4  ;;  %v1952_v0 = vrot.slane %v1950_v53, 5  ;;  %v1956_v1 = vrot.slane %v1954_v56, 4  ;;  %v1965_v3 = vshrl.u32 %v15121_v27, 16  ;;  %v14347_v50 = vld [vmem:[%s17090_s3 + $0x100] sm:$0xff]   ;;  %v14178_v53 = vld [vmem:[%s17090_s3 + $0x18] sm:$0xff]  }
 0x16e   :  { %v873_v5 = vshrl.u32 %v726_v58, 16  ;;  %v876_v6 = vshll.u32 %v726_v58, 16  ;;  %v866_v7 = vshrl.u32 %v725_v60, 16  ;;  %v869_v25 = vshll.u32 %v725_v60, 16  ;;  %v14156_v34 = vld [vmem:[#allocation2 + $0xf0] sm:$0xff]   ;;  %12855 = vmatprep.subr.bf16.mxu0 %v14178_v53 }
 0x16f   :  { %v1939_v13 = vsel %vm14812_vm2, %v1934_v61, %v1938_v37  ;;  %v1947_v9 = vor.u32 %v1946_v48, %v1943_v51  ;;  %v1957_v14 = vor.u32 %v1956_v1, %v1952_v0  ;;  %v1962_v39 = vrot.slane %v1960_v63, 5  ;;  %v14154_v19 = vld [vmem:[#allocation2 + $0xe4] sm:$0xff]   ;;  %v15156_v51 = vpop.f32.mrb[60].mxu0  ;;  %v14161_v63 = vld [vmem:[%s17090_s3 + $0x110] sm:$0xff]   ;;  %12856 = vmatpush3.bf16.msra.mxu0 %v14178_v53 }
 0x170   :  { %v11474_v44 = vcombine.low %v1929_v28, %v1939_v13  ;;  %v875_v21 = vrot.slane %v873_v5, 7  ;;  %v868_v23 = vrot.slane %v866_v7, 7  ;;  %v1967_v29 = vrot.slane %v1965_v3, 4  ;;  %13057 = vmatprep.mubr.bf16.mxu1 %v14154_v19  ;;  %v15169_v61 = vpop.f32.mrb[61].mxu0  ;;  %v14164_v19 = vld [vmem:[%s17090_s3 + $0x118] sm:$0xff]  }
 0x171   :  { %v1948_v16 = vrot.slane %v1947_v9, 4  ;;  %v1958_v36 = vrot.slane %v1957_v14, 4  ;;  %v1968_v15 = vshll.u32 %v15121_v27, 16  ;;  %v1974_v38 = vshll.u32 %v15133_v30, 16  ;;  %13058 = vmatmul.mubr.bf16.vlgmr.msra.gmra.mrb[0].mxu1 %v14156_v34  ;;  %v15171_v7 = vpop.f32.mrb[62].mxu0 }
 0x172   :  { %12805 = vmatprep.mubr.bf16.mxu0 %v11474_v44  ;;  %v878_v12 = vor.u32 %v876_v6, %v875_v21  ;;  %v1081_v37 = vsel %vm14845_vm5, %v875_v21, 0  ;;  %v871_v35 = vor.u32 %v869_v25, %v868_v23  ;;  %v1080_v28 = vsel %vm14845_vm5, %v868_v23, 0  ;;  %13090 = vmatpush3.bf16.msra.mxu1 %v14347_v50  ;;  %v1587_v6 = vld [vmem:[#allocation2 + $0x9c] sm:$0xf]  ;;  %v14181_v25 = vld [vmem:[%s17090_s3 + $0x20] sm:$0xff]   ;;  %v15180_v44 = vpop.f32.mrb[63].mxu0 }
 0x173   :  { %v11427_v41 = vcombine.low %v1081_v37, %v1081_v37  ;;  %v11424_v43 = vcombine.low %v1080_v28, %v1080_v28  ;;  %v1953_v47 = vsel %vm14812_vm2, %v1948_v16, %v1952_v0  ;;  %v1963_v27 = vsel %vm14812_vm2, %v1958_v36, %v1962_v39  ;;  %13091 = vmatprep.subr.bf16.mxu1 %v15139_v8  ;;  %v1588_v34 = vld [vmem:[#allocation2 + $0xa0] sm:$0xf]  ;;  %v1654_v16 = vld [vmem:[#allocation2 + $0xa4] sm:$0x1]  ;;  %v15191_v37 = vld [vmem:[#allocation2 + $0xa8] sm:$0xf] }
 0x174   :  { %v1049_v56 = vsel %vm14845_vm5, 0, %v878_v12  ;;  %v1048_v58 = vsel %vm14845_vm5, 0, %v871_v35  ;;  %v11475_v60 = vcombine.low %v1953_v47, %v1963_v27  ;;  %v1970_v48 = vrot.slane %v1968_v15, 5  ;;  %12857 = vmatprep.subr.bf16.mxu0 %v14181_v25 }
 0x175   :  { %v11425_v0 = vcombine.low %v1049_v56, %v1049_v56  ;;  %v11426_v1 = vcombine.high %v1049_v56, %v1049_v56  ;;  %1521 = vst [vmem:[#allocation2 + $0x110] sm:$0x1] %v11427_v41  ;;  %v11422_v3 = vcombine.low %v1048_v58, %v1048_v58  ;;  %v11423_v5 = vcombine.high %v1048_v58, %v1048_v58 }
 0x176   :  { %1518 = vst [vmem:[#allocation2 + $0x104] sm:$0x1] %v11424_v43  ;;  %12806 = vmatmul.mubr.bf16.gmra.mrb[84].mxu0 %v11475_v60  ;;  %v1971_v13 = vor.u32 %v1970_v48, %v1967_v29  ;;  %v1976_v9 = vrot.slane %v1974_v38, 5  ;;  %v1978_v14 = vshrl.u32 %v15133_v30, 16  ;;  %v1984_v39 = vshll.u32 %v1653_v46, 16  ;;  %13092 = vmatpush3.bf16.msra.mxu1 %v15139_v8  ;;  %v14167_v48 = vld [vmem:[%s17090_s3 + $0x120] sm:$0xff]  }
 0x177   :  { %1519 = vst [vmem:[#allocation2 + $0x108] sm:$0xf] %v11425_v0  ;;  %1520 = vst [vmem:[#allocation2 + $0x10c] sm:$0xf] %v11426_v1  ;;  %v557_v21 = vadd.f32 %v15056_v45, %v15011_v11  ;;  %v549_v23 = vadd.f32 %v15056_v45, %v15013_v18  ;;  %v560_v30 = vadd.f32 %v15056_v45, %v15023_v24  ;;  %v1989_v12 = vshrl.u32 %v1587_v6, 16  ;;  %v14183_v24 = vld [vmem:[%s17090_s3 + $0x28] sm:$0xff]  }
 0x178   :  { %1516 = vst [vmem:[#allocation2 + $0xfc] sm:$0xf] %v11422_v3  ;;  %1517 = vst [vmem:[#allocation2 + $0x100] sm:$0xf] %v11423_v5  ;;  %v552_v29 = vadd.f32 %v15056_v45, %v15025_v33  ;;  %v1972_v36 = vrot.slane %v1971_v13, 4  ;;  %v1980_v15 = vrot.slane %v1978_v14, 4  ;;  %13093 = vmatprep.subr.bf16.mxu1 %v14161_v63  ;;  %12858 = vmatpush3.bf16.msra.mxu0 %v14181_v25 }
 0x179   :  { %v1986_v38 = vrot.slane %v1984_v39, 5  ;;  %v685_v11 = vmax.f32 %v557_v21, 0.0  ;;  %v683_v18 = vmax.f32 %v549_v23, 0.0  ;;  %v686_v35 = vmax.f32 %v560_v30, 0.0  ;;  %12859 = vmatprep.subr.bf16.mxu0 %v14183_v24  ;;  %v1590_v14 = vld [vmem:[#allocation2 + $0xac] sm:$0xf] }
 0x17a   :  { %v684_v28 = vmax.f32 %v552_v29, 0.0  ;;  %v1977_v33 = vsel %vm14812_vm2, %v1972_v36, %v1976_v9  ;;  %v1981_v8 = vor.u32 %v1980_v15, %v1976_v9  ;;  %v1991_v41 = vrot.slane %v1989_v12, 4  ;;  %13094 = vmatpush3.bf16.msra.mxu1 %v14161_v63  ;;  %v14170_v39 = vld [vmem:[%s17090_s3 + $0x128] sm:$0xff]  }
 0x17b   :  { %v1992_v43 = vshll.u32 %v1587_v6, 16  ;;  %v728_v47 = vpack.c.bf16 %v686_v35, %v685_v11  ;;  %v1998_v46 = vshll.u32 %v1588_v34, 16  ;;  %v2002_v50 = vshrl.u32 %v1588_v34, 16  ;;  %13095 = vmatprep.subr.bf16.mxu1 %v14164_v19 }
 0x17c   :  { %v727_v27 = vpack.c.bf16 %v684_v28, %v683_v18  ;;  %v1982_v53 = vrot.slane %v1981_v8, 4  ;;  %v2008_v58 = vshll.u32 %v1654_v16, 16  ;;  %v2013_v60 = vshrl.u32 %v15191_v37, 16  ;;  %12860 = vmatpush3.bf16.msra.mxu0 %v14183_v24 }
 0x17d   :  { %v1994_v56 = vrot.slane %v1992_v43, 5  ;;  %v887_v0 = vshrl.u32 %v728_v47, 16  ;;  %v890_v1 = vshll.u32 %v728_v47, 16  ;;  %v2000_v13 = vrot.slane %v1998_v46, 5  ;;  %v1655_v43 = vld [vmem:[#allocation2 + $0xb0] sm:$0x1] }
 0x17e   :  { %v880_v3 = vshrl.u32 %v727_v27, 16  ;;  %v883_v5 = vshll.u32 %v727_v27, 16  ;;  %v1987_v6 = vsel %vm14812_vm2, %v1982_v53, %v1986_v38  ;;  %v2004_v9 = vrot.slane %v2002_v50, 4  ;;  %13096 = vmatpush3.bf16.msra.mxu1 %v14164_v19  ;;  %v14159_v38 = vld [vmem:[#allocation2 + $0x108] sm:$0xff]  }
 0x17f   :  { %v1995_v63 = vor.u32 %v1994_v56, %v1991_v41  ;;  %v11476_v21 = vcombine.low %v1977_v33, %v1987_v6  ;;  %v889_v23 = vrot.slane %v887_v0, 7  ;;  %v2010_v25 = vrot.slane %v2008_v58, 5  ;;  %v14157_v29 = vld [vmem:[#allocation2 + $0xfc] sm:$0xff]   ;;  %13097 = vmatprep.subr.bf16.mxu1 %v14167_v48  ;;  %v14175_v58 = vld [vmem:[%s17090_s3 + $0x130] sm:$0xff]   ;;  %v1592_v6 = vld [vmem:[#allocation2 + $0xb8] sm:$0xf] }
 0x180   :  { %v882_v30 = vrot.slane %v880_v3, 7  ;;  %v2005_v16 = vor.u32 %v2004_v9, %v2000_v13  ;;  %v2015_v36 = vrot.slane %v2013_v60, 4  ;;  %v2016_v15 = vshll.u32 %v15191_v37, 16  ;;  %13061 = vmatprep.mubr.bf16.mxu1 %v14157_v29  ;;  %v14185_v37 = vld [vmem:[%s17090_s3 + $0x30] sm:$0xff]  }
 0x181   :  { %v1996_v34 = vrot.slane %v1995_v63, 4  ;;  %12809 = vmatprep.mubr.bf16.mxu0 %v11476_v21  ;;  %v892_v12 = vor.u32 %v890_v1, %v889_v23  ;;  %v1083_v11 = vsel %vm14845_vm5, %v889_v23, 0  ;;  %13062 = vmatmul.mubr.bf16.gmra.mrb[4].mxu1 %v14159_v38  ;;  %v2022_v27 = vshll.u32 %v1590_v14, 16  ;;  %v1656_v21 = vld [vmem:[#allocation2 + $0xbc] sm:$0x1] }
 0x182   :  { %v885_v18 = vor.u32 %v883_v5, %v882_v30  ;;  %v1082_v35 = vsel %vm14845_vm5, %v882_v30, 0  ;;  %v11433_v28 = vcombine.low %v1083_v11, %v1083_v11  ;;  %v2006_v8 = vrot.slane %v2005_v16, 4  ;;  %13098 = vmatpush3.bf16.msra.mxu1 %v14167_v48  ;;  %v1591_v5 = vld [vmem:[#allocation2 + $0xb4] sm:$0xf]  ;;  %12861 = vmatprep.subr.bf16.mxu0 %v14185_v37 }
 0x183   :  { %v11430_v19 = vcombine.low %v1082_v35, %v1082_v35  ;;  %v2001_v33 = vsel %vm14812_vm2, %v1996_v34, %v2000_v13  ;;  %v1051_v24 = vsel %vm14845_vm5, 0, %v892_v12  ;;  %v2018_v47 = vrot.slane %v2016_v15, 5  ;;  %13099 = vmatprep.subr.bf16.mxu1 %v14170_v39  ;;  %12862 = vmatpush3.bf16.msra.mxu0 %v14185_v37 }
 0x184   :  { %v1050_v41 = vsel %vm14845_vm5, 0, %v885_v18  ;;  %v11431_v46 = vcombine.low %v1051_v24, %v1051_v24  ;;  %v11432_v50 = vcombine.high %v1051_v24, %v1051_v24  ;;  %1527 = vst [vmem:[#allocation2 + $0x128] sm:$0x1] %v11433_v28  ;;  %v2011_v60 = vsel %vm14812_vm2, %v2006_v8, %v2010_v25 }
 0x185   :  { %v11428_v53 = vcombine.low %v1050_v41, %v1050_v41  ;;  %v11429_v56 = vcombine.high %v1050_v41, %v1050_v41  ;;  %1524 = vst [vmem:[#allocation2 + $0x11c] sm:$0x1] %v11430_v19  ;;  %v2019_v0 = vor.u32 %v2018_v47, %v2015_v36  ;;  %v2024_v1 = vrot.slane %v2022_v27, 5  ;;  %v14180_v36 = vld [vmem:[%s17090_s3 + $0x138] sm:$0xff]  }
 0x186   :  { %v2026_v3 = vshrl.u32 %v1590_v14, 16  ;;  %1525 = vst [vmem:[#allocation2 + $0x120] sm:$0xf] %v11431_v46  ;;  %1526 = vst [vmem:[#allocation2 + $0x124] sm:$0xf] %v11432_v50  ;;  %v11477_v48 = vcombine.low %v2001_v33, %v2011_v60  ;;  %v2032_v63 = vshll.u32 %v1655_v43, 16  ;;  %v573_v13 = vadd.f32 %v15056_v45, %v15031_v57  ;;  %13100 = vmatpush3.bf16.msra.mxu1 %v14170_v39 }
 0x187   :  { %1522 = vst [vmem:[#allocation2 + $0x114] sm:$0xf] %v11428_v53  ;;  %1523 = vst [vmem:[#allocation2 + $0x118] sm:$0xf] %v11429_v56  ;;  %v565_v9 = vadd.f32 %v15056_v45, %v15039_v17  ;;  %v14186_v14 = vld [vmem:[%s17090_s3 + $0x38] sm:$0xff]   ;;  %v2020_v23 = vrot.slane %v2019_v0, 4  ;;  %v576_v25 = vadd.f32 %v15056_v45, %v15041_v22  ;;  %v568_v29 = vadd.f32 %v15056_v45, %v15047_v4 }
 0x188   :  { %v2028_v30 = vrot.slane %v2026_v3, 4  ;;  %12810 = vmatmul.mubr.bf16.gmra.mrb[88].mxu0 %v11477_v48  ;;  %v2034_v57 = vrot.slane %v2032_v63, 5  ;;  %v689_v34 = vmax.f32 %v573_v13, 0.0  ;;  %v2037_v17 = vshrl.u32 %v1591_v5, 16  ;;  %13101 = vmatprep.subr.bf16.mxu1 %v14175_v58  ;;  %v14184_v43 = vld [vmem:[%s17090_s3 + $0x140] sm:$0xff]  }
 0x189   :  { %v687_v16 = vmax.f32 %v565_v9, 0.0  ;;  %v2025_v15 = vsel %vm14812_vm2, %v2020_v23, %v2024_v1  ;;  %v690_v12 = vmax.f32 %v576_v25, 0.0  ;;  %v688_v22 = vmax.f32 %v568_v29, 0.0  ;;  %12863 = vmatprep.subr.bf16.mxu0 %v14186_v14 }
 0x18a   :  { %v2029_v38 = vor.u32 %v2028_v30, %v2024_v1  ;;  %v2039_v11 = vrot.slane %v2037_v17, 4  ;;  %v2040_v4 = vshll.u32 %v1591_v5, 16  ;;  %v2046_v39 = vshll.u32 %v1592_v6, 16  ;;  %12864 = vmatpush3.bf16.msra.mxu0 %v14186_v14  ;;  %13102 = vmatpush3.bf16.msra.mxu1 %v14175_v58 }
 0x18b   :  { %v2050_v18 = vshrl.u32 %v1592_v6, 16  ;;  %v730_v28 = vpack.c.bf16 %v690_v12, %v689_v34  ;;  %v729_v19 = vpack.c.bf16 %v688_v22, %v687_v16  ;;  %v2056_v33 = vshll.u32 %v1656_v21, 16  ;;  %13103 = vmatprep.subr.bf16.mxu1 %v14180_v36  ;;  %v1593_v34 = vld [vmem:[#allocation2 + $0xd8] sm:$0xf]  ;;  %v1657_v16 = vld [vmem:[#allocation2 + $0xe0] sm:$0x1] }
 0x18c   :  { %v2030_v35 = vrot.slane %v2029_v38, 4  ;;  %v2042_v8 = vrot.slane %v2040_v4, 5  ;;  %v2048_v37 = vrot.slane %v2046_v39, 5  ;;  %v589_v41 = vadd.f32 %v15056_v45, %v15051_v42  ;;  %v1595_v12 = vld [vmem:[#allocation2 + $0xe4] sm:$0xf] }
 0x18d   :  { %v2052_v24 = vrot.slane %v2050_v18, 4  ;;  %v901_v27 = vshrl.u32 %v730_v28, 16  ;;  %v904_v46 = vshll.u32 %v730_v28, 16  ;;  %v894_v50 = vshrl.u32 %v729_v19, 16  ;;  %v14162_v1 = vld [vmem:[#allocation2 + $0x120] sm:$0xff]  }
 0x18e   :  { %v2035_v47 = vsel %vm14812_vm2, %v2030_v35, %v2034_v57  ;;  %v14160_v53 = vld [vmem:[#allocation2 + $0x114] sm:$0xff]   ;;  %v897_v58 = vshll.u32 %v729_v19, 16  ;;  %v2043_v60 = vor.u32 %v2042_v8, %v2039_v11  ;;  %v2058_v42 = vrot.slane %v2056_v33, 5  ;;  %13104 = vmatpush3.bf16.msra.mxu1 %v14180_v36 }
 0x18f   :  { %v11478_v56 = vcombine.low %v2025_v15, %v2035_v47  ;;  %v2053_v0 = vor.u32 %v2052_v24, %v2048_v37  ;;  %v903_v3 = vrot.slane %v901_v27, 7  ;;  %v896_v5 = vrot.slane %v894_v50, 7  ;;  %13065 = vmatprep.mubr.bf16.mxu1 %v14160_v53  ;;  %13169 = vmatprep.subr.bf16.mxu1 %v14184_v43 }
 0x190   :  { %v693_v6 = vmax.f32 %v589_v41, 0.0  ;;  %v2044_v48 = vrot.slane %v2043_v60, 4  ;;  %v581_v13 = vadd.f32 %v15056_v45, %v15064_v52  ;;  %v592_v9 = vadd.f32 %v15056_v45, %v15068_v59  ;;  %13066 = vmatmul.mubr.bf16.gmra.mrb[8].mxu1 %v14162_v1  ;;  %v1594_v59 = vld [vmem:[#allocation2 + $0xdc] sm:$0xf] }
 0x191   :  { %12813 = vmatprep.mubr.bf16.mxu0 %v11478_v56  ;;  %v2054_v63 = vrot.slane %v2053_v0, 4  ;;  %v906_v21 = vor.u32 %v904_v46, %v903_v3  ;;  %v1085_v14 = vsel %vm14845_vm5, %v903_v3, 0  ;;  %v899_v23 = vor.u32 %v897_v58, %v896_v5  ;;  %v1596_v46 = vld [vmem:[#allocation2 + $0xe8] sm:$0xf] }
 0x192   :  { %v1084_v30 = vsel %vm14845_vm5, %v896_v5, 0  ;;  %v11439_v25 = vcombine.low %v1085_v14, %v1085_v14  ;;  %v2049_v57 = vsel %vm14812_vm2, %v2044_v48, %v2048_v37  ;;  %v691_v38 = vmax.f32 %v581_v13, 0.0  ;;  %v1658_v14 = vld [vmem:[#allocation2 + $0xec] sm:$0x1] }
 0x193   :  { %v11436_v29 = vcombine.low %v1084_v30, %v1084_v30  ;;  %v2059_v52 = vsel %vm14812_vm2, %v2054_v63, %v2058_v42  ;;  %v1053_v17 = vsel %vm14845_vm5, 0, %v906_v21  ;;  %v1052_v36 = vsel %vm14845_vm5, 0, %v899_v23 }
 0x194   :  { %v11479_v15 = vcombine.low %v2049_v57, %v2059_v52  ;;  %v11437_v22 = vcombine.low %v1053_v17, %v1053_v17  ;;  %v11438_v11 = vcombine.high %v1053_v17, %v1053_v17  ;;  %1533 = vst [vmem:[#allocation2 + $0x140] sm:$0x1] %v11439_v25  ;;  %v11434_v4 = vcombine.low %v1052_v36, %v1052_v36 }
 0x195   :  { %v11435_v39 = vcombine.high %v1052_v36, %v1052_v36  ;;  %1530 = vst [vmem:[#allocation2 + $0x134] sm:$0x1] %v11436_v29  ;;  %v694_v18 = vmax.f32 %v592_v9, 0.0  ;;  %v584_v35 = vadd.f32 %v15056_v45, %v15070_v55  ;;  %v2061_v28 = vshrl.u32 %v1593_v34, 16  ;;  %v1597_v29 = vld [vmem:[#allocation2 + $0xf0] sm:$0xf] }
 0x196   :  { %12814 = vmatmul.mubr.bf16.gmra.mrb[92].mxu0 %v11479_v15  ;;  %v2064_v19 = vshll.u32 %v1593_v34, 16  ;;  %1531 = vst [vmem:[#allocation2 + $0x138] sm:$0xf] %v11437_v22  ;;  %1532 = vst [vmem:[#allocation2 + $0x13c] sm:$0xf] %v11438_v11  ;;  %v2070_v33 = vshll.u32 %v1594_v59, 16 }
 0x197   :  { %1528 = vst [vmem:[#allocation2 + $0x12c] sm:$0xf] %v11434_v4  ;;  %1529 = vst [vmem:[#allocation2 + $0x130] sm:$0xf] %v11435_v39  ;;  %v2074_v8 = vshrl.u32 %v1594_v59, 16  ;;  %v2080_v37 = vshll.u32 %v1657_v16, 16  ;;  %v732_v41 = vpack.c.bf16 %v694_v18, %v693_v6 }
 0x198   :  { %v2085_v24 = vshrl.u32 %v1595_v12, 16  ;;  %v692_v43 = vmax.f32 %v584_v35, 0.0  ;;  %v2063_v47 = vrot.slane %v2061_v28, 4  ;;  %v2066_v27 = vrot.slane %v2064_v19, 5 }
 0x199   :  { %v2072_v50 = vrot.slane %v2070_v33, 5  ;;  %v2076_v53 = vrot.slane %v2074_v8, 4  ;;  %v2082_v56 = vrot.slane %v2080_v37, 5  ;;  %v915_v55 = vshrl.u32 %v732_v41, 16  ;;  %v1598_v33 = vld [vmem:[#allocation2 + $0xf4] sm:$0xf] }
 0x19a   :  { %v2087_v58 = vrot.slane %v2085_v24, 4  ;;  %v918_v60 = vshll.u32 %v732_v41, 16  ;;  %v731_v0 = vpack.c.bf16 %v692_v43, %v691_v38  ;;  %v2067_v1 = vor.u32 %v2066_v27, %v2063_v47  ;;  %v1659_v41 = vld [vmem:[#allocation2 + $0xf8] sm:$0x1] }
 0x19b   :  { %v2077_v3 = vor.u32 %v2076_v53, %v2072_v50  ;;  %v2088_v5 = vshll.u32 %v1595_v12, 16  ;;  %v2094_v42 = vshll.u32 %v1596_v46, 16  ;;  %v2098_v48 = vshrl.u32 %v1596_v46, 16 }
 0x19c   :  { %v917_v63 = vrot.slane %v915_v55, 7  ;;  %v908_v13 = vshrl.u32 %v731_v0, 16  ;;  %v911_v9 = vshll.u32 %v731_v0, 16  ;;  %v2068_v6 = vrot.slane %v2067_v1, 4 }
 0x19d   :  { %v2078_v21 = vrot.slane %v2077_v3, 4  ;;  %v2090_v23 = vrot.slane %v2088_v5, 5  ;;  %v2096_v30 = vrot.slane %v2094_v42, 5  ;;  %v2100_v25 = vrot.slane %v2098_v48, 4  ;;  %v14165_v39 = vld [vmem:[#allocation2 + $0x138] sm:$0xff]  }
 0x19e   :  { %v920_v57 = vor.u32 %v918_v60, %v917_v63  ;;  %v1087_v52 = vsel %vm14845_vm5, %v917_v63, 0  ;;  %v910_v34 = vrot.slane %v908_v13, 7  ;;  %v2073_v59 = vsel %vm14812_vm2, %v2068_v6, %v2072_v50  ;;  %v14163_v38 = vld [vmem:[#allocation2 + $0x12c] sm:$0xff]   ;;  %v1599_v5 = vld [vmem:[#allocation2 + $0xfc] sm:$0xf] }
 0x19f   :  { %v11445_v16 = vcombine.low %v1087_v52, %v1087_v52  ;;  %v2083_v17 = vsel %vm14812_vm2, %v2078_v21, %v2082_v56  ;;  %v2091_v36 = vor.u32 %v2090_v23, %v2087_v58  ;;  %v2101_v15 = vor.u32 %v2100_v25, %v2096_v30  ;;  %13069 = vmatprep.mubr.bf16.mxu1 %v14163_v38 }
 0x1a0   :  { %v1055_v12 = vsel %vm14845_vm5, 0, %v920_v57  ;;  %v913_v22 = vor.u32 %v911_v9, %v910_v34  ;;  %v1086_v11 = vsel %vm14845_vm5, %v910_v34, 0  ;;  %v11480_v4 = vcombine.low %v2073_v59, %v2083_v17  ;;  %13070 = vmatmul.mubr.bf16.gmra.mrb[12].mxu1 %v14165_v39  ;;  %v1600_v9 = vld [vmem:[#allocation2 + $0x100] sm:$0xf] }
 0x1a1   :  { %v11443_v18 = vcombine.low %v1055_v12, %v1055_v12  ;;  %v11444_v35 = vcombine.high %v1055_v12, %v1055_v12  ;;  %1539 = vst [vmem:[#allocation2 + $0x158] sm:$0x1] %v11445_v16  ;;  %v11442_v28 = vcombine.low %v1086_v11, %v1086_v11  ;;  %v2092_v19 = vrot.slane %v2091_v36, 4  ;;  %v1601_v16 = vld [vmem:[#allocation2 + $0x108] sm:$0xf] }
 0x1a2   :  { %v1054_v8 = vsel %vm14845_vm5, 0, %v913_v22  ;;  %12817 = vmatprep.mubr.bf16.mxu0 %v11480_v4  ;;  %v2102_v37 = vrot.slane %v2101_v15, 4  ;;  %v2104_v24 = vshll.u32 %v1658_v14, 16  ;;  %v2109_v43 = vshrl.u32 %v1597_v29, 16 }
 0x1a3   :  { %1537 = vst [vmem:[#allocation2 + $0x150] sm:$0xf] %v11443_v18  ;;  %1538 = vst [vmem:[#allocation2 + $0x154] sm:$0xf] %v11444_v35  ;;  %v11440_v47 = vcombine.low %v1054_v8, %v1054_v8  ;;  %v11441_v27 = vcombine.high %v1054_v8, %v1054_v8  ;;  %v2097_v46 = vsel %vm14812_vm2, %v2092_v19, %v2096_v30  ;;  %v2112_v50 = vshll.u32 %v1597_v29, 16 }
 0x1a4   :  { %1536 = vst [vmem:[#allocation2 + $0x14c] sm:$0x1] %v11442_v28  ;;  %v2106_v53 = vrot.slane %v2104_v24, 5  ;;  %v2111_v56 = vrot.slane %v2109_v43, 4  ;;  %v2118_v58 = vshll.u32 %v1598_v33, 16  ;;  %v2122_v55 = vshrl.u32 %v1598_v33, 16 }
 0x1a5   :  { %1534 = vst [vmem:[#allocation2 + $0x144] sm:$0xf] %v11440_v47  ;;  %1535 = vst [vmem:[#allocation2 + $0x148] sm:$0xf] %v11441_v27  ;;  %v2114_v60 = vrot.slane %v2112_v50, 5  ;;  %v2128_v0 = vshll.u32 %v1659_v41, 16  ;;  %v605_v1 = vadd.f32 %v15056_v45, %v15078_v31  ;;  %v597_v3 = vadd.f32 %v15056_v45, %v15081_v40 }
 0x1a6   :  { %v2107_v42 = vsel %vm14812_vm2, %v2102_v37, %v2106_v53  ;;  %v2120_v48 = vrot.slane %v2118_v58, 5  ;;  %v2124_v63 = vrot.slane %v2122_v55, 4  ;;  %v608_v13 = vadd.f32 %v15056_v45, %v15088_v54  ;;  %v1660_v29 = vld [vmem:[#allocation2 + $0x104] sm:$0x1]  ;;  %v1602_v50 = vld [vmem:[#allocation2 + $0x10c] sm:$0xf] }
 0x1a7   :  { %v11481_v6 = vcombine.low %v2097_v46, %v2107_v42  ;;  %v2115_v21 = vor.u32 %v2114_v60, %v2111_v56  ;;  %v2130_v14 = vrot.slane %v2128_v0, 5  ;;  %v697_v23 = vmax.f32 %v605_v1, 0.0 }
 0x1a8   :  { %v2125_v30 = vor.u32 %v2124_v63, %v2120_v48  ;;  %v695_v25 = vmax.f32 %v597_v3, 0.0  ;;  %v698_v31 = vmax.f32 %v608_v13, 0.0  ;;  %v600_v40 = vadd.f32 %v15056_v45, %v15094_v62  ;;  %v1661_v13 = vld [vmem:[#allocation2 + $0x110] sm:$0x1] }
 0x1a9   :  { %12818 = vmatmul.mubr.bf16.gmra.mrb[96].mxu0 %v11481_v6  ;;  %v2116_v57 = vrot.slane %v2115_v21, 4  ;;  %v2133_v52 = vshrl.u32 %v1599_v5, 16  ;;  %v2136_v34 = vshll.u32 %v1599_v5, 16  ;;  %v2142_v59 = vshll.u32 %v1600_v9, 16 }
 0x1aa   :  { %v2126_v17 = vrot.slane %v2125_v30, 4  ;;  %v734_v54 = vpack.c.bf16 %v698_v31, %v697_v23  ;;  %v696_v36 = vmax.f32 %v600_v40, 0.0  ;;  %v2146_v15 = vshrl.u32 %v1600_v9, 16  ;;  %v14168_v43 = vld [vmem:[#allocation2 + $0x150] sm:$0xff]  }
 0x1ab   :  { %v2121_v38 = vsel %vm14812_vm2, %v2116_v57, %v2120_v48  ;;  %v2135_v12 = vrot.slane %v2133_v52, 4  ;;  %v2138_v22 = vrot.slane %v2136_v34, 5  ;;  %v2144_v11 = vrot.slane %v2142_v59, 5 }
 0x1ac   :  { %v2131_v45 = vsel %vm14812_vm2, %v2126_v17, %v2130_v14  ;;  %v929_v62 = vshrl.u32 %v734_v54, 16  ;;  %v932_v4 = vshll.u32 %v734_v54, 16  ;;  %v733_v39 = vpack.c.bf16 %v696_v36, %v695_v25  ;;  %v14166_v33 = vld [vmem:[#allocation2 + $0x144] sm:$0xff]   ;;  %v15310_v54 = vld [vmem:[%s17091_s2] ss:$0 sm:$0xff] }
 0x1ad   :  { %v11482_v18 = vcombine.low %v2121_v38, %v2131_v45  ;;  %v2139_v35 = vor.u32 %v2138_v22, %v2135_v12  ;;  %v2148_v28 = vrot.slane %v2146_v15, 4  ;;  %v2152_v19 = vshll.u32 %v1660_v29, 16  ;;  %13073 = vmatprep.mubr.bf16.mxu1 %v14166_v33  ;;  %v1603_v29 = vld [vmem:[#allocation2 + $0x114] sm:$0xf]  ;;  %v1604_v12 = vld [vmem:[#allocation2 + $0x118] sm:$0xf] }
 0x1ae   :  { %v931_v8 = vrot.slane %v929_v62, 7  ;;  %v922_v37 = vshrl.u32 %v733_v39, 16  ;;  %v925_v24 = vshll.u32 %v733_v39, 16  ;;  %v2157_v41 = vshrl.u32 %v1601_v16, 16  ;;  %13074 = vmatmul.mubr.bf16.gmra.mrb[16].mxu1 %v14168_v43  ;;  %v1605_v22 = vld [vmem:[#allocation2 + $0x120] sm:$0xf] }
 0x1af   :  { %12821 = vmatprep.mubr.bf16.mxu0 %v11482_v18  ;;  %v2140_v47 = vrot.slane %v2139_v35, 4  ;;  %v2149_v27 = vor.u32 %v2148_v28, %v2144_v11  ;;  %v2154_v46 = vrot.slane %v2152_v19, 5  ;;  %v2160_v53 = vshll.u32 %v1601_v16, 16  ;;  %v1662_v16 = vld [vmem:[#allocation2 + $0x11c] sm:$0x1] }
 0x1b0   :  { %v934_v56 = vor.u32 %v932_v4, %v931_v8  ;;  %v1089_v58 = vsel %vm14845_vm5, %v931_v8, 0  ;;  %v924_v55 = vrot.slane %v922_v37, 7  ;;  %v2159_v60 = vrot.slane %v2157_v41, 4 }
 0x1b1   :  { %v11451_v0 = vcombine.low %v1089_v58, %v1089_v58  ;;  %v2145_v1 = vsel %vm14812_vm2, %v2140_v47, %v2144_v11  ;;  %v2150_v3 = vrot.slane %v2149_v27, 4  ;;  %v2162_v5 = vrot.slane %v2160_v53, 5 }
 0x1b2   :  { %v1057_v42 = vsel %vm14845_vm5, 0, %v934_v56  ;;  %v927_v48 = vor.u32 %v925_v24, %v924_v55  ;;  %v1088_v63 = vsel %vm14845_vm5, %v924_v55, 0  ;;  %v2166_v9 = vshll.u32 %v1602_v50, 16 }
 0x1b3   :  { %v11449_v6 = vcombine.low %v1057_v42, %v1057_v42  ;;  %v11450_v21 = vcombine.high %v1057_v42, %v1057_v42  ;;  %1545 = vst [vmem:[#allocation2 + $0x170] sm:$0x1] %v11451_v0  ;;  %v11448_v14 = vcombine.low %v1088_v63, %v1088_v63  ;;  %v2155_v23 = vsel %vm14812_vm2, %v2150_v3, %v2154_v46  ;;  %v1606_v0 = vld [vmem:[#allocation2 + $0x124] sm:$0xf] }
 0x1b4   :  { %v1056_v30 = vsel %vm14845_vm5, 0, %v927_v48  ;;  %v11483_v25 = vcombine.low %v2145_v1, %v2155_v23  ;;  %v2163_v31 = vor.u32 %v2162_v5, %v2159_v60  ;;  %v2168_v40 = vrot.slane %v2166_v9, 5 }
 0x1b5   :  { %1543 = vst [vmem:[#allocation2 + $0x168] sm:$0xf] %v11449_v6  ;;  %1544 = vst [vmem:[#allocation2 + $0x16c] sm:$0xf] %v11450_v21  ;;  %v11446_v57 = vcombine.low %v1056_v30, %v1056_v30  ;;  %v11447_v52 = vcombine.high %v1056_v30, %v1056_v30  ;;  %v2170_v34 = vshrl.u32 %v1602_v50, 16  ;;  %v2176_v59 = vshll.u32 %v1661_v13, 16 }
 0x1b6   :  { %1542 = vst [vmem:[#allocation2 + $0x164] sm:$0x1] %v11448_v14  ;;  %12822 = vmatmul.mubr.bf16.gmra.mrb[100].mxu0 %v11483_v25  ;;  %v2164_v17 = vrot.slane %v2163_v31, 4  ;;  %v621_v36 = vadd.f32 %v15310_v54, %v15110_v26  ;;  %v613_v15 = vadd.f32 %v15310_v54, %v15123_v10  ;;  %v624_v38 = vadd.f32 %v15310_v54, %v15125_v20 }
 0x1b7   :  { %1540 = vst [vmem:[#allocation2 + $0x15c] sm:$0xf] %v11446_v57  ;;  %1541 = vst [vmem:[#allocation2 + $0x160] sm:$0xf] %v11447_v52  ;;  %v2172_v11 = vrot.slane %v2170_v34, 4  ;;  %v2178_v45 = vrot.slane %v2176_v59, 5  ;;  %v616_v62 = vadd.f32 %v15310_v54, %v15130_v49 }
 0x1b8   :  { %v2181_v4 = vshrl.u32 %v1603_v29, 16  ;;  %v2169_v39 = vsel %vm14812_vm2, %v2164_v17, %v2168_v40  ;;  %v701_v26 = vmax.f32 %v621_v36, 0.0  ;;  %v699_v18 = vmax.f32 %v613_v15, 0.0 }
 0x1b9   :  { %v702_v35 = vmax.f32 %v624_v38, 0.0  ;;  %v2173_v10 = vor.u32 %v2172_v11, %v2168_v40  ;;  %v700_v28 = vmax.f32 %v616_v62, 0.0  ;;  %v2184_v20 = vshll.u32 %v1603_v29, 16 }
 0x1ba   :  { %v2183_v19 = vrot.slane %v2181_v4, 4  ;;  %v2190_v8 = vshll.u32 %v1604_v12, 16  ;;  %v2194_v37 = vshrl.u32 %v1604_v12, 16  ;;  %v2200_v24 = vshll.u32 %v1662_v16, 16  ;;  %v1663_v16 = vld [vmem:[#allocation2 + $0x128] sm:$0x1] }
 0x1bb   :  { %v736_v33 = vpack.c.bf16 %v702_v35, %v701_v26  ;;  %v2174_v41 = vrot.slane %v2173_v10, 4  ;;  %v735_v43 = vpack.c.bf16 %v700_v28, %v699_v18  ;;  %v2186_v47 = vrot.slane %v2184_v20, 5  ;;  %v1608_v20 = vld [vmem:[#allocation2 + $0x130] sm:$0xf] }
 0x1bc   :  { %v2205_v27 = vshrl.u32 %v1605_v22, 16  ;;  %v2192_v50 = vrot.slane %v2190_v8, 5  ;;  %v2196_v53 = vrot.slane %v2194_v37, 4  ;;  %v2202_v42 = vrot.slane %v2200_v24, 5  ;;  %v14172_v25 = vld [vmem:[#allocation2 + $0x168] sm:$0xff]  }
 0x1bd   :  { %v943_v49 = vshrl.u32 %v736_v33, 16  ;;  %v946_v46 = vshll.u32 %v736_v33, 16  ;;  %v2179_v56 = vsel %vm14812_vm2, %v2174_v41, %v2178_v45  ;;  %v936_v58 = vshrl.u32 %v735_v43, 16  ;;  %v1664_v33 = vld [vmem:[#allocation2 + $0x134] sm:$0x1] }
 0x1be   :  { %v939_v55 = vshll.u32 %v735_v43, 16  ;;  %v2187_v60 = vor.u32 %v2186_v47, %v2183_v19  ;;  %v11484_v1 = vcombine.low %v2169_v39, %v2179_v56  ;;  %v2197_v5 = vor.u32 %v2196_v53, %v2192_v50  ;;  %v14169_v6 = vld [vmem:[#allocation2 + $0x15c] sm:$0xff]  }
 0x1bf   :  { %v945_v3 = vrot.slane %v943_v49, 7  ;;  %v938_v48 = vrot.slane %v936_v58, 7  ;;  %v2207_v13 = vrot.slane %v2205_v27, 4  ;;  %v2208_v9 = vshll.u32 %v1605_v22, 16  ;;  %13077 = vmatprep.mubr.bf16.mxu1 %v14169_v6  ;;  %v1607_v22 = vld [vmem:[#allocation2 + $0x12c] sm:$0xf] }
 0x1c0   :  { %v2188_v63 = vrot.slane %v2187_v60, 4  ;;  %12825 = vmatprep.mubr.bf16.mxu0 %v11484_v1  ;;  %v2198_v23 = vrot.slane %v2197_v5, 4  ;;  %v2214_v30 = vshll.u32 %v1606_v0, 16  ;;  %13078 = vmatmul.mubr.bf16.gmra.mrb[20].mxu1 %v14172_v25  ;;  %v2218_v39 = vshrl.u32 %v1606_v0, 16 }
 0x1c1   :  { %v948_v21 = vor.u32 %v946_v46, %v945_v3  ;;  %v1091_v14 = vsel %vm14845_vm5, %v945_v3, 0  ;;  %v941_v40 = vor.u32 %v939_v55, %v938_v48  ;;  %v1090_v29 = vsel %vm14845_vm5, %v938_v48, 0  ;;  %v1610_v3 = vld [vmem:[#allocation2 + $0x13c] sm:$0xf] }
 0x1c2   :  { %v11457_v31 = vcombine.low %v1091_v14, %v1091_v14  ;;  %v2193_v57 = vsel %vm14812_vm2, %v2188_v63, %v2192_v50  ;;  %v11454_v34 = vcombine.low %v1090_v29, %v1090_v29  ;;  %v2203_v59 = vsel %vm14812_vm2, %v2198_v23, %v2202_v42 }
 0x1c3   :  { %v1059_v52 = vsel %vm14845_vm5, 0, %v948_v21  ;;  %v2210_v17 = vrot.slane %v2208_v9, 5  ;;  %v1058_v38 = vsel %vm14845_vm5, 0, %v941_v40  ;;  %v11485_v12 = vcombine.low %v2193_v57, %v2203_v59 }
 0x1c4   :  { %v11455_v36 = vcombine.low %v1059_v52, %v1059_v52  ;;  %v11456_v15 = vcombine.high %v1059_v52, %v1059_v52  ;;  %1551 = vst [vmem:[#allocation2 + $0x188] sm:$0x1] %v11457_v31  ;;  %v11452_v11 = vcombine.low %v1058_v38, %v1058_v38  ;;  %v11453_v45 = vcombine.high %v1058_v38, %v1058_v38 }
 0x1c5   :  { %1548 = vst [vmem:[#allocation2 + $0x17c] sm:$0x1] %v11454_v34  ;;  %v2211_v62 = vor.u32 %v2210_v17, %v2207_v13  ;;  %v2216_v4 = vrot.slane %v2214_v30, 5  ;;  %12826 = vmatmul.mubr.bf16.gmra.mrb[104].mxu0 %v11485_v12  ;;  %v2224_v26 = vshll.u32 %v1663_v16, 16  ;;  %v637_v18 = vadd.f32 %v15310_v54, %v15156_v51  ;;  %v1609_v51 = vld [vmem:[#allocation2 + $0x138] sm:$0xf] }
 0x1c6   :  { %1549 = vst [vmem:[#allocation2 + $0x180] sm:$0xf] %v11455_v36  ;;  %1550 = vst [vmem:[#allocation2 + $0x184] sm:$0xf] %v11456_v15  ;;  %v629_v35 = vadd.f32 %v15310_v54, %v15169_v61  ;;  %v640_v28 = vadd.f32 %v15310_v54, %v15171_v7  ;;  %v632_v19 = vadd.f32 %v15310_v54, %v15180_v44  ;;  %v2229_v8 = vshrl.u32 %v1607_v22, 16 }
 0x1c7   :  { %1546 = vst [vmem:[#allocation2 + $0x174] sm:$0xf] %v11452_v11  ;;  %1547 = vst [vmem:[#allocation2 + $0x178] sm:$0xf] %v11453_v45  ;;  %v2212_v10 = vrot.slane %v2211_v62, 4  ;;  %v2220_v37 = vrot.slane %v2218_v39, 4 }
 0x1c8   :  { %v2226_v24 = vrot.slane %v2224_v26, 5  ;;  %v705_v41 = vmax.f32 %v637_v18, 0.0  ;;  %v703_v43 = vmax.f32 %v629_v35, 0.0  ;;  %v706_v47 = vmax.f32 %v640_v28, 0.0  ;;  %v1665_v11 = vld [vmem:[#allocation2 + $0x140] sm:$0x1] }
 0x1c9   :  { %v2217_v61 = vsel %vm14812_vm2, %v2212_v10, %v2216_v4  ;;  %v704_v27 = vmax.f32 %v632_v19, 0.0  ;;  %v2231_v49 = vrot.slane %v2229_v8, 4  ;;  %v2221_v46 = vor.u32 %v2220_v37, %v2216_v4  ;;  %v1611_v45 = vld [vmem:[#allocation2 + $0x144] sm:$0xf]  ;;  %v1612_v18 = vld [vmem:[#allocation2 + $0x148] sm:$0xf] }
 0x1ca   :  { %v2232_v50 = vshll.u32 %v1607_v22, 16  ;;  %v2238_v7 = vshll.u32 %v1608_v20, 16  ;;  %v2242_v53 = vshrl.u32 %v1608_v20, 16  ;;  %v738_v56 = vpack.c.bf16 %v706_v47, %v705_v41  ;;  %v1666_v20 = vld [vmem:[#allocation2 + $0x14c] sm:$0x1] }
 0x1cb   :  { %v737_v44 = vpack.c.bf16 %v704_v27, %v703_v43  ;;  %v2248_v54 = vshll.u32 %v1664_v33, 16  ;;  %v2253_v58 = vshrl.u32 %v1609_v51, 16  ;;  %v2222_v55 = vrot.slane %v2221_v46, 4  ;;  %v1667_v47 = vld [vmem:[#allocation2 + $0x158] sm:$0x1] }
 0x1cc   :  { %v2234_v60 = vrot.slane %v2232_v50, 5  ;;  %v2240_v0 = vrot.slane %v2238_v7, 5  ;;  %v2244_v1 = vrot.slane %v2242_v53, 4  ;;  %v957_v5 = vshrl.u32 %v738_v56, 16  ;;  %v1614_v7 = vld [vmem:[#allocation2 + $0x154] sm:$0xf] }
 0x1cd   :  { %v960_v42 = vshll.u32 %v738_v56, 16  ;;  %v950_v48 = vshrl.u32 %v737_v44, 16  ;;  %v953_v63 = vshll.u32 %v737_v44, 16  ;;  %v2227_v13 = vsel %vm14812_vm2, %v2222_v55, %v2226_v24  ;;  %v14177_v40 = vld [vmem:[#allocation2 + $0x180] sm:$0xff]  }
 0x1ce   :  { %v2235_v9 = vor.u32 %v2234_v60, %v2231_v49  ;;  %v2245_v6 = vor.u32 %v2244_v1, %v2240_v0  ;;  %v2250_v21 = vrot.slane %v2248_v54, 5  ;;  %v14174_v14 = vld [vmem:[#allocation2 + $0x174] sm:$0xff]   ;;  %v11486_v23 = vcombine.low %v2217_v61, %v2227_v13  ;;  %v1613_v61 = vld [vmem:[#allocation2 + $0x150] sm:$0xf] }
 0x1cf   :  { %v959_v30 = vrot.slane %v957_v5, 7  ;;  %v952_v25 = vrot.slane %v950_v48, 7  ;;  %v2255_v31 = vrot.slane %v2253_v58, 4  ;;  %v2256_v52 = vshll.u32 %v1609_v51, 16  ;;  %13081 = vmatprep.mubr.bf16.mxu1 %v14174_v14  ;;  %v1615_v48 = vld [vmem:[#allocation2 + $0x15c] sm:$0xf] }
 0x1d0   :  { %v2236_v29 = vrot.slane %v2235_v9, 4  ;;  %v2246_v57 = vrot.slane %v2245_v6, 4  ;;  %v2262_v34 = vshll.u32 %v1610_v3, 16  ;;  %12829 = vmatprep.mubr.bf16.mxu0 %v11486_v23  ;;  %13082 = vmatmul.mubr.bf16.gmra.mrb[24].mxu1 %v14177_v40  ;;  %v2266_v37 = vshrl.u32 %v1610_v3, 16  ;;  %v1668_v14 = vld [vmem:[#allocation2 + $0x164] sm:$0x1] }
 0x1d1   :  { %v962_v59 = vor.u32 %v960_v42, %v959_v30  ;;  %v1093_v16 = vsel %vm14845_vm5, %v959_v30, 0  ;;  %v955_v17 = vor.u32 %v953_v63, %v952_v25  ;;  %v1092_v36 = vsel %vm14845_vm5, %v952_v25, 0  ;;  %v1617_v40 = vld [vmem:[#allocation2 + $0x168] sm:$0xf] }
 0x1d2   :  { %v11463_v15 = vcombine.low %v1093_v16, %v1093_v16  ;;  %v11460_v38 = vcombine.low %v1092_v36, %v1092_v36  ;;  %v2241_v12 = vsel %vm14812_vm2, %v2236_v29, %v2240_v0  ;;  %v2251_v22 = vsel %vm14812_vm2, %v2246_v57, %v2250_v21  ;;  %v1616_v21 = vld [vmem:[#allocation2 + $0x160] sm:$0xf] }
 0x1d3   :  { %v1061_v62 = vsel %vm14845_vm5, 0, %v962_v59  ;;  %v1060_v4 = vsel %vm14845_vm5, 0, %v955_v17  ;;  %v11487_v39 = vcombine.low %v2241_v12, %v2251_v22  ;;  %v2258_v26 = vrot.slane %v2256_v52, 5 }
 0x1d4   :  { %v11461_v35 = vcombine.low %v1061_v62, %v1061_v62  ;;  %v11462_v10 = vcombine.high %v1061_v62, %v1061_v62  ;;  %1557 = vst [vmem:[#allocation2 + $0x1a0] sm:$0x1] %v11463_v15  ;;  %v11458_v28 = vcombine.low %v1060_v4, %v1060_v4  ;;  %v11459_v19 = vcombine.high %v1060_v4, %v1060_v4 }
 0x1d5   :  { %1554 = vst [vmem:[#allocation2 + $0x194] sm:$0x1] %v11460_v38  ;;  %12830 = vmatmul.mubr.bf16.gmra.mrb[108].mxu0 %v11487_v39  ;;  %v2259_v33 = vor.u32 %v2258_v26, %v2255_v31  ;;  %v2264_v8 = vrot.slane %v2262_v34, 5  ;;  %v2272_v24 = vshll.u32 %v1665_v11, 16  ;;  %v2277_v32 = vshrl.u32 %v1611_v45, 16 }
 0x1d6   :  { %1555 = vst [vmem:[#allocation2 + $0x198] sm:$0xf] %v11461_v35  ;;  %1556 = vst [vmem:[#allocation2 + $0x19c] sm:$0xf] %v11462_v10  ;;  %v2280_v41 = vshll.u32 %v1611_v45, 16  ;;  %v2286_v43 = vshll.u32 %v1612_v18, 16 }
 0x1d7   :  { %1552 = vst [vmem:[#allocation2 + $0x18c] sm:$0xf] %v11458_v28  ;;  %1553 = vst [vmem:[#allocation2 + $0x190] sm:$0xf] %v11459_v19  ;;  %v2290_v51 = vshrl.u32 %v1612_v18, 16  ;;  %v2260_v27 = vrot.slane %v2259_v33, 4 }
 0x1d8   :  { %v2268_v49 = vrot.slane %v2266_v37, 4  ;;  %v2274_v46 = vrot.slane %v2272_v24, 5  ;;  %v2296_v50 = vshll.u32 %v1666_v20, 16  ;;  %v2279_v53 = vrot.slane %v2277_v32, 4  ;;  %v1669_v18 = vld [vmem:[#allocation2 + $0x170] sm:$0x1] }
 0x1d9   :  { %v2282_v56 = vrot.slane %v2280_v41, 5  ;;  %v2288_v44 = vrot.slane %v2286_v43, 5  ;;  %v2292_v54 = vrot.slane %v2290_v51, 4  ;;  %v2265_v58 = vsel %vm14812_vm2, %v2260_v27, %v2264_v8  ;;  %v1618_v28 = vld [vmem:[#allocation2 + $0x16c] sm:$0xf] }
 0x1da   :  { %v2269_v55 = vor.u32 %v2268_v49, %v2264_v8  ;;  %v2298_v60 = vrot.slane %v2296_v50, 5  ;;  %v2301_v0 = vshrl.u32 %v1613_v61, 16  ;;  %v2304_v5 = vshll.u32 %v1613_v61, 16  ;;  %v1619_v32 = vld [vmem:[#allocation2 + $0x174] sm:$0xf] }
 0x1db   :  { %v2283_v1 = vor.u32 %v2282_v56, %v2279_v53  ;;  %v2293_v3 = vor.u32 %v2292_v54, %v2288_v44  ;;  %v2310_v42 = vshll.u32 %v1614_v7, 16  ;;  %v2314_v9 = vshrl.u32 %v1614_v7, 16  ;;  %v1620_v50 = vld [vmem:[#allocation2 + $0x178] sm:$0xf]  ;;  %v1670_v7 = vld [vmem:[#allocation2 + $0x17c] sm:$0x1] }
 0x1dc   :  { %v2270_v63 = vrot.slane %v2269_v55, 4  ;;  %v2303_v13 = vrot.slane %v2301_v0, 4  ;;  %v2320_v6 = vshll.u32 %v1667_v47, 16  ;;  %v2306_v25 = vrot.slane %v2304_v5, 5 }
 0x1dd   :  { %v2284_v23 = vrot.slane %v2283_v1, 4  ;;  %v2294_v30 = vrot.slane %v2293_v3, 4  ;;  %v2312_v31 = vrot.slane %v2310_v42, 5  ;;  %v2316_v57 = vrot.slane %v2314_v9, 4  ;;  %v14182_v45 = vld [vmem:[#allocation2 + $0x198] sm:$0xff]  }
 0x1de   :  { %v2275_v29 = vsel %vm14812_vm2, %v2270_v63, %v2274_v46  ;;  %v2322_v52 = vrot.slane %v2320_v6, 5  ;;  %v2325_v34 = vshrl.u32 %v1615_v48, 16  ;;  %v14179_v59 = vld [vmem:[#allocation2 + $0x18c] sm:$0xff]   ;;  %v2307_v15 = vor.u32 %v2306_v25, %v2303_v13 }
 0x1df   :  { %v11488_v16 = vcombine.low %v2265_v58, %v2275_v29  ;;  %v2289_v17 = vsel %vm14812_vm2, %v2284_v23, %v2288_v44  ;;  %v2299_v36 = vsel %vm14812_vm2, %v2294_v30, %v2298_v60  ;;  %v2317_v12 = vor.u32 %v2316_v57, %v2312_v31  ;;  %13085 = vmatprep.mubr.bf16.mxu1 %v14179_v59 }
 0x1e0   :  { %v11489_v38 = vcombine.low %v2289_v17, %v2299_v36  ;;  %v2327_v22 = vrot.slane %v2325_v34, 4  ;;  %v2328_v11 = vshll.u32 %v1615_v48, 16  ;;  %v2308_v62 = vrot.slane %v2307_v15, 4  ;;  %13086 = vmatmul.mubr.bf16.gmra.mrb[28].mxu1 %v14182_v45  ;;  %v1621_v48 = vld [vmem:[#allocation2 + $0x180] sm:$0xf] }
 0x1e1   :  { %12833 = vmatprep.mubr.bf16.mxu0 %v11488_v16  ;;  %v2334_v4 = vshll.u32 %v1616_v21, 16  ;;  %v2338_v39 = vshrl.u32 %v1616_v21, 16  ;;  %v2344_v26 = vshll.u32 %v1668_v14, 16  ;;  %v2318_v35 = vrot.slane %v2317_v12, 4  ;;  %v1622_v21 = vld [vmem:[#allocation2 + $0x184] sm:$0xf] }
 0x1e2   :  { %12834 = vmatmul.mubr.bf16.gmra.mrb[112].mxu0 %v11489_v38  ;;  %v2330_v10 = vrot.slane %v2328_v11, 5  ;;  %v2349_v19 = vshrl.u32 %v1617_v40, 16  ;;  %v2352_v20 = vshll.u32 %v1617_v40, 16  ;;  %v2313_v33 = vsel %vm14812_vm2, %v2308_v62, %v2312_v31  ;;  %v4996_v31 = vld [vmem:[#allocation2 + $0xc] sm:$0xf] }
 0x1e3   :  { %v2336_v8 = vrot.slane %v2334_v4, 5  ;;  %v2340_v37 = vrot.slane %v2338_v39, 4  ;;  %v2346_v24 = vrot.slane %v2344_v26, 5  ;;  %v2323_v41 = vsel %vm14812_vm2, %v2318_v35, %v2322_v52  ;;  %v1671_v16 = vld [vmem:[#allocation2 + $0x188] sm:$0x1] }
 0x1e4   :  { %v2331_v43 = vor.u32 %v2330_v10, %v2327_v22  ;;  %v2351_v51 = vrot.slane %v2349_v19, 4  ;;  %v2354_v61 = vrot.slane %v2352_v20, 5  ;;  %v11490_v47 = vcombine.low %v2313_v33, %v2323_v41  ;;  %v4997_v11 = vld [vmem:[#allocation2 + $0x10] sm:$0xf]  ;;  %v4998_v26 = vld [vmem:[#allocation2 + $0x14] sm:$0x1] }
 0x1e5   :  { %v2341_v27 = vor.u32 %v2340_v37, %v2336_v8  ;;  %v2358_v49 = vshll.u32 %v1618_v28, 16  ;;  %v2362_v46 = vshrl.u32 %v1618_v28, 16  ;;  %v2368_v44 = vshll.u32 %v1669_v18, 16  ;;  %v1623_v19 = vld [vmem:[#allocation2 + $0x18c] sm:$0xf] }
 0x1e6   :  { %v2332_v53 = vrot.slane %v2331_v43, 4  ;;  %v2355_v56 = vor.u32 %v2354_v61, %v2351_v51  ;;  %v2373_v54 = vshrl.u32 %v1619_v32, 16  ;;  %12837 = vmatprep.mubr.bf16.mxu0 %v11490_v47  ;;  %v2376_v0 = vshll.u32 %v1619_v32, 16 }
 0x1e7   :  { %v2342_v58 = vrot.slane %v2341_v27, 4  ;;  %v2360_v55 = vrot.slane %v2358_v49, 5  ;;  %v2364_v60 = vrot.slane %v2362_v46, 4  ;;  %v2370_v5 = vrot.slane %v2368_v44, 5  ;;  %v1624_v49 = vld [vmem:[#allocation2 + $0x190] sm:$0xf] }
 0x1e8   :  { %v2337_v1 = vsel %vm14812_vm2, %v2332_v53, %v2336_v8  ;;  %v2356_v3 = vrot.slane %v2355_v56, 4  ;;  %v2375_v42 = vrot.slane %v2373_v54, 4  ;;  %v2378_v9 = vrot.slane %v2376_v0, 5  ;;  %v4999_v56 = vld [vmem:[#allocation2 + $0x18] sm:$0xf] }
 0x1e9   :  { %v2347_v63 = vsel %vm14812_vm2, %v2342_v58, %v2346_v24  ;;  %v2365_v13 = vor.u32 %v2364_v60, %v2360_v55  ;;  %v2382_v6 = vshll.u32 %v1620_v50, 16  ;;  %v2386_v30 = vshrl.u32 %v1620_v50, 16  ;;  %v1672_v58 = vld [vmem:[#allocation2 + $0x194] sm:$0x1] }
 0x1ea   :  { %v11491_v14 = vcombine.low %v2337_v1, %v2347_v63  ;;  %v2361_v23 = vsel %vm14812_vm2, %v2356_v3, %v2360_v55  ;;  %v2392_v25 = vshll.u32 %v1670_v7, 16  ;;  %v2379_v29 = vor.u32 %v2378_v9, %v2375_v42  ;;  %v5000_v42 = vld [vmem:[#allocation2 + $0x1c] sm:$0xf] }
 0x1eb   :  { %v2366_v40 = vrot.slane %v2365_v13, 4  ;;  %v2384_v57 = vrot.slane %v2382_v6, 5  ;;  %v2397_v52 = vshrl.u32 %v1621_v48, 16  ;;  %v2388_v34 = vrot.slane %v2386_v30, 4 }
 0x1ec   :  { %12838 = vmatmul.mubr.bf16.gmra.mrb[116].mxu0 %v11491_v14  ;;  %v2394_v59 = vrot.slane %v2392_v25, 5  ;;  %v2400_v17 = vshll.u32 %v1621_v48, 16  ;;  %v2406_v36 = vshll.u32 %v1622_v21, 16  ;;  %v2380_v38 = vrot.slane %v2379_v29, 4  ;;  %v15391_v48 = vld [vmem:[%s17090_s3 + $0x80] sm:$0xff]  }
 0x1ed   :  { %v2371_v15 = vsel %vm14812_vm2, %v2366_v40, %v2370_v5  ;;  %v2399_v12 = vrot.slane %v2397_v52, 4  ;;  %v2410_v22 = vshrl.u32 %v1622_v21, 16  ;;  %v2389_v62 = vor.u32 %v2388_v34, %v2384_v57  ;;  %v5001_v21 = vld [vmem:[#allocation2 + $0x20] sm:$0x1]  ;;  %12929 = vmatprep.subr.bf16.mxu0 %v15391_v48 }
 0x1ee   :  { %v11492_v45 = vcombine.low %v2361_v23, %v2371_v15  ;;  %v2402_v4 = vrot.slane %v2400_v17, 5  ;;  %v2408_v39 = vrot.slane %v2406_v36, 5  ;;  %v2385_v18 = vsel %vm14812_vm2, %v2380_v38, %v2384_v57 }
 0x1ef   :  { %v2412_v35 = vrot.slane %v2410_v22, 4  ;;  %v2416_v10 = vshll.u32 %v1671_v16, 16  ;;  %v5093_v28 = vshrl.u32 %v4996_v31, 16  ;;  %v2390_v20 = vrot.slane %v2389_v62, 4  ;;  %v5003_v22 = vld [vmem:[#allocation2 + $0x28] sm:$0xf] }
 0x1f0   :  { %12841 = vmatprep.mubr.bf16.mxu0 %v11492_v45  ;;  %v2403_v33 = vor.u32 %v2402_v4, %v2399_v12  ;;  %v5096_v8 = vshll.u32 %v4996_v31, 16  ;;  %v5102_v37 = vshll.u32 %v4997_v11, 16  ;;  %v5106_v43 = vshrl.u32 %v4997_v11, 16  ;;  %v5002_v31 = vld [vmem:[#allocation2 + $0x24] sm:$0xf] }
 0x1f1   :  { %v2413_v24 = vor.u32 %v2412_v35, %v2408_v39  ;;  %v2418_v32 = vrot.slane %v2416_v10, 5  ;;  %v5095_v41 = vrot.slane %v5093_v28, 4  ;;  %v2395_v51 = vsel %vm14812_vm2, %v2390_v20, %v2394_v59 }
 0x1f2   :  { %v2404_v61 = vrot.slane %v2403_v33, 4  ;;  %v5098_v47 = vrot.slane %v5096_v8, 5  ;;  %v5104_v27 = vrot.slane %v5102_v37, 5  ;;  %v11493_v46 = vcombine.low %v2385_v18, %v2395_v51  ;;  %v5004_v18 = vld [vmem:[#allocation2 + $0x2c] sm:$0x1] }
 0x1f3   :  { %v2414_v50 = vrot.slane %v2413_v24, 4  ;;  %v5108_v7 = vrot.slane %v5106_v43, 4  ;;  %v5112_v53 = vshll.u32 %v4998_v26, 16  ;;  %v2421_v55 = vshrl.u32 %v1623_v19, 16 }
 0x1f4   :  { %v2409_v44 = vsel %vm14812_vm2, %v2404_v61, %v2408_v39  ;;  %v5099_v54 = vor.u32 %v5098_v47, %v5095_v41  ;;  %v2424_v60 = vshll.u32 %v1623_v19, 16  ;;  %12842 = vmatmul.mubr.bf16.gmra.mrb[120].mxu0 %v11493_v46  ;;  %v2430_v5 = vshll.u32 %v1624_v49, 16  ;;  %v5005_v47 = vld [vmem:[#allocation2 + $0x30] sm:$0xf] }
 0x1f5   :  { %v2419_v0 = vsel %vm14812_vm2, %v2414_v50, %v2418_v32  ;;  %v5109_v1 = vor.u32 %v5108_v7, %v5104_v27  ;;  %v5114_v3 = vrot.slane %v5112_v53, 5  ;;  %v2423_v9 = vrot.slane %v2421_v55, 4  ;;  %v5006_v7 = vld [vmem:[#allocation2 + $0x34] sm:$0xf]  ;;  %v5007_v53 = vld [vmem:[#allocation2 + $0x38] sm:$0x1] }
 0x1f6   :  { %v11494_v63 = vcombine.low %v2409_v44, %v2419_v0  ;;  %v5100_v13 = vrot.slane %v5099_v54, 4  ;;  %v2426_v6 = vrot.slane %v2424_v60, 5  ;;  %v2432_v23 = vrot.slane %v2430_v5, 5  ;;  %v14349_v54 = vld [vmem:[#allocation2] sm:$0xf] }
 0x1f7   :  { %v5110_v14 = vrot.slane %v5109_v1, 4  ;;  %v2434_v30 = vshrl.u32 %v1624_v49, 16  ;;  %v2440_v25 = vshll.u32 %v1672_v58, 16  ;;  %v5117_v57 = vshrl.u32 %v4999_v56, 16  ;;  %v14350_v58 = vld [vmem:[#allocation2 + $0x4] sm:$0xf] }
 0x1f8   :  { %12845 = vmatprep.mubr.bf16.mxu0 %v11494_v63  ;;  %v5105_v40 = vsel %vm14812_vm2, %v5100_v13, %v5104_v27  ;;  %v2427_v29 = vor.u32 %v2426_v6, %v2423_v9  ;;  %v5120_v52 = vshll.u32 %v4999_v56, 16  ;;  %v5126_v17 = vshll.u32 %v5000_v42, 16  ;;  %v14351_v60 = vld [vmem:[#allocation2 + $0xc] sm:$0xf]  ;;  %v14352_v0 = vld [vmem:[#allocation2 + $0x10] sm:$0xf] }
 0x1f9   :  { %v5115_v34 = vsel %vm14812_vm2, %v5110_v14, %v5114_v3  ;;  %v2436_v59 = vrot.slane %v2434_v30, 4  ;;  %v2442_v16 = vrot.slane %v2440_v25, 5  ;;  %v5119_v38 = vrot.slane %v5117_v57, 4  ;;  %v5008_v14 = vld [vmem:[#allocation2 + $0x3c] sm:$0xf] }
 0x1fa   :  { %v11656_v36 = vcombine.low %v5105_v40, %v5115_v34  ;;  %v2428_v15 = vrot.slane %v2427_v29, 4  ;;  %v5122_v12 = vrot.slane %v5120_v52, 5  ;;  %v5128_v45 = vrot.slane %v5126_v17, 5  ;;  %v5009_v40 = vld [vmem:[#allocation2 + $0x40] sm:$0xf]  ;;  %v14190_v29 = vld [vmem:[%s17090_s3 + $0x148] sm:$0xff]  }
 0x1fb   :  { %v2437_v11 = vor.u32 %v2436_v59, %v2432_v23  ;;  %v5130_v62 = vshrl.u32 %v5000_v42, 16  ;;  %v5136_v4 = vshll.u32 %v5001_v21, 16  ;;  %v5141_v35 = vshrl.u32 %v5002_v31, 16 }
 0x1fc   :  { %13105 = vmatprep.mubr.bf16.mxu1 %v11656_v36  ;;  %v2433_v39 = vsel %vm14812_vm2, %v2428_v15, %v2432_v23  ;;  %v5123_v26 = vor.u32 %v5122_v12, %v5119_v38  ;;  %v5144_v10 = vshll.u32 %v5002_v31, 16  ;;  %v5150_v33 = vshll.u32 %v5003_v22, 16  ;;  %v14353_v36 = vld [vmem:[#allocation2 + $0x18] sm:$0xf]  ;;  %v14354_v15 = vld [vmem:[#allocation2 + $0x1c] sm:$0xf] }
 0x1fd   :  { %v2438_v28 = vrot.slane %v2437_v11, 4  ;;  %v5132_v19 = vrot.slane %v5130_v62, 4  ;;  %v5138_v20 = vrot.slane %v5136_v4, 5  ;;  %v5143_v37 = vrot.slane %v5141_v35, 4  ;;  %v14355_v11 = vld [vmem:[%s17090_s3 + $0x140] sm:$0xff]  }
 0x1fe   :  { %v5124_v8 = vrot.slane %v5123_v26, 4  ;;  %v5146_v24 = vrot.slane %v5144_v10, 5  ;;  %v5154_v32 = vshrl.u32 %v5003_v22, 16  ;;  %v5152_v51 = vrot.slane %v5150_v33, 5  ;;  %v5011_v26 = vld [vmem:[#allocation2 + $0x48] sm:$0xf] }
 0x1ff   :  { %v2443_v41 = vsel %vm14812_vm2, %v2438_v28, %v2442_v16  ;;  %v5133_v43 = vor.u32 %v5132_v19, %v5128_v45  ;;  %v5160_v61 = vshll.u32 %v5004_v18, 16  ;;  %v11504_v55 = vcombine.low %v14349_v54, %v14350_v58  ;;  %v5010_v16 = vld [vmem:[#allocation2 + $0x44] sm:$0x1]  ;;  %v5012_v18 = vld [vmem:[#allocation2 + $0x4c] sm:$0xf] }
 0x200   :  { %v11495_v27 = vcombine.low %v2433_v39, %v2443_v41  ;;  %v5129_v49 = vsel %vm14812_vm2, %v5124_v8, %v5128_v45  ;;  %v5147_v46 = vor.u32 %v5146_v24, %v5143_v37  ;;  %v5156_v50 = vrot.slane %v5154_v32, 4  ;;  %v14356_v24 = vld [vmem:[#allocation2 + $0x24] sm:$0xf]  ;;  %v14357_v32 = vld [vmem:[#allocation2 + $0x28] sm:$0xf] }
 0x201   :  { %v5134_v56 = vrot.slane %v5133_v43, 4  ;;  %v5162_v44 = vrot.slane %v5160_v61, 5  ;;  %v11505_v1 = vcombine.low %v14351_v60, %v14352_v0  ;;  %v5165_v42 = vshrl.u32 %v5005_v47, 16  ;;  %v14221_v43 = vld [vmem:[%s17090_s3 + $0x88] sm:$0xff]   ;;  %v5015_v60 = vld [vmem:[#allocation2 + $0x58] sm:$0xf] }
 0x202   :  { %12846 = vmatmul.mubr.bf16.gmra.mrb[124].mxu0 %v11495_v27  ;;  %v5148_v3 = vrot.slane %v5147_v46, 4  ;;  %v5157_v5 = vor.u32 %v5156_v50, %v5152_v51  ;;  %v5168_v63 = vshll.u32 %v5005_v47, 16  ;;  %v5174_v9 = vshll.u32 %v5006_v7, 16  ;;  %v5013_v27 = vld [vmem:[#allocation2 + $0x50] sm:$0x1]  ;;  %v14200_v0 = vld [vmem:[%s17090_s3 + $0x158] sm:$0xff]  }
 0x203   :  { %v5139_v13 = vsel %vm14812_vm2, %v5134_v56, %v5138_v20  ;;  %12865 = vmatprep.mubr.bf16.mxu0 %v11504_v55  ;;  %v5178_v6 = vshrl.u32 %v5006_v7, 16  ;;  %v5184_v21 = vshll.u32 %v5007_v53, 16  ;;  %v5167_v31 = vrot.slane %v5165_v42, 4  ;;  %v14195_v20 = vld [vmem:[%s17090_s3 + $0x150] sm:$0xff]  }
 0x204   :  { %v11657_v23 = vcombine.low %v5129_v49, %v5139_v13  ;;  %v5153_v30 = vsel %vm14812_vm2, %v5148_v3, %v5152_v51  ;;  %v5158_v25 = vrot.slane %v5157_v5, 4  ;;  %v5170_v57 = vrot.slane %v5168_v63, 5  ;;  %v5014_v56 = vld [vmem:[#allocation2 + $0x54] sm:$0xf] }
 0x205   :  { %v5176_v52 = vrot.slane %v5174_v9, 5  ;;  %v5180_v34 = vrot.slane %v5178_v6, 4  ;;  %v5186_v59 = vrot.slane %v5184_v21, 5  ;;  %v11506_v38 = vcombine.low %v14353_v36, %v14354_v15  ;;  %v14224_v63 = vld [vmem:[%s17090_s3 + $0x90] sm:$0xff]  }
 0x206   :  { %13106 = vmatmul.mubr.bf16.vlgmr.msra.gmra.mrb[32].mxu1 %v11657_v23  ;;  %v5163_v17 = vsel %vm14812_vm2, %v5158_v25, %v5162_v44  ;;  %v5189_v12 = vshrl.u32 %v5008_v14, 16  ;;  %v5192_v22 = vshll.u32 %v5008_v14, 16  ;;  %v5171_v62 = vor.u32 %v5170_v57, %v5167_v31  ;;  %v14358_v6 = vld [vmem:[#allocation2 + $0x30] sm:$0xf]  ;;  %v14359_v21 = vld [vmem:[#allocation2 + $0x34] sm:$0xf] }
 0x207   :  { %13170 = vmatpush3.bf16.msra.mxu1 %v14355_v11  ;;  %v11658_v45 = vcombine.low %v5153_v30, %v5163_v17  ;;  %v5181_v4 = vor.u32 %v5180_v34, %v5176_v52  ;;  %v5198_v39 = vshll.u32 %v5009_v40, 16  ;;  %v5202_v28 = vshrl.u32 %v5009_v40, 16  ;;  %v5016_v31 = vld [vmem:[#allocation2 + $0x5c] sm:$0x1] }
 0x208   :  { %v5191_v35 = vrot.slane %v5189_v12, 4  ;;  %v5194_v10 = vrot.slane %v5192_v22, 5  ;;  %v5208_v19 = vshll.u32 %v5010_v16, 16  ;;  %13171 = vmatprep.subr.bf16.mxu1 %v14190_v29  ;;  %v5172_v33 = vrot.slane %v5171_v62, 4  ;;  %v14205_v12 = vld [vmem:[%s17090_s3 + $0x160] sm:$0xff]   ;;  %v14226_v22 = vld [vmem:[%s17090_s3 + $0x98] sm:$0xff]  }
 0x209   :  { %13109 = vmatprep.mubr.bf16.mxu1 %v11658_v45  ;;  %v5182_v8 = vrot.slane %v5181_v4, 4  ;;  %v5200_v37 = vrot.slane %v5198_v39, 5  ;;  %v11507_v41 = vcombine.low %v14356_v24, %v14357_v32  ;;  %v5204_v61 = vrot.slane %v5202_v28, 4  ;;  %v14360_v4 = vld [vmem:[#allocation2 + $0x3c] sm:$0xf] }
 0x20a   :  { %12866 = vmatmul.mubr.bf16.vlgmr.msra.gmra.mrb[64].mxu0 %v11505_v1  ;;  %v5195_v51 = vor.u32 %v5194_v10, %v5191_v35  ;;  %v5210_v47 = vrot.slane %v5208_v19, 5  ;;  %v5213_v49 = vshrl.u32 %v5011_v26, 16  ;;  %v5177_v46 = vsel %vm14812_vm2, %v5172_v33, %v5176_v52  ;;  %v14361_v39 = vld [vmem:[#allocation2 + $0x40] sm:$0xf]  ;;  %v5019_v33 = vld [vmem:[#allocation2 + $0x68] sm:$0x1] }
 0x20b   :  { %v5187_v50 = vsel %vm14812_vm2, %v5182_v8, %v5186_v59  ;;  %12869 = vmatprep.mubr.bf16.mxu0 %v11506_v38  ;;  %v5216_v7 = vshll.u32 %v5011_v26, 16  ;;  %v5222_v53 = vshll.u32 %v5012_v18, 16  ;;  %13172 = vmatpush3.bf16.msra.mxu1 %v14190_v29  ;;  %v5205_v58 = vor.u32 %v5204_v61, %v5200_v37  ;;  %v5017_v59 = vld [vmem:[#allocation2 + $0x60] sm:$0xf]  ;;  %v5018_v38 = vld [vmem:[#allocation2 + $0x64] sm:$0xf] }
 0x20c   :  { %v11659_v44 = vcombine.low %v5177_v46, %v5187_v50  ;;  %v5196_v54 = vrot.slane %v5195_v51, 4  ;;  %v5215_v55 = vrot.slane %v5213_v49, 4  ;;  %13173 = vmatprep.subr.bf16.mxu1 %v14195_v20  ;;  %12930 = vmatpush3.bf16.msra.mxu0 %v15391_v48  ;;  %v5226_v5 = vshrl.u32 %v5012_v18, 16  ;;  %v5020_v51 = vld [vmem:[#allocation2 + $0x6c] sm:$0xf]  ;;  %v14228_v61 = vld [vmem:[%s17090_s3 + $0xa0] sm:$0xff]  }
 0x20d   :  { %v5218_v1 = vrot.slane %v5216_v7, 5  ;;  %v5224_v3 = vrot.slane %v5222_v53, 5  ;;  %v5232_v42 = vshll.u32 %v5013_v27, 16  ;;  %12931 = vmatprep.subr.bf16.mxu0 %v14221_v43  ;;  %v5206_v9 = vrot.slane %v5205_v58, 4  ;;  %v5021_v50 = vld [vmem:[#allocation2 + $0x70] sm:$0xf] }
 0x20e   :  { %13110 = vmatmul.mubr.bf16.gmra.mrb[36].mxu1 %v11659_v44  ;;  %v5201_v13 = vsel %vm14812_vm2, %v5196_v54, %v5200_v37  ;;  %v11508_v14 = vcombine.low %v14358_v6, %v14359_v21  ;;  %v5237_v23 = vshrl.u32 %v5014_v56, 16  ;;  %v5228_v48 = vrot.slane %v5226_v5, 4  ;;  %v14210_v7 = vld [vmem:[%s17090_s3 + $0x168] sm:$0xff]   ;;  %v5024_v21 = vld [vmem:[#allocation2 + $0x7c] sm:$0xf] }
 0x20f   :  { %v5219_v30 = vor.u32 %v5218_v1, %v5215_v55  ;;  %v5234_v25 = vrot.slane %v5232_v42, 5  ;;  %v5240_v40 = vshll.u32 %v5014_v56, 16  ;;  %13174 = vmatpush3.bf16.msra.mxu1 %v14195_v20  ;;  %v5211_v29 = vsel %vm14812_vm2, %v5206_v9, %v5210_v47  ;;  %v14362_v54 = vld [vmem:[#allocation2 + $0x48] sm:$0xf]  ;;  %v14363_v58 = vld [vmem:[#allocation2 + $0x4c] sm:$0xf] }
 0x210   :  { %v5239_v57 = vrot.slane %v5237_v23, 4  ;;  %v5246_v52 = vshll.u32 %v5015_v60, 16  ;;  %v5250_v34 = vshrl.u32 %v5015_v60, 16  ;;  %13175 = vmatprep.subr.bf16.mxu1 %v14200_v0  ;;  %12932 = vmatpush3.bf16.msra.mxu0 %v14221_v43  ;;  %v11660_v16 = vcombine.low %v5201_v13, %v5211_v29  ;;  %v5022_v1 = vld [vmem:[#allocation2 + $0x74] sm:$0x1] }
 0x211   :  { %v5220_v17 = vrot.slane %v5219_v30, 4  ;;  %v5229_v36 = vor.u32 %v5228_v48, %v5224_v3  ;;  %v5242_v15 = vrot.slane %v5240_v40, 5  ;;  %12933 = vmatprep.subr.bf16.mxu0 %v14224_v63  ;;  %v5256_v62 = vshll.u32 %v5016_v31, 16  ;;  %v5023_v42 = vld [vmem:[#allocation2 + $0x78] sm:$0xf]  ;;  %v14215_v31 = vld [vmem:[%s17090_s3 + $0x170] sm:$0xff]  }
 0x212   :  { %12870 = vmatmul.mubr.bf16.gmra.mrb[68].mxu0 %v11507_v41  ;;  %v5248_v11 = vrot.slane %v5246_v52, 5  ;;  %v5252_v45 = vrot.slane %v5250_v34, 4  ;;  %v11509_v26 = vcombine.low %v14360_v4, %v14361_v39  ;;  %13113 = vmatprep.mubr.bf16.mxu1 %v11660_v16  ;;  %v5261_v28 = vshrl.u32 %v5017_v59, 16  ;;  %v14364_v52 = vld [vmem:[#allocation2 + $0x54] sm:$0xf] }
 0x213   :  { %v5225_v18 = vsel %vm14812_vm2, %v5220_v17, %v5224_v3  ;;  %v5230_v35 = vrot.slane %v5229_v36, 4  ;;  %12873 = vmatprep.mubr.bf16.mxu0 %v11508_v14  ;;  %v5243_v10 = vor.u32 %v5242_v15, %v5239_v57  ;;  %v5258_v20 = vrot.slane %v5256_v62, 5  ;;  %13176 = vmatpush3.bf16.msra.mxu1 %v14200_v0  ;;  %v14230_v14 = vld [vmem:[%s17090_s3 + $0xa8] sm:$0xff]   ;;  %v14365_v34 = vld [vmem:[#allocation2 + $0x58] sm:$0xf]  ;;  %v14233_v4 = vld [vmem:[%s17090_s3 + $0xb0] sm:$0xff]  }
 0x214   :  { %v5253_v19 = vor.u32 %v5252_v45, %v5248_v11  ;;  %v5264_v8 = vshll.u32 %v5017_v59, 16  ;;  %v5270_v37 = vshll.u32 %v5018_v38, 16  ;;  %12934 = vmatpush3.bf16.msra.mxu0 %v14224_v63  ;;  %v5263_v41 = vrot.slane %v5261_v28, 4  ;;  %13177 = vmatprep.subr.bf16.mxu1 %v14205_v12  ;;  %v5025_v15 = vld [vmem:[#allocation2 + $0x80] sm:$0x1] }
 0x215   :  { %v5235_v24 = vsel %vm14812_vm2, %v5230_v35, %v5234_v25  ;;  %v5244_v32 = vrot.slane %v5243_v10, 4  ;;  %v5274_v43 = vshrl.u32 %v5018_v38, 16  ;;  %12935 = vmatprep.subr.bf16.mxu0 %v14226_v22  ;;  %v5280_v44 = vshll.u32 %v5019_v33, 16  ;;  %v5026_v62 = vld [vmem:[#allocation2 + $0x84] sm:$0xf]  ;;  %v14222_v10 = vld [vmem:[%s17090_s3 + $0x178] sm:$0xff]  }
 0x216   :  { %v11661_v47 = vcombine.low %v5225_v18, %v5235_v24  ;;  %v5254_v27 = vrot.slane %v5253_v19, 4  ;;  %v5266_v49 = vrot.slane %v5264_v8, 5  ;;  %v5272_v46 = vrot.slane %v5270_v37, 5  ;;  %v5027_v8 = vld [vmem:[#allocation2 + $0x88] sm:$0xf] }
 0x217   :  { %v5249_v53 = vsel %vm14812_vm2, %v5244_v32, %v5248_v11  ;;  %v5276_v56 = vrot.slane %v5274_v43, 4  ;;  %v11510_v55 = vcombine.low %v14362_v54, %v14363_v58  ;;  %v5285_v3 = vshrl.u32 %v5020_v51, 16  ;;  %13178 = vmatpush3.bf16.msra.mxu1 %v14205_v12  ;;  %v14366_v32 = vld [vmem:[#allocation2 + $0x60] sm:$0xf]  ;;  %v14234_v58 = vld [vmem:[%s17090_s3 + $0xb8] sm:$0xff]  }
 0x218   :  { %13114 = vmatmul.mubr.bf16.gmra.mrb[40].mxu1 %v11661_v47  ;;  %v5259_v60 = vsel %vm14812_vm2, %v5254_v27, %v5258_v20  ;;  %v5267_v0 = vor.u32 %v5266_v49, %v5263_v41  ;;  %v5288_v5 = vshll.u32 %v5020_v51, 16  ;;  %12936 = vmatpush3.bf16.msra.mxu0 %v14226_v22  ;;  %v5282_v9 = vrot.slane %v5280_v44, 5  ;;  %v14367_v41 = vld [vmem:[#allocation2 + $0x64] sm:$0xf]  ;;  %v5028_v51 = vld [vmem:[#allocation2 + $0x8c] sm:$0x1] }
 0x219   :  { %v11662_v63 = vcombine.low %v5249_v53, %v5259_v60  ;;  %v5277_v13 = vor.u32 %v5276_v56, %v5272_v46  ;;  %v5294_v6 = vshll.u32 %v5021_v50, 16  ;;  %12937 = vmatprep.subr.bf16.mxu0 %v14228_v61  ;;  %v5287_v30 = vrot.slane %v5285_v3, 4  ;;  %13179 = vmatprep.subr.bf16.mxu1 %v14210_v7  ;;  %v14231_v54 = vld [vmem:[%s17090_s3 + $0x180] sm:$0xff]   ;;  %v5030_v3 = vld [vmem:[#allocation2 + $0x94] sm:$0xf] }
 0x21a   :  { %12874 = vmatmul.mubr.bf16.gmra.mrb[72].mxu0 %v11509_v26  ;;  %v5268_v23 = vrot.slane %v5267_v0, 4  ;;  %v5290_v48 = vrot.slane %v5288_v5, 5  ;;  %v5298_v25 = vshrl.u32 %v5021_v50, 16  ;;  %v5304_v57 = vshll.u32 %v5022_v1, 16  ;;  %v5029_v50 = vld [vmem:[#allocation2 + $0x90] sm:$0xf] }
 0x21b   :  { %13117 = vmatprep.mubr.bf16.mxu1 %v11662_v63  ;;  %v5278_v40 = vrot.slane %v5277_v13, 4  ;;  %12877 = vmatprep.mubr.bf16.mxu0 %v11510_v55  ;;  %v5296_v29 = vrot.slane %v5294_v6, 5  ;;  %v11511_v59 = vcombine.low %v14364_v52, %v14365_v34  ;;  %v5309_v38 = vshrl.u32 %v5023_v42, 16  ;;  %v14368_v13 = vld [vmem:[#allocation2 + $0x6c] sm:$0xf] }
 0x21c   :  { %v5273_v16 = vsel %vm14812_vm2, %v5268_v23, %v5272_v46  ;;  %v5291_v17 = vor.u32 %v5290_v48, %v5287_v30  ;;  %v5300_v36 = vrot.slane %v5298_v25, 4  ;;  %12938 = vmatpush3.bf16.msra.mxu0 %v14228_v61  ;;  %v5306_v22 = vrot.slane %v5304_v57, 5  ;;  %13180 = vmatpush3.bf16.msra.mxu1 %v14210_v7 }
 0x21d   :  { %v5283_v12 = vsel %vm14812_vm2, %v5278_v40, %v5282_v9  ;;  %v5312_v11 = vshll.u32 %v5023_v42, 16  ;;  %v5318_v45 = vshll.u32 %v5024_v21, 16  ;;  %12939 = vmatprep.subr.bf16.mxu0 %v14230_v14  ;;  %v5311_v35 = vrot.slane %v5309_v38, 4  ;;  %13181 = vmatprep.subr.bf16.mxu1 %v14215_v31  ;;  %v14369_v9 = vld [vmem:[#allocation2 + $0x70] sm:$0xf] }
 0x21e   :  { %v11663_v39 = vcombine.low %v5273_v16, %v5283_v12  ;;  %v5292_v26 = vrot.slane %v5291_v17, 4  ;;  %v5301_v18 = vor.u32 %v5300_v36, %v5296_v29  ;;  %v5322_v20 = vshrl.u32 %v5024_v21, 16  ;;  %v5032_v16 = vld [vmem:[#allocation2 + $0x9c] sm:$0xf]  ;;  %v5033_v12 = vld [vmem:[#allocation2 + $0xa0] sm:$0xf] }
 0x21f   :  { %v5314_v28 = vrot.slane %v5312_v11, 5  ;;  %v5320_v19 = vrot.slane %v5318_v45, 5  ;;  %v5328_v33 = vshll.u32 %v5025_v15, 16  ;;  %v11512_v43 = vcombine.low %v14366_v32, %v14367_v41 }
 0x220   :  { %13118 = vmatmul.mubr.bf16.gmra.mrb[44].mxu1 %v11663_v39  ;;  %v5297_v37 = vsel %vm14812_vm2, %v5292_v26, %v5296_v29  ;;  %v5302_v24 = vrot.slane %v5301_v18, 4  ;;  %v5333_v61 = vshrl.u32 %v5026_v62, 16  ;;  %12940 = vmatpush3.bf16.msra.mxu0 %v14230_v14  ;;  %v5324_v27 = vrot.slane %v5322_v20, 4  ;;  %v14372_v26 = vld [vmem:[%s17090_s3 + $0xc0] sm:$0xff]  }
 0x221   :  { %v5315_v47 = vor.u32 %v5314_v28, %v5311_v35  ;;  %v5330_v49 = vrot.slane %v5328_v33, 5  ;;  %v5336_v46 = vshll.u32 %v5026_v62, 16  ;;  %13182 = vmatpush3.bf16.msra.mxu1 %v14215_v31  ;;  %12941 = vmatprep.subr.bf16.mxu0 %v14233_v4  ;;  %v5342_v56 = vshll.u32 %v5027_v8, 16  ;;  %v5031_v31 = vld [vmem:[#allocation2 + $0x98] sm:$0x1] }
 0x222   :  { %v5307_v7 = vsel %vm14812_vm2, %v5302_v24, %v5306_v22  ;;  %12878 = vmatmul.mubr.bf16.gmra.mrb[76].mxu0 %v11511_v59  ;;  %v5335_v53 = vrot.slane %v5333_v61, 4  ;;  %v5346_v44 = vshrl.u32 %v5027_v8, 16  ;;  %13183 = vmatprep.subr.bf16.mxu1 %v14222_v10  ;;  %v5325_v0 = vor.u32 %v5324_v27, %v5320_v19  ;;  %v14370_v62 = vld [vmem:[#allocation2 + $0x78] sm:$0xf]  ;;  %v5035_v24 = vld [vmem:[#allocation2 + $0xa8] sm:$0xf] }
 0x223   :  { %v11664_v55 = vcombine.low %v5297_v37, %v5307_v7  ;;  %v5316_v60 = vrot.slane %v5315_v47, 4  ;;  %12881 = vmatprep.mubr.bf16.mxu0 %v11512_v43  ;;  %v5338_v1 = vrot.slane %v5336_v46, 5  ;;  %v5344_v5 = vrot.slane %v5342_v56, 5  ;;  %v5036_v61 = vld [vmem:[#allocation2 + $0xac] sm:$0xf] }
 0x224   :  { %v5348_v42 = vrot.slane %v5346_v44, 4  ;;  %v5352_v63 = vshll.u32 %v5028_v51, 16  ;;  %v11513_v6 = vcombine.low %v14368_v13, %v14369_v9  ;;  %12942 = vmatpush3.bf16.msra.mxu0 %v14233_v4  ;;  %v5326_v14 = vrot.slane %v5325_v0, 4  ;;  %v14371_v4 = vld [vmem:[#allocation2 + $0x7c] sm:$0xf] }
 0x225   :  { %13121 = vmatprep.mubr.bf16.mxu1 %v11664_v55  ;;  %v5321_v21 = vsel %vm14812_vm2, %v5316_v60, %v5320_v19  ;;  %v5339_v23 = vor.u32 %v5338_v1, %v5335_v53  ;;  %v5357_v30 = vshrl.u32 %v5029_v50, 16  ;;  %13184 = vmatpush3.bf16.msra.mxu1 %v14222_v10  ;;  %v5360_v40 = vshll.u32 %v5029_v50, 16  ;;  %v5034_v10 = vld [vmem:[#allocation2 + $0xa4] sm:$0x1]  ;;  %v14374_v50 = vld [vmem:[#allocation2 + $0x88] sm:$0xf] }
 0x226   :  { %v5349_v48 = vor.u32 %v5348_v42, %v5344_v5  ;;  %v5354_v25 = vrot.slane %v5352_v63, 5  ;;  %v5366_v29 = vshll.u32 %v5030_v3, 16  ;;  %13249 = vmatprep.subr.bf16.mxu1 %v14231_v54  ;;  %12943 = vmatprep.subr.bf16.mxu0 %v14234_v58  ;;  %v5331_v57 = vsel %vm14812_vm2, %v5326_v14, %v5330_v49  ;;  %v14373_v46 = vld [vmem:[#allocation2 + $0x84] sm:$0xf]  ;;  %v5037_v54 = vld [vmem:[#allocation2 + $0xb0] sm:$0x1] }
 0x227   :  { %v5340_v52 = vrot.slane %v5339_v23, 4  ;;  %v5359_v34 = vrot.slane %v5357_v30, 4  ;;  %v5370_v59 = vshrl.u32 %v5030_v3, 16  ;;  %v11665_v17 = vcombine.low %v5321_v21, %v5331_v57  ;;  %v5038_v3 = vld [vmem:[#allocation2 + $0xb4] sm:$0xf] }
 0x228   :  { %v5350_v36 = vrot.slane %v5349_v48, 4  ;;  %v5362_v15 = vrot.slane %v5360_v40, 5  ;;  %v5368_v38 = vrot.slane %v5366_v29, 5  ;;  %12944 = vmatpush3.bf16.msra.mxu0 %v14234_v58  ;;  %v5376_v45 = vshll.u32 %v5031_v31, 16  ;;  %v5039_v23 = vld [vmem:[#allocation2 + $0xb8] sm:$0xf] }
 0x229   :  { %v5345_v22 = vsel %vm14812_vm2, %v5340_v52, %v5344_v5  ;;  %v5372_v11 = vrot.slane %v5370_v59, 4  ;;  %v11514_v39 = vcombine.low %v14370_v62, %v14371_v4  ;;  %13009 = vmatprep.subr.bf16.mxu0 %v14372_v26  ;;  %13122 = vmatmul.mubr.bf16.gmra.mrb[48].mxu1 %v11665_v17  ;;  %v5381_v28 = vshrl.u32 %v5032_v16, 16  ;;  %v14376_v31 = vld [vmem:[#allocation2 + $0x94] sm:$0xf]  ;;  %v5040_v59 = vld [vmem:[#allocation2 + $0xbc] sm:$0x1] }
 0x22a   :  { %v5355_v18 = vsel %vm14812_vm2, %v5350_v36, %v5354_v25  ;;  %12882 = vmatmul.mubr.bf16.gmra.mrb[80].mxu0 %v11513_v6  ;;  %v5363_v35 = vor.u32 %v5362_v15, %v5359_v34  ;;  %v5384_v19 = vshll.u32 %v5032_v16, 16  ;;  %v5378_v8 = vrot.slane %v5376_v45, 5  ;;  %v14375_v25 = vld [vmem:[#allocation2 + $0x90] sm:$0xf]  ;;  %v5042_v4 = vld [vmem:[#allocation2 + $0xc4] sm:$0xf] }
 0x22b   :  { %v11666_v20 = vcombine.low %v5345_v22, %v5355_v18  ;;  %v5373_v33 = vor.u32 %v5372_v11, %v5368_v38  ;;  %12885 = vmatprep.mubr.bf16.mxu0 %v11514_v39  ;;  %v5390_v37 = vshll.u32 %v5033_v12, 16  ;;  %v5383_v41 = vrot.slane %v5381_v28, 4 }
 0x22c   :  { %v5364_v32 = vrot.slane %v5363_v35, 4  ;;  %v5386_v43 = vrot.slane %v5384_v19, 5  ;;  %v5394_v51 = vshrl.u32 %v5033_v12, 16  ;;  %v5400_v49 = vshll.u32 %v5034_v10, 16  ;;  %v5041_v12 = vld [vmem:[#allocation2 + $0xc0] sm:$0xf] }
 0x22d   :  { %13125 = vmatprep.mubr.bf16.mxu1 %v11666_v20  ;;  %v5374_v47 = vrot.slane %v5373_v33, 4  ;;  %v5392_v27 = vrot.slane %v5390_v37, 5  ;;  %v11515_v7 = vcombine.low %v14373_v46, %v14374_v50  ;;  %v5405_v58 = vshrl.u32 %v5035_v24, 16  ;;  %v14377_v35 = vld [vmem:[#allocation2 + $0x9c] sm:$0xf] }
 0x22e   :  { %v5369_v53 = vsel %vm14812_vm2, %v5364_v32, %v5368_v38  ;;  %v5387_v56 = vor.u32 %v5386_v43, %v5383_v41  ;;  %v5396_v44 = vrot.slane %v5394_v51, 4  ;;  %v5402_v60 = vrot.slane %v5400_v49, 5  ;;  %v14378_v10 = vld [vmem:[#allocation2 + $0xa0] sm:$0xf]  ;;  %v5043_v32 = vld [vmem:[#allocation2 + $0xc8] sm:$0x1] }
 0x22f   :  { %v5379_v55 = vsel %vm14812_vm2, %v5374_v47, %v5378_v8  ;;  %v5408_v0 = vshll.u32 %v5035_v24, 16  ;;  %v5414_v1 = vshll.u32 %v5036_v61, 16  ;;  %v5407_v13 = vrot.slane %v5405_v58, 4  ;;  %v5044_v49 = vld [vmem:[#allocation2 + $0xe4] sm:$0xf] }
 0x230   :  { %v11667_v5 = vcombine.low %v5369_v53, %v5379_v55  ;;  %v5388_v42 = vrot.slane %v5387_v56, 4  ;;  %v5397_v63 = vor.u32 %v5396_v44, %v5392_v27  ;;  %v5418_v21 = vshrl.u32 %v5036_v61, 16  ;;  %v5045_v56 = vld [vmem:[#allocation2 + $0xe8] sm:$0xf] }
 0x231   :  { %v5410_v9 = vrot.slane %v5408_v0, 5  ;;  %v5416_v6 = vrot.slane %v5414_v1, 5  ;;  %v5424_v14 = vshll.u32 %v5037_v54, 16  ;;  %v11516_v40 = vcombine.low %v14375_v25, %v14376_v31  ;;  %v14379_v55 = vld [vmem:[#allocation2 + $0xa8] sm:$0xf] }
 0x232   :  { %13126 = vmatmul.mubr.bf16.gmra.mrb[52].mxu1 %v11667_v5  ;;  %v5393_v30 = vsel %vm14812_vm2, %v5388_v42, %v5392_v27  ;;  %v5398_v48 = vrot.slane %v5397_v63, 4  ;;  %12886 = vmatmul.mubr.bf16.gmra.mrb[84].mxu0 %v11515_v7  ;;  %v5429_v29 = vshrl.u32 %v5038_v3, 16  ;;  %v5420_v52 = vrot.slane %v5418_v21, 4  ;;  %v5046_v5 = vld [vmem:[#allocation2 + $0xec] sm:$0x1] }
 0x233   :  { %v5411_v57 = vor.u32 %v5410_v9, %v5407_v13  ;;  %v5426_v34 = vrot.slane %v5424_v14, 5  ;;  %v5432_v16 = vshll.u32 %v5038_v3, 16  ;;  %12889 = vmatprep.mubr.bf16.mxu0 %v11516_v40  ;;  %v5438_v15 = vshll.u32 %v5039_v23, 16  ;;  %v5047_v14 = vld [vmem:[#allocation2 + $0xf0] sm:$0xf] }
 0x234   :  { %v5403_v17 = vsel %vm14812_vm2, %v5398_v48, %v5402_v60  ;;  %v5431_v36 = vrot.slane %v5429_v29, 4  ;;  %v5442_v38 = vshrl.u32 %v5039_v23, 16  ;;  %v5421_v45 = vor.u32 %v5420_v52, %v5416_v6  ;;  %v14380_v60 = vld [vmem:[#allocation2 + $0xac] sm:$0xf]  ;;  %v5048_v31 = vld [vmem:[#allocation2 + $0xf4] sm:$0xf] }
 0x235   :  { %v11668_v22 = vcombine.low %v5393_v30, %v5403_v17  ;;  %v5412_v11 = vrot.slane %v5411_v57, 4  ;;  %v5434_v62 = vrot.slane %v5432_v16, 5  ;;  %v5440_v39 = vrot.slane %v5438_v15, 5  ;;  %v14381_v52 = vld [vmem:[#allocation2 + $0xb4] sm:$0xf] }
 0x236   :  { %v5444_v26 = vrot.slane %v5442_v38, 4  ;;  %v5448_v18 = vshll.u32 %v5040_v59, 16  ;;  %v11517_v28 = vcombine.low %v14377_v35, %v14378_v10  ;;  %v5422_v20 = vrot.slane %v5421_v45, 4  ;;  %v5049_v15 = vld [vmem:[#allocation2 + $0xf8] sm:$0x1] }
 0x237   :  { %13129 = vmatprep.mubr.bf16.mxu1 %v11668_v22  ;;  %v5417_v19 = vsel %vm14812_vm2, %v5412_v11, %v5416_v6  ;;  %v5435_v33 = vor.u32 %v5434_v62, %v5431_v36  ;;  %v5453_v8 = vshrl.u32 %v5041_v12, 16  ;;  %v5456_v41 = vshll.u32 %v5041_v12, 16  ;;  %v5050_v62 = vld [vmem:[#allocation2 + $0xfc] sm:$0xf]  ;;  %v5051_v35 = vld [vmem:[#allocation2 + $0x100] sm:$0xf] }
 0x238   :  { %v5445_v37 = vor.u32 %v5444_v26, %v5440_v39  ;;  %v5450_v24 = vrot.slane %v5448_v18, 5  ;;  %v5462_v43 = vshll.u32 %v5042_v4, 16  ;;  %v5427_v51 = vsel %vm14812_vm2, %v5422_v20, %v5426_v34  ;;  %v14382_v34 = vld [vmem:[#allocation2 + $0xb8] sm:$0xf] }
 0x239   :  { %v5436_v61 = vrot.slane %v5435_v33, 4  ;;  %v5455_v47 = vrot.slane %v5453_v8, 4  ;;  %v5466_v27 = vshrl.u32 %v5042_v4, 16  ;;  %v11669_v46 = vcombine.low %v5417_v19, %v5427_v51  ;;  %v5052_v51 = vld [vmem:[#allocation2 + $0x104] sm:$0x1] }
 0x23a   :  { %v5446_v50 = vrot.slane %v5445_v37, 4  ;;  %12890 = vmatmul.mubr.bf16.gmra.mrb[88].mxu0 %v11517_v28  ;;  %v5458_v7 = vrot.slane %v5456_v41, 5  ;;  %v5464_v53 = vrot.slane %v5462_v43, 5  ;;  %v5472_v58 = vshll.u32 %v5043_v32, 16 }
 0x23b   :  { %v5441_v44 = vsel %vm14812_vm2, %v5436_v61, %v5440_v39  ;;  %v5468_v54 = vrot.slane %v5466_v27, 4  ;;  %v11518_v0 = vcombine.low %v14379_v55, %v14380_v60  ;;  %13130 = vmatmul.mubr.bf16.gmra.mrb[56].mxu1 %v11669_v46  ;;  %v5477_v42 = vshrl.u32 %v5044_v49, 16  ;;  %v14383_v60 = vld [vmem:[#allocation2 + $0xd8] sm:$0xf] }
 0x23c   :  { %v5451_v1 = vsel %vm14812_vm2, %v5446_v50, %v5450_v24  ;;  %v5459_v3 = vor.u32 %v5458_v7, %v5455_v47  ;;  %v5480_v63 = vshll.u32 %v5044_v49, 16  ;;  %v5474_v6 = vrot.slane %v5472_v58, 5  ;;  %v5053_v50 = vld [vmem:[#allocation2 + $0x108] sm:$0xf] }
 0x23d   :  { %v11670_v13 = vcombine.low %v5441_v44, %v5451_v1  ;;  %v5469_v9 = vor.u32 %v5468_v54, %v5464_v53  ;;  %12893 = vmatprep.mubr.bf16.mxu0 %v11518_v0  ;;  %v5486_v21 = vshll.u32 %v5045_v56, 16  ;;  %v5479_v30 = vrot.slane %v5477_v42, 4  ;;  %v14384_v0 = vld [vmem:[#allocation2 + $0xdc] sm:$0xf] }
 0x23e   :  { %v5460_v23 = vrot.slane %v5459_v3, 4  ;;  %v5482_v48 = vrot.slane %v5480_v63, 5  ;;  %v5490_v25 = vshrl.u32 %v5045_v56, 16  ;;  %v5496_v57 = vshll.u32 %v5046_v5, 16  ;;  %v5054_v3 = vld [vmem:[#allocation2 + $0x10c] sm:$0xf] }
 0x23f   :  { %13133 = vmatprep.mubr.bf16.mxu1 %v11670_v13  ;;  %v5470_v40 = vrot.slane %v5469_v9, 4  ;;  %v5488_v29 = vrot.slane %v5486_v21, 5  ;;  %v11519_v59 = vcombine.low %v14381_v52, %v14382_v34  ;;  %v5501_v38 = vshrl.u32 %v5047_v14, 16  ;;  %v14385_v63 = vld [vmem:[#allocation2 + $0xe4] sm:$0xf] }
 0x240   :  { %v5465_v16 = vsel %vm14812_vm2, %v5460_v23, %v5464_v53  ;;  %v5483_v17 = vor.u32 %v5482_v48, %v5479_v30  ;;  %v5492_v36 = vrot.slane %v5490_v25, 4  ;;  %v5498_v22 = vrot.slane %v5496_v57, 5  ;;  %v14386_v13 = vld [vmem:[#allocation2 + $0xe8] sm:$0xf]  ;;  %v5055_v30 = vld [vmem:[#allocation2 + $0x110] sm:$0x1] }
 0x241   :  { %v5475_v12 = vsel %vm14812_vm2, %v5470_v40, %v5474_v6  ;;  %v5504_v11 = vshll.u32 %v5047_v14, 16  ;;  %v5510_v45 = vshll.u32 %v5048_v31, 16  ;;  %v5503_v18 = vrot.slane %v5501_v38, 4  ;;  %v5056_v57 = vld [vmem:[#allocation2 + $0x114] sm:$0xf] }
 0x242   :  { %v11671_v4 = vcombine.low %v5465_v16, %v5475_v12  ;;  %v5484_v39 = vrot.slane %v5483_v17, 4  ;;  %v5493_v26 = vor.u32 %v5492_v36, %v5488_v29  ;;  %12894 = vmatmul.mubr.bf16.gmra.mrb[92].mxu0 %v11519_v59  ;;  %v5514_v19 = vshrl.u32 %v5048_v31, 16  ;;  %v5057_v17 = vld [vmem:[#allocation2 + $0x118] sm:$0xf]  ;;  %v14387_v12 = vld [vmem:[#allocation2 + $0xf0] sm:$0xf] }
 0x243   :  { %v5506_v10 = vrot.slane %v5504_v11, 5  ;;  %v5512_v28 = vrot.slane %v5510_v45, 5  ;;  %v5520_v20 = vshll.u32 %v5049_v15, 16  ;;  %v5525_v37 = vshrl.u32 %v5050_v62, 16 }
 0x244   :  { %13134 = vmatmul.mubr.bf16.gmra.mrb[60].mxu1 %v11671_v4  ;;  %v5489_v33 = vsel %vm14812_vm2, %v5484_v39, %v5488_v29  ;;  %v5494_v8 = vrot.slane %v5493_v26, 4  ;;  %v5528_v24 = vshll.u32 %v5050_v62, 16  ;;  %v5516_v41 = vrot.slane %v5514_v19, 4  ;;  %v5058_v4 = vld [vmem:[#allocation2 + $0x11c] sm:$0x1] }
 0x245   :  { %v5507_v32 = vor.u32 %v5506_v10, %v5503_v18  ;;  %v5522_v43 = vrot.slane %v5520_v20, 5  ;;  %v5534_v61 = vshll.u32 %v5051_v35, 16  ;;  %v5527_v27 = vrot.slane %v5525_v37, 4  ;;  %v5059_v19 = vld [vmem:[#allocation2 + $0x120] sm:$0xf] }
 0x246   :  { %v5499_v47 = vsel %vm14812_vm2, %v5494_v8, %v5498_v22  ;;  %v5530_v49 = vrot.slane %v5528_v24, 5  ;;  %v5538_v46 = vshrl.u32 %v5051_v35, 16  ;;  %v5517_v56 = vor.u32 %v5516_v41, %v5512_v28  ;;  %v14388_v22 = vld [vmem:[#allocation2 + $0xf4] sm:$0xf]  ;;  %v5060_v24 = vld [vmem:[#allocation2 + $0x124] sm:$0xf] }
 0x247   :  { %v11672_v7 = vcombine.low %v5489_v33, %v5499_v47  ;;  %v5508_v53 = vrot.slane %v5507_v32, 4  ;;  %v5536_v44 = vrot.slane %v5534_v61, 5  ;;  %v5544_v55 = vshll.u32 %v5052_v51, 16  ;;  %v14389_v51 = vld [vmem:[#allocation2 + $0xfc] sm:$0xf] }
 0x248   :  { %v5531_v54 = vor.u32 %v5530_v49, %v5527_v27  ;;  %v5540_v58 = vrot.slane %v5538_v46, 4  ;;  %v11520_v1 = vcombine.low %v14383_v60, %v14384_v0  ;;  %v5518_v42 = vrot.slane %v5517_v56, 4  ;;  %v14390_v61 = vld [vmem:[#allocation2 + $0x100] sm:$0xf] }
 0x249   :  { %13137 = vmatprep.mubr.bf16.mxu1 %v11672_v7  ;;  %v5513_v5 = vsel %vm14812_vm2, %v5508_v53, %v5512_v28  ;;  %v11521_v9 = vcombine.low %v14385_v63, %v14386_v13  ;;  %v5549_v6 = vshrl.u32 %v5053_v50, 16  ;;  %v5546_v23 = vrot.slane %v5544_v55, 5  ;;  %v5063_v13 = vld [vmem:[#allocation2 + $0x130] sm:$0xf] }
 0x24a   :  { %v5532_v21 = vrot.slane %v5531_v54, 4  ;;  %v5541_v14 = vor.u32 %v5540_v58, %v5536_v44  ;;  %12897 = vmatprep.mubr.bf16.mxu0 %v11520_v1  ;;  %v5552_v48 = vshll.u32 %v5053_v50, 16  ;;  %v5523_v25 = vsel %vm14812_vm2, %v5518_v42, %v5522_v43  ;;  %v5061_v50 = vld [vmem:[#allocation2 + $0x128] sm:$0x1]  ;;  %v5062_v58 = vld [vmem:[#allocation2 + $0x12c] sm:$0xf] }
 0x24b   :  { %12898 = vmatmul.mubr.bf16.gmra.mrb[96].mxu0 %v11521_v9  ;;  %v5551_v31 = vrot.slane %v5549_v6, 4  ;;  %v5558_v40 = vshll.u32 %v5054_v3, 16  ;;  %v5562_v29 = vshrl.u32 %v5054_v3, 16  ;;  %v11673_v52 = vcombine.low %v5513_v5, %v5523_v25 }
 0x24c   :  { %v5537_v34 = vsel %vm14812_vm2, %v5532_v21, %v5536_v44  ;;  %v5542_v59 = vrot.slane %v5541_v14, 4  ;;  %v5554_v16 = vrot.slane %v5552_v48, 5  ;;  %v5568_v38 = vshll.u32 %v5055_v30, 16  ;;  %v14391_v21 = vld [vmem:[#allocation2 + $0x108] sm:$0xf] }
 0x24d   :  { %v5560_v36 = vrot.slane %v5558_v40, 5  ;;  %v5564_v15 = vrot.slane %v5562_v29, 4  ;;  %v11522_v11 = vcombine.low %v14387_v12, %v14388_v22  ;;  %13138 = vmatmul.mubr.bf16.gmra.mrb[0].mxu1 %v11673_v52  ;;  %v5573_v39 = vshrl.u32 %v5056_v57, 16  ;;  %v14392_v14 = vld [vmem:[#allocation2 + $0x10c] sm:$0xf] }
 0x24e   :  { %v5547_v45 = vsel %vm14812_vm2, %v5542_v59, %v5546_v23  ;;  %v5555_v62 = vor.u32 %v5554_v16, %v5551_v31  ;;  %v5576_v26 = vshll.u32 %v5056_v57, 16  ;;  %v5570_v10 = vrot.slane %v5568_v38, 5  ;;  %v5064_v40 = vld [vmem:[#allocation2 + $0x134] sm:$0x1]  ;;  %v5065_v16 = vld [vmem:[#allocation2 + $0x138] sm:$0xf] }
 0x24f   :  { %v11674_v18 = vcombine.low %v5537_v34, %v5547_v45  ;;  %v5565_v35 = vor.u32 %v5564_v15, %v5560_v36  ;;  %12901 = vmatprep.mubr.bf16.mxu0 %v11522_v11  ;;  %v5582_v28 = vshll.u32 %v5057_v17, 16  ;;  %v5575_v33 = vrot.slane %v5573_v39, 4  ;;  %v5066_v12 = vld [vmem:[#allocation2 + $0x13c] sm:$0xf] }
 0x250   :  { %v5556_v20 = vrot.slane %v5555_v62, 4  ;;  %v5578_v8 = vrot.slane %v5576_v26, 5  ;;  %v5586_v37 = vshrl.u32 %v5057_v17, 16  ;;  %v5592_v43 = vshll.u32 %v5058_v4, 16  ;;  %v14393_v62 = vld [vmem:[#allocation2 + $0x114] sm:$0xf] }
 0x251   :  { %13141 = vmatprep.mubr.bf16.mxu1 %v11674_v18  ;;  %v5566_v32 = vrot.slane %v5565_v35, 4  ;;  %v5584_v41 = vrot.slane %v5582_v28, 5  ;;  %v11523_v47 = vcombine.low %v14389_v51, %v14390_v61  ;;  %v5597_v7 = vshrl.u32 %v5059_v19, 16  ;;  %v14394_v4 = vld [vmem:[#allocation2 + $0x118] sm:$0xf] }
 0x252   :  { %v5561_v27 = vsel %vm14812_vm2, %v5556_v20, %v5560_v36  ;;  %v5579_v49 = vor.u32 %v5578_v8, %v5575_v33  ;;  %v5588_v46 = vrot.slane %v5586_v37, 4  ;;  %v5594_v56 = vrot.slane %v5592_v43, 5  ;;  %v5067_v20 = vld [vmem:[#allocation2 + $0x140] sm:$0x1]  ;;  %v5068_v43 = vld [vmem:[#allocation2 + $0x144] sm:$0xf] }
 0x253   :  { %v5571_v53 = vsel %vm14812_vm2, %v5566_v32, %v5570_v10  ;;  %12902 = vmatmul.mubr.bf16.gmra.mrb[100].mxu0 %v11523_v47  ;;  %v5600_v44 = vshll.u32 %v5059_v19, 16  ;;  %v5606_v54 = vshll.u32 %v5060_v24, 16  ;;  %v5599_v1 = vrot.slane %v5597_v7, 4 }
 0x254   :  { %v11675_v55 = vcombine.low %v5561_v27, %v5571_v53  ;;  %v5580_v60 = vrot.slane %v5579_v49, 4  ;;  %v5589_v0 = vor.u32 %v5588_v46, %v5584_v41  ;;  %v5610_v42 = vshrl.u32 %v5060_v24, 16  ;;  %v5069_v49 = vld [vmem:[#allocation2 + $0x148] sm:$0xf]  ;;  %v14395_v53 = vld [vmem:[#allocation2 + $0x120] sm:$0xf] }
 0x255   :  { %v5602_v3 = vrot.slane %v5600_v44, 5  ;;  %v5608_v5 = vrot.slane %v5606_v54, 5  ;;  %v5616_v63 = vshll.u32 %v5061_v50, 16  ;;  %v11524_v23 = vcombine.low %v14391_v21, %v14392_v14  ;;  %v5072_v14 = vld [vmem:[#allocation2 + $0x154] sm:$0xf] }
 0x256   :  { %13142 = vmatmul.mubr.bf16.gmra.mrb[4].mxu1 %v11675_v55  ;;  %v5585_v9 = vsel %vm14812_vm2, %v5580_v60, %v5584_v41  ;;  %v5590_v6 = vrot.slane %v5589_v0, 4  ;;  %v5621_v30 = vshrl.u32 %v5062_v58, 16  ;;  %v5612_v25 = vrot.slane %v5610_v42, 4  ;;  %v5070_v55 = vld [vmem:[#allocation2 + $0x14c] sm:$0x1] }
 0x257   :  { %v5603_v48 = vor.u32 %v5602_v3, %v5599_v1  ;;  %v5618_v31 = vrot.slane %v5616_v63, 5  ;;  %v5624_v29 = vshll.u32 %v5062_v58, 16  ;;  %12905 = vmatprep.mubr.bf16.mxu0 %v11524_v23  ;;  %v5630_v34 = vshll.u32 %v5063_v13, 16  ;;  %v5071_v63 = vld [vmem:[#allocation2 + $0x150] sm:$0xf] }
 0x258   :  { %v5595_v57 = vsel %vm14812_vm2, %v5590_v6, %v5594_v56  ;;  %v5623_v52 = vrot.slane %v5621_v30, 4  ;;  %v5634_v59 = vshrl.u32 %v5063_v13, 16  ;;  %v5613_v15 = vor.u32 %v5612_v25, %v5608_v5  ;;  %v14396_v56 = vld [vmem:[#allocation2 + $0x124] sm:$0xf]  ;;  %v14397_v25 = vld [vmem:[#allocation2 + $0x12c] sm:$0xf] }
 0x259   :  { %v11676_v17 = vcombine.low %v5585_v9, %v5595_v57  ;;  %v5604_v36 = vrot.slane %v5603_v48, 4  ;;  %v5626_v38 = vrot.slane %v5624_v29, 5  ;;  %v5632_v22 = vrot.slane %v5630_v34, 5  ;;  %v5073_v34 = vld [vmem:[#allocation2 + $0x158] sm:$0x1] }
 0x25a   :  { %v5636_v11 = vrot.slane %v5634_v59, 4  ;;  %v5640_v45 = vshll.u32 %v5064_v40, 16  ;;  %v11525_v39 = vcombine.low %v14393_v62, %v14394_v4  ;;  %v5614_v18 = vrot.slane %v5613_v15, 4 }
 0x25b   :  { %13145 = vmatprep.mubr.bf16.mxu1 %v11676_v17  ;;  %v5609_v26 = vsel %vm14812_vm2, %v5604_v36, %v5608_v5  ;;  %v5627_v35 = vor.u32 %v5626_v38, %v5623_v52  ;;  %v5645_v10 = vshrl.u32 %v5065_v16, 16  ;;  %v5648_v33 = vshll.u32 %v5065_v16, 16  ;;  %v5074_v38 = vld [vmem:[#allocation2 + $0x15c] sm:$0xf] }
 0x25c   :  { %v5637_v28 = vor.u32 %v5636_v11, %v5632_v22  ;;  %v5642_v19 = vrot.slane %v5640_v45, 5  ;;  %12906 = vmatmul.mubr.bf16.gmra.mrb[104].mxu0 %v11525_v39  ;;  %v5654_v8 = vshll.u32 %v5066_v12, 16  ;;  %v5619_v37 = vsel %vm14812_vm2, %v5614_v18, %v5618_v31  ;;  %v14398_v31 = vld [vmem:[#allocation2 + $0x130] sm:$0xf]  ;;  %v5075_v18 = vld [vmem:[#allocation2 + $0x160] sm:$0xf] }
 0x25d   :  { %v5628_v24 = vrot.slane %v5627_v35, 4  ;;  %v5647_v32 = vrot.slane %v5645_v10, 4  ;;  %v5658_v41 = vshrl.u32 %v5066_v12, 16  ;;  %v11677_v51 = vcombine.low %v5609_v26, %v5619_v37 }
 0x25e   :  { %v5638_v61 = vrot.slane %v5637_v28, 4  ;;  %v5650_v47 = vrot.slane %v5648_v33, 5  ;;  %v5656_v27 = vrot.slane %v5654_v8, 5  ;;  %v5664_v7 = vshll.u32 %v5067_v20, 16  ;;  %v14399_v28 = vld [vmem:[#allocation2 + $0x138] sm:$0xf] }
 0x25f   :  { %v5633_v46 = vsel %vm14812_vm2, %v5628_v24, %v5632_v22  ;;  %v5660_v50 = vrot.slane %v5658_v41, 4  ;;  %v11526_v44 = vcombine.low %v14395_v53, %v14396_v56  ;;  %13146 = vmatmul.mubr.bf16.gmra.mrb[8].mxu1 %v11677_v51  ;;  %v5669_v60 = vshrl.u32 %v5068_v43, 16  ;;  %v5078_v53 = vld [vmem:[#allocation2 + $0x16c] sm:$0xf] }
 0x260   :  { %v5643_v54 = vsel %vm14812_vm2, %v5638_v61, %v5642_v19  ;;  %v5651_v58 = vor.u32 %v5650_v47, %v5647_v32  ;;  %v5672_v0 = vshll.u32 %v5068_v43, 16  ;;  %v5666_v5 = vrot.slane %v5664_v7, 5  ;;  %v14400_v19 = vld [vmem:[#allocation2 + $0x13c] sm:$0xf]  ;;  %v5076_v32 = vld [vmem:[#allocation2 + $0x164] sm:$0x1] }
 0x261   :  { %v11678_v1 = vcombine.low %v5633_v46, %v5643_v54  ;;  %v5661_v3 = vor.u32 %v5660_v50, %v5656_v27  ;;  %12909 = vmatprep.mubr.bf16.mxu0 %v11526_v44  ;;  %v5678_v42 = vshll.u32 %v5069_v49, 16  ;;  %v5671_v9 = vrot.slane %v5669_v60, 4 }
 0x262   :  { %v5652_v13 = vrot.slane %v5651_v58, 4  ;;  %v5674_v6 = vrot.slane %v5672_v0, 5  ;;  %v5682_v21 = vshrl.u32 %v5069_v49, 16  ;;  %v5688_v48 = vshll.u32 %v5070_v55, 16  ;;  %v14401_v58 = vld [vmem:[#allocation2 + $0x144] sm:$0xf] }
 0x263   :  { %13149 = vmatprep.mubr.bf16.mxu1 %v11678_v1  ;;  %v5662_v23 = vrot.slane %v5661_v3, 4  ;;  %v5680_v30 = vrot.slane %v5678_v42, 5  ;;  %v11527_v40 = vcombine.low %v14397_v25, %v14398_v31  ;;  %v5693_v59 = vshrl.u32 %v5071_v63, 16  ;;  %v14402_v55 = vld [vmem:[#allocation2 + $0x148] sm:$0xf] }
 0x264   :  { %v5657_v29 = vsel %vm14812_vm2, %v5652_v13, %v5656_v27  ;;  %v5675_v57 = vor.u32 %v5674_v6, %v5671_v9  ;;  %v5684_v52 = vrot.slane %v5682_v21, 4  ;;  %v5690_v17 = vrot.slane %v5688_v48, 5  ;;  %v5077_v27 = vld [vmem:[#allocation2 + $0x168] sm:$0xf]  ;;  %v5079_v13 = vld [vmem:[#allocation2 + $0x170] sm:$0x1] }
 0x265   :  { %v5667_v16 = vsel %vm14812_vm2, %v5662_v23, %v5666_v5  ;;  %12910 = vmatmul.mubr.bf16.gmra.mrb[108].mxu0 %v11527_v40  ;;  %v5696_v36 = vshll.u32 %v5071_v63, 16  ;;  %v5702_v15 = vshll.u32 %v5072_v14, 16  ;;  %v5695_v45 = vrot.slane %v5693_v59, 4  ;;  %v5080_v48 = vld [vmem:[#allocation2 + $0x174] sm:$0xf] }
 0x266   :  { %v11679_v12 = vcombine.low %v5657_v29, %v5667_v16  ;;  %v5676_v22 = vrot.slane %v5675_v57, 4  ;;  %v5685_v11 = vor.u32 %v5684_v52, %v5680_v30  ;;  %v5706_v39 = vshrl.u32 %v5072_v14, 16  ;;  %v5081_v57 = vld [vmem:[#allocation2 + $0x178] sm:$0xf]  ;;  %v14403_v16 = vld [vmem:[#allocation2 + $0x150] sm:$0xf] }
 0x267   :  { %v5698_v62 = vrot.slane %v5696_v36, 5  ;;  %v5704_v4 = vrot.slane %v5702_v15, 5  ;;  %v5712_v26 = vshll.u32 %v5073_v34, 16  ;;  %v11528_v20 = vcombine.low %v14399_v28, %v14400_v19  ;;  %v5084_v19 = vld [vmem:[#allocation2 + $0x184] sm:$0xf] }
 0x268   :  { %13150 = vmatmul.mubr.bf16.gmra.mrb[12].mxu1 %v11679_v12  ;;  %v5681_v35 = vsel %vm14812_vm2, %v5676_v22, %v5680_v30  ;;  %v5686_v10 = vrot.slane %v5685_v11, 4  ;;  %v5717_v33 = vshrl.u32 %v5074_v38, 16  ;;  %v5708_v37 = vrot.slane %v5706_v39, 4  ;;  %v5082_v12 = vld [vmem:[#allocation2 + $0x17c] sm:$0x1] }
 0x269   :  { %v5699_v8 = vor.u32 %v5698_v62, %v5695_v45  ;;  %v5714_v24 = vrot.slane %v5712_v26, 5  ;;  %v5720_v41 = vshll.u32 %v5074_v38, 16  ;;  %12913 = vmatprep.mubr.bf16.mxu0 %v11528_v20  ;;  %v5726_v61 = vshll.u32 %v5075_v18, 16  ;;  %v5083_v26 = vld [vmem:[#allocation2 + $0x180] sm:$0xf] }
 0x26a   :  { %v5691_v43 = vsel %vm14812_vm2, %v5686_v10, %v5690_v17  ;;  %v5719_v51 = vrot.slane %v5717_v33, 4  ;;  %v5730_v47 = vshrl.u32 %v5075_v18, 16  ;;  %v5709_v50 = vor.u32 %v5708_v37, %v5704_v4  ;;  %v14404_v17 = vld [vmem:[#allocation2 + $0x154] sm:$0xf]  ;;  %v14405_v37 = vld [vmem:[#allocation2 + $0x15c] sm:$0xf] }
 0x26b   :  { %v11680_v49 = vcombine.low %v5681_v35, %v5691_v43  ;;  %v5700_v46 = vrot.slane %v5699_v8, 4  ;;  %v5722_v7 = vrot.slane %v5720_v41, 5  ;;  %v5728_v56 = vrot.slane %v5726_v61, 5  ;;  %v5085_v61 = vld [vmem:[#allocation2 + $0x188] sm:$0x1] }
 0x26c   :  { %v5732_v44 = vrot.slane %v5730_v47, 4  ;;  %v5736_v54 = vshll.u32 %v5076_v32, 16  ;;  %v11529_v60 = vcombine.low %v14401_v58, %v14402_v55  ;;  %v5710_v1 = vrot.slane %v5709_v50, 4 }
 0x26d   :  { %13153 = vmatprep.mubr.bf16.mxu1 %v11680_v49  ;;  %v5705_v0 = vsel %vm14812_vm2, %v5700_v46, %v5704_v4  ;;  %v5723_v3 = vor.u32 %v5722_v7, %v5719_v51  ;;  %v5741_v5 = vshrl.u32 %v5077_v27, 16  ;;  %v5744_v9 = vshll.u32 %v5077_v27, 16  ;;  %v5086_v7 = vld [vmem:[#allocation2 + $0x18c] sm:$0xf] }
 0x26e   :  { %v5733_v42 = vor.u32 %v5732_v44, %v5728_v56  ;;  %v5738_v63 = vrot.slane %v5736_v54, 5  ;;  %12914 = vmatmul.mubr.bf16.gmra.mrb[112].mxu0 %v11529_v60  ;;  %v5750_v6 = vshll.u32 %v5078_v53, 16  ;;  %v5715_v21 = vsel %vm14812_vm2, %v5710_v1, %v5714_v24  ;;  %v14406_v24 = vld [vmem:[#allocation2 + $0x160] sm:$0xf]  ;;  %v5087_v1 = vld [vmem:[#allocation2 + $0x190] sm:$0xf] }
 0x26f   :  { %v5724_v14 = vrot.slane %v5723_v3, 4  ;;  %v5743_v23 = vrot.slane %v5741_v5, 4  ;;  %v5754_v30 = vshrl.u32 %v5078_v53, 16  ;;  %v11681_v25 = vcombine.low %v5705_v0, %v5715_v21 }
 0x270   :  { %v5734_v31 = vrot.slane %v5733_v42, 4  ;;  %v5746_v40 = vrot.slane %v5744_v9, 5  ;;  %v5752_v29 = vrot.slane %v5750_v6, 5  ;;  %v5760_v59 = vshll.u32 %v5079_v13, 16  ;;  %v14407_v42 = vld [vmem:[#allocation2 + $0x168] sm:$0xf] }
 0x271   :  { %v5729_v52 = vsel %vm14812_vm2, %v5724_v14, %v5728_v56  ;;  %v5756_v34 = vrot.slane %v5754_v30, 4  ;;  %v11530_v36 = vcombine.low %v14403_v16, %v14404_v17  ;;  %13154 = vmatmul.mubr.bf16.gmra.mrb[16].mxu1 %v11681_v25  ;;  %v5765_v22 = vshrl.u32 %v5080_v48, 16  ;;  %v5090_v16 = vld [vmem:[#allocation2 + $0x19c] sm:$0xf] }
 0x272   :  { %v5739_v15 = vsel %vm14812_vm2, %v5734_v31, %v5738_v63  ;;  %v5747_v38 = vor.u32 %v5746_v40, %v5743_v23  ;;  %v5768_v11 = vshll.u32 %v5080_v48, 16  ;;  %v5762_v4 = vrot.slane %v5760_v59, 5  ;;  %v14408_v63 = vld [vmem:[#allocation2 + $0x16c] sm:$0xf]  ;;  %v5088_v23 = vld [vmem:[#allocation2 + $0x194] sm:$0x1] }
 0x273   :  { %v11682_v45 = vcombine.low %v5729_v52, %v5739_v15  ;;  %v5757_v62 = vor.u32 %v5756_v34, %v5752_v29  ;;  %12917 = vmatprep.mubr.bf16.mxu0 %v11530_v36  ;;  %v5774_v39 = vshll.u32 %v5081_v57, 16  ;;  %v5767_v35 = vrot.slane %v5765_v22, 4 }
 0x274   :  { %v5748_v18 = vrot.slane %v5747_v38, 4  ;;  %v5770_v10 = vrot.slane %v5768_v11, 5  ;;  %v5778_v28 = vshrl.u32 %v5081_v57, 16  ;;  %v5784_v8 = vshll.u32 %v5082_v12, 16  ;;  %v14409_v38 = vld [vmem:[#allocation2 + $0x174] sm:$0xf] }
 0x275   :  { %13157 = vmatprep.mubr.bf16.mxu1 %v11682_v45  ;;  %v5758_v20 = vrot.slane %v5757_v62, 4  ;;  %v5776_v33 = vrot.slane %v5774_v39, 5  ;;  %v11531_v32 = vcombine.low %v14405_v37, %v14406_v24  ;;  %v5789_v47 = vshrl.u32 %v5083_v26, 16  ;;  %v14410_v12 = vld [vmem:[#allocation2 + $0x178] sm:$0xf] }
 0x276   :  { %v5753_v41 = vsel %vm14812_vm2, %v5748_v18, %v5752_v29  ;;  %v5771_v43 = vor.u32 %v5770_v10, %v5767_v35  ;;  %v5780_v51 = vrot.slane %v5778_v28, 4  ;;  %v5786_v49 = vrot.slane %v5784_v8, 5  ;;  %v5089_v29 = vld [vmem:[#allocation2 + $0x198] sm:$0xf]  ;;  %v5091_v18 = vld [vmem:[#allocation2 + $0x1a0] sm:$0x1] }
 0x277   :  { %v5763_v27 = vsel %vm14812_vm2, %v5758_v20, %v5762_v4  ;;  %12918 = vmatmul.mubr.bf16.gmra.mrb[116].mxu0 %v11531_v32  ;;  %v5792_v46 = vshll.u32 %v5083_v26, 16  ;;  %v5798_v50 = vshll.u32 %v5084_v19, 16  ;;  %v5791_v54 = vrot.slane %v5789_v47, 4  ;;  %v14411_v47 = vld [vmem:[#allocation2 + $0x180] sm:$0xf] }
 0x278   :  { %v11683_v53 = vcombine.low %v5753_v41, %v5763_v27  ;;  %v5772_v56 = vrot.slane %v5771_v43, 4  ;;  %v5781_v44 = vor.u32 %v5780_v51, %v5776_v33  ;;  %v5802_v60 = vshrl.u32 %v5084_v19, 16  ;;  %v6405_v41 = vld [vmem:[#allocation2 + $0xc] sm:$0xe]  ;;  %v14412_v27 = vld [vmem:[#allocation2 + $0x184] sm:$0xf] }
 0x279   :  { %v5794_v58 = vrot.slane %v5792_v46, 5  ;;  %v5800_v55 = vrot.slane %v5798_v50, 5  ;;  %v5808_v0 = vshll.u32 %v5085_v61, 16  ;;  %v11532_v13 = vcombine.low %v14407_v42, %v14408_v63  ;;  %v14416_v63 = vld [vmem:[#allocation2 + $0x1c] sm:$0xf] }
 0x27a   :  { %13158 = vmatmul.mubr.bf16.gmra.mrb[20].mxu1 %v11683_v53  ;;  %v5777_v3 = vsel %vm14812_vm2, %v5772_v56, %v5776_v33  ;;  %v5782_v5 = vrot.slane %v5781_v44, 4  ;;  %v5813_v9 = vshrl.u32 %v5086_v7, 16  ;;  %v5804_v21 = vrot.slane %v5802_v60, 4  ;;  %v14414_v60 = vld [vmem:[#allocation2 + $0x18c] sm:$0xf] }
 0x27b   :  { %v5795_v6 = vor.u32 %v5794_v58, %v5791_v54  ;;  %v5810_v14 = vrot.slane %v5808_v0, 5  ;;  %v5816_v30 = vshll.u32 %v5086_v7, 16  ;;  %12921 = vmatprep.mubr.bf16.mxu0 %v11532_v13  ;;  %v5822_v31 = vshll.u32 %v5087_v1, 16  ;;  %v14413_v58 = vld [vmem:[#allocation2 + $0x10] sm:$0xf] }
 0x27c   :  { %v5787_v48 = vsel %vm14812_vm2, %v5782_v5, %v5786_v49  ;;  %v5815_v25 = vrot.slane %v5813_v9, 4  ;;  %v5826_v40 = vshrl.u32 %v5087_v1, 16  ;;  %v5805_v34 = vor.u32 %v5804_v21, %v5800_v55  ;;  %v14415_v0 = vld [vmem:[#allocation2 + $0x190] sm:$0xf]  ;;  %v3454_v9 = vld [vmem:[#allocation2] sm:$0xe] }
 0x27d   :  { %v11684_v57 = vcombine.low %v5777_v3, %v5787_v48  ;;  %v5796_v52 = vrot.slane %v5795_v6, 4  ;;  %v5818_v59 = vrot.slane %v5816_v30, 5  ;;  %v5824_v17 = vrot.slane %v5822_v31, 5  ;;  %v6406_v3 = vld [vmem:[#allocation2 + $0x18] sm:$0xe] }
 0x27e   :  { %v5828_v36 = vrot.slane %v5826_v40, 4  ;;  %v5832_v15 = vshll.u32 %v5088_v23, 16  ;;  %v11533_v22 = vcombine.low %v14409_v38, %v14410_v12  ;;  %v5806_v45 = vrot.slane %v5805_v34, 4  ;;  %v6407_v30 = vld [vmem:[#allocation2 + $0x24] sm:$0xe] }
 0x27f   :  { %13161 = vmatprep.mubr.bf16.mxu1 %v11684_v57  ;;  %v5801_v11 = vsel %vm14812_vm2, %v5796_v52, %v5800_v55  ;;  %v5819_v62 = vor.u32 %v5818_v59, %v5815_v25  ;;  %v5837_v4 = vshrl.u32 %v5089_v29, 16  ;;  %v5840_v35 = vshll.u32 %v5089_v29, 16  ;;  %v14418_v40 = vld [vmem:[#allocation2 + $0x28] sm:$0xf]  ;;  %v14419_v38 = vld [vmem:[#allocation2 + $0x20] sm:$0x1] }
 0x280   :  { %v5829_v39 = vor.u32 %v5828_v36, %v5824_v17  ;;  %v5834_v26 = vrot.slane %v5832_v15, 5  ;;  %12922 = vmatmul.mubr.bf16.gmra.mrb[120].mxu0 %v11533_v22  ;;  %v5846_v10 = vshll.u32 %v5090_v16, 16  ;;  %v5811_v28 = vsel %vm14812_vm2, %v5806_v45, %v5810_v14  ;;  %v14417_v14 = vld [vmem:[#allocation2 + $0x14] sm:$0x1]  ;;  %v14420_v22 = vld [vmem:[#allocation2 + $0x4] sm:$0xf] }
 0x281   :  { %v5820_v19 = vrot.slane %v5819_v62, 4  ;;  %v5839_v20 = vrot.slane %v5837_v4, 4  ;;  %v5850_v33 = vshrl.u32 %v5090_v16, 16  ;;  %v11685_v8 = vcombine.low %v5801_v11, %v5811_v28  ;;  %v3455_v16 = vld [vmem:[#allocation2 + $0xc] sm:$0xe] }
 0x282   :  { %v5830_v37 = vrot.slane %v5829_v39, 4  ;;  %v5842_v24 = vrot.slane %v5840_v35, 5  ;;  %v5848_v32 = vrot.slane %v5846_v10, 5  ;;  %v5856_v61 = vshll.u32 %v5091_v18, 16  ;;  %v14421_v45 = vld [vmem:[#allocation2 + $0x8] sm:$0x1] }
 0x283   :  { %v5825_v43 = vsel %vm14812_vm2, %v5820_v19, %v5824_v17  ;;  %v5852_v51 = vrot.slane %v5850_v33, 4  ;;  %v11534_v49 = vcombine.low %v14411_v47, %v14412_v27  ;;  %13162 = vmatmul.mubr.bf16.gmra.mrb[24].mxu1 %v11685_v8  ;;  %v11696_v56 = vrot.slane %v6405_v41, 9  ;;  %v14422_v39 = vld [vmem:[#allocation2 + $0x2c] sm:$0x1]  ;;  %v14423_v35 = vld [vmem:[#allocation2 + $0x10] sm:$0xf] }
 0x284   :  { %v5835_v46 = vsel %vm14812_vm2, %v5830_v37, %v5834_v26  ;;  %v5843_v50 = vor.u32 %v5842_v24, %v5839_v20  ;;  %v6535_v55 = vrot.slane %v14413_v58, 5  ;;  %v11535_v1 = vcombine.low %v14414_v60, %v14415_v0  ;;  %v3456_v28 = vld [vmem:[#allocation2 + $0x18] sm:$0xe]  ;;  %v14424_v8 = vld [vmem:[#allocation2 + $0x34] sm:$0xf] }
 0x285   :  { %v11686_v7 = vcombine.low %v5825_v43, %v5835_v46  ;;  %v5853_v53 = vor.u32 %v5852_v51, %v5848_v32  ;;  %12925 = vmatprep.mubr.bf16.mxu0 %v11534_v49  ;;  %v5858_v42 = vrot.slane %v5856_v61, 5  ;;  %v6542_v13 = vrot.slane %v14416_v63, 5  ;;  %v14425_v43 = vld [vmem:[#allocation2 + $0x14] sm:$0x1]  ;;  %v6408_v47 = vld [vmem:[#allocation2 + $0x30] sm:$0xe] }
 0x286   :  { %v5844_v44 = vrot.slane %v5843_v50, 4  ;;  %v6537_v21 = vrot.slane %v6535_v55, 4  ;;  %v6538_v23 = vrot.slane %v14417_v14, 5  ;;  %v6536_v25 = vsel %vm15574_vm8, %v11696_v56, %v6535_v55  ;;  %v14426_v46 = vld [vmem:[#allocation2 + $0x1c] sm:$0xf] }
 0x287   :  { %13165 = vmatprep.mubr.bf16.mxu1 %v11686_v7  ;;  %v5854_v5 = vrot.slane %v5853_v53, 4  ;;  %v11697_v31 = vrot.slane %v6406_v3, 9  ;;  %v6549_v29 = vrot.slane %v14418_v40, 5  ;;  %v6544_v34 = vrot.slane %v6542_v13, 4  ;;  %v14427_v55 = vld [vmem:[#allocation2 + $0x38] sm:$0x1] }
 0x288   :  { %v5849_v6 = vsel %vm14812_vm2, %v5844_v44, %v5848_v32  ;;  %12926 = vmatmul.mubr.bf16.gmra.mrb[124].mxu0 %v11535_v1  ;;  %v6539_v52 = vsel %vm15574_vm8, %v6537_v21, %v6538_v23  ;;  %v11544_v59 = vrot.slane %v3454_v9, 9  ;;  %v11698_v36 = vrot.slane %v6407_v30, 9  ;;  %v14428_v1 = vld [vmem:[#allocation2 + $0x20] sm:$0x1]  ;;  %v6409_v9 = vld [vmem:[#allocation2 + $0x3c] sm:$0xe] }
 0x289   :  { %v5859_v48 = vsel %vm14812_vm2, %v5854_v5, %v5858_v42  ;;  %v11728_v17 = vcombine.low %v6536_v25, %v6539_v52  ;;  %v6551_v15 = vrot.slane %v6549_v29, 4  ;;  %v6545_v12 = vrot.slane %v14419_v38, 5  ;;  %v14235_v5 = vld [vmem:[%s17090_s3 + $0x188] sm:$0xff]   ;;  %v3457_v42 = vld [vmem:[#allocation2 + $0x24] sm:$0xe] }
 0x28a   :  { %v11687_v57 = vcombine.low %v5849_v6, %v5859_v48  ;;  %v3555_v11 = vrot.slane %v14420_v22, 5  ;;  %v3558_v62 = vrot.slane %v14421_v45, 5  ;;  %v6543_v4 = vsel %vm15574_vm8, %v11697_v31, %v6542_v13  ;;  %v14429_v6 = vld [vmem:[#allocation2 + $0x40] sm:$0xf]  ;;  %v14430_v48 = vld [vmem:[#allocation2 + $0x28] sm:$0xf] }
 0x28b   :  { %v6552_v26 = vrot.slane %v14422_v39, 5  ;;  %v11545_v18 = vrot.slane %v3455_v16, 9  ;;  %v3562_v10 = vrot.slane %v14423_v35, 5  ;;  %v6546_v19 = vsel %vm15574_vm8, %v6544_v34, %v6545_v12  ;;  %v3458_v31 = vld [vmem:[#allocation2 + $0x30] sm:$0xe]  ;;  %v14431_v40 = vld [vmem:[%s17090_s3 + $0x180] sm:$0xff]  }
 0x28c   :  { %13166 = vmatmul.mubr.bf16.gmra.mrb[28].mxu1 %v11687_v57  ;;  %v3556_v20 = vsel %vm15574_vm8, %v11544_v59, %v3555_v11  ;;  %v3557_v33 = vrot.slane %v3555_v11, 4  ;;  %v6556_v37 = vrot.slane %v14424_v8, 5  ;;  %v6550_v24 = vsel %vm15574_vm8, %v11698_v36, %v6549_v29  ;;  %v15614_v34 = vld [vmem:[#allocation2 + $0x48] sm:$0xe]  ;;  %v15616_v59 = vld [vmem:[#allocation2 + $0x4c] sm:$0xf] }
 0x28d   :  { %13185 = vmatprep.mubr.bf16.mxu1 %v11728_v17  ;;  %v6553_v32 = vsel %vm15574_vm8, %v6551_v15, %v6552_v26  ;;  %v3564_v41 = vrot.slane %v3562_v10, 4  ;;  %v3565_v51 = vrot.slane %v14425_v43, 5  ;;  %v11546_v49 = vrot.slane %v3456_v28, 9  ;;  %v14433_v36 = vld [vmem:[#allocation2 + $0x44] sm:$0x1]  ;;  %v14236_v11 = vld [vmem:[%s17090_s3 + $0x190] sm:$0xff]  }
 0x28e   :  { %v3559_v61 = vsel %vm15574_vm8, %v3557_v33, %v3558_v62  ;;  %v6558_v27 = vrot.slane %v6556_v37, 4  ;;  %v3569_v50 = vrot.slane %v14426_v46, 5  ;;  %v11729_v7 = vcombine.low %v6543_v4, %v6546_v19  ;;  %v14434_v12 = vld [vmem:[#allocation2 + $0x2c] sm:$0x1]  ;;  %v14435_v45 = vld [vmem:[%s17090_s3 + $0xc0] sm:$0xff]   ;;  %v14237_v46 = vld [vmem:[%s17090_s3 + $0x198] sm:$0xff]  }
 0x28f   :  { %v11576_v53 = vcombine.low %v3556_v20, %v3559_v61  ;;  %v3563_v56 = vsel %vm15574_vm8, %v11545_v18, %v3562_v10  ;;  %v3566_v44 = vsel %vm15574_vm8, %v3564_v41, %v3565_v51  ;;  %v6559_v60 = vrot.slane %v14427_v55, 5  ;;  %v14436_v39 = vld [vmem:[#allocation2 + $0x34] sm:$0xf]  ;;  %v14437_v18 = vld [vmem:[%s17090_s3 + $0xc8] sm:$0xff]   ;;  %v14439_v51 = vld [vmem:[#allocation2 + $0x50] sm:$0x1] }
 0x290   :  { %v11577_v58 = vcombine.low %v3563_v56, %v3566_v44  ;;  %v3571_v0 = vrot.slane %v3569_v50, 4  ;;  %v3572_v3 = vrot.slane %v14428_v1, 5  ;;  %v11730_v63 = vcombine.low %v6550_v24, %v6553_v32  ;;  %v3459_v32 = vld [vmem:[#allocation2 + $0x3c] sm:$0xe]  ;;  %v14441_v56 = vld [vmem:[#allocation2 + $0x40] sm:$0xf] }
 0x291   :  { %12945 = vmatprep.mubr.bf16.mxu0 %v11576_v53  ;;  %v11699_v13 = vrot.slane %v6408_v47, 9  ;;  %v6563_v21 = vrot.slane %v14429_v6, 5  ;;  %v6560_v14 = vsel %vm15574_vm8, %v6558_v27, %v6559_v60  ;;  %v3570_v23 = vsel %vm15574_vm8, %v11546_v49, %v3569_v50  ;;  %v6411_v47 = vld [vmem:[#allocation2 + $0x54] sm:$0xe]  ;;  %v14440_v27 = vld [vmem:[#allocation2 + $0x58] sm:$0xf] }
 0x292   :  { %12946 = vmatmul.mubr.bf16.vlgmr.msra.gmra.mrb[64].mxu0 %v11577_v58  ;;  %v3573_v30 = vsel %vm15574_vm8, %v3571_v0, %v3572_v3  ;;  %v3576_v25 = vrot.slane %v14430_v48, 5  ;;  %v11547_v52 = vrot.slane %v3457_v42, 9  ;;  %v6570_v16 = vrot.slane %v15616_v59, 5  ;;  %v3460_v58 = vld [vmem:[#allocation2 + $0x48] sm:$0xe]  ;;  %v14442_v55 = vld [vmem:[%s17090_s3 + $0xd0] sm:$0xff]  }
 0x293   :  { %v11578_v29 = vcombine.low %v3570_v23, %v3573_v30  ;;  %v6565_v57 = vrot.slane %v6563_v21, 4  ;;  %v11700_v17 = vrot.slane %v6409_v9, 9  ;;  %v6566_v15 = vrot.slane %v14433_v36, 5  ;;  %13010 = vmatpush3.bf16.msra.mxu0 %v14435_v45  ;;  %v15651_v3 = vld [vmem:[#allocation2 + $0x64] sm:$0xf]  ;;  %v14448_v36 = vld [vmem:[%s17090_s3 + $0xd8] sm:$0xff]  }
 0x294   :  { %13186 = vmatmul.mubr.bf16.vlgmr.msra.gmra.mrb[32].mxu1 %v11729_v7  ;;  %v3578_v38 = vrot.slane %v3576_v25, 4  ;;  %v3579_v22 = vrot.slane %v14434_v12, 5  ;;  %v6557_v62 = vsel %vm15574_vm8, %v11699_v13, %v6556_v37  ;;  %v11548_v4 = vrot.slane %v3458_v31, 9  ;;  %13011 = vmatprep.subr.bf16.mxu0 %v14437_v18  ;;  %v14438_v37 = vld [vmem:[#allocation2 + $0x38] sm:$0x1]  ;;  %v14238_v31 = vld [vmem:[%s17090_s3 + $0x1a0] sm:$0xff]  }
 0x295   :  { %13250 = vmatpush3.bf16.msra.mxu1 %v14431_v40  ;;  %13189 = vmatprep.mubr.bf16.mxu1 %v11730_v63  ;;  %v3583_v26 = vrot.slane %v14436_v39, 5  ;;  %v11731_v35 = vcombine.low %v6557_v62, %v6560_v14  ;;  %v6567_v10 = vsel %vm15574_vm8, %v6565_v57, %v6566_v15  ;;  %v6572_v19 = vrot.slane %v6570_v16, 4  ;;  %v14444_v9 = vld [vmem:[#allocation2 + $0x44] sm:$0x1]  ;;  %v14445_v14 = vld [vmem:[#allocation2 + $0x5c] sm:$0x1] }
 0x296   :  { %13251 = vmatprep.subr.bf16.mxu1 %v14235_v5  ;;  %12949 = vmatprep.mubr.bf16.mxu0 %v11578_v29  ;;  %v3580_v28 = vsel %vm15574_vm8, %v3578_v38, %v3579_v22  ;;  %v3577_v20 = vsel %vm15574_vm8, %v11547_v52, %v3576_v25  ;;  %v11701_v33 = vrot.slane %v15614_v34, 9  ;;  %v3586_v24 = vrot.slane %v14438_v37, 5  ;;  %v14446_v48 = vld [vmem:[#allocation2 + $0x4c] sm:$0xf]  ;;  %v6412_v52 = vld [vmem:[#allocation2 + $0x60] sm:$0xe] }
 0x297   :  { %v3585_v8 = vrot.slane %v3583_v26, 4  ;;  %v6564_v41 = vsel %vm15574_vm8, %v11700_v17, %v6563_v21  ;;  %v11579_v43 = vcombine.low %v3577_v20, %v3580_v28  ;;  %v6573_v61 = vrot.slane %v14439_v51, 5  ;;  %13012 = vmatpush3.bf16.msra.mxu0 %v14437_v18  ;;  %v14449_v12 = vld [vmem:[#allocation2 + $0x68] sm:$0x1]  ;;  %v14451_v18 = vld [vmem:[#allocation2 + $0x58] sm:$0xf] }
 0x298   :  { %v6577_v49 = vrot.slane %v14440_v27, 5  ;;  %v11732_v50 = vcombine.low %v6564_v41, %v6567_v10  ;;  %v3584_v7 = vsel %vm15574_vm8, %v11548_v4, %v3583_v26  ;;  %v3590_v44 = vrot.slane %v14441_v56, 5  ;;  %13013 = vmatprep.subr.bf16.mxu0 %v14442_v55  ;;  %v3461_v26 = vld [vmem:[#allocation2 + $0x54] sm:$0xe]  ;;  %v6413_v20 = vld [vmem:[#allocation2 + $0x6c] sm:$0xe] }
 0x299   :  { %13252 = vmatpush3.bf16.msra.mxu1 %v14235_v5  ;;  %v3587_v53 = vsel %vm15574_vm8, %v3585_v8, %v3586_v24  ;;  %v6574_v60 = vsel %vm15574_vm8, %v6572_v19, %v6573_v61  ;;  %v6584_v5 = vrot.slane %v15651_v3, 5  ;;  %v11702_v42 = vrot.slane %v6411_v47, 9  ;;  %v14239_v8 = vld [vmem:[%s17090_s3 + $0x1a8] sm:$0xff]   ;;  %v15681_v61 = vld [vmem:[#allocation2 + $0x7c] sm:$0xf]  ;;  %v14456_v56 = vld [vmem:[%s17090_s3 + $0xe0] sm:$0xff]  }
 0x29a   :  { %13253 = vmatprep.subr.bf16.mxu1 %v14236_v11  ;;  %12950 = vmatmul.mubr.bf16.gmra.mrb[68].mxu0 %v11579_v43  ;;  %v11580_v0 = vcombine.low %v3584_v7, %v3587_v53  ;;  %v6579_v1 = vrot.slane %v6577_v49, 4  ;;  %v11549_v63 = vrot.slane %v3459_v32, 9  ;;  %v3592_v13 = vrot.slane %v3590_v44, 4  ;;  %v14452_v43 = vld [vmem:[#allocation2 + $0x5c] sm:$0x1] }
 0x29b   :  { %v3593_v6 = vrot.slane %v14444_v9, 5  ;;  %v6571_v21 = vsel %vm15574_vm8, %v11701_v33, %v6570_v16  ;;  %v6580_v23 = vrot.slane %v14445_v14, 5  ;;  %v11550_v30 = vrot.slane %v3460_v58, 9  ;;  %13014 = vmatpush3.bf16.msra.mxu0 %v14442_v55  ;;  %v14447_v16 = vld [vmem:[#allocation2 + $0x50] sm:$0x1]  ;;  %v14459_v9 = vld [vmem:[%s17090_s3 + $0xe8] sm:$0xff]  }
 0x29c   :  { %13190 = vmatmul.mubr.bf16.gmra.mrb[36].mxu1 %v11731_v35  ;;  %12953 = vmatprep.mubr.bf16.mxu0 %v11580_v0  ;;  %v3597_v25 = vrot.slane %v14446_v48, 5  ;;  %v11733_v40 = vcombine.low %v6571_v21, %v6574_v60  ;;  %v6586_v34 = vrot.slane %v6584_v5, 4  ;;  %v3600_v17 = vrot.slane %v14447_v16, 5  ;;  %v3462_v33 = vld [vmem:[#allocation2 + $0x60] sm:$0xe] }
 0x29d   :  { %13193 = vmatprep.mubr.bf16.mxu1 %v11732_v50  ;;  %13254 = vmatpush3.bf16.msra.mxu1 %v14236_v11  ;;  %v3594_v29 = vsel %vm15574_vm8, %v3592_v13, %v3593_v6  ;;  %v6581_v57 = vsel %vm15574_vm8, %v6579_v1, %v6580_v23  ;;  %v6578_v15 = vsel %vm15574_vm8, %v11702_v42, %v6577_v49  ;;  %v6587_v22 = vrot.slane %v14449_v12, 5  ;;  %v14450_v11 = vld [vmem:[#allocation2 + $0x70] sm:$0xf]  ;;  %v14454_v27 = vld [vmem:[#allocation2 + $0x64] sm:$0xf] }
 0x29e   :  { %13255 = vmatprep.subr.bf16.mxu1 %v14237_v46  ;;  %v3599_v59 = vrot.slane %v3597_v25, 4  ;;  %13015 = vmatprep.subr.bf16.mxu0 %v14448_v36  ;;  %v3591_v38 = vsel %vm15574_vm8, %v11549_v63, %v3590_v44  ;;  %v6591_v45 = vrot.slane %v14450_v11, 5  ;;  %v3598_v4 = vsel %vm15574_vm8, %v11550_v30, %v3597_v25  ;;  %v14455_v50 = vld [vmem:[#allocation2 + $0x74] sm:$0x1]  ;;  %v6414_v55 = vld [vmem:[#allocation2 + $0x78] sm:$0xe] }
 0x29f   :  { %v11581_v62 = vcombine.low %v3591_v38, %v3594_v29  ;;  %v3604_v35 = vrot.slane %v14451_v18, 5  ;;  %v11734_v10 = vcombine.low %v6578_v15, %v6581_v57  ;;  %v11703_v28 = vrot.slane %v6412_v52, 9  ;;  %13016 = vmatpush3.bf16.msra.mxu0 %v14448_v36  ;;  %v14457_v0 = vld [vmem:[#allocation2 + $0x68] sm:$0x1]  ;;  %v14240_v42 = vld [vmem:[%s17090_s3 + $0x1b0] sm:$0xff]   ;;  %v14241_v15 = vld [vmem:[%s17090_s3 + $0x1b8] sm:$0xff]  }
 0x2a0   :  { %v3601_v39 = vsel %vm15574_vm8, %v3599_v59, %v3600_v17  ;;  %v6588_v37 = vsel %vm15574_vm8, %v6586_v34, %v6587_v22  ;;  %v6593_v24 = vrot.slane %v6591_v45, 4  ;;  %v11551_v41 = vrot.slane %v3461_v26, 9  ;;  %13017 = vmatprep.subr.bf16.mxu0 %v14456_v56  ;;  %v15698_v13 = vld [vmem:[#allocation2 + $0x88] sm:$0xf]  ;;  %v6415_v23 = vld [vmem:[#allocation2 + $0x84] sm:$0xe] }
 0x2a1   :  { %13256 = vmatpush3.bf16.msra.mxu1 %v14237_v46  ;;  %v11582_v19 = vcombine.low %v3598_v4, %v3601_v39  ;;  %v3606_v32 = vrot.slane %v3604_v35, 4  ;;  %v3607_v51 = vrot.slane %v14452_v43, 5  ;;  %v6598_v47 = vrot.slane %v15681_v61, 5  ;;  %v14460_v30 = vld [vmem:[#allocation2 + $0x70] sm:$0xf] }
 0x2a2   :  { %13257 = vmatprep.subr.bf16.mxu1 %v14238_v31  ;;  %12954 = vmatmul.mubr.bf16.gmra.mrb[72].mxu0 %v11581_v62  ;;  %v3611_v49 = vrot.slane %v14454_v27, 5  ;;  %v11704_v46 = vrot.slane %v6413_v20, 9  ;;  %v6594_v7 = vrot.slane %v14455_v50, 5  ;;  %v11552_v53 = vrot.slane %v3462_v33, 9  ;;  %v3463_v57 = vld [vmem:[#allocation2 + $0x6c] sm:$0xe] }
 0x2a3   :  { %12957 = vmatprep.mubr.bf16.mxu0 %v11582_v19  ;;  %v6585_v44 = vsel %vm15574_vm8, %v11703_v28, %v6584_v5  ;;  %v3608_v58 = vsel %vm15574_vm8, %v3606_v32, %v3607_v51  ;;  %v3614_v1 = vrot.slane %v14457_v0, 5  ;;  %13018 = vmatpush3.bf16.msra.mxu0 %v14456_v56  ;;  %v6605_v5 = vrot.slane %v15698_v13, 5  ;;  %v14461_v34 = vld [vmem:[#allocation2 + $0x80] sm:$0x1]  ;;  %v3464_v36 = vld [vmem:[#allocation2 + $0x78] sm:$0xe] }
 0x2a4   :  { %13194 = vmatmul.mubr.bf16.gmra.mrb[40].mxu1 %v11733_v40  ;;  %v3613_v60 = vrot.slane %v3611_v49, 4  ;;  %v11735_v63 = vcombine.low %v6585_v44, %v6588_v37  ;;  %v6595_v3 = vsel %vm15574_vm8, %v6593_v24, %v6594_v7  ;;  %13019 = vmatprep.subr.bf16.mxu0 %v14459_v9  ;;  %v3605_v6 = vsel %vm15574_vm8, %v11551_v41, %v3604_v35  ;;  %v14462_v22 = vld [vmem:[#allocation2 + $0x7c] sm:$0xf]  ;;  %v14463_v4 = vld [vmem:[#allocation2 + $0x74] sm:$0x1]  ;;  %v15736_v32 = vld [vmem:[%s17090_s3 + $0x1c0] sm:$0xff]  }
 0x2a5   :  { %13197 = vmatprep.mubr.bf16.mxu1 %v11734_v10  ;;  %13258 = vmatpush3.bf16.msra.mxu1 %v14238_v31  ;;  %v6600_v21 = vrot.slane %v6598_v47, 4  ;;  %v3618_v48 = vrot.slane %v14460_v30, 5  ;;  %v6592_v25 = vsel %vm15574_vm8, %v11704_v46, %v6591_v45  ;;  %v11583_v31 = vcombine.low %v3605_v6, %v3608_v58  ;;  %v15721_v26 = vld [vmem:[#allocation2 + $0x94] sm:$0xf]  ;;  %v14465_v35 = vld [vmem:[#allocation2 + $0x8c] sm:$0x1] }
 0x2a6   :  { %13259 = vmatprep.subr.bf16.mxu1 %v14239_v8  ;;  %v3615_v14 = vsel %vm15574_vm8, %v3613_v60, %v3614_v1  ;;  %v11705_v40 = vrot.slane %v6414_v55, 9  ;;  %v3612_v29 = vsel %vm15574_vm8, %v11552_v53, %v3611_v49  ;;  %v11736_v52 = vcombine.low %v6592_v25, %v6595_v3  ;;  %v14466_v20 = vld [vmem:[#allocation2 + $0x80] sm:$0x1]  ;;  %v14469_v27 = vld [vmem:[#allocation2 + $0x88] sm:$0xf]  ;;  %v14470_v49 = vld [vmem:[%s17090_s3 + $0xf8] sm:$0xff]  }
 0x2a7   :  { %v6601_v59 = vrot.slane %v14461_v34, 5  ;;  %v11584_v16 = vcombine.low %v3612_v29, %v3615_v14  ;;  %v3620_v17 = vrot.slane %v3618_v48, 4  ;;  %13020 = vmatpush3.bf16.msra.mxu0 %v14459_v9  ;;  %v11706_v38 = vrot.slane %v6415_v23, 9  ;;  %v14468_v51 = vld [vmem:[#allocation2 + $0xa0] sm:$0xf] }
 0x2a8   :  { %v6607_v12 = vrot.slane %v6605_v5, 4  ;;  %v3625_v11 = vrot.slane %v14462_v22, 5  ;;  %v11553_v62 = vrot.slane %v3463_v57, 9  ;;  %v3621_v39 = vrot.slane %v14463_v4, 5  ;;  %v6416_v7 = vld [vmem:[#allocation2 + $0x90] sm:$0xe] }
 0x2a9   :  { %13260 = vmatpush3.bf16.msra.mxu1 %v14239_v8  ;;  %v6602_v45 = vsel %vm15574_vm8, %v6600_v21, %v6601_v59  ;;  %v6612_v18 = vrot.slane %v15721_v26, 5  ;;  %v6608_v10 = vrot.slane %v14465_v35, 5  ;;  %v11554_v28 = vrot.slane %v3464_v36, 9  ;;  %v14467_v8 = vld [vmem:[%s17090_s3 + $0xf0] sm:$0xff]   ;;  %v6417_v56 = vld [vmem:[#allocation2 + $0x9c] sm:$0xe] }
 0x2aa   :  { %13261 = vmatprep.subr.bf16.mxu1 %v14240_v42  ;;  %12958 = vmatmul.mubr.bf16.gmra.mrb[76].mxu0 %v11583_v31  ;;  %v3627_v19 = vrot.slane %v3625_v11, 4  ;;  %v3628_v33 = vrot.slane %v14466_v20, 5  ;;  %v6599_v37 = vsel %vm15574_vm8, %v11705_v40, %v6598_v47  ;;  %v3622_v24 = vsel %vm15574_vm8, %v3620_v17, %v3621_v39  ;;  %v14471_v55 = vld [vmem:[#allocation2 + $0x98] sm:$0x1]  ;;  %v3465_v1 = vld [vmem:[#allocation2 + $0x84] sm:$0xe] }
 0x2ab   :  { %12961 = vmatprep.mubr.bf16.mxu0 %v11584_v16  ;;  %13021 = vmatprep.subr.bf16.mxu0 %v14467_v8  ;;  %v6609_v41 = vsel %vm15574_vm8, %v6607_v12, %v6608_v10  ;;  %v6619_v61 = vrot.slane %v14468_v51, 5  ;;  %v3632_v47 = vrot.slane %v14469_v27, 5  ;;  %v11737_v46 = vcombine.low %v6599_v37, %v6602_v45  ;;  %v3466_v9 = vld [vmem:[#allocation2 + $0x90] sm:$0xe]  ;;  %v14472_v6 = vld [vmem:[#allocation2 + $0x94] sm:$0xf] }
 0x2ac   :  { %13198 = vmatmul.mubr.bf16.gmra.mrb[44].mxu1 %v11735_v63  ;;  %13022 = vmatpush3.bf16.msra.mxu0 %v14467_v8  ;;  %v3629_v43 = vsel %vm15574_vm8, %v3627_v19, %v3628_v33  ;;  %v3619_v50 = vsel %vm15574_vm8, %v11553_v62, %v3618_v48  ;;  %v6614_v53 = vrot.slane %v6612_v18, 4  ;;  %v6606_v44 = vsel %vm15574_vm8, %v11706_v38, %v6605_v5  ;;  %v14473_v48 = vld [vmem:[#allocation2 + $0x8c] sm:$0x1]  ;;  %v14474_v40 = vld [vmem:[#allocation2 + $0xa4] sm:$0x1] }
 0x2ad   :  { %13201 = vmatprep.mubr.bf16.mxu1 %v11736_v52  ;;  %13262 = vmatpush3.bf16.msra.mxu1 %v14240_v42  ;;  %v11585_v58 = vcombine.low %v3619_v50, %v3622_v24  ;;  %v6615_v60 = vrot.slane %v14471_v55, 5  ;;  %v3626_v0 = vsel %vm15574_vm8, %v11554_v28, %v3625_v11  ;;  %v11738_v42 = vcombine.low %v6606_v44, %v6609_v41  ;;  %v14475_v57 = vld [vmem:[#allocation2 + $0xac] sm:$0xf]  ;;  %v14476_v59 = vld [vmem:[#allocation2 + $0x98] sm:$0x1] }
 0x2ae   :  { %13263 = vmatprep.subr.bf16.mxu1 %v14241_v15  ;;  %13023 = vmatprep.subr.bf16.mxu0 %v14470_v49  ;;  %v11586_v63 = vcombine.low %v3626_v0, %v3629_v43  ;;  %v3634_v3 = vrot.slane %v3632_v47, 4  ;;  %v3639_v21 = vrot.slane %v14472_v6, 5  ;;  %v11707_v13 = vrot.slane %v6416_v7, 9  ;;  %v14477_v36 = vld [vmem:[#allocation2 + $0xa0] sm:$0xf] }
 0x2af   :  { %v11708_v5 = vrot.slane %v6417_v56, 9  ;;  %v6621_v14 = vrot.slane %v6619_v61, 4  ;;  %v6616_v23 = vsel %vm15574_vm8, %v6614_v53, %v6615_v60  ;;  %v11555_v30 = vrot.slane %v3465_v1, 9  ;;  %v14478_v11 = vld [vmem:[#allocation2 + $0xb8] sm:$0xf] }
 0x2b0   :  { %13024 = vmatpush3.bf16.msra.mxu0 %v14470_v49  ;;  %v3635_v25 = vrot.slane %v14473_v48, 5  ;;  %v3641_v31 = vrot.slane %v3639_v21, 4  ;;  %v6622_v29 = vrot.slane %v14474_v40, 5  ;;  %v6626_v52 = vrot.slane %v14475_v57, 5  ;;  %v6418_v35 = vld [vmem:[#allocation2 + $0xa8] sm:$0xe] }
 0x2b1   :  { %13264 = vmatpush3.bf16.msra.mxu1 %v14241_v15  ;;  %v11556_v34 = vrot.slane %v3466_v9, 9  ;;  %v3642_v16 = vrot.slane %v14476_v59, 5  ;;  %v3646_v15 = vrot.slane %v14477_v36, 5  ;;  %v6613_v38 = vsel %vm15574_vm8, %v11707_v13, %v6612_v18  ;;  %v6419_v28 = vld [vmem:[#allocation2 + $0xb4] sm:$0xe] }
 0x2b2   :  { %13329 = vmatprep.subr.bf16.mxu1 %v15736_v32  ;;  %12962 = vmatmul.mubr.bf16.gmra.mrb[80].mxu0 %v11585_v58  ;;  %v3636_v17 = vsel %vm15574_vm8, %v3634_v3, %v3635_v25  ;;  %v6623_v12 = vsel %vm15574_vm8, %v6621_v14, %v6622_v29  ;;  %v6633_v45 = vrot.slane %v14478_v11, 5  ;;  %v11739_v62 = vcombine.low %v6613_v38, %v6616_v23  ;;  %v3467_v19 = vld [vmem:[#allocation2 + $0x9c] sm:$0xe]  ;;  %v14479_v20 = vld [vmem:[#allocation2 + $0xac] sm:$0xf] }
 0x2b3   :  { %12965 = vmatprep.mubr.bf16.mxu0 %v11586_v63  ;;  %v3643_v22 = vsel %vm15574_vm8, %v3641_v31, %v3642_v16  ;;  %v6620_v4 = vsel %vm15574_vm8, %v11708_v5, %v6619_v61  ;;  %v3633_v39 = vsel %vm15574_vm8, %v11555_v30, %v3632_v47  ;;  %v6628_v10 = vrot.slane %v6626_v52, 4  ;;  %v3468_v41 = vld [vmem:[#allocation2 + $0xa8] sm:$0xe]  ;;  %v14480_v51 = vld [vmem:[#allocation2 + $0xb0] sm:$0x1] }
 0x2b4   :  { %13202 = vmatmul.mubr.bf16.gmra.mrb[48].mxu1 %v11737_v46  ;;  %v11587_v26 = vcombine.low %v3633_v39, %v3636_v17  ;;  %v3640_v18 = vsel %vm15574_vm8, %v11556_v34, %v3639_v21  ;;  %v3653_v33 = vrot.slane %v14479_v20, 5  ;;  %v11740_v8 = vcombine.low %v6620_v4, %v6623_v12  ;;  %v14481_v50 = vld [vmem:[#allocation2 + $0xa4] sm:$0x1]  ;;  %v14482_v56 = vld [vmem:[#allocation2 + $0xbc] sm:$0x1] }
 0x2b5   :  { %13205 = vmatprep.mubr.bf16.mxu1 %v11738_v42  ;;  %v11588_v37 = vcombine.low %v3640_v18, %v3643_v22  ;;  %v3648_v24 = vrot.slane %v3646_v15, 4  ;;  %v11709_v43 = vrot.slane %v6418_v35, 9  ;;  %v6629_v61 = vrot.slane %v14480_v51, 5  ;;  %v14483_v55 = vld [vmem:[#allocation2 + $0xb0] sm:$0x1] }
 0x2b6   :  { %v6635_v27 = vrot.slane %v6633_v45, 4  ;;  %v3655_v47 = vrot.slane %v3653_v33, 4  ;;  %v11710_v49 = vrot.slane %v6419_v28, 9  ;;  %v11557_v46 = vrot.slane %v3467_v19, 9  ;;  %v14484_v1 = vld [vmem:[#allocation2 + $0xc4] sm:$0xf] }
 0x2b7   :  { %v3649_v7 = vrot.slane %v14481_v50, 5  ;;  %v6630_v53 = vsel %vm15574_vm8, %v6628_v10, %v6629_v61  ;;  %v6636_v44 = vrot.slane %v14482_v56, 5  ;;  %v11558_v58 = vrot.slane %v3468_v41, 9  ;;  %v14485_v63 = vld [vmem:[#allocation2 + $0xb8] sm:$0xf] }
 0x2b8   :  { %v3656_v60 = vrot.slane %v14483_v55, 5  ;;  %v6640_v42 = vrot.slane %v14484_v1, 5  ;;  %v3660_v3 = vrot.slane %v14485_v63, 5  ;;  %v3470_v9 = vld [vmem:[#allocation2 + $0xd8] sm:$0xe]  ;;  %v6627_v6 = vsel %vm15574_vm8, %v11709_v43, %v6626_v52 }
 0x2b9   :  { %v3650_v0 = vsel %vm15574_vm8, %v3648_v24, %v3649_v7  ;;  %v6637_v21 = vsel %vm15574_vm8, %v6635_v27, %v6636_v44  ;;  %v14486_v5 = vld [vmem:[#allocation2 + $0xe8] sm:$0xf]  ;;  %v11741_v23 = vcombine.low %v6627_v6, %v6630_v53  ;;  %v3647_v30 = vsel %vm15574_vm8, %v11557_v46, %v3646_v15  ;;  %v6420_v31 = vld [vmem:[#allocation2 + $0xc0] sm:$0xe]  ;;  %v3469_v29 = vld [vmem:[#allocation2 + $0xb4] sm:$0xe] }
 0x2ba   :  { %12966 = vmatmul.mubr.bf16.gmra.mrb[84].mxu0 %v11587_v26  ;;  %v3657_v13 = vsel %vm15574_vm8, %v3655_v47, %v3656_v60  ;;  %v6647_v14 = vrot.slane %v14486_v5, 5  ;;  %v6634_v48 = vsel %vm15574_vm8, %v11710_v49, %v6633_v45  ;;  %v11589_v25 = vcombine.low %v3647_v30, %v3650_v0  ;;  %v6421_v16 = vld [vmem:[#allocation2 + $0xe4] sm:$0xe]  ;;  %v14487_v38 = vld [vmem:[#allocation2 + $0xdc] sm:$0xf] }
 0x2bb   :  { %12969 = vmatprep.mubr.bf16.mxu0 %v11588_v37  ;;  %v3654_v40 = vsel %vm15574_vm8, %v11558_v58, %v3653_v33  ;;  %v11560_v57 = vrot.slane %v3470_v9, 9  ;;  %v11742_v52 = vcombine.low %v6634_v48, %v6637_v21  ;;  %v6642_v34 = vrot.slane %v6640_v42, 4  ;;  %v14488_v12 = vld [vmem:[#allocation2 + $0xe0] sm:$0x1]  ;;  %v14489_v45 = vld [vmem:[#allocation2 + $0xc8] sm:$0x1] }
 0x2bc   :  { %13206 = vmatmul.mubr.bf16.gmra.mrb[52].mxu1 %v11739_v62  ;;  %v11590_v59 = vcombine.low %v3654_v40, %v3657_v13  ;;  %v3662_v17 = vrot.slane %v3660_v3, 4  ;;  %v6649_v36 = vrot.slane %v6647_v14, 4  ;;  %v3667_v15 = vrot.slane %v14487_v38, 5  ;;  %v14490_v39 = vld [vmem:[#allocation2 + $0xbc] sm:$0x1] }
 0x2bd   :  { %13209 = vmatprep.mubr.bf16.mxu1 %v11740_v8  ;;  %v3670_v22 = vrot.slane %v14488_v12, 5  ;;  %v11711_v11 = vrot.slane %v6420_v31, 9  ;;  %v6643_v62 = vrot.slane %v14489_v45, 5  ;;  %v11559_v4 = vrot.slane %v3469_v29, 9  ;;  %v14491_v10 = vld [vmem:[#allocation2 + $0xec] sm:$0x1] }
 0x2be   :  { %v3663_v35 = vrot.slane %v14490_v39, 5  ;;  %v11712_v26 = vrot.slane %v6421_v16, 9  ;;  %v6650_v18 = vrot.slane %v14491_v10, 5  ;;  %v3668_v28 = vsel %vm15574_vm8, %v11560_v57, %v3667_v15  ;;  %v14492_v8 = vld [vmem:[#allocation2 + $0xf4] sm:$0xf] }
 0x2bf   :  { %v3669_v19 = vrot.slane %v3667_v15, 4  ;;  %v6644_v20 = vsel %vm15574_vm8, %v6642_v34, %v6643_v62  ;;  %v6654_v37 = vrot.slane %v14492_v8, 5  ;;  %v14493_v24 = vld [vmem:[#allocation2 + $0xe8] sm:$0xf]  ;;  %v14494_v51 = vld [vmem:[#allocation2 + $0x100] sm:$0xf]  ;;  %v6641_v46 = vsel %vm15574_vm8, %v11711_v11, %v6640_v42 }
 0x2c0   :  { %v3664_v33 = vsel %vm15574_vm8, %v3662_v17, %v3663_v35  ;;  %v3674_v41 = vrot.slane %v14493_v24, 5  ;;  %v6651_v43 = vsel %vm15574_vm8, %v6649_v36, %v6650_v18  ;;  %v6661_v61 = vrot.slane %v14494_v51, 5  ;;  %v14495_v47 = vld [vmem:[#allocation2 + $0xf4] sm:$0xf]  ;;  %v6422_v58 = vld [vmem:[#allocation2 + $0xf0] sm:$0xe] }
 0x2c1   :  { %v3671_v27 = vsel %vm15574_vm8, %v3669_v19, %v3670_v22  ;;  %v3681_v49 = vrot.slane %v14495_v47, 5  ;;  %v3661_v50 = vsel %vm15574_vm8, %v11559_v4, %v3660_v3  ;;  %v11743_v53 = vcombine.low %v6641_v46, %v6644_v20  ;;  %v3471_v55 = vld [vmem:[#allocation2 + $0xe4] sm:$0xe]  ;;  %v6423_v1 = vld [vmem:[#allocation2 + $0xfc] sm:$0xe] }
 0x2c2   :  { %12970 = vmatmul.mubr.bf16.gmra.mrb[88].mxu0 %v11589_v25  ;;  %v11592_v7 = vcombine.low %v3668_v28, %v3671_v27  ;;  %v6648_v56 = vsel %vm15574_vm8, %v11712_v26, %v6647_v14  ;;  %v11591_v44 = vcombine.low %v3661_v50, %v3664_v33  ;;  %v6656_v0 = vrot.slane %v6654_v37, 4  ;;  %v3472_v9 = vld [vmem:[#allocation2 + $0xf0] sm:$0xe]  ;;  %v14496_v3 = vld [vmem:[#allocation2 + $0xf8] sm:$0x1] }
 0x2c3   :  { %12973 = vmatprep.mubr.bf16.mxu0 %v11590_v59  ;;  %v11744_v60 = vcombine.low %v6648_v56, %v6651_v43  ;;  %v3676_v63 = vrot.slane %v3674_v41, 4  ;;  %v6663_v6 = vrot.slane %v6661_v61, 4  ;;  %v3683_v42 = vrot.slane %v3681_v49, 4  ;;  %v14498_v48 = vld [vmem:[#allocation2 + $0x104] sm:$0x1] }
 0x2c4   :  { %13210 = vmatmul.mubr.bf16.gmra.mrb[56].mxu1 %v11741_v23  ;;  %v11713_v21 = vrot.slane %v6422_v58, 9  ;;  %v6657_v13 = vrot.slane %v14496_v3, 5  ;;  %v11561_v5 = vrot.slane %v3471_v55, 9  ;;  %v14497_v23 = vld [vmem:[#allocation2 + $0xec] sm:$0x1]  ;;  %v11714_v30 = vrot.slane %v6423_v1, 9 }
 0x2c5   :  { %13213 = vmatprep.mubr.bf16.mxu1 %v11742_v52  ;;  %v3677_v14 = vrot.slane %v14497_v23, 5  ;;  %v6664_v25 = vrot.slane %v14498_v48, 5  ;;  %v11562_v31 = vrot.slane %v3472_v9, 9  ;;  %v14499_v40 = vld [vmem:[#allocation2 + $0xf8] sm:$0x1] }
 0x2c6   :  { %v3684_v29 = vrot.slane %v14499_v40, 5  ;;  %v6658_v57 = vsel %vm15574_vm8, %v6656_v0, %v6657_v13  ;;  %v14500_v34 = vld [vmem:[#allocation2 + $0x10c] sm:$0xf]  ;;  %v14501_v16 = vld [vmem:[#allocation2 + $0x100] sm:$0xf]  ;;  %v6655_v45 = vsel %vm15574_vm8, %v11713_v21, %v6654_v37  ;;  %v3675_v62 = vsel %vm15574_vm8, %v11561_v5, %v3674_v41 }
 0x2c7   :  { %v3678_v52 = vsel %vm15574_vm8, %v3676_v63, %v3677_v14  ;;  %v6668_v59 = vrot.slane %v14500_v34, 5  ;;  %v3688_v17 = vrot.slane %v14501_v16, 5  ;;  %v6665_v36 = vsel %vm15574_vm8, %v6663_v6, %v6664_v25  ;;  %v14502_v15 = vld [vmem:[#allocation2 + $0x118] sm:$0xf]  ;;  %v14503_v22 = vld [vmem:[#allocation2 + $0x10c] sm:$0xf] }
 0x2c8   :  { %v3685_v38 = vsel %vm15574_vm8, %v3683_v42, %v3684_v29  ;;  %v6675_v12 = vrot.slane %v14502_v15, 5  ;;  %v3695_v11 = vrot.slane %v14503_v22, 5  ;;  %v11745_v4 = vcombine.low %v6655_v45, %v6658_v57  ;;  %v6424_v26 = vld [vmem:[#allocation2 + $0x108] sm:$0xe]  ;;  %v3473_v18 = vld [vmem:[#allocation2 + $0xfc] sm:$0xe] }
 0x2c9   :  { %v6662_v39 = vsel %vm15574_vm8, %v11714_v30, %v6661_v61  ;;  %v11593_v35 = vcombine.low %v3675_v62, %v3678_v52  ;;  %v3682_v10 = vsel %vm15574_vm8, %v11562_v31, %v3681_v49  ;;  %v6670_v19 = vrot.slane %v6668_v59, 4  ;;  %v6425_v33 = vld [vmem:[#allocation2 + $0x114] sm:$0xe]  ;;  %v3474_v24 = vld [vmem:[#allocation2 + $0x108] sm:$0xe] }
 0x2ca   :  { %12974 = vmatmul.mubr.bf16.gmra.mrb[92].mxu0 %v11591_v44  ;;  %v11746_v28 = vcombine.low %v6662_v39, %v6665_v36  ;;  %v11594_v20 = vcombine.low %v3682_v10, %v3685_v38  ;;  %v3690_v8 = vrot.slane %v3688_v17, 4  ;;  %v6677_v37 = vrot.slane %v6675_v12, 4  ;;  %v14504_v51 = vld [vmem:[#allocation2 + $0x110] sm:$0x1]  ;;  %v14505_v47 = vld [vmem:[#allocation2 + $0x104] sm:$0x1] }
 0x2cb   :  { %12977 = vmatprep.mubr.bf16.mxu0 %v11592_v7  ;;  %v3697_v41 = vrot.slane %v3695_v11, 4  ;;  %v11715_v43 = vrot.slane %v6424_v26, 9  ;;  %v6671_v61 = vrot.slane %v14504_v51, 5  ;;  %v11563_v27 = vrot.slane %v3473_v18, 9  ;;  %v14506_v50 = vld [vmem:[#allocation2 + $0x11c] sm:$0x1] }
 0x2cc   :  { %13214 = vmatmul.mubr.bf16.gmra.mrb[60].mxu1 %v11743_v53  ;;  %v3691_v46 = vrot.slane %v14505_v47, 5  ;;  %v11716_v49 = vrot.slane %v6425_v33, 9  ;;  %v6678_v7 = vrot.slane %v14506_v50, 5  ;;  %v11564_v53 = vrot.slane %v3474_v24, 9  ;;  %v14507_v56 = vld [vmem:[#allocation2 + $0x110] sm:$0x1] }
 0x2cd   :  { %13217 = vmatprep.mubr.bf16.mxu1 %v11744_v60  ;;  %v3698_v44 = vrot.slane %v14507_v56, 5  ;;  %v6672_v58 = vsel %vm15574_vm8, %v6670_v19, %v6671_v61  ;;  %v14508_v60 = vld [vmem:[#allocation2 + $0x124] sm:$0xf]  ;;  %v14509_v1 = vld [vmem:[#allocation2 + $0x118] sm:$0xf]  ;;  %v6669_v5 = vsel %vm15574_vm8, %v11715_v43, %v6668_v59  ;;  %v3689_v23 = vsel %vm15574_vm8, %v11563_v27, %v3688_v17 }
 0x2ce   :  { %v3692_v55 = vsel %vm15574_vm8, %v3690_v8, %v3691_v46  ;;  %v6682_v0 = vrot.slane %v14508_v60, 5  ;;  %v3702_v63 = vrot.slane %v14509_v1, 5  ;;  %v6679_v9 = vsel %vm15574_vm8, %v6677_v37, %v6678_v7  ;;  %v14510_v42 = vld [vmem:[#allocation2 + $0x130] sm:$0xf]  ;;  %v14511_v3 = vld [vmem:[#allocation2 + $0x124] sm:$0xf] }
 0x2cf   :  { %v3699_v6 = vsel %vm15574_vm8, %v3697_v41, %v3698_v44  ;;  %v6689_v21 = vrot.slane %v14510_v42, 5  ;;  %v3709_v13 = vrot.slane %v14511_v3, 5  ;;  %v11747_v14 = vcombine.low %v6669_v5, %v6672_v58  ;;  %v6426_v25 = vld [vmem:[#allocation2 + $0x120] sm:$0xe]  ;;  %v3475_v40 = vld [vmem:[#allocation2 + $0x114] sm:$0xe] }
 0x2d0   :  { %v6676_v30 = vsel %vm15574_vm8, %v11716_v49, %v6675_v12  ;;  %v11595_v48 = vcombine.low %v3689_v23, %v3692_v55  ;;  %v3696_v31 = vsel %vm15574_vm8, %v11564_v53, %v3695_v11  ;;  %v6684_v57 = vrot.slane %v6682_v0, 4  ;;  %v6427_v34 = vld [vmem:[#allocation2 + $0x12c] sm:$0xe]  ;;  %v3476_v36 = vld [vmem:[#allocation2 + $0x120] sm:$0xe] }
 0x2d1   :  { %v11748_v29 = vcombine.low %v6676_v30, %v6679_v9  ;;  %v11596_v52 = vcombine.low %v3696_v31, %v3699_v6  ;;  %v3704_v16 = vrot.slane %v3702_v63, 4  ;;  %v6691_v59 = vrot.slane %v6689_v21, 4  ;;  %v14512_v15 = vld [vmem:[#allocation2 + $0x128] sm:$0x1]  ;;  %v14513_v45 = vld [vmem:[#allocation2 + $0x11c] sm:$0x1] }
 0x2d2   :  { %12978 = vmatmul.mubr.bf16.gmra.mrb[96].mxu0 %v11593_v35  ;;  %v3711_v17 = vrot.slane %v3709_v13, 4  ;;  %v11717_v38 = vrot.slane %v6426_v25, 9  ;;  %v6685_v12 = vrot.slane %v14512_v15, 5  ;;  %v11565_v22 = vrot.slane %v3475_v40, 9  ;;  %v14515_v26 = vld [vmem:[#allocation2 + $0x128] sm:$0x1] }
 0x2d3   :  { %12981 = vmatprep.mubr.bf16.mxu0 %v11594_v20  ;;  %v3705_v62 = vrot.slane %v14513_v45, 5  ;;  %v11718_v11 = vrot.slane %v6427_v34, 9  ;;  %v11566_v35 = vrot.slane %v3476_v36, 9  ;;  %v3712_v10 = vrot.slane %v14515_v26, 5  ;;  %v14516_v19 = vld [vmem:[#allocation2 + $0x13c] sm:$0xf] }
 0x2d4   :  { %13218 = vmatmul.mubr.bf16.gmra.mrb[0].mxu1 %v11745_v4  ;;  %v14514_v4 = vld [vmem:[#allocation2 + $0x134] sm:$0x1]  ;;  %v6686_v18 = vsel %vm15574_vm8, %v6684_v57, %v6685_v12  ;;  %v6696_v20 = vrot.slane %v14516_v19, 5  ;;  %v14517_v33 = vld [vmem:[#allocation2 + $0x130] sm:$0xf]  ;;  %v6683_v27 = vsel %vm15574_vm8, %v11717_v38, %v6682_v0  ;;  %v3703_v47 = vsel %vm15574_vm8, %v11565_v22, %v3702_v63 }
 0x2d5   :  { %13221 = vmatprep.mubr.bf16.mxu1 %v11746_v28  ;;  %v6692_v39 = vrot.slane %v14514_v4, 5  ;;  %v3706_v28 = vsel %vm15574_vm8, %v3704_v16, %v3705_v62  ;;  %v3716_v8 = vrot.slane %v14517_v33, 5  ;;  %v3713_v37 = vsel %vm15574_vm8, %v3711_v17, %v3712_v10  ;;  %v14518_v41 = vld [vmem:[#allocation2 + $0x148] sm:$0xf]  ;;  %v14519_v51 = vld [vmem:[#allocation2 + $0x13c] sm:$0xf] }
 0x2d6   :  { %v6703_v43 = vrot.slane %v14518_v41, 5  ;;  %v3723_v61 = vrot.slane %v14519_v51, 5  ;;  %v11749_v46 = vcombine.low %v6683_v27, %v6686_v18  ;;  %v6690_v49 = vsel %vm15574_vm8, %v11718_v11, %v6689_v21  ;;  %v6428_v7 = vld [vmem:[#allocation2 + $0x138] sm:$0xe]  ;;  %v3477_v56 = vld [vmem:[#allocation2 + $0x12c] sm:$0xe] }
 0x2d7   :  { %v6693_v24 = vsel %vm15574_vm8, %v6691_v59, %v6692_v39  ;;  %v11597_v50 = vcombine.low %v3703_v47, %v3706_v28  ;;  %v3710_v53 = vsel %vm15574_vm8, %v11566_v35, %v3709_v13  ;;  %v6698_v58 = vrot.slane %v6696_v20, 4  ;;  %v6429_v60 = vld [vmem:[#allocation2 + $0x144] sm:$0xe]  ;;  %v3478_v9 = vld [vmem:[#allocation2 + $0x138] sm:$0xe] }
 0x2d8   :  { %v11750_v44 = vcombine.low %v6690_v49, %v6693_v24  ;;  %v11598_v55 = vcombine.low %v3710_v53, %v3713_v37  ;;  %v3718_v1 = vrot.slane %v3716_v8, 4  ;;  %v6705_v0 = vrot.slane %v6703_v43, 4  ;;  %v14520_v42 = vld [vmem:[#allocation2 + $0x140] sm:$0x1]  ;;  %v14521_v5 = vld [vmem:[#allocation2 + $0x134] sm:$0x1] }
 0x2d9   :  { %v3725_v63 = vrot.slane %v3723_v61, 4  ;;  %v11719_v6 = vrot.slane %v6428_v7, 9  ;;  %v6699_v21 = vrot.slane %v14520_v42, 5  ;;  %v11567_v3 = vrot.slane %v3477_v56, 9  ;;  %v14523_v25 = vld [vmem:[#allocation2 + $0x140] sm:$0x1] }
 0x2da   :  { %12982 = vmatmul.mubr.bf16.gmra.mrb[100].mxu0 %v11595_v48  ;;  %v3719_v23 = vrot.slane %v14521_v5, 5  ;;  %v11720_v13 = vrot.slane %v6429_v60, 9  ;;  %v11568_v48 = vrot.slane %v3478_v9, 9  ;;  %v3726_v31 = vrot.slane %v14523_v25, 5  ;;  %v14524_v57 = vld [vmem:[#allocation2 + $0x154] sm:$0xf] }
 0x2db   :  { %12985 = vmatprep.mubr.bf16.mxu0 %v11596_v52  ;;  %v6700_v40 = vsel %vm15574_vm8, %v6698_v58, %v6699_v21  ;;  %v6710_v52 = vrot.slane %v14524_v57, 5  ;;  %v14525_v34 = vld [vmem:[#allocation2 + $0x148] sm:$0xf]  ;;  %v14526_v17 = vld [vmem:[#allocation2 + $0x160] sm:$0xf]  ;;  %v6697_v22 = vsel %vm15574_vm8, %v11719_v6, %v6696_v20  ;;  %v3717_v45 = vsel %vm15574_vm8, %v11567_v3, %v3716_v8 }
 0x2dc   :  { %13222 = vmatmul.mubr.bf16.gmra.mrb[4].mxu1 %v11747_v14  ;;  %v14522_v14 = vld [vmem:[#allocation2 + $0x14c] sm:$0x1]  ;;  %v3730_v16 = vrot.slane %v14525_v34, 5  ;;  %v3727_v59 = vsel %vm15574_vm8, %v3725_v63, %v3726_v31  ;;  %v6717_v38 = vrot.slane %v14526_v17, 5  ;;  %v14527_v15 = vld [vmem:[#allocation2 + $0x154] sm:$0xf]  ;;  %v11751_v62 = vcombine.low %v6697_v22, %v6700_v40 }
 0x2dd   :  { %13225 = vmatprep.mubr.bf16.mxu1 %v11748_v29  ;;  %v6706_v30 = vrot.slane %v14522_v14, 5  ;;  %v3720_v29 = vsel %vm15574_vm8, %v3718_v1, %v3719_v23  ;;  %v3737_v12 = vrot.slane %v14527_v15, 5  ;;  %v6704_v11 = vsel %vm15574_vm8, %v11720_v13, %v6703_v43  ;;  %v6430_v39 = vld [vmem:[#allocation2 + $0x150] sm:$0xe]  ;;  %v3479_v26 = vld [vmem:[#allocation2 + $0x144] sm:$0xe] }
 0x2de   :  { %v11599_v4 = vcombine.low %v3717_v45, %v3720_v29  ;;  %v3724_v35 = vsel %vm15574_vm8, %v11568_v48, %v3723_v61  ;;  %v6712_v18 = vrot.slane %v6710_v52, 4  ;;  %v6431_v19 = vld [vmem:[#allocation2 + $0x15c] sm:$0xe]  ;;  %v3732_v33 = vrot.slane %v3730_v16, 4  ;;  %v3480_v24 = vld [vmem:[#allocation2 + $0x150] sm:$0xe] }
 0x2df   :  { %v6707_v36 = vsel %vm15574_vm8, %v6705_v0, %v6706_v30  ;;  %v11600_v28 = vcombine.low %v3724_v35, %v3727_v59  ;;  %v6719_v20 = vrot.slane %v6717_v38, 4  ;;  %v3739_v8 = vrot.slane %v3737_v12, 4  ;;  %v14528_v41 = vld [vmem:[#allocation2 + $0x158] sm:$0x1]  ;;  %v14529_v27 = vld [vmem:[#allocation2 + $0x14c] sm:$0x1] }
 0x2e0   :  { %v11752_v10 = vcombine.low %v6704_v11, %v6707_v36  ;;  %v11721_v37 = vrot.slane %v6430_v39, 9  ;;  %v6713_v43 = vrot.slane %v14528_v41, 5  ;;  %v11569_v51 = vrot.slane %v3479_v26, 9  ;;  %v14531_v7 = vld [vmem:[#allocation2 + $0x158] sm:$0x1] }
 0x2e1   :  { %v3733_v47 = vrot.slane %v14529_v27, 5  ;;  %v11722_v61 = vrot.slane %v6431_v19, 9  ;;  %v3740_v53 = vrot.slane %v14531_v7, 5  ;;  %v14532_v58 = vld [vmem:[#allocation2 + $0x16c] sm:$0xf] }
 0x2e2   :  { %12986 = vmatmul.mubr.bf16.gmra.mrb[104].mxu0 %v11597_v50  ;;  %v11570_v50 = vrot.slane %v3480_v24, 9  ;;  %v6714_v56 = vsel %vm15574_vm8, %v6712_v18, %v6713_v43  ;;  %v14533_v60 = vld [vmem:[#allocation2 + $0x160] sm:$0xf]  ;;  %v14534_v63 = vld [vmem:[#allocation2 + $0x178] sm:$0xf]  ;;  %v6711_v3 = vsel %vm15574_vm8, %v11721_v37, %v6710_v52  ;;  %v3731_v5 = vsel %vm15574_vm8, %v11569_v51, %v3730_v16 }
 0x2e3   :  { %12989 = vmatprep.mubr.bf16.mxu0 %v11598_v55  ;;  %v6724_v55 = vrot.slane %v14532_v58, 5  ;;  %v3744_v1 = vrot.slane %v14533_v60, 5  ;;  %v3741_v0 = vsel %vm15574_vm8, %v3739_v8, %v3740_v53  ;;  %v6731_v6 = vrot.slane %v14534_v63, 5  ;;  %v14535_v42 = vld [vmem:[#allocation2 + $0x16c] sm:$0xf] }
 0x2e4   :  { %13226 = vmatmul.mubr.bf16.gmra.mrb[8].mxu1 %v11749_v46  ;;  %v14530_v46 = vld [vmem:[#allocation2 + $0x164] sm:$0x1]  ;;  %v3751_v21 = vrot.slane %v14535_v42, 5  ;;  %v11753_v23 = vcombine.low %v6711_v3, %v6714_v56  ;;  %v6718_v13 = vsel %vm15574_vm8, %v11722_v61, %v6717_v38  ;;  %v6432_v30 = vld [vmem:[#allocation2 + $0x168] sm:$0xe]  ;;  %v3738_v48 = vsel %vm15574_vm8, %v11570_v50, %v3737_v12 }
 0x2e5   :  { %13229 = vmatprep.mubr.bf16.mxu1 %v11750_v44  ;;  %v6720_v49 = vrot.slane %v14530_v46, 5  ;;  %v3734_v44 = vsel %vm15574_vm8, %v3732_v33, %v3733_v47  ;;  %v3481_v25 = vld [vmem:[#allocation2 + $0x15c] sm:$0xe]  ;;  %v6726_v40 = vrot.slane %v6724_v55, 4  ;;  %v11602_v29 = vcombine.low %v3738_v48, %v3741_v0  ;;  %v6433_v57 = vld [vmem:[#allocation2 + $0x174] sm:$0xe] }
 0x2e6   :  { %v11601_v14 = vcombine.low %v3731_v5, %v3734_v44  ;;  %v3746_v34 = vrot.slane %v3744_v1, 4  ;;  %v3482_v36 = vld [vmem:[#allocation2 + $0x168] sm:$0xe]  ;;  %v6733_v52 = vrot.slane %v6731_v6, 4  ;;  %v3753_v16 = vrot.slane %v3751_v21, 4 }
 0x2e7   :  { %v6721_v9 = vsel %vm15574_vm8, %v6719_v20, %v6720_v49  ;;  %v11723_v59 = vrot.slane %v6432_v30, 9  ;;  %v14536_v17 = vld [vmem:[#allocation2 + $0x170] sm:$0x1]  ;;  %v11571_v15 = vrot.slane %v3481_v25, 9  ;;  %v14537_v22 = vld [vmem:[#allocation2 + $0x164] sm:$0x1] }
 0x2e8   :  { %v11754_v31 = vcombine.low %v6718_v13, %v6721_v9  ;;  %v6727_v38 = vrot.slane %v14536_v17, 5  ;;  %v3747_v45 = vrot.slane %v14537_v22, 5  ;;  %v11724_v12 = vrot.slane %v6433_v57, 9  ;;  %v14539_v39 = vld [vmem:[#allocation2 + $0x170] sm:$0x1] }
 0x2e9   :  { %v3754_v35 = vrot.slane %v14539_v39, 5  ;;  %v14540_v18 = vld [vmem:[#allocation2 + $0x184] sm:$0xf]  ;;  %v14541_v19 = vld [vmem:[#allocation2 + $0x178] sm:$0xf]  ;;  %v6725_v51 = vsel %vm15574_vm8, %v11723_v59, %v6724_v55  ;;  %v3745_v27 = vsel %vm15574_vm8, %v11571_v15, %v3744_v1 }
 0x2ea   :  { %12990 = vmatmul.mubr.bf16.gmra.mrb[108].mxu0 %v11599_v4  ;;  %v11572_v4 = vrot.slane %v3482_v36, 9  ;;  %v6728_v26 = vsel %vm15574_vm8, %v6726_v40, %v6727_v38  ;;  %v3758_v33 = vrot.slane %v14541_v19, 5  ;;  %v14542_v8 = vld [vmem:[#allocation2 + $0x190] sm:$0xf]  ;;  %v14543_v41 = vld [vmem:[#allocation2 + $0x184] sm:$0xf]  ;;  %v6732_v61 = vsel %vm15574_vm8, %v11724_v12, %v6731_v6 }
 0x2eb   :  { %12993 = vmatprep.mubr.bf16.mxu0 %v11600_v28  ;;  %v6738_v28 = vrot.slane %v14540_v18, 5  ;;  %v3755_v20 = vsel %vm15574_vm8, %v3753_v16, %v3754_v35  ;;  %v6745_v37 = vrot.slane %v14542_v8, 5  ;;  %v3765_v43 = vrot.slane %v14543_v41, 5  ;;  %v6434_v49 = vld [vmem:[#allocation2 + $0x180] sm:$0xe] }
 0x2ec   :  { %13230 = vmatmul.mubr.bf16.gmra.mrb[12].mxu1 %v11751_v62  ;;  %v14538_v62 = vld [vmem:[#allocation2 + $0x17c] sm:$0x1]  ;;  %v11755_v47 = vcombine.low %v6725_v51, %v6728_v26  ;;  %v3752_v50 = vsel %vm15574_vm8, %v11572_v4, %v3751_v21  ;;  %v3483_v7 = vld [vmem:[#allocation2 + $0x174] sm:$0xe]  ;;  %v6435_v58 = vld [vmem:[#allocation2 + $0x18c] sm:$0xe] }
 0x2ed   :  { %13233 = vmatprep.mubr.bf16.mxu1 %v11752_v10  ;;  %v6734_v11 = vrot.slane %v14538_v62, 5  ;;  %v3748_v10 = vsel %vm15574_vm8, %v3746_v34, %v3747_v45  ;;  %v6740_v56 = vrot.slane %v6738_v28, 4  ;;  %v11604_v44 = vcombine.low %v3752_v50, %v3755_v20  ;;  %v3484_v9 = vld [vmem:[#allocation2 + $0x180] sm:$0xe]  ;;  %v14544_v63 = vld [vmem:[#allocation2 + $0x188] sm:$0x1] }
 0x2ee   :  { %v11603_v46 = vcombine.low %v3745_v27, %v3748_v10  ;;  %v3760_v60 = vrot.slane %v3758_v33, 4  ;;  %v6747_v55 = vrot.slane %v6745_v37, 4  ;;  %v3767_v1 = vrot.slane %v3765_v43, 4  ;;  %v14545_v3 = vld [vmem:[#allocation2 + $0x17c] sm:$0x1]  ;;  %v14245_v51 = vld [vmem:[#allocation2 + $0xc] sm:$0xff]  }
 0x2ef   :  { %v6735_v24 = vsel %vm15574_vm8, %v6733_v52, %v6734_v11  ;;  %v11725_v0 = vrot.slane %v6434_v49, 9  ;;  %v6741_v6 = vrot.slane %v14544_v63, 5  ;;  %v11573_v42 = vrot.slane %v3483_v7, 9  ;;  %v14547_v30 = vld [vmem:[#allocation2 + $0x188] sm:$0x1]  ;;  %v14260_v50 = vld [vmem:[%s17090_s3 + $0x1d0] sm:$0xff]  }
 0x2f0   :  { %v11756_v53 = vcombine.low %v6732_v61, %v6735_v24  ;;  %v3761_v5 = vrot.slane %v14545_v3, 5  ;;  %v11726_v21 = vrot.slane %v6435_v58, 9  ;;  %v3768_v48 = vrot.slane %v14547_v30, 5  ;;  %v14548_v40 = vld [vmem:[#allocation2 + $0x19c] sm:$0xf]  ;;  %v14244_v27 = vld [vmem:[#allocation2 + $0x24] sm:$0xff]  }
 0x2f1   :  { %v6742_v25 = vsel %vm15574_vm8, %v6740_v56, %v6741_v6  ;;  %v14549_v57 = vld [vmem:[#allocation2 + $0x190] sm:$0xf]  ;;  %v6739_v16 = vsel %vm15574_vm8, %v11725_v0, %v6738_v28  ;;  %v3759_v59 = vsel %vm15574_vm8, %v11573_v42, %v3758_v33  ;;  %v6436_v22 = vld [vmem:[#allocation2 + $0x198] sm:$0xe]  ;;  %v3485_v12 = vld [vmem:[#allocation2 + $0x18c] sm:$0xe] }
 0x2f2   :  { %12994 = vmatmul.mubr.bf16.gmra.mrb[112].mxu0 %v11601_v14  ;;  %v11574_v14 = vrot.slane %v3484_v9, 9  ;;  %v3772_v34 = vrot.slane %v14549_v57, 5  ;;  %v3769_v52 = vsel %vm15574_vm8, %v3767_v1, %v3768_v48  ;;  %v11757_v17 = vcombine.low %v6739_v16, %v6742_v25  ;;  %v14550_v26 = vld [vmem:[#allocation2 + $0x1a0] sm:$0x1]  ;;  %v14551_v28 = vld [vmem:[#allocation2 + $0x194] sm:$0x1] }
 0x2f3   :  { %12997 = vmatprep.mubr.bf16.mxu0 %v11602_v29  ;;  %v6752_v29 = vrot.slane %v14548_v40, 5  ;;  %v6746_v38 = vsel %vm15574_vm8, %v11726_v21, %v6745_v37  ;;  %v11727_v35 = vrot.slane %v6436_v22, 9  ;;  %v6755_v10 = vrot.slane %v14550_v26, 5  ;;  %v14251_v61 = vld [vmem:[%s17090_s3 + $0x1c8] sm:$0xff]   ;;  %v14248_v7 = vld [vmem:[#allocation2 + $0x3c] sm:$0xff]   ;;  %v14258_v1 = vld [vmem:[#allocation2 + $0x54] sm:$0xff]  }
 0x2f4   :  { %13234 = vmatmul.mubr.bf16.gmra.mrb[16].mxu1 %v11753_v23  ;;  %v14546_v23 = vld [vmem:[#allocation2 + $0x194] sm:$0x1]  ;;  %v3766_v45 = vsel %vm15574_vm8, %v11574_v14, %v3765_v43  ;;  %v3774_v39 = vrot.slane %v3772_v34, 4  ;;  %v11575_v18 = vrot.slane %v3485_v12, 9  ;;  %v3775_v19 = vrot.slane %v14551_v28, 5  ;;  %v14242_v43 = vld [vmem:[#allocation2 + $0x18] sm:$0xff]  }
 0x2f5   :  { %13237 = vmatprep.mubr.bf16.mxu1 %v11754_v31  ;;  %v6748_v13 = vrot.slane %v14546_v23, 5  ;;  %v3762_v31 = vsel %vm15574_vm8, %v3760_v60, %v3761_v5  ;;  %v6754_v11 = vrot.slane %v6752_v29, 4  ;;  %v11606_v4 = vcombine.low %v3766_v45, %v3769_v52  ;;  %v14249_v49 = vld [vmem:[#allocation2 + $0x24] sm:$0xff]   ;;  %v14269_v58 = vld [vmem:[%s17090_s3 + $0x1d8] sm:$0xff]   ;;  %v14289_v63 = vld [vmem:[%s17090_s3 + $0x1f0] sm:$0xff]  }
 0x2f6   :  { %v11605_v15 = vcombine.low %v3759_v59, %v3762_v31  ;;  %v3776_v24 = vsel %vm15574_vm8, %v3774_v39, %v3775_v19  ;;  %v6753_v20 = vsel %vm15574_vm8, %v11727_v35, %v6752_v29  ;;  %v3773_v8 = vsel %vm15574_vm8, %v11575_v18, %v3772_v34  ;;  %v14250_v56 = vld [vmem:[#allocation2 + $0x48] sm:$0xff]   ;;  %v14253_v60 = vld [vmem:[#allocation2 + $0x54] sm:$0xff]   ;;  %v14261_v42 = vld [vmem:[#allocation2 + $0x60] sm:$0xff]  }
 0x2f7   :  { %v6749_v36 = vsel %vm15574_vm8, %v6747_v55, %v6748_v13  ;;  %v6756_v33 = vsel %vm15574_vm8, %v6754_v11, %v6755_v10  ;;  %v11607_v41 = vcombine.low %v3773_v8, %v3776_v24  ;;  %v14256_v9 = vld [vmem:[#allocation2 + $0x48] sm:$0xff]   ;;  %v14255_v55 = vld [vmem:[#allocation2 + $0x60] sm:$0xff]   ;;  %v14259_v3 = vld [vmem:[#allocation2 + $0x78] sm:$0xff]  }
 0x2f8   :  { %v11758_v62 = vcombine.low %v6746_v38, %v6749_v36  ;;  %v11759_v37 = vcombine.low %v6753_v20, %v6756_v33  ;;  %v14284_v0 = vld [vmem:[%s17090_s3 + $0x1e8] sm:$0xff]   ;;  %v14294_v21 = vld [vmem:[%s17090_s3 + $0x1f8] sm:$0xff]   ;;  %v15951_v23 = vld [vmem:[%s17090_s3 + $0x200] sm:$0xff]  }
 0x2f9   :  { %v14257_v6 = vld [vmem:[#allocation2 + $0x6c] sm:$0xff]   ;;  %v14262_v13 = vld [vmem:[#allocation2 + $0x84] sm:$0xff]   ;;  %v14265_v14 = vld [vmem:[#allocation2 + $0x78] sm:$0xff]  }
 0x2fa   :  { %12998 = vmatmul.mubr.bf16.gmra.mrb[116].mxu0 %v11603_v46  ;;  %v14246_v46 = vld [vmem:[#allocation2 + $0x30] sm:$0xff]   ;;  %v14267_v48 = vld [vmem:[#allocation2 + $0x84] sm:$0xff]   ;;  %v14266_v25 = vld [vmem:[#allocation2 + $0x9c] sm:$0xff]  }
 0x2fb   :  { %13001 = vmatprep.mubr.bf16.mxu0 %v11604_v44  ;;  %v14254_v44 = vld [vmem:[#allocation2 + $0x3c] sm:$0xff]   ;;  %v14263_v5 = vld [vmem:[#allocation2 + $0x6c] sm:$0xff]   ;;  %v14271_v57 = vld [vmem:[#allocation2 + $0xb4] sm:$0xff]  }
 0x2fc   :  { %13238 = vmatmul.mubr.bf16.gmra.mrb[20].mxu1 %v11755_v47  ;;  %v14247_v47 = vld [vmem:[#allocation2 + $0x18] sm:$0xff]   ;;  %v14264_v30 = vld [vmem:[#allocation2 + $0x90] sm:$0xff]   ;;  %v14268_v40 = vld [vmem:[#allocation2 + $0xa8] sm:$0xff]  }
 0x2fd   :  { %13241 = vmatprep.mubr.bf16.mxu1 %v11756_v53  ;;  %v14252_v53 = vld [vmem:[#allocation2 + $0x30] sm:$0xff]   ;;  %v14272_v29 = vld [vmem:[#allocation2 + $0x9c] sm:$0xff]   ;;  %v14274_v34 = vld [vmem:[#allocation2 + $0xa8] sm:$0xff]  }
 0x2fe   :  { %v14270_v31 = vld [vmem:[#allocation2 + $0x90] sm:$0xff]   ;;  %v14273_v36 = vld [vmem:[#allocation2 + $0xc0] sm:$0xff]   ;;  %v7976_v11 = vld [vmem:[#allocation2 + $0x18] sm:$0xf] }
 0x2ff   :  { %v14276_v52 = vld [vmem:[#allocation2 + $0xb4] sm:$0xff]   ;;  %v14275_v16 = vld [vmem:[#allocation2 + $0xcc] sm:$0xff]   ;;  %v14279_v59 = vld [vmem:[#allocation2 + $0xc0] sm:$0xff]   ;;  %v8073_v39 = vshrl.u32 %v7976_v11, 16  ;;  %v8076_v35 = vshll.u32 %v7976_v11, 16 }
 0x300   :  { %v14280_v38 = vld [vmem:[#allocation2 + $0xfc] sm:$0xff]   ;;  %v14282_v22 = vld [vmem:[#allocation2 + $0x114] sm:$0xff]   ;;  %v14285_v12 = vld [vmem:[#allocation2 + $0x12c] sm:$0xff]  }
 0x301   :  { %v14283_v45 = vld [vmem:[#allocation2 + $0x120] sm:$0xff]   ;;  %v7980_v10 = vld [vmem:[#allocation2 + $0x28] sm:$0xf]  ;;  %v14288_v33 = vld [vmem:[#allocation2 + $0x150] sm:$0xff]  }
 0x302   :  { %13002 = vmatmul.mubr.bf16.gmra.mrb[120].mxu0 %v11605_v15  ;;  %v14281_v15 = vld [vmem:[#allocation2 + $0x108] sm:$0xff]   ;;  %v7979_v26 = vld [vmem:[#allocation2 + $0x24] sm:$0xf]  ;;  %v8106_v8 = vshll.u32 %v7980_v10, 16 }
 0x303   :  { %13005 = vmatprep.mubr.bf16.mxu0 %v11606_v4  ;;  %v7977_v4 = vld [vmem:[#allocation2 + $0x1c] sm:$0xf]  ;;  %v14287_v18 = vld [vmem:[#allocation2 + $0x144] sm:$0xff]   ;;  %v8097_v24 = vshrl.u32 %v7979_v26, 16  ;;  %v8100_v20 = vshll.u32 %v7979_v26, 16 }
 0x304   :  { %13242 = vmatmul.mubr.bf16.gmra.mrb[24].mxu1 %v11757_v17  ;;  %v14277_v17 = vld [vmem:[#allocation2 + $0xf0] sm:$0xff]   ;;  %v8082_v28 = vshll.u32 %v7977_v4, 16  ;;  %v8086_v19 = vshrl.u32 %v7977_v4, 16  ;;  %v7987_v11 = vld [vmem:[#allocation2 + $0x44] sm:$0x1] }
 0x305   :  { %13245 = vmatprep.mubr.bf16.mxu1 %v11758_v62  ;;  %v14286_v62 = vld [vmem:[#allocation2 + $0x138] sm:$0xff]  }
 0x30a   :  { %13006 = vmatmul.mubr.bf16.gmra.mrb[124].mxu0 %v11607_v41  ;;  %v8075_v41 = vrot.slane %v8073_v39, 4  ;;  %v7988_v39 = vld [vmem:[#allocation2 + $0x48] sm:$0xf] }
 0x30b   :  { %13025 = vmatprep.mubr.bf16.mxu0 %v14245_v51  ;;  %v8084_v51 = vrot.slane %v8082_v28, 5 }
 0x30c   :  { %13246 = vmatmul.mubr.bf16.gmra.mrb[28].mxu1 %v11759_v37  ;;  %v8110_v37 = vshrl.u32 %v7980_v10, 16 }
 0x30d   :  { %13265 = vmatprep.mubr.bf16.mxu1 %v14242_v43  ;;  %v8078_v43 = vrot.slane %v8076_v35, 5  ;;  %v7989_v35 = vld [vmem:[#allocation2 + $0x4c] sm:$0xf] }
 0x312   :  { %13026 = vmatmul.mubr.bf16.vlgmr.msra.gmra.mrb[64].mxu0 %v14247_v47  ;;  %v7982_v47 = vld [vmem:[#allocation2 + $0x30] sm:$0xf] }
 0x313   :  { %13029 = vmatprep.mubr.bf16.mxu0 %v14249_v49  ;;  %v8108_v49 = vrot.slane %v8106_v8, 5 }
 0x314   :  { %13266 = vmatmul.mubr.bf16.vlgmr.msra.gmra.mrb[32].mxu1 %v14244_v27  ;;  %v8088_v27 = vrot.slane %v8086_v19, 4  ;;  %v7991_v19 = vld [vmem:[#allocation2 + $0x54] sm:$0xf] }
 0x315   :  { %13330 = vmatpush3.bf16.msra.mxu1 %v15736_v32  ;;  %13269 = vmatprep.mubr.bf16.mxu1 %v14246_v46  ;;  %v14278_v32 = vld [vmem:[%s17090_s3 + $0x1e0] sm:$0xff]   ;;  %v8102_v46 = vrot.slane %v8100_v20, 5 }
 0x316   :  { %13331 = vmatprep.subr.bf16.mxu1 %v14251_v61 }
 0x319   :  { %13332 = vmatpush3.bf16.msra.mxu1 %v14251_v61  ;;  %v8099_v61 = vrot.slane %v8097_v24, 4 }
 0x31a   :  { %13333 = vmatprep.subr.bf16.mxu1 %v14260_v50  ;;  %13030 = vmatmul.mubr.bf16.gmra.mrb[68].mxu0 %v14252_v53  ;;  %v7978_v53 = vld [vmem:[#allocation2 + $0x20] sm:$0x1] }
 0x31b   :  { %13033 = vmatprep.mubr.bf16.mxu0 %v14254_v44  ;;  %v8124_v44 = vshll.u32 %v7982_v47, 16 }
 0x31c   :  { %13270 = vmatmul.mubr.bf16.gmra.mrb[36].mxu1 %v14248_v7  ;;  %v8079_v7 = vor.u32 %v8078_v43, %v8075_v41  ;;  %v7994_v41 = vld [vmem:[#allocation2 + $0x60] sm:$0xf]  ;;  %v8169_v43 = vshrl.u32 %v7988_v39, 16 }
 0x31d   :  { %13273 = vmatprep.mubr.bf16.mxu1 %v14250_v56  ;;  %13334 = vmatpush3.bf16.msra.mxu1 %v14260_v50  ;;  %v8112_v50 = vrot.slane %v8110_v37, 4  ;;  %v8121_v56 = vshrl.u32 %v7982_v47, 16  ;;  %v7992_v37 = vld [vmem:[#allocation2 + $0x58] sm:$0xf]  ;;  %v8182_v47 = vshrl.u32 %v7989_v35, 16 }
 0x31e   :  { %13335 = vmatprep.subr.bf16.mxu1 %v14269_v58 }
 0x321   :  { %13336 = vmatpush3.bf16.msra.mxu1 %v14269_v58  ;;  %v14290_v58 = vld [vmem:[#allocation2 + $0x15c] sm:$0xff]  }
 0x322   :  { %13337 = vmatprep.subr.bf16.mxu1 %v14278_v32  ;;  %13034 = vmatmul.mubr.bf16.gmra.mrb[72].mxu0 %v14256_v9  ;;  %v14291_v9 = vld [vmem:[#allocation2 + $0x168] sm:$0xff]  }
 0x323   :  { %13037 = vmatprep.mubr.bf16.mxu0 %v14258_v1  ;;  %v8113_v1 = vor.u32 %v8112_v50, %v8108_v49  ;;  %v8196_v50 = vshll.u32 %v7991_v19, 16 }
 0x324   :  { %13274 = vmatmul.mubr.bf16.gmra.mrb[40].mxu1 %v14253_v60  ;;  %v7981_v60 = vld [vmem:[#allocation2 + $0x2c] sm:$0x1] }
 0x325   :  { %13277 = vmatprep.mubr.bf16.mxu1 %v14255_v55  ;;  %13338 = vmatpush3.bf16.msra.mxu1 %v14278_v32  ;;  %v8089_v32 = vor.u32 %v8088_v27, %v8084_v51  ;;  %v8103_v55 = vor.u32 %v8102_v46, %v8099_v61  ;;  %v8178_v27 = vshll.u32 %v7989_v35, 16  ;;  %v8164_v46 = vshll.u32 %v7987_v11, 16 }
 0x326   :  { %13339 = vmatprep.subr.bf16.mxu1 %v14284_v0 }
 0x329   :  { %13340 = vmatpush3.bf16.msra.mxu1 %v14284_v0  ;;  %v7983_v0 = vld [vmem:[#allocation2 + $0x34] sm:$0xf] }
 0x32a   :  { %13341 = vmatprep.subr.bf16.mxu1 %v14289_v63  ;;  %13038 = vmatmul.mubr.bf16.gmra.mrb[76].mxu0 %v14261_v42  ;;  %v8116_v42 = vshll.u32 %v7981_v60, 16  ;;  %v14296_v60 = vld [vmem:[#allocation2 + $0x198] sm:$0xff]  }
 0x32b   :  { %13041 = vmatprep.mubr.bf16.mxu0 %v14263_v5  ;;  %v8123_v5 = vrot.slane %v8121_v56, 4  ;;  %v7995_v56 = vld [vmem:[#allocation2 + $0x64] sm:$0xf] }
 0x32c   :  { %13278 = vmatmul.mubr.bf16.gmra.mrb[44].mxu1 %v14257_v6  ;;  %v8092_v6 = vshll.u32 %v7978_v53, 16  ;;  %v8206_v53 = vshrl.u32 %v7992_v37, 16 }
 0x32d   :  { %13281 = vmatprep.mubr.bf16.mxu1 %v14259_v3  ;;  %13342 = vmatpush3.bf16.msra.mxu1 %v14289_v63  ;;  %v8080_v63 = vrot.slane %v8079_v7, 4  ;;  %v7984_v3 = vld [vmem:[#allocation2 + $0x38] sm:$0x1]  ;;  %v8202_v7 = vshll.u32 %v7992_v37, 16 }
 0x32e   :  { %13343 = vmatprep.subr.bf16.mxu1 %v14294_v21 }
 0x331   :  { %13344 = vmatpush3.bf16.msra.mxu1 %v14294_v21  ;;  %v8126_v21 = vrot.slane %v8124_v44, 5  ;;  %v8217_v44 = vshrl.u32 %v7994_v41, 16 }
 0x332   :  { %13409 = vmatprep.subr.bf16.mxu1 %v15951_v23  ;;  %13042 = vmatmul.mubr.bf16.gmra.mrb[80].mxu0 %v14265_v14  ;;  %v8130_v14 = vshll.u32 %v7983_v0, 16 }
 0x333   :  { %13045 = vmatprep.mubr.bf16.mxu0 %v14267_v48  ;;  %v7985_v48 = vld [vmem:[#allocation2 + $0x3c] sm:$0xf] }
 0x334   :  { %13282 = vmatmul.mubr.bf16.gmra.mrb[48].mxu1 %v14262_v13  ;;  %v8090_v13 = vrot.slane %v8089_v32, 4  ;;  %v14295_v32 = vld [vmem:[#allocation2 + $0x18c] sm:$0xff]  }
 0x335   :  { %13285 = vmatprep.mubr.bf16.mxu1 %v14264_v30  ;;  %v8134_v30 = vshrl.u32 %v7983_v0, 16 }
 0x33a   :  { %13046 = vmatmul.mubr.bf16.gmra.mrb[84].mxu0 %v14270_v31  ;;  %v8114_v31 = vrot.slane %v8113_v1, 4 }
 0x33b   :  { %13049 = vmatprep.mubr.bf16.mxu0 %v14272_v29  ;;  %v8094_v29 = vrot.slane %v8092_v6, 5  ;;  %v8171_v6 = vrot.slane %v8169_v43, 4  ;;  %v7996_v43 = vld [vmem:[#allocation2 + $0x68] sm:$0x1] }
 0x33c   :  { %13286 = vmatmul.mubr.bf16.gmra.mrb[52].mxu1 %v14266_v25  ;;  %v8104_v25 = vrot.slane %v8103_v55, 4 }
 0x33d   :  { %13289 = vmatprep.mubr.bf16.mxu1 %v14268_v40  ;;  %v8085_v40 = vsel %vm14812_vm2, %v8080_v63, %v8084_v51  ;;  %v8172_v51 = vshll.u32 %v7988_v39, 16  ;;  %v7997_v63 = vld [vmem:[#allocation2 + $0x6c] sm:$0xf]  ;;  %v8000_v39 = vld [vmem:[#allocation2 + $0x78] sm:$0xf] }
 0x342   :  { %13050 = vmatmul.mubr.bf16.gmra.mrb[88].mxu0 %v14274_v34  ;;  %v8127_v34 = vor.u32 %v8126_v21, %v8123_v5  ;;  %v8184_v5 = vrot.slane %v8182_v47, 4  ;;  %v7998_v21 = vld [vmem:[#allocation2 + $0x70] sm:$0xf] }
 0x343   :  { %13053 = vmatprep.mubr.bf16.mxu0 %v14276_v52  ;;  %v7986_v52 = vld [vmem:[#allocation2 + $0x40] sm:$0xf] }
 0x344   :  { %13290 = vmatmul.mubr.bf16.gmra.mrb[56].mxu1 %v14271_v57  ;;  %v8118_v57 = vrot.slane %v8116_v42, 5  ;;  %v8154_v4 = vshll.u32 %v7986_v52, 16  ;;  %v15966_v10 = vrot.slane %v8127_v34, 4  ;;  %v8158_v8 = vshrl.u32 %v7986_v52, 16  ;;  %v7993_v34 = vld [vmem:[#allocation2 + $0x5c] sm:$0x1] }
 0x345   :  { %13293 = vmatprep.mubr.bf16.mxu1 %v14273_v36  ;;  %v8140_v36 = vshll.u32 %v7984_v3, 16  ;;  %v8174_v42 = vrot.slane %v8172_v51, 5  ;;  %v15985_v3 = vrot.slane %v8178_v27, 5  ;;  %v8244_v52 = vshll.u32 %v7997_v63, 16 }
 0x346   :  { %v15977_v61 = vrot.slane %v8154_v4, 5  ;;  %v8160_v0 = vrot.slane %v8158_v8, 4  ;;  %v8265_v51 = vshrl.u32 %v8000_v39, 16  ;;  %v8268_v27 = vshll.u32 %v8000_v39, 16 }
 0x34a   :  { %13054 = vmatmul.mubr.bf16.gmra.mrb[92].mxu0 %v14279_v59  ;;  %v14292_v59 = vld [vmem:[#allocation2 + $0x174] sm:$0xff]  }
 0x34c   :  { %13294 = vmatmul.mubr.bf16.gmra.mrb[60].mxu1 %v14275_v16  ;;  %v8145_v16 = vshrl.u32 %v7985_v48, 16 }
 0x34d   :  { %13297 = vmatprep.mubr.bf16.mxu1 %v14277_v17  ;;  %v8095_v17 = vsel %vm14812_vm2, %v8090_v13, %v8094_v29  ;;  %v7990_v13 = vld [vmem:[#allocation2 + $0x50] sm:$0x1]  ;;  %v8219_v29 = vrot.slane %v8217_v44, 4 }
 0x34e   :  { %v15964_v26 = vcombine.low %v8085_v40, %v8095_v17  ;;  %v15970_v28 = vrot.slane %v8145_v16, 4  ;;  %v8208_v40 = vrot.slane %v8206_v53, 4  ;;  %v8250_v16 = vshll.u32 %v7998_v21, 16 }
 0x354   :  { %13298 = vmatmul.mubr.bf16.gmra.mrb[0].mxu1 %v14280_v38  ;;  %v15958_v38 = vrot.slane %v8130_v14, 5 }
 0x355   :  { %13301 = vmatprep.mubr.bf16.mxu1 %v14281_v15  ;;  %v8136_v15 = vrot.slane %v8134_v30, 4  ;;  %v8198_v30 = vrot.slane %v8196_v50, 5 }
 0x357   :  { %v8137_v24 = vor.u32 %v8136_v15, %v15958_v38  ;;  %v15993_v15 = vrot.slane %v8164_v46, 5 }
 0x359   :  { %v8138_v55 = vrot.slane %v8137_v24, 4 }
 0x35c   :  { %13302 = vmatmul.mubr.bf16.gmra.mrb[4].mxu1 %v14282_v22  ;;  %v8148_v22 = vshll.u32 %v7985_v48, 16  ;;  %v8226_v48 = vshll.u32 %v7995_v56, 16 }
 0x35d   :  { %13305 = vmatprep.mubr.bf16.mxu1 %v14283_v45  ;;  %v14293_v45 = vld [vmem:[#allocation2 + $0x180] sm:$0xff]  }
 0x35e   :  { %v15975_v20 = vrot.slane %v8148_v22, 5  ;;  %v8188_v22 = vshll.u32 %v7990_v13, 16  ;;  %v15996_v11 = vrot.slane %v8226_v48, 5 }
 0x360   :  { %v8151_v1 = vor.u32 %v15975_v20, %v15970_v28  ;;  %v8212_v28 = vshll.u32 %v7993_v34, 16  ;;  %v15999_v20 = vrot.slane %v8250_v16, 5 }
 0x364   :  { %13306 = vmatmul.mubr.bf16.gmra.mrb[8].mxu1 %v14285_v12  ;;  %v8109_v12 = vsel %vm14812_vm2, %v8104_v25, %v8108_v49  ;;  %v8193_v49 = vshrl.u32 %v7991_v19, 16  ;;  %v8230_v25 = vshrl.u32 %v7995_v56, 16 }
 0x365   :  { %13309 = vmatprep.mubr.bf16.mxu1 %v14286_v62  ;;  %v8119_v62 = vsel %vm14812_vm2, %v8114_v31, %v8118_v57  ;;  %v15987_v31 = vrot.slane %v8202_v7, 5  ;;  %v8001_v7 = vld [vmem:[#allocation2 + $0x7c] sm:$0xf] }
 0x366   :  { %v8195_v14 = vrot.slane %v8193_v49, 4  ;;  %v8232_v4 = vrot.slane %v8230_v25, 4  ;;  %v8190_v49 = vrot.slane %v8188_v22, 5 }
 0x368   :  { %v8199_v35 = vor.u32 %v8198_v30, %v8195_v14  ;;  %v8233_v50 = vor.u32 %v8232_v4, %v15996_v11  ;;  %v8002_v14 = vld [vmem:[#allocation2 + $0x80] sm:$0x1] }
 0x36a   :  { %v8200_v56 = vrot.slane %v8199_v35, 4  ;;  %v8006_v35 = vld [vmem:[#allocation2 + $0x90] sm:$0xf] }
 0x36c   :  { %13310 = vmatmul.mubr.bf16.gmra.mrb[12].mxu1 %v14287_v18  ;;  %v15968_v18 = vrot.slane %v8140_v36, 5  ;;  %v8241_v36 = vshrl.u32 %v7997_v63, 16  ;;  %v8270_v63 = vrot.slane %v8268_v27, 5  ;;  %v8205_v25 = vsel %vm14812_vm2, %v8200_v56, %v15987_v31  ;;  %v8010_v27 = vld [vmem:[#allocation2 + $0xa0] sm:$0xf] }
 0x36d   :  { %13313 = vmatprep.mubr.bf16.mxu1 %v14288_v33  ;;  %v15972_v33 = vcombine.low %v8109_v12, %v8119_v62  ;;  %v8175_v12 = vor.u32 %v8174_v42, %v8171_v6  ;;  %v8185_v62 = vor.u32 %v8184_v5, %v15985_v3  ;;  %v8274_v6 = vshll.u32 %v8001_v7, 16 }
 0x36e   :  { %v8143_v17 = vsel %vm14812_vm2, %v8138_v55, %v15968_v18  ;;  %v8243_v24 = vrot.slane %v8241_v36, 4  ;;  %v8246_v18 = vrot.slane %v8244_v52, 5  ;;  %v8278_v42 = vshrl.u32 %v8001_v7, 16  ;;  %v8013_v7 = vld [vmem:[#allocation2 + $0xac] sm:$0xf] }
 0x36f   :  { %v8176_v46 = vrot.slane %v8175_v12, 4  ;;  %v8186_v53 = vrot.slane %v8185_v62, 4  ;;  %v16026_v16 = vrot.slane %v8274_v6, 5  ;;  %v8004_v12 = vld [vmem:[#allocation2 + $0x88] sm:$0xf]  ;;  %v8370_v6 = vshll.u32 %v8013_v7, 16 }
 0x370   :  { %v8247_v55 = vor.u32 %v8246_v18, %v8243_v24  ;;  %v16032_v62 = vld [vmem:[#allocation2 + $0x8c] sm:$0x1] }
 0x371   :  { %v8181_v30 = vsel %vm14812_vm2, %v8176_v46, %v15985_v3  ;;  %v8191_v48 = vsel %vm14812_vm2, %v8186_v53, %v8190_v49  ;;  %v8308_v46 = vshll.u32 %v16032_v62, 16  ;;  %v8313_v49 = vshrl.u32 %v8006_v35, 16 }
 0x372   :  { %v8248_v34 = vrot.slane %v8247_v55, 4 }
 0x374   :  { %13314 = vmatmul.mubr.bf16.gmra.mrb[16].mxu1 %v14290_v58  ;;  %v8220_v58 = vshll.u32 %v7994_v41, 16  ;;  %v8152_v41 = vrot.slane %v8151_v1, 4 }
 0x375   :  { %13317 = vmatprep.mubr.bf16.mxu1 %v14291_v9  ;;  %v8133_v9 = vsel %vm14812_vm2, %v15966_v10, %v15958_v38  ;;  %v8161_v38 = vor.u32 %v8160_v0, %v15977_v61  ;;  %v8209_v10 = vor.u32 %v8208_v40, %v15987_v31  ;;  %v8267_v0 = vrot.slane %v8265_v51, 4  ;;  %v8003_v40 = vld [vmem:[#allocation2 + $0x84] sm:$0xf] }
 0x376   :  { %v8222_v57 = vrot.slane %v8220_v58, 5  ;;  %v11810_v37 = vcombine.low %v8133_v9, %v8143_v17  ;;  %v8214_v58 = vrot.slane %v8212_v28, 5  ;;  %v8236_v9 = vshll.u32 %v7996_v43, 16 }
 0x377   :  { %v8162_v47 = vrot.slane %v8161_v38, 4  ;;  %v8210_v44 = vrot.slane %v8209_v10, 4  ;;  %v8157_v5 = vsel %vm14812_vm2, %v8152_v41, %v15977_v61  ;;  %v8271_v52 = vor.u32 %v8270_v63, %v8267_v0  ;;  %v8007_v10 = vld [vmem:[#allocation2 + $0x94] sm:$0xf] }
 0x378   :  { %v8223_v19 = vor.u32 %v8222_v57, %v8219_v29  ;;  %v14299_v29 = vld [vmem:[%s17090_s3 + $0x208] sm:$0xff]   ;;  %v8238_v3 = vrot.slane %v8236_v9, 5  ;;  %v8284_v31 = vshll.u32 %v8002_v14, 16  ;;  %v8292_v22 = vshll.u32 %v8003_v40, 16  ;;  %v8015_v14 = vld [vmem:[#allocation2 + $0xb4] sm:$0xf] }
 0x379   :  { %v8215_v61 = vsel %vm14812_vm2, %v8210_v44, %v8214_v58  ;;  %v8298_v43 = vshll.u32 %v8004_v12, 16  ;;  %v8302_v51 = vshrl.u32 %v8004_v12, 16  ;;  %v8322_v53 = vshll.u32 %v8007_v10, 16 }
 0x37a   :  { %v16034_v4 = vcombine.low %v8205_v25, %v8215_v61  ;;  %v16049_v18 = vrot.slane %v8284_v31, 5  ;;  %v8294_v41 = vrot.slane %v8292_v22, 5  ;;  %v8326_v56 = vshrl.u32 %v8007_v10, 16  ;;  %v8016_v31 = vld [vmem:[#allocation2 + $0xb8] sm:$0xf] }
 0x37b   :  { %v8350_v9 = vshrl.u32 %v8010_v27, 16  ;;  %v16057_v63 = vrot.slane %v8298_v43, 5  ;;  %v16075_v12 = vrot.slane %v8308_v46, 5 }
 0x37c   :  { %13318 = vmatmul.mubr.bf16.gmra.mrb[20].mxu1 %v14292_v59  ;;  %v8254_v59 = vshrl.u32 %v7998_v21, 16  ;;  %v8234_v21 = vrot.slane %v8233_v50, 4  ;;  %v8316_v50 = vshll.u32 %v8006_v35, 16 }
 0x37d   :  { %13321 = vmatprep.mubr.bf16.mxu1 %v14293_v45  ;;  %v14297_v45 = vld [vmem:[#allocation2 + $0x1a4] sm:$0xff]  }
 0x37e   :  { %v8256_v8 = vrot.slane %v8254_v59, 4  ;;  %v8280_v59 = vrot.slane %v8278_v42, 4  ;;  %v8239_v17 = vsel %vm14812_vm2, %v8234_v21, %v8238_v3  ;;  %v8374_v42 = vshrl.u32 %v8013_v7, 16 }
 0x37f   :  { %v8315_v21 = vrot.slane %v8313_v49, 4  ;;  %v8352_v3 = vrot.slane %v8350_v9, 4  ;;  %v8018_v49 = vld [vmem:[#allocation2 + $0xc0] sm:$0xf] }
 0x380   :  { %v8257_v1 = vor.u32 %v8256_v8, %v15999_v20  ;;  %v8281_v24 = vor.u32 %v8280_v59, %v16026_v16  ;;  %v8009_v8 = vld [vmem:[#allocation2 + $0x9c] sm:$0xf]  ;;  %v8376_v59 = vrot.slane %v8374_v42, 4  ;;  %v8409_v42 = vshrl.u32 %v8018_v49, 16 }
 0x381   :  { %v8337_v44 = vshrl.u32 %v8009_v8, 16  ;;  %v8340_v58 = vshll.u32 %v8009_v8, 16  ;;  %v8398_v8 = vshrl.u32 %v8016_v31, 16 }
 0x382   :  { %v8258_v36 = vrot.slane %v8257_v1, 4  ;;  %v8282_v0 = vrot.slane %v8281_v24, 4  ;;  %v8394_v24 = vshll.u32 %v8016_v31, 16 }
 0x383   :  { %v8339_v25 = vrot.slane %v8337_v44, 4  ;;  %v8342_v61 = vrot.slane %v8340_v58, 5  ;;  %v8400_v9 = vrot.slane %v8398_v8, 4 }
 0x384   :  { %13322 = vmatmul.mubr.bf16.gmra.mrb[24].mxu1 %v14295_v32  ;;  %v7999_v32 = vld [vmem:[#allocation2 + $0x74] sm:$0x1]  ;;  %v8287_v62 = vsel %vm14812_vm2, %v8282_v0, %v16049_v18 }
 0x385   :  { %13325 = vmatprep.mubr.bf16.mxu1 %v14296_v60  ;;  %v8224_v60 = vrot.slane %v8223_v19, 4  ;;  %v8260_v13 = vshll.u32 %v7999_v32, 16  ;;  %v16046_v19 = vrot.slane %v8271_v52, 4  ;;  %v14301_v32 = vld [vmem:[%s17090_s3 + $0x218] sm:$0xff]   ;;  %v16066_v52 = vrot.slane %v8370_v6, 5 }
 0x386   :  { %v8343_v35 = vor.u32 %v8342_v61, %v8339_v25 }
 0x387   :  { %v8229_v57 = vsel %vm14812_vm2, %v8224_v60, %v15996_v11  ;;  %v8262_v38 = vrot.slane %v8260_v13, 5  ;;  %v11812_v11 = vcombine.low %v8181_v30, %v8191_v48  ;;  %v8346_v60 = vshll.u32 %v8010_v27, 16 }
 0x388   :  { %v16044_v28 = vcombine.low %v8229_v57, %v8239_v17  ;;  %v8318_v13 = vrot.slane %v8316_v50, 5  ;;  %v16059_v30 = vrot.slane %v8322_v53, 5  ;;  %v8328_v48 = vrot.slane %v8326_v56, 4  ;;  %v8019_v50 = vld [vmem:[#allocation2 + $0xc4] sm:$0xf] }
 0x389   :  { %v8263_v39 = vsel %vm14812_vm2, %v8258_v36, %v8262_v38  ;;  %v16064_v57 = vrot.slane %v8346_v60, 5  ;;  %v8385_v17 = vshrl.u32 %v8015_v14, 16  ;;  %v8388_v38 = vshll.u32 %v8015_v14, 16 }
 0x38a   :  { %v8377_v18 = vor.u32 %v8376_v59, %v16066_v52  ;;  %v8344_v58 = vrot.slane %v8343_v35, 4  ;;  %v16097_v60 = vrot.slane %v8394_v24, 5  ;;  %v8422_v14 = vshrl.u32 %v8019_v50, 16  ;;  %v16140_v35 = vld [vmem:[#allocation2 + $0x194] sm:$0x1] }
 0x38b   :  { %v8353_v10 = vor.u32 %v8352_v3, %v16064_v57  ;;  %v8024_v3 = vld [vmem:[#allocation2 + $0xf0] sm:$0xf] }
 0x38c   :  { %13326 = vmatmul.mubr.bf16.gmra.mrb[28].mxu1 %v14297_v45  ;;  %v8378_v0 = vrot.slane %v8377_v18, 4  ;;  %v8401_v31 = vor.u32 %v8400_v9, %v16097_v60  ;;  %v8021_v18 = vld [vmem:[#allocation2 + $0xcc] sm:$0xf] }
 0x38d   :  { %13345 = vmatprep.mubr.bf16.mxu1 %v15964_v26  ;;  %v8167_v26 = vsel %vm14812_vm2, %v8162_v47, %v15993_v15  ;;  %v8289_v15 = vshrl.u32 %v8003_v40, 16  ;;  %v14302_v40 = vld [vmem:[%s17090_s3 + $0x220] sm:$0xff]  }
 0x38e   :  { %v11811_v45 = vcombine.low %v8157_v5, %v8167_v26  ;;  %v8304_v26 = vrot.slane %v8302_v51, 4  ;;  %v16148_v8 = vrot.slane %v8401_v31, 4 }
 0x394   :  { %13346 = vmatmul.mubr.bf16.vlgmr.msra.gmra.mrb[32].mxu1 %v15972_v33  ;;  %v8253_v33 = vsel %vm14812_vm2, %v8248_v34, %v15999_v20  ;;  %v8291_v20 = vrot.slane %v8289_v15, 4  ;;  %v8277_v15 = vsel %vm14812_vm2, %v16046_v19, %v16026_v16  ;;  %v14303_v16 = vld [vmem:[%s17090_s3 + $0x228] sm:$0xff]   ;;  %v8014_v19 = vld [vmem:[#allocation2 + $0xb0] sm:$0x1] }
 0x395   :  { %13410 = vmatpush3.bf16.msra.mxu1 %v15951_v23  ;;  %13349 = vmatprep.mubr.bf16.mxu1 %v11810_v37  ;;  %v14300_v23 = vld [vmem:[%s17090_s3 + $0x210] sm:$0xff]   ;;  %v8012_v37 = vld [vmem:[#allocation2 + $0xa8] sm:$0xf]  ;;  %v16051_v47 = vcombine.low %v8253_v33, %v8263_v39  ;;  %v8329_v33 = vor.u32 %v8328_v48, %v16059_v30  ;;  %v11816_v43 = vcombine.low %v8277_v15, %v8287_v62  ;;  %v8380_v56 = vshll.u32 %v8014_v19, 16 }
 0x396   :  { %13411 = vmatprep.subr.bf16.mxu1 %v14299_v29  ;;  %v8361_v55 = vshrl.u32 %v8012_v37, 16  ;;  %v8364_v1 = vshll.u32 %v8012_v37, 16  ;;  %v8295_v5 = vor.u32 %v8294_v41, %v8291_v20  ;;  %v8387_v20 = vrot.slane %v8385_v17, 4  ;;  %v16122_v17 = vld [vmem:[#allocation2 + $0xc8] sm:$0x1] }
 0x397   :  { %v8390_v41 = vrot.slane %v8388_v38, 5 }
 0x398   :  { %v8363_v34 = vrot.slane %v8361_v55, 4  ;;  %v8366_v36 = vrot.slane %v8364_v1, 5  ;;  %v16072_v22 = vrot.slane %v8295_v5, 4 }
 0x399   :  { %13412 = vmatpush3.bf16.msra.mxu1 %v14299_v29  ;;  %v8008_v29 = vld [vmem:[#allocation2 + $0x98] sm:$0x1]  ;;  %v8391_v6 = vor.u32 %v8390_v41, %v8387_v20 }
 0x39a   :  { %13413 = vmatprep.subr.bf16.mxu1 %v14300_v23  ;;  %v8332_v39 = vshll.u32 %v8008_v29, 16  ;;  %v8367_v37 = vor.u32 %v8366_v36, %v8363_v34  ;;  %v8301_v51 = vsel %vm14812_vm2, %v16072_v22, %v16057_v63  ;;  %v8382_v29 = vrot.slane %v8380_v56, 5  ;;  %v14305_v34 = vld [vmem:[%s17090_s3 + $0x238] sm:$0xff]   ;;  %v8022_v56 = vld [vmem:[#allocation2 + $0xd0] sm:$0xf] }
 0x39b   :  { %v8349_v36 = vsel %vm14812_vm2, %v8344_v58, %v16064_v57  ;;  %v16130_v22 = vrot.slane %v8391_v6, 4  ;;  %v16132_v57 = vrot.slane %v8409_v42, 4  ;;  %v8027_v58 = vld [vmem:[#allocation2 + $0xfc] sm:$0xf]  ;;  %v9721_v6 = vrot.slane %v16140_v35, 5 }
 0x39c   :  { %13350 = vmatmul.mubr.bf16.gmra.mrb[36].mxu1 %v11811_v45  ;;  %v8305_v45 = vor.u32 %v8304_v26, %v16057_v63  ;;  %v8334_v53 = vrot.slane %v8332_v39, 5  ;;  %v8368_v1 = vrot.slane %v8367_v37, 4  ;;  %v8017_v63 = vld [vmem:[#allocation2 + $0xbc] sm:$0x1]  ;;  %v8383_v15 = vsel %vm14812_vm2, %v8378_v0, %v8382_v29  ;;  %v9414_v39 = vld [vmem:[#allocation2 + $0x18c] sm:$0xe] }
 0x39d   :  { %13353 = vmatprep.mubr.bf16.mxu1 %v11812_v11  ;;  %13414 = vmatpush3.bf16.msra.mxu1 %v14300_v23  ;;  %v8319_v11 = vor.u32 %v8318_v13, %v8315_v21  ;;  %v8011_v23 = vld [vmem:[#allocation2 + $0xa4] sm:$0x1]  ;;  %v8412_v21 = vshll.u32 %v8018_v49, 16  ;;  %v8418_v13 = vshll.u32 %v8019_v50, 16  ;;  %v9415_v49 = vld [vmem:[#allocation2 + $0x198] sm:$0xe] }
 0x39e   :  { %13415 = vmatprep.subr.bf16.mxu1 %v14301_v32  ;;  %v8306_v27 = vrot.slane %v8305_v45, 4  ;;  %v8356_v46 = vshll.u32 %v8011_v23, 16  ;;  %v8373_v38 = vsel %vm14812_vm2, %v8368_v1, %v16066_v52  ;;  %v8025_v45 = vld [vmem:[#allocation2 + $0xf4] sm:$0xf]  ;;  %v8433_v42 = vshrl.u32 %v8021_v18, 16 }
 0x39f   :  { %v8320_v7 = vrot.slane %v8319_v11, 4  ;;  %v8414_v62 = vrot.slane %v8412_v21, 5  ;;  %v16136_v11 = vrot.slane %v8418_v13, 5  ;;  %v8466_v20 = vshll.u32 %v8025_v45, 16  ;;  %v8028_v21 = vld [vmem:[#allocation2 + $0x100] sm:$0xf] }
 0x3a0   :  { %v8358_v26 = vrot.slane %v8356_v46, 5  ;;  %v8311_v25 = vsel %vm14812_vm2, %v8306_v27, %v16075_v12  ;;  %v16134_v12 = vld [vmem:[#allocation2 + $0x190] sm:$0xf]  ;;  %v11877_v27 = vrot.slane %v9414_v39, 9  ;;  %v8470_v0 = vshrl.u32 %v8025_v45, 16 }
 0x3a1   :  { %13416 = vmatpush3.bf16.msra.mxu1 %v14301_v32  ;;  %v8354_v32 = vrot.slane %v8353_v10, 4  ;;  %v8325_v61 = vsel %vm14812_vm2, %v8320_v7, %v16059_v30  ;;  %v8404_v30 = vshll.u32 %v8017_v63, 16  ;;  %v11817_v52 = vcombine.low %v8301_v51, %v8311_v25  ;;  %v16142_v10 = vld [vmem:[#allocation2 + $0x19c] sm:$0xf] }
 0x3a2   :  { %13417 = vmatprep.subr.bf16.mxu1 %v14302_v40  ;;  %v8428_v51 = vshll.u32 %v16122_v17, 16  ;;  %v9718_v46 = vrot.slane %v16134_v12, 5  ;;  %v8397_v7 = vsel %vm14812_vm2, %v16130_v22, %v16097_v60  ;;  %v11878_v13 = vrot.slane %v9415_v49, 9  ;;  %v8029_v17 = vld [vmem:[#allocation2 + $0x104] sm:$0x1] }
 0x3a3   :  { %v8359_v59 = vsel %vm14812_vm2, %v8354_v32, %v8358_v26  ;;  %v16150_v37 = vrot.slane %v8404_v30, 5  ;;  %v16169_v32 = vld [vmem:[#allocation2 + $0x1a0] sm:$0x1]  ;;  %v16176_v26 = vrot.slane %v8466_v20, 5  ;;  %v8436_v25 = vshll.u32 %v8021_v18, 16 }
 0x3a4   :  { %13354 = vmatmul.mubr.bf16.gmra.mrb[40].mxu1 %v16034_v4  ;;  %v8330_v4 = vrot.slane %v8329_v33, 4  ;;  %v16138_v33 = vrot.slane %v8422_v14, 4  ;;  %v16146_v24 = vcombine.low %v8349_v36, %v8359_v59  ;;  %v9720_v63 = vrot.slane %v9718_v46, 4 }
 0x3a5   :  { %13357 = vmatprep.mubr.bf16.mxu1 %v16044_v28  ;;  %13418 = vmatpush3.bf16.msra.mxu1 %v14302_v40  ;;  %v14304_v28 = vld [vmem:[%s17090_s3 + $0x230] sm:$0xff]   ;;  %v16095_v44 = vpop.f32.mrb[96].mxu0  ;;  %v9725_v14 = vrot.slane %v16142_v10, 5  ;;  %v9728_v31 = vrot.slane %v16169_v32, 5  ;;  %v8472_v30 = vrot.slane %v8470_v0, 4 }
 0x3a6   :  { %13419 = vmatprep.subr.bf16.mxu1 %v14303_v16  ;;  %17102 = vst [vmem:[#allocation3_spill] sm:$0xff] %v16095_v44  ;;  %v16099_v55 = vpop.f32.mrb[97].mxu0  ;;  %v8335_v40 = vsel %vm14812_vm2, %v8330_v4, %v8334_v53  ;;  %v8415_v4 = vor.u32 %v8414_v62, %v16132_v57  ;;  %v8425_v53 = vor.u32 %v16138_v33, %v16136_v11  ;;  %v8490_v57 = vshll.u32 %v8028_v21, 16 }
 0x3a7   :  { %17103 = vst [vmem:[#allocation4_spill] sm:$0xff] %v16099_v55  ;;  %v16101_v5 = vpop.f32.mrb[98].mxu0  ;;  %v11818_v23 = vcombine.low %v8325_v61, %v8335_v40  ;;  %v8442_v61 = vshll.u32 %v8022_v56, 16  ;;  %v16181_v40 = vsel %vm15574_vm8, %v11877_v27, %v9718_v46  ;;  %v16185_v29 = vsel %vm15574_vm8, %v9720_v63, %v9721_v6  ;;  %v8031_v27 = vld [vmem:[#allocation2 + $0x10c] sm:$0xf] }
 0x3a8   :  { %17104 = vst [vmem:[#allocation5_spill] sm:$0xff] %v16101_v5  ;;  %v16103_v48 = vpop.f32.mrb[99].mxu0  ;;  %v9727_v59 = vrot.slane %v9725_v14, 4  ;;  %v8416_v62 = vrot.slane %v8415_v4, 4  ;;  %v8494_v33 = vshrl.u32 %v8028_v21, 16  ;;  %v16194_v39 = vsel %vm15574_vm8, %v11878_v13, %v9725_v14 }
 0x3a9   :  { %13420 = vmatpush3.bf16.msra.mxu1 %v14303_v16  ;;  %17105 = vst [vmem:[#allocation6_spill] sm:$0xff] %v16103_v48  ;;  %v8460_v16 = vshll.u32 %v8024_v3, 16  ;;  %v8435_v4 = vrot.slane %v8433_v42, 4  ;;  %v8023_v6 = vld [vmem:[#allocation2 + $0xd4] sm:$0x1]  ;;  %v8407_v42 = vsel %vm14812_vm2, %v16148_v8, %v16150_v37 }
 0x3aa   :  { %13421 = vmatprep.subr.bf16.mxu1 %v14304_v28 }
 0x3ab   :  { %v16173_v1 = vrot.slane %v8460_v16, 5  ;;  %v8426_v16 = vrot.slane %v8425_v53, 4  ;;  %v8473_v53 = vor.u32 %v8472_v30, %v16176_v26 }
 0x3ac   :  { %13358 = vmatmul.mubr.bf16.gmra.mrb[44].mxu1 %v16051_v47  ;;  %v8457_v47 = vshrl.u32 %v8024_v3, 16  ;;  %v8446_v3 = vshrl.u32 %v8022_v56, 16  ;;  %v8438_v56 = vrot.slane %v8436_v25, 5  ;;  %v8421_v25 = vsel %vm14812_vm2, %v8416_v62, %v16136_v11  ;;  %v8032_v11 = vld [vmem:[#allocation2 + $0x110] sm:$0x1] }
 0x3ad   :  { %13361 = vmatprep.mubr.bf16.mxu1 %v11816_v43  ;;  %13422 = vmatpush3.bf16.msra.mxu1 %v14304_v28  ;;  %v16144_v19 = vpop.f32.mrb[100].mxu0  ;;  %v16154_v43 = vcombine.low %v8373_v38, %v8383_v15  ;;  %v8481_v38 = vshrl.u32 %v8027_v58, 16  ;;  %v8484_v15 = vshll.u32 %v8027_v58, 16  ;;  %v16208_v58 = vrot.slane %v8442_v61, 5 }
 0x3ae   :  { %13423 = vmatprep.subr.bf16.mxu1 %v14305_v34  ;;  %17106 = vst [vmem:[#allocation7_spill] sm:$0xff] %v16144_v19  ;;  %v16152_v41 = vpop.f32.mrb[101].mxu0  ;;  %v16167_v28 = vrot.slane %v8457_v47, 4  ;;  %v8030_v47 = vld [vmem:[#allocation2 + $0x108] sm:$0xf]  ;;  %v8448_v0 = vrot.slane %v8446_v3, 4 }
 0x3af   :  { %17107 = vst [vmem:[#allocation8_spill] sm:$0xff] %v16152_v41  ;;  %v16158_v50 = vpop.f32.mrb[102].mxu0  ;;  %v8483_v21 = vrot.slane %v8481_v38, 4  ;;  %v8486_v13 = vrot.slane %v8484_v15, 5  ;;  %v8505_v14 = vshrl.u32 %v8030_v47, 16  ;;  %v8430_v61 = vrot.slane %v8428_v51, 5 }
 0x3b0   :  { %17108 = vst [vmem:[#allocation9_spill] sm:$0xff] %v16158_v50  ;;  %v16171_v9 = vpop.f32.mrb[103].mxu0  ;;  %v8463_v18 = vor.u32 %v16173_v1, %v16167_v28  ;;  %v16213_v28 = vrot.slane %v8490_v57, 5  ;;  %v8496_v1 = vrot.slane %v8494_v33, 4  ;;  %v8518_v3 = vshrl.u32 %v8031_v27, 16 }
 0x3b1   :  { %13424 = vmatpush3.bf16.msra.mxu1 %v14305_v34  ;;  %17109 = vst [vmem:[#allocation10_spill] sm:$0xff] %v16171_v9  ;;  %v8026_v34 = vld [vmem:[#allocation2 + $0xf8] sm:$0x1]  ;;  %v8449_v30 = vor.u32 %v8448_v0, %v16208_v58  ;;  %v8452_v38 = vshll.u32 %v8023_v6, 16  ;;  %v8033_v15 = vld [vmem:[#allocation2 + $0x114] sm:$0xf]  ;;  %v8431_v8 = vsel %vm14812_vm2, %v8426_v16, %v8430_v61 }
 0x3b2   :  { %v8476_v20 = vshll.u32 %v8026_v34, 16  ;;  %v8508_v34 = vshll.u32 %v8030_v47, 16  ;;  %v8034_v57 = vld [vmem:[#allocation2 + $0x118] sm:$0xf]  ;;  %v8464_v37 = vrot.slane %v8463_v18, 4  ;;  %v8474_v33 = vrot.slane %v8473_v53, 4 }
 0x3b3   :  { %v8487_v47 = vor.u32 %v8486_v13, %v8483_v21  ;;  %v8497_v51 = vor.u32 %v8496_v1, %v16213_v28  ;;  %v8529_v0 = vshrl.u32 %v8033_v15, 16  ;;  %v8532_v6 = vshll.u32 %v8033_v15, 16 }
 0x3b4   :  { %13362 = vmatmul.mubr.bf16.gmra.mrb[48].mxu1 %v11817_v52  ;;  %v16198_v52 = vsel %vm15574_vm8, %v9727_v59, %v9728_v31  ;;  %v8514_v59 = vshll.u32 %v8031_v27, 16  ;;  %v8439_v31 = vor.u32 %v8438_v56, %v8435_v4  ;;  %v8510_v27 = vrot.slane %v8508_v34, 5 }
 0x3b5   :  { %13365 = vmatprep.mubr.bf16.mxu1 %v11818_v23  ;;  %v16190_v45 = vpop.f32.mrb[104].mxu0  ;;  %v8538_v46 = vshll.u32 %v8034_v57, 16  ;;  %v8450_v53 = vrot.slane %v8449_v30, 4  ;;  %v8454_v21 = vrot.slane %v8452_v38, 5  ;;  %v8542_v13 = vshrl.u32 %v8034_v57, 16 }
 0x3b6   :  { %17110 = vst [vmem:[#allocation11_spill] sm:$0xff] %v16190_v45  ;;  %v16200_v23 = vpop.f32.mrb[105].mxu0  ;;  %v16232_v4 = vrot.slane %v8514_v59, 5  ;;  %v8440_v18 = vrot.slane %v8439_v31, 4  ;;  %v11821_v1 = vcombine.low %v8397_v7, %v8407_v42  ;;  %v16245_v59 = vrot.slane %v8487_v47, 4 }
 0x3b7   :  { %17111 = vst [vmem:[#allocation12_spill] sm:$0xff] %v16200_v23  ;;  %v16206_v49 = vpop.f32.mrb[106].mxu0  ;;  %v8500_v61 = vshll.u32 %v8029_v17, 16  ;;  %v16252_v30 = vrot.slane %v8497_v51, 4  ;;  %v8524_v38 = vshll.u32 %v8032_v11, 16  ;;  %v8531_v22 = vrot.slane %v8529_v0, 4 }
 0x3b8   :  { %17112 = vst [vmem:[#allocation13_spill] sm:$0xff] %v16206_v49  ;;  %v16210_v63 = vpop.f32.mrb[107].mxu0  ;;  %v8534_v7 = vrot.slane %v8532_v6, 5  ;;  %v8036_v42 = vld [vmem:[#allocation2 + $0x120] sm:$0xf]  ;;  %v8445_v57 = vsel %vm14812_vm2, %v8440_v18, %v16208_v58  ;;  %v8493_v47 = vsel %vm14812_vm2, %v16245_v59, %v16213_v28 }
 0x3b9   :  { %17113 = vst [vmem:[#allocation14_spill] sm:$0xff] %v16210_v63  ;;  %v8502_v11 = vrot.slane %v8500_v61, 5  ;;  %v8039_v17 = vld [vmem:[#allocation2 + $0x12c] sm:$0xf]  ;;  %v8040_v51 = vld [vmem:[#allocation2 + $0x130] sm:$0xf] }
 0x3ba   :  { %v8556_v58 = vshll.u32 %v8036_v42, 16  ;;  %v16375_v49 = vld [vmem:[#allocation2 + $0x178] sm:$0xf] }
 0x3bc   :  { %13366 = vmatmul.mubr.bf16.gmra.mrb[52].mxu1 %v16146_v24  ;;  %v8478_v24 = vrot.slane %v8476_v20, 5  ;;  %v8520_v20 = vrot.slane %v8518_v3, 4  ;;  %v8469_v3 = vsel %vm14812_vm2, %v8464_v37, %v16176_v26  ;;  %v8455_v26 = vsel %vm14812_vm2, %v8450_v53, %v8454_v21 }
 0x3bd   :  { %13369 = vmatprep.mubr.bf16.mxu1 %v16154_v43  ;;  %v16229_v62 = vpop.f32.mrb[108].mxu0  ;;  %v8507_v43 = vrot.slane %v8505_v14, 4  ;;  %v11822_v14 = vcombine.low %v8421_v25, %v8431_v8  ;;  %v8037_v25 = vld [vmem:[#allocation2 + $0x124] sm:$0xf]  ;;  %v16260_v8 = vrot.slane %v8538_v46, 5  ;;  %v8544_v37 = vrot.slane %v8542_v13, 4 }
 0x3be   :  { %17114 = vst [vmem:[#allocation15_spill] sm:$0xff] %v16229_v62  ;;  %v16234_v56 = vpop.f32.mrb[109].mxu0  ;;  %v8479_v31 = vsel %vm14812_vm2, %v8474_v33, %v8478_v24  ;;  %v8521_v60 = vor.u32 %v8520_v20, %v16232_v4  ;;  %v8035_v24 = vld [vmem:[#allocation2 + $0x11c] sm:$0x1]  ;;  %v8562_v20 = vshll.u32 %v8037_v25, 16  ;;  %v8566_v0 = vshrl.u32 %v8037_v25, 16 }
 0x3bf   :  { %17115 = vst [vmem:[#allocation16_spill] sm:$0xff] %v16234_v56  ;;  %v16236_v16 = vpop.f32.mrb[110].mxu0  ;;  %v8511_v15 = vor.u32 %v8510_v27, %v8507_v43  ;;  %v11824_v33 = vcombine.low %v8469_v3, %v8479_v31  ;;  %v8553_v27 = vshrl.u32 %v8036_v42, 16  ;;  %v11823_v6 = vcombine.low %v8445_v57, %v8455_v26  ;;  %v8042_v13 = vld [vmem:[#allocation2 + $0x138] sm:$0xf] }
 0x3c0   :  { %17116 = vst [vmem:[#allocation17_spill] sm:$0xff] %v16236_v16  ;;  %v16243_v34 = vpop.f32.mrb[111].mxu0  ;;  %v8503_v46 = vsel %vm14812_vm2, %v16252_v30, %v8502_v11  ;;  %v8522_v21 = vrot.slane %v8521_v60, 4  ;;  %v8545_v59 = vor.u32 %v8544_v37, %v16260_v8  ;;  %v8548_v61 = vshll.u32 %v8035_v24, 16  ;;  %v8043_v3 = vld [vmem:[#allocation2 + $0x13c] sm:$0xf] }
 0x3c1   :  { %17117 = vst [vmem:[#allocation18_spill] sm:$0xff] %v16243_v34  ;;  %v8512_v53 = vrot.slane %v8511_v15, 4  ;;  %v8577_v42 = vshrl.u32 %v8039_v17, 16  ;;  %v8580_v25 = vshll.u32 %v8039_v17, 16  ;;  %v8586_v57 = vshll.u32 %v8040_v51, 16 }
 0x3c2   :  { %v8590_v26 = vshrl.u32 %v8040_v51, 16  ;;  %v8555_v36 = vrot.slane %v8553_v27, 4  ;;  %v16278_v30 = vrot.slane %v8562_v20, 5  ;;  %v8568_v15 = vrot.slane %v8566_v0, 4  ;;  %v8045_v27 = vld [vmem:[#allocation2 + $0x144] sm:$0xf] }
 0x3c3   :  { %v8604_v24 = vshll.u32 %v8042_v13, 16  ;;  %v8546_v11 = vrot.slane %v8545_v59, 4  ;;  %v8610_v17 = vshll.u32 %v8043_v3, 16  ;;  %v8614_v51 = vshrl.u32 %v8043_v3, 16 }
 0x3c4   :  { %13370 = vmatmul.mubr.bf16.gmra.mrb[56].mxu1 %v11821_v1  ;;  %v8526_v1 = vrot.slane %v8524_v38, 5  ;;  %v8517_v38 = vsel %vm14812_vm2, %v8512_v53, %v16232_v4  ;;  %v8582_v20 = vrot.slane %v8580_v25, 5  ;;  %v16287_v0 = vrot.slane %v8586_v57, 5 }
 0x3c5   :  { %13373 = vmatprep.mubr.bf16.mxu1 %v11822_v14  ;;  %v16266_v43 = vpop.f32.mrb[112].mxu0  ;;  %v8535_v14 = vor.u32 %v8534_v7, %v8531_v22  ;;  %v16285_v22 = vld [vmem:[#allocation2 + $0x128] sm:$0x1]  ;;  %v8601_v7 = vshrl.u32 %v8042_v13, 16  ;;  %v16293_v13 = vld [vmem:[#allocation2 + $0x134] sm:$0x1] }
 0x3c6   :  { %17118 = vst [vmem:[#allocation19_spill] sm:$0xff] %v16266_v43  ;;  %v16268_v18 = vpop.f32.mrb[113].mxu0  ;;  %v8527_v60 = vsel %vm14812_vm2, %v8522_v21, %v8526_v1  ;;  %v8569_v21 = vor.u32 %v8568_v15, %v16278_v30  ;;  %v8572_v1 = vshll.u32 %v16285_v22, 16  ;;  %v8606_v3 = vrot.slane %v8604_v24, 5 }
 0x3c7   :  { %17119 = vst [vmem:[#allocation20_spill] sm:$0xff] %v16268_v18  ;;  %v16273_v28 = vpop.f32.mrb[114].mxu0  ;;  %v8558_v18 = vrot.slane %v8556_v58, 5  ;;  %v8536_v37 = vrot.slane %v8535_v14, 4  ;;  %v8579_v58 = vrot.slane %v8577_v42, 4  ;;  %v8550_v14 = vrot.slane %v8548_v61, 5 }
 0x3c8   :  { %17120 = vst [vmem:[#allocation21_spill] sm:$0xff] %v16273_v28  ;;  %v16276_v31 = vpop.f32.mrb[115].mxu0  ;;  %v8603_v59 = vrot.slane %v8601_v7, 4  ;;  %v8625_v42 = vshrl.u32 %v8045_v27, 16  ;;  %v11826_v25 = vcombine.low %v8517_v38, %v8527_v60  ;;  %v8048_v60 = vld [vmem:[#allocation2 + $0x150] sm:$0xf] }
 0x3c9   :  { %17121 = vst [vmem:[#allocation22_spill] sm:$0xff] %v16276_v31  ;;  %v11825_v31 = vcombine.low %v8493_v47, %v8503_v46  ;;  %v8559_v53 = vor.u32 %v8558_v18, %v8555_v36  ;;  %v8616_v47 = vrot.slane %v8614_v51, 4  ;;  %v16301_v46 = vld [vmem:[#allocation2 + $0x148] sm:$0xf]  ;;  %v8628_v36 = vshll.u32 %v8045_v27, 16 }
 0x3ca   :  { %v8541_v15 = vsel %vm14812_vm2, %v8536_v37, %v16260_v8  ;;  %v8551_v61 = vsel %vm14812_vm2, %v8546_v11, %v8550_v14  ;;  %v8583_v7 = vor.u32 %v8582_v20, %v8579_v58  ;;  %v8596_v51 = vshll.u32 %v16293_v13, 16  ;;  %v16316_v37 = vld [vmem:[#allocation2 + $0x154] sm:$0xf]  ;;  %v16337_v28 = vld [vmem:[#allocation2 + $0x160] sm:$0xf] }
 0x3cb   :  { %v8560_v24 = vrot.slane %v8559_v53, 4  ;;  %v8607_v27 = vor.u32 %v8606_v3, %v8603_v59  ;;  %v8638_v8 = vshrl.u32 %v16301_v46, 16  ;;  %v8630_v58 = vrot.slane %v8628_v36, 5  ;;  %v8051_v36 = vld [vmem:[#allocation2 + $0x15c] sm:$0xf] }
 0x3cc   :  { %13374 = vmatmul.mubr.bf16.gmra.mrb[60].mxu1 %v11823_v6  ;;  %v8592_v6 = vrot.slane %v8590_v26, 4  ;;  %v16299_v26 = vrot.slane %v8610_v17, 5  ;;  %v8570_v17 = vrot.slane %v8569_v21, 4  ;;  %v8649_v20 = vshrl.u32 %v8048_v60, 16 }
 0x3cd   :  { %13377 = vmatprep.mubr.bf16.mxu1 %v11824_v33  ;;  %v16289_v4 = vpop.f32.mrb[116].mxu0  ;;  %v11827_v53 = vcombine.low %v8541_v15, %v8551_v61  ;;  %v8584_v21 = vrot.slane %v8583_v7, 4  ;;  %v8598_v61 = vrot.slane %v8596_v51, 5  ;;  %v8608_v7 = vrot.slane %v8607_v27, 4  ;;  %v8054_v27 = vld [vmem:[#allocation2 + $0x168] sm:$0xf] }
 0x3ce   :  { %17122 = vst [vmem:[#allocation23_spill] sm:$0xff] %v16289_v4  ;;  %v16295_v33 = vpop.f32.mrb[117].mxu0  ;;  %v8593_v38 = vor.u32 %v8592_v6, %v16287_v0  ;;  %v8634_v4 = vshll.u32 %v16301_v46, 16  ;;  %v8617_v11 = vor.u32 %v8616_v47, %v16299_v26  ;;  %v8652_v6 = vshll.u32 %v8048_v60, 16 }
 0x3cf   :  { %17123 = vst [vmem:[#allocation24_spill] sm:$0xff] %v16295_v33  ;;  %v16297_v57 = vpop.f32.mrb[118].mxu0  ;;  %v16312_v33 = vld [vmem:[#allocation2 + $0x140] sm:$0x1]  ;;  %v8662_v47 = vshrl.u32 %v16316_v37, 16  ;;  %v8640_v60 = vrot.slane %v8638_v8, 4 }
 0x3d0   :  { %17124 = vst [vmem:[#allocation25_spill] sm:$0xff] %v16297_v57  ;;  %v16303_v18 = vpop.f32.mrb[119].mxu0  ;;  %v8574_v57 = vrot.slane %v8572_v1, 5  ;;  %v8594_v1 = vrot.slane %v8593_v38, 4  ;;  %v8620_v14 = vshll.u32 %v16312_v33, 16  ;;  %v16333_v38 = vrot.slane %v8634_v4, 5 }
 0x3d1   :  { %17125 = vst [vmem:[#allocation26_spill] sm:$0xff] %v16303_v18  ;;  %v8627_v18 = vrot.slane %v8625_v42, 4  ;;  %v16327_v42 = vld [vmem:[#allocation2 + $0x14c] sm:$0x1] }
 0x3d2   :  { %v8575_v59 = vsel %vm14812_vm2, %v8570_v17, %v8574_v57  ;;  %v8651_v17 = vrot.slane %v8649_v20, 4  ;;  %v8599_v4 = vsel %vm14812_vm2, %v8594_v1, %v8598_v61  ;;  %v8622_v51 = vrot.slane %v8620_v14, 5  ;;  %v16348_v20 = vld [vmem:[#allocation2 + $0x16c] sm:$0xf] }
 0x3d3   :  { %v8631_v57 = vor.u32 %v8630_v58, %v8627_v18  ;;  %v8673_v18 = vshrl.u32 %v8051_v36, 16  ;;  %v8676_v58 = vshll.u32 %v8051_v36, 16  ;;  %v8613_v1 = vsel %vm14812_vm2, %v8608_v7, %v16299_v26 }
 0x3d4   :  { %13378 = vmatmul.mubr.bf16.gmra.mrb[0].mxu1 %v11825_v31  ;;  %v8565_v31 = vsel %vm14812_vm2, %v8560_v24, %v16278_v30  ;;  %v8618_v24 = vrot.slane %v8617_v11, 4  ;;  %v8664_v11 = vrot.slane %v8662_v47, 4  ;;  %v8697_v47 = vshrl.u32 %v8054_v27, 16 }
 0x3d5   :  { %13381 = vmatprep.mubr.bf16.mxu1 %v11826_v25  ;;  %v16325_v3 = vpop.f32.mrb[120].mxu0  ;;  %v8658_v25 = vshll.u32 %v16316_v37, 16  ;;  %v11828_v43 = vcombine.low %v8565_v31, %v8575_v59  ;;  %v8644_v31 = vshll.u32 %v16327_v42, 16  ;;  %v16352_v59 = vld [vmem:[#allocation2 + $0x158] sm:$0x1]  ;;  %v8700_v36 = vshll.u32 %v8054_v27, 16 }
 0x3d6   :  { %17126 = vst [vmem:[#allocation27_spill] sm:$0xff] %v16325_v3  ;;  %v16331_v15 = vpop.f32.mrb[121].mxu0  ;;  %v8654_v3 = vrot.slane %v8652_v6, 5  ;;  %v8641_v6 = vor.u32 %v8640_v60, %v16333_v38  ;;  %v8623_v14 = vsel %vm14812_vm2, %v8618_v24, %v8622_v51  ;;  %v8706_v61 = vshll.u32 %v16348_v20, 16  ;;  %v8060_v51 = vld [vmem:[#allocation2 + $0x180] sm:$0xf] }
 0x3d7   :  { %17127 = vst [vmem:[#allocation28_spill] sm:$0xff] %v16331_v15  ;;  %v16335_v30 = vpop.f32.mrb[122].mxu0  ;;  %v8589_v15 = vsel %vm14812_vm2, %v8584_v21, %v16287_v0  ;;  %v16346_v8 = vrot.slane %v8658_v25, 5  ;;  %v8682_v0 = vshll.u32 %v16337_v28, 16  ;;  %v8686_v21 = vshrl.u32 %v16337_v28, 16 }
 0x3d8   :  { %17128 = vst [vmem:[#allocation29_spill] sm:$0xff] %v16335_v30  ;;  %v16339_v34 = vpop.f32.mrb[123].mxu0  ;;  %v16361_v25 = vrot.slane %v8631_v57, 4  ;;  %v8710_v60 = vshrl.u32 %v16348_v20, 16  ;;  %v8668_v30 = vshll.u32 %v16352_v59, 16  ;;  %v8675_v16 = vrot.slane %v8673_v18, 4 }
 0x3d9   :  { %17129 = vst [vmem:[#allocation30_spill] sm:$0xff] %v16339_v34  ;;  %v8678_v26 = vrot.slane %v8676_v58, 5  ;;  %v8642_v24 = vrot.slane %v8641_v6, 4  ;;  %v16371_v57 = vrot.slane %v8682_v0, 5  ;;  %v11829_v27 = vcombine.low %v8589_v15, %v8599_v4 }
 0x3da   :  { %v11830_v56 = vcombine.low %v8613_v1, %v8623_v14  ;;  %v8646_v63 = vrot.slane %v8644_v31, 5  ;;  %v8699_v18 = vrot.slane %v8697_v47, 4  ;;  %v8702_v58 = vrot.slane %v8700_v36, 5  ;;  %v16390_v36 = vld [vmem:[#allocation2 + $0x184] sm:$0xf] }
 0x3db   :  { %v16379_v23 = vrot.slane %v8706_v61, 5  ;;  %v8712_v6 = vrot.slane %v8710_v60, 4  ;;  %v8637_v0 = vsel %vm14812_vm2, %v16361_v25, %v16333_v38  ;;  %v8670_v4 = vrot.slane %v8668_v30, 5  ;;  %v16392_v61 = vld [vmem:[#allocation2 + $0x170] sm:$0x1] }
 0x3dc   :  { %13382 = vmatmul.mubr.bf16.gmra.mrb[4].mxu1 %v11827_v53  ;;  %v8655_v53 = vor.u32 %v8654_v3, %v8651_v17  ;;  %v8688_v3 = vrot.slane %v8686_v21, 4  ;;  %v8057_v17 = vld [vmem:[#allocation2 + $0x174] sm:$0xf]  ;;  %v16385_v21 = vld [vmem:[#allocation2 + $0x164] sm:$0x1]  ;;  %v8679_v31 = vor.u32 %v8678_v26, %v8675_v16  ;;  %v8647_v1 = vsel %vm14812_vm2, %v8642_v24, %v8646_v63 }
 0x3dd   :  { %13385 = vmatprep.mubr.bf16.mxu1 %v11828_v43  ;;  %v16365_v34 = vpop.f32.mrb[124].mxu0  ;;  %v8665_v43 = vor.u32 %v8664_v11, %v16346_v8  ;;  %v8724_v47 = vshll.u32 %v8057_v17, 16  ;;  %v8730_v38 = vshll.u32 %v16375_v49, 16  ;;  %v8734_v30 = vshrl.u32 %v16375_v49, 16 }
 0x3de   :  { %17130 = vst [vmem:[#allocation31_spill] sm:$0xff] %v16365_v34  ;;  %v16369_v7 = vpop.f32.mrb[125].mxu0  ;;  %v8656_v34 = vrot.slane %v8655_v53, 4  ;;  %v8689_v14 = vor.u32 %v8688_v3, %v16371_v57  ;;  %v8721_v53 = vshrl.u32 %v8057_v17, 16  ;;  %v8745_v25 = vshrl.u32 %v8060_v51, 16 }
 0x3df   :  { %17131 = vst [vmem:[#allocation32_spill] sm:$0xff] %v16369_v7  ;;  %v16373_v62 = vpop.f32.mrb[126].mxu0  ;;  %v8666_v15 = vrot.slane %v8665_v43, 4  ;;  %v8748_v60 = vshll.u32 %v8060_v51, 16  ;;  %v8692_v63 = vshll.u32 %v16385_v21, 16  ;;  %v8703_v43 = vor.u32 %v8702_v58, %v8699_v18 }
 0x3e0   :  { %17132 = vst [vmem:[#allocation33_spill] sm:$0xff] %v16373_v62  ;;  %v16377_v11 = vpop.f32.mrb[127].mxu0  ;;  %v8661_v16 = vsel %vm14812_vm2, %v8656_v34, %v16346_v8  ;;  %v8713_v26 = vor.u32 %v8712_v6, %v16379_v23  ;;  %v8680_v3 = vrot.slane %v8679_v31, 4  ;;  %v16405_v17 = vld [vmem:[#allocation2 + $0x17c] sm:$0x1]  ;;  %v8758_v51 = vshrl.u32 %v16390_v36, 16 }
 0x3e1   :  { %17133 = vst [vmem:[#allocation34_spill] sm:$0xff] %v16377_v11  ;;  %v8690_v34 = vrot.slane %v8689_v14, 4  ;;  %v8716_v8 = vshll.u32 %v16392_v61, 16  ;;  %v8723_v18 = vrot.slane %v8721_v53, 4  ;;  %v8726_v58 = vrot.slane %v8724_v47, 5 }
 0x3e2   :  { %v16414_v62 = vrot.slane %v8730_v38, 5  ;;  %v8750_v31 = vrot.slane %v8748_v60, 5  ;;  %v11831_v7 = vcombine.low %v8637_v0, %v8647_v1  ;;  %v8704_v9 = vrot.slane %v8703_v43, 4  ;;  %v8063_v47 = vld [vmem:[#allocation2 + $0x18c] sm:$0xf] }
 0x3e3   :  { %v8714_v50 = vrot.slane %v8713_v26, 4  ;;  %v8740_v41 = vshll.u32 %v16405_v17, 16  ;;  %v8694_v14 = vrot.slane %v8692_v63, 5  ;;  %v8760_v53 = vrot.slane %v8758_v51, 4  ;;  %v16432_v26 = vld [vmem:[#allocation2 + $0x188] sm:$0x1] }
 0x3e4   :  { %13386 = vmatmul.mubr.bf16.gmra.mrb[8].mxu1 %v11829_v27  ;;  %v8754_v27 = vshll.u32 %v16390_v36, 16  ;;  %v8685_v38 = vsel %vm14812_vm2, %v8680_v3, %v16371_v57  ;;  %v8727_v1 = vor.u32 %v8726_v58, %v8723_v18  ;;  %v8709_v63 = vsel %vm14812_vm2, %v8704_v9, %v16379_v23 }
 0x3e5   :  { %13389 = vmatprep.mubr.bf16.mxu1 %v11830_v56  ;;  %v8671_v56 = vsel %vm14812_vm2, %v8666_v15, %v8670_v4  ;;  %v16403_v24 = vpop.f32.mrb[64].mxu0  ;;  %v8736_v15 = vrot.slane %v8734_v30, 4  ;;  %v8747_v4 = vrot.slane %v8745_v25, 4  ;;  %v8718_v30 = vrot.slane %v8716_v8, 5 }
 0x3e6   :  { %v16409_v11 = vpop.f32.mrb[65].mxu0  ;;  %v11832_v19 = vcombine.low %v8661_v16, %v8671_v56  ;;  %v16419_v48 = vrot.slane %v8754_v27, 5  ;;  %v8695_v0 = vsel %vm14812_vm2, %v8690_v34, %v8694_v14  ;;  %v8066_v16 = vld [vmem:[#allocation2 + $0x198] sm:$0xf]  ;;  %v8742_v43 = vrot.slane %v8740_v41, 5 }
 0x3e7   :  { %v16412_v6 = vpop.f32.mrb[66].mxu0  ;;  %v8737_v25 = vor.u32 %v8736_v15, %v16414_v62  ;;  %v8751_v60 = vor.u32 %v8750_v31, %v8747_v4  ;;  %v8769_v57 = vshrl.u32 %v8063_v47, 16  ;;  %v8772_v3 = vshll.u32 %v8063_v47, 16  ;;  %v8069_v47 = vld [vmem:[#allocation2 + $0x1a4] sm:$0xf] }
 0x3e8   :  { %v16416_v45 = vpop.f32.mrb[67].mxu0  ;;  %v8761_v56 = vor.u32 %v8760_v53, %v16419_v48  ;;  %v8778_v27 = vshll.u32 %v16134_v12, 16  ;;  %v8782_v51 = vshrl.u32 %v16134_v12, 16  ;;  %v8793_v8 = vshrl.u32 %v8066_v16, 16 }
 0x3e9   :  { %v8796_v9 = vshll.u32 %v8066_v16, 16  ;;  %v8802_v23 = vshll.u32 %v16142_v10, 16  ;;  %v8806_v41 = vshrl.u32 %v16142_v10, 16  ;;  %v8728_v18 = vrot.slane %v8727_v1, 4 }
 0x3ea   :  { %v8738_v58 = vrot.slane %v8737_v25, 4  ;;  %v8752_v15 = vrot.slane %v8751_v60, 4  ;;  %v8764_v4 = vshll.u32 %v16432_v26, 16  ;;  %v11833_v31 = vcombine.low %v8685_v38, %v8695_v0 }
 0x3eb   :  { %v8771_v12 = vrot.slane %v8769_v57, 4  ;;  %v8762_v16 = vrot.slane %v8761_v56, 4  ;;  %v8774_v5 = vrot.slane %v8772_v3, 5  ;;  %v8780_v55 = vrot.slane %v8778_v27, 5 }
 0x3ec   :  { %13390 = vmatmul.mubr.bf16.gmra.mrb[12].mxu1 %v11831_v7  ;;  %v8719_v7 = vsel %vm14812_vm2, %v8714_v50, %v8718_v30  ;;  %v16448_v30 = vld [vmem:[#allocation2 + $0x1a8] sm:$0xf]  ;;  %v8784_v44 = vrot.slane %v8782_v51, 4  ;;  %v8795_v10 = vrot.slane %v8793_v8, 4  ;;  %v8804_v1 = vrot.slane %v8802_v23, 5 }
 0x3ed   :  { %13393 = vmatprep.mubr.bf16.mxu1 %v11832_v19  ;;  %v16434_v19 = vpop.f32.mrb[68].mxu0  ;;  %v11834_v14 = vcombine.low %v8709_v63, %v8719_v7  ;;  %v8808_v25 = vrot.slane %v8806_v41, 4  ;;  %v8817_v60 = vshrl.u32 %v8069_v47, 16  ;;  %v8826_v38 = vshll.u32 %v16448_v30, 16 }
 0x3ee   :  { %v16439_v34 = vpop.f32.mrb[69].mxu0  ;;  %v8830_v0 = vshrl.u32 %v16448_v30, 16  ;;  %v8733_v63 = vsel %vm14812_vm2, %v8728_v18, %v16414_v62  ;;  %v8766_v7 = vrot.slane %v8764_v4, 5  ;;  %v8743_v57 = vsel %vm14812_vm2, %v8738_v58, %v8742_v43 }
 0x3ef   :  { %17134 = vst [vmem:[#allocation35_spill] sm:$0xff] %v16439_v34  ;;  %v16443_v50 = vpop.f32.mrb[70].mxu0  ;;  %v8820_v34 = vshll.u32 %v8069_v47, 16  ;;  %v8775_v3 = vor.u32 %v8774_v5, %v8771_v12  ;;  %v8785_v27 = vor.u32 %v8784_v44, %v8780_v55  ;;  %v8788_v51 = vshll.u32 %v16140_v35, 16 }
 0x3f0   :  { %17135 = vst [vmem:[#allocation36_spill] sm:$0xff] %v16443_v50  ;;  %v16446_v53 = vpop.f32.mrb[71].mxu0  ;;  %v8798_v50 = vrot.slane %v8796_v9, 5  ;;  %v8757_v8 = vsel %vm14812_vm2, %v8752_v15, %v16419_v48  ;;  %v8767_v9 = vsel %vm14812_vm2, %v8762_v16, %v8766_v7  ;;  %v8809_v41 = vor.u32 %v8808_v25, %v8804_v1 }
 0x3f1   :  { %v8819_v43 = vrot.slane %v8817_v60, 4  ;;  %v8822_v58 = vrot.slane %v8820_v34, 5  ;;  %v8828_v4 = vrot.slane %v8826_v38, 5  ;;  %v8832_v5 = vrot.slane %v8830_v0, 4 }
 0x3f2   :  { %v8799_v62 = vor.u32 %v8798_v50, %v8795_v10  ;;  %v11835_v44 = vcombine.low %v8733_v63, %v8743_v57  ;;  %v8812_v35 = vshll.u32 %v16169_v32, 16  ;;  %v11836_v48 = vcombine.low %v8757_v8, %v8767_v9 }
 0x3f3   :  { %v8776_v15 = vrot.slane %v8775_v3, 4  ;;  %v8786_v12 = vrot.slane %v8785_v27, 4  ;;  %v8810_v50 = vrot.slane %v8809_v41, 4  ;;  %v8790_v16 = vrot.slane %v8788_v51, 5  ;;  %v14552_v3 = vld [vmem:[#allocation2 + $0x1c] sm:$0xf] }
 0x3f4   :  { %13394 = vmatmul.mubr.bf16.gmra.mrb[16].mxu1 %v11833_v31  ;;  %v8800_v47 = vrot.slane %v8799_v62, 4  ;;  %v8823_v10 = vor.u32 %v8822_v58, %v8819_v43  ;;  %v8833_v25 = vor.u32 %v8832_v5, %v8828_v4  ;;  %v8814_v60 = vrot.slane %v8812_v35, 5  ;;  %v9385_v58 = vld [vmem:[#allocation2 + $0x18] sm:$0xe] }
 0x3f5   :  { %13397 = vmatprep.mubr.bf16.mxu1 %v11834_v14  ;;  %v16457_v56 = vpop.f32.mrb[72].mxu0  ;;  %v16472_v14 = vld [vmem:[#allocation2 + $0x1ac] sm:$0x1]  ;;  %v8781_v38 = vsel %vm14812_vm2, %v8776_v15, %v8780_v55  ;;  %v8791_v32 = vsel %vm14812_vm2, %v8786_v12, %v8790_v16  ;;  %v9515_v27 = vrot.slane %v14552_v3, 5  ;;  %v11848_v35 = vrot.slane %v9385_v58, 9  ;;  %v14306_v58 = vld [vmem:[%s17092_s5] sm:$0xff]  }
 0x3f6   :  { %v16465_v23 = vpop.f32.mrb[73].mxu0  ;;  %v8836_v34 = vshll.u32 %v16472_v14, 16  ;;  %v8805_v63 = vsel %vm14812_vm2, %v8800_v47, %v8804_v1  ;;  %v8815_v7 = vsel %vm14812_vm2, %v8810_v50, %v8814_v60  ;;  %v8824_v8 = vrot.slane %v8823_v10, 4  ;;  %v14554_v47 = vld [vmem:[#allocation2 + $0x28] sm:$0xf]  ;;  %13489 = vmatprep.subr.bf16.mxu0 %v14306_v58 }
 0x3f7   :  { %v16467_v18 = vpop.f32.mrb[74].mxu0  ;;  %v8834_v9 = vrot.slane %v8833_v25, 4  ;;  %v11837_v62 = vcombine.low %v8781_v38, %v8791_v32  ;;  %v11838_v43 = vcombine.low %v8805_v63, %v8815_v7  ;;  %v9517_v5 = vrot.slane %v9515_v27, 4  ;;  %v9387_v63 = vld [vmem:[#allocation2 + $0x30] sm:$0xe]  ;;  %13490 = vmatpush3.bf16.msra.mxu0 %v14306_v58 }
 0x3f8   :  { %v16469_v31 = vpop.f32.mrb[75].mxu0  ;;  %v8838_v55 = vrot.slane %v8836_v34, 5  ;;  %v8829_v1 = vsel %vm14812_vm2, %v8824_v8, %v8828_v4  ;;  %v9522_v50 = vrot.slane %v14554_v47, 5  ;;  %v14555_v34 = vld [vmem:[#allocation2 + $0x34] sm:$0xf]  ;;  %v9516_v2 = vsel %vm15574_vm8, %v11848_v35, %v9515_v27  ;;  %v14307_v27 = vld [vmem:[%s17092_s5 + $0x8] sm:$0xff]  }
 0x3f9   :  { %v9529_v60 = vrot.slane %v14555_v34, 5  ;;  %v9386_v4 = vld [vmem:[#allocation2 + $0x24] sm:$0xe]  ;;  %v14559_v34 = vld [vmem:[#allocation2 + $0x4c] sm:$0xf]  ;;  %13491 = vmatprep.subr.bf16.mxu0 %v14307_v27 }
 0x3fa   :  { %v9524_v3 = vrot.slane %v9522_v50, 4  ;;  %v11849_v8 = vrot.slane %v9386_v4, 9  ;;  %v9543_v4 = vrot.slane %v14559_v34, 5  ;;  %v14309_v34 = vld [vmem:[%s17092_s5 + $0x18] sm:$0xff]  }
 0x3fb   :  { %13492 = vmatpush3.bf16.msra.mxu0 %v14307_v27 }
 0x3fc   :  { %13398 = vmatmul.mubr.bf16.gmra.mrb[20].mxu1 %v11835_v44  ;;  %v8839_v44 = vsel %vm14812_vm2, %v8834_v9, %v8838_v55  ;;  %v14556_v9 = vld [vmem:[#allocation2 + $0x2c] sm:$0x1]  ;;  %v9545_v58 = vrot.slane %v9543_v4, 4 }
 0x3fd   :  { %13401 = vmatprep.mubr.bf16.mxu1 %v11836_v48  ;;  %v16479_v0 = vpop.f32.mrb[76].mxu0  ;;  %v14553_v48 = vld [vmem:[#allocation2 + $0x20] sm:$0x1]  ;;  %v11839_v16 = vcombine.low %v8829_v1, %v8839_v44  ;;  %v9525_v55 = vrot.slane %v14556_v9, 5 }
 0x3fe   :  { %v16485_v57 = vpop.f32.mrb[77].mxu0  ;;  %v9518_v15 = vrot.slane %v14553_v48, 5  ;;  %v14558_v48 = vld [vmem:[#allocation2 + $0x40] sm:$0xf] }
 0x3ff   :  { %v16487_v51 = vpop.f32.mrb[78].mxu0  ;;  %v9526_v44 = vsel %vm15574_vm8, %v9524_v3, %v9525_v55  ;;  %v14308_v3 = vld [vmem:[%s17092_s5 + $0x10] sm:$0xff]  }
 0x400   :  { %v16489_v41 = vpop.f32.mrb[79].mxu0  ;;  %v9519_v10 = vsel %vm15574_vm8, %v9517_v5, %v9518_v15  ;;  %v14557_v5 = vld [vmem:[#allocation2 + $0x38] sm:$0x1]  ;;  %v9536_v15 = vrot.slane %v14558_v48, 5  ;;  %13493 = vmatprep.subr.bf16.mxu0 %v14308_v3 }
 0x401   :  { %v11880_v7 = vcombine.low %v9516_v2, %v9519_v10  ;;  %v9532_v1 = vrot.slane %v14557_v5, 5  ;;  %v9388_v10 = vld [vmem:[#allocation2 + $0x3c] sm:$0xe]  ;;  %v9523_v2 = vsel %vm15574_vm8, %v11849_v8, %v9522_v50  ;;  %v14560_v8 = vld [vmem:[#allocation2 + $0x44] sm:$0x1]  ;;  %13494 = vmatpush3.bf16.msra.mxu0 %v14308_v3 }
 0x402   :  { %v11881_v9 = vcombine.low %v9523_v2, %v9526_v44  ;;  %v11851_v50 = vrot.slane %v9388_v10, 9  ;;  %v9539_v48 = vrot.slane %v14560_v8, 5  ;;  %v14561_v2 = vld [vmem:[#allocation2 + $0x50] sm:$0x1]  ;;  %13495 = vmatprep.subr.bf16.mxu0 %v14309_v34  ;;  %v9391_v3 = vld [vmem:[#allocation2 + $0x60] sm:$0xe] }
 0x404   :  { %13402 = vmatmul.mubr.bf16.gmra.mrb[24].mxu1 %v11837_v62  ;;  %v9531_v62 = vrot.slane %v9529_v60, 4 }
 0x405   :  { %13405 = vmatprep.mubr.bf16.mxu1 %v11838_v43  ;;  %v16495_v12 = vpop.f32.mrb[80].mxu0  ;;  %v11850_v43 = vrot.slane %v9387_v63, 9  ;;  %13496 = vmatpush3.bf16.msra.mxu0 %v14309_v34 }
 0x406   :  { %v16499_v25 = vpop.f32.mrb[81].mxu0  ;;  %v9533_v47 = vsel %vm15574_vm8, %v9531_v62, %v9532_v1  ;;  %v9538_v1 = vrot.slane %v9536_v15, 4 }
 0x407   :  { %v16501_v38 = vpop.f32.mrb[82].mxu0  ;;  %v9530_v55 = vsel %vm15574_vm8, %v11850_v43, %v9529_v60 }
 0x408   :  { %v16505_v32 = vpop.f32.mrb[83].mxu0  ;;  %v11882_v5 = vcombine.low %v9530_v55, %v9533_v47  ;;  %v9540_v60 = vsel %vm15574_vm8, %v9538_v1, %v9539_v48  ;;  %v14562_v47 = vld [vmem:[#allocation2 + $0x58] sm:$0xf]  ;;  %v14563_v55 = vld [vmem:[#allocation2 + $0x64] sm:$0xf] }
 0x409   :  { %v14310_v1 = vld [vmem:[%s17092_s5 + $0x20] sm:$0xff]  }
 0x40a   :  { %13497 = vmatprep.subr.bf16.mxu0 %v14310_v1 }
 0x40b   :  { %13498 = vmatpush3.bf16.msra.mxu0 %v14310_v1  ;;  %v9393_v1 = vld [vmem:[#allocation2 + $0x78] sm:$0xe] }
 0x40c   :  { %13406 = vmatmul.mubr.bf16.gmra.mrb[28].mxu1 %v11839_v16 }
 0x40d   :  { %13425 = vmatprep.mubr.bf16.mxu1 %v11880_v7  ;;  %v16515_v35 = vpop.f32.mrb[84].mxu0  ;;  %v9389_v7 = vld [vmem:[#allocation2 + $0x48] sm:$0xe] }
 0x40e   :  { %17136 = vst [vmem:[#allocation37_spill] sm:$0xff] %v16515_v35  ;;  %v16519_v16 = vpop.f32.mrb[85].mxu0  ;;  %v11852_v44 = vrot.slane %v9389_v7, 9  ;;  %v9537_v7 = vsel %vm15574_vm8, %v11851_v50, %v9536_v15  ;;  %v14564_v50 = vld [vmem:[#allocation2 + $0x5c] sm:$0x1] }
 0x40f   :  { %17137 = vst [vmem:[#allocation38_spill] sm:$0xff] %v16519_v16  ;;  %v16523_v63 = vpop.f32.mrb[86].mxu0  ;;  %v11883_v48 = vcombine.low %v9537_v7, %v9540_v60  ;;  %v14311_v60 = vld [vmem:[%s17092_s5 + $0x28] sm:$0xff]   ;;  %v11854_v7 = vrot.slane %v9391_v3, 9 }
 0x410   :  { %17138 = vst [vmem:[#allocation39_spill] sm:$0xff] %v16523_v63  ;;  %v16530_v62 = vpop.f32.mrb[87].mxu0  ;;  %v9546_v63 = vrot.slane %v14561_v2, 5  ;;  %v9544_v2 = vsel %vm15574_vm8, %v11852_v44, %v9543_v4  ;;  %v14565_v4 = vld [vmem:[#allocation2 + $0x68] sm:$0x1]  ;;  %13499 = vmatprep.subr.bf16.mxu0 %v14311_v60 }
 0x411   :  { %17139 = vst [vmem:[#allocation40_spill] sm:$0xff] %v16530_v62  ;;  %v9560_v44 = vrot.slane %v14565_v4, 5  ;;  %13500 = vmatpush3.bf16.msra.mxu0 %v14311_v60  ;;  %v14569_v62 = vld [vmem:[#allocation2 + $0x80] sm:$0x1]  ;;  %v14582_v16 = vld [vmem:[#allocation2 + $0xc8] sm:$0x1] }
 0x412   :  { %v9547_v27 = vsel %vm15574_vm8, %v9545_v58, %v9546_v63  ;;  %v9390_v58 = vld [vmem:[#allocation2 + $0x54] sm:$0xe]  ;;  %v9616_v35 = vrot.slane %v14582_v16, 5 }
 0x413   :  { %v11853_v15 = vrot.slane %v9390_v58, 9 }
 0x414   :  { %13426 = vmatmul.mubr.bf16.vlgmr.msra.gmra.mrb[32].mxu1 %v11881_v9  ;;  %v9550_v9 = vrot.slane %v14562_v47, 5  ;;  %v11884_v47 = vcombine.low %v9544_v2, %v9547_v27 }
 0x415   :  { %13429 = vmatprep.mubr.bf16.mxu1 %v11882_v5  ;;  %v16537_v43 = vpop.f32.mrb[88].mxu0  ;;  %v9557_v5 = vrot.slane %v14563_v55, 5 }
 0x416   :  { %17140 = vst [vmem:[#allocation41_spill] sm:$0xff] %v16537_v43  ;;  %v16541_v10 = vpop.f32.mrb[89].mxu0  ;;  %v9552_v55 = vrot.slane %v9550_v9, 4  ;;  %v9551_v3 = vsel %vm15574_vm8, %v11853_v15, %v9550_v9  ;;  %v14568_v15 = vld [vmem:[#allocation2 + $0x74] sm:$0x1] }
 0x417   :  { %17141 = vst [vmem:[#allocation42_spill] sm:$0xff] %v16541_v10  ;;  %v16545_v8 = vpop.f32.mrb[90].mxu0  ;;  %v9559_v10 = vrot.slane %v9557_v5, 4  ;;  %v9558_v4 = vsel %vm15574_vm8, %v11854_v7, %v9557_v5  ;;  %v14570_v7 = vld [vmem:[#allocation2 + $0x88] sm:$0xf] }
 0x418   :  { %17142 = vst [vmem:[#allocation43_spill] sm:$0xff] %v16545_v8  ;;  %v16552_v63 = vpop.f32.mrb[91].mxu0  ;;  %v9553_v8 = vrot.slane %v14564_v50, 5 }
 0x419   :  { %17143 = vst [vmem:[#allocation44_spill] sm:$0xff] %v16552_v63  ;;  %v9561_v34 = vsel %vm15574_vm8, %v9559_v10, %v9560_v44  ;;  %v9392_v44 = vld [vmem:[#allocation2 + $0x6c] sm:$0xe] }
 0x41a   :  { %v9554_v27 = vsel %vm15574_vm8, %v9552_v55, %v9553_v8  ;;  %v14312_v8 = vld [vmem:[%s17092_s5 + $0x30] sm:$0xff]   ;;  %v11855_v9 = vrot.slane %v9392_v44, 9 }
 0x41b   :  { %v11885_v55 = vcombine.low %v9551_v3, %v9554_v27  ;;  %13501 = vmatprep.subr.bf16.mxu0 %v14312_v8  ;;  %v9574_v27 = vrot.slane %v14569_v62, 5  ;;  %v9578_v3 = vrot.slane %v14570_v7, 5  ;;  %v14572_v7 = vld [vmem:[#allocation2 + $0x8c] sm:$0x1] }
 0x41c   :  { %13430 = vmatmul.mubr.bf16.gmra.mrb[36].mxu1 %v11883_v48  ;;  %v14566_v48 = vld [vmem:[#allocation2 + $0x70] sm:$0xf]  ;;  %13502 = vmatpush3.bf16.msra.mxu0 %v14312_v8 }
 0x41d   :  { %13433 = vmatprep.mubr.bf16.mxu1 %v11884_v47  ;;  %v16559_v2 = vpop.f32.mrb[92].mxu0  ;;  %v9564_v63 = vrot.slane %v14566_v48, 5  ;;  %v14567_v47 = vld [vmem:[#allocation2 + $0x7c] sm:$0xf]  ;;  %v11886_v48 = vcombine.low %v9558_v4, %v9561_v34  ;;  %v14571_v4 = vld [vmem:[#allocation2 + $0x94] sm:$0xf] }
 0x41e   :  { %17144 = vst [vmem:[#allocation45_spill] sm:$0xff] %v16559_v2  ;;  %v16563_v58 = vpop.f32.mrb[93].mxu0  ;;  %v9571_v50 = vrot.slane %v14567_v47, 5  ;;  %v11856_v2 = vrot.slane %v9393_v1, 9  ;;  %v9394_v1 = vld [vmem:[#allocation2 + $0x84] sm:$0xe] }
 0x41f   :  { %17145 = vst [vmem:[#allocation46_spill] sm:$0xff] %v16563_v58  ;;  %v16567_v43 = vpop.f32.mrb[94].mxu0  ;;  %v9566_v47 = vrot.slane %v9564_v63, 4  ;;  %v9565_v60 = vsel %vm15574_vm8, %v11855_v9, %v9564_v63  ;;  %v14574_v9 = vld [vmem:[#allocation2 + $0xa0] sm:$0xf] }
 0x420   :  { %17146 = vst [vmem:[#allocation47_spill] sm:$0xff] %v16567_v43  ;;  %v16574_v10 = vpop.f32.mrb[95].mxu0  ;;  %v9573_v58 = vrot.slane %v9571_v50, 4  ;;  %v9567_v43 = vrot.slane %v14568_v15, 5  ;;  %v9580_v15 = vrot.slane %v9578_v3, 4 }
 0x421   :  { %17147 = vst [vmem:[#allocation48_spill] sm:$0xff] %v16574_v10  ;;  %v9395_v10 = vld [vmem:[#allocation2 + $0x90] sm:$0xe] }
 0x422   :  { %v9568_v5 = vsel %vm15574_vm8, %v9566_v47, %v9567_v43  ;;  %v9575_v34 = vsel %vm15574_vm8, %v9573_v58, %v9574_v27  ;;  %v11857_v47 = vrot.slane %v9394_v1, 9  ;;  %v9581_v58 = vrot.slane %v14572_v7, 5  ;;  %v9397_v7 = vld [vmem:[#allocation2 + $0xa8] sm:$0xe] }
 0x423   :  { %v11887_v44 = vcombine.low %v9565_v60, %v9568_v5  ;;  %v11858_v27 = vrot.slane %v9395_v10, 9  ;;  %v9592_v5 = vrot.slane %v14574_v9, 5  ;;  %v9396_v10 = vld [vmem:[#allocation2 + $0x9c] sm:$0xe] }
 0x424   :  { %13434 = vmatmul.mubr.bf16.gmra.mrb[40].mxu1 %v11885_v55  ;;  %v9585_v55 = vrot.slane %v14571_v4, 5  ;;  %v14573_v4 = vld [vmem:[#allocation2 + $0x98] sm:$0x1]  ;;  %v9582_v63 = vsel %vm15574_vm8, %v9580_v15, %v9581_v58  ;;  %v9579_v60 = vsel %vm15574_vm8, %v11857_v47, %v9578_v3  ;;  %v11859_v58 = vrot.slane %v9396_v10, 9  ;;  %v9398_v10 = vld [vmem:[#allocation2 + $0xb4] sm:$0xe] }
 0x425   :  { %13437 = vmatprep.mubr.bf16.mxu1 %v11886_v48  ;;  %v9572_v48 = vsel %vm15574_vm8, %v11856_v2, %v9571_v50  ;;  %v9588_v8 = vrot.slane %v14573_v4, 5  ;;  %v14575_v50 = vld [vmem:[#allocation2 + $0xac] sm:$0xf]  ;;  %v14576_v4 = vld [vmem:[#allocation2 + $0xa4] sm:$0x1] }
 0x426   :  { %v11888_v62 = vcombine.low %v9572_v48, %v9575_v34  ;;  %v9587_v43 = vrot.slane %v9585_v55, 4  ;;  %v9599_v34 = vrot.slane %v14575_v50, 5  ;;  %v9586_v48 = vsel %vm15574_vm8, %v11858_v27, %v9585_v55  ;;  %v14578_v47 = vld [vmem:[#allocation2 + $0xb8] sm:$0xf]  ;;  %v14579_v27 = vld [vmem:[#allocation2 + $0xc4] sm:$0xf] }
 0x427   :  { %v9595_v9 = vrot.slane %v14576_v4, 5  ;;  %v9399_v4 = vld [vmem:[#allocation2 + $0xc0] sm:$0xe] }
 0x428   :  { %v9589_v2 = vsel %vm15574_vm8, %v9587_v43, %v9588_v8  ;;  %v9601_v15 = vrot.slane %v9599_v34, 4  ;;  %v11860_v43 = vrot.slane %v9397_v7, 9  ;;  %v14577_v8 = vld [vmem:[#allocation2 + $0xb0] sm:$0x1] }
 0x429   :  { %v11890_v1 = vcombine.low %v9586_v48, %v9589_v2  ;;  %v9602_v50 = vrot.slane %v14577_v8, 5  ;;  %v9613_v2 = vrot.slane %v14579_v27, 5  ;;  %v14580_v8 = vld [vmem:[#allocation2 + $0xbc] sm:$0x1]  ;;  %v11862_v27 = vrot.slane %v9399_v4, 9 }
 0x42a   :  { %v9600_v48 = vsel %vm15574_vm8, %v11860_v43, %v9599_v34  ;;  %v14583_v43 = vld [vmem:[#allocation2 + $0xf4] sm:$0xf] }
 0x42b   :  { %v9603_v55 = vsel %vm15574_vm8, %v9601_v15, %v9602_v50  ;;  %v14581_v15 = vld [vmem:[#allocation2 + $0xd0] sm:$0xf]  ;;  %v9614_v16 = vsel %vm15574_vm8, %v11862_v27, %v9613_v2  ;;  %v14587_v27 = vld [vmem:[#allocation2 + $0x10c] sm:$0xf] }
 0x42c   :  { %13438 = vmatmul.mubr.bf16.gmra.mrb[44].mxu1 %v11887_v44  ;;  %v11889_v44 = vcombine.low %v9579_v60, %v9582_v63  ;;  %v9606_v63 = vrot.slane %v14578_v47, 5  ;;  %v9593_v60 = vsel %vm15574_vm8, %v11859_v58, %v9592_v5  ;;  %v9609_v47 = vrot.slane %v14580_v8, 5  ;;  %v9401_v8 = vld [vmem:[#allocation2 + $0xf0] sm:$0xe] }
 0x42d   :  { %13441 = vmatprep.mubr.bf16.mxu1 %v11888_v62  ;;  %v9594_v62 = vrot.slane %v9592_v5, 4  ;;  %v9620_v50 = vrot.slane %v14581_v15, 5  ;;  %v9400_v5 = vld [vmem:[#allocation2 + $0xcc] sm:$0xe]  ;;  %v14586_v15 = vld [vmem:[#allocation2 + $0x100] sm:$0xf] }
 0x42e   :  { %v9608_v7 = vrot.slane %v9606_v63, 4 }
 0x42f   :  { %v9596_v3 = vsel %vm15574_vm8, %v9594_v62, %v9595_v9  ;;  %v9615_v62 = vrot.slane %v9613_v2, 4  ;;  %v11861_v9 = vrot.slane %v9398_v10, 9 }
 0x430   :  { %v9610_v58 = vsel %vm15574_vm8, %v9608_v7, %v9609_v47 }
 0x431   :  { %v9617_v34 = vsel %vm15574_vm8, %v9615_v62, %v9616_v35 }
 0x432   :  { %v11894_v4 = vcombine.low %v9614_v16, %v9617_v34  ;;  %v9641_v34 = vrot.slane %v14587_v27, 5  ;;  %v9404_v27 = vld [vmem:[#allocation2 + $0x114] sm:$0xe] }
 0x434   :  { %13442 = vmatmul.mubr.bf16.gmra.mrb[48].mxu1 %v11889_v44  ;;  %v11891_v44 = vcombine.low %v9593_v60, %v9596_v3  ;;  %v9627_v3 = vrot.slane %v14583_v43, 5  ;;  %v11863_v60 = vrot.slane %v9400_v5, 9  ;;  %v9634_v5 = vrot.slane %v14586_v15, 5 }
 0x435   :  { %13445 = vmatprep.mubr.bf16.mxu1 %v11890_v1  ;;  %v11892_v1 = vcombine.low %v9600_v48, %v9603_v55  ;;  %v9607_v55 = vsel %vm15574_vm8, %v11861_v9, %v9606_v63  ;;  %v14584_v48 = vld [vmem:[#allocation2 + $0xd4] sm:$0x1]  ;;  %v11864_v63 = vrot.slane %v9401_v8, 9  ;;  %v14585_v9 = vld [vmem:[#allocation2 + $0xf8] sm:$0x1] }
 0x436   :  { %v9623_v10 = vrot.slane %v14584_v48, 5  ;;  %v9629_v7 = vrot.slane %v9627_v3, 4  ;;  %v9621_v35 = vsel %vm15574_vm8, %v11863_v60, %v9620_v50  ;;  %v9630_v47 = vrot.slane %v14585_v9, 5  ;;  %v9403_v60 = vld [vmem:[#allocation2 + $0x108] sm:$0xe] }
 0x437   :  { %v9628_v43 = vsel %vm15574_vm8, %v11864_v63, %v9627_v3  ;;  %v14589_v8 = vld [vmem:[#allocation2 + $0x110] sm:$0x1]  ;;  %v14591_v63 = vld [vmem:[#allocation2 + $0x124] sm:$0xf] }
 0x438   :  { %v9631_v2 = vsel %vm15574_vm8, %v9629_v7, %v9630_v47  ;;  %v9655_v47 = vrot.slane %v14591_v63, 5 }
 0x439   :  { %v11896_v48 = vcombine.low %v9628_v43, %v9631_v2 }
 0x43c   :  { %13446 = vmatmul.mubr.bf16.gmra.mrb[52].mxu1 %v11891_v44  ;;  %v9622_v44 = vrot.slane %v9620_v50, 4  ;;  %v9636_v50 = vrot.slane %v9634_v5, 4 }
 0x43d   :  { %13449 = vmatprep.mubr.bf16.mxu1 %v11892_v1  ;;  %v11893_v1 = vcombine.low %v9607_v55, %v9610_v58  ;;  %v9402_v55 = vld [vmem:[#allocation2 + $0xfc] sm:$0xe] }
 0x43e   :  { %v9624_v62 = vsel %vm15574_vm8, %v9622_v44, %v9623_v10  ;;  %v9643_v44 = vrot.slane %v9641_v34, 4  ;;  %v11865_v10 = vrot.slane %v9402_v55, 9 }
 0x43f   :  { %v11895_v58 = vcombine.low %v9621_v35, %v9624_v62  ;;  %v9644_v35 = vrot.slane %v14589_v8, 5  ;;  %v14590_v62 = vld [vmem:[#allocation2 + $0x118] sm:$0xf]  ;;  %v9658_v8 = vrot.slane %v16285_v22, 5 }
 0x440   :  { %v9648_v9 = vrot.slane %v14590_v62, 5  ;;  %v9635_v15 = vsel %vm15574_vm8, %v11865_v10, %v9634_v5  ;;  %v14593_v10 = vld [vmem:[#allocation2 + $0x130] sm:$0xf] }
 0x441   :  { %v9645_v3 = vsel %vm15574_vm8, %v9643_v44, %v9644_v35  ;;  %v9662_v35 = vrot.slane %v14593_v10, 5  ;;  %v9409_v10 = vld [vmem:[#allocation2 + $0x150] sm:$0xe] }
 0x442   :  { %v9650_v55 = vrot.slane %v9648_v9, 4 }
 0x443   :  { %v9664_v22 = vrot.slane %v9662_v35, 4 }
 0x444   :  { %13450 = vmatmul.mubr.bf16.gmra.mrb[56].mxu1 %v11893_v1  ;;  %v14588_v1 = vld [vmem:[#allocation2 + $0x104] sm:$0x1] }
 0x445   :  { %13453 = vmatprep.mubr.bf16.mxu1 %v11894_v4  ;;  %v9637_v16 = vrot.slane %v14588_v1, 5  ;;  %v11866_v4 = vrot.slane %v9403_v60, 9  ;;  %v11867_v60 = vrot.slane %v9404_v27, 9  ;;  %v14592_v1 = vld [vmem:[#allocation2 + $0x11c] sm:$0x1] }
 0x447   :  { %v9638_v7 = vsel %vm15574_vm8, %v9636_v50, %v9637_v16  ;;  %v9642_v2 = vsel %vm15574_vm8, %v11866_v4, %v9641_v34  ;;  %v9657_v50 = vrot.slane %v9655_v47, 4  ;;  %v9651_v16 = vrot.slane %v14592_v1, 5  ;;  %v14594_v4 = vld [vmem:[#allocation2 + $0x13c] sm:$0xf] }
 0x448   :  { %v11898_v43 = vcombine.low %v9642_v2, %v9645_v3  ;;  %v9649_v62 = vsel %vm15574_vm8, %v11867_v60, %v9648_v9  ;;  %v9407_v2 = vld [vmem:[#allocation2 + $0x138] sm:$0xe]  ;;  %v9676_v60 = vrot.slane %v16301_v46, 5  ;;  %v9683_v1 = vrot.slane %v16316_v37, 5 }
 0x449   :  { %v9652_v5 = vsel %vm15574_vm8, %v9650_v55, %v9651_v16  ;;  %v9659_v34 = vsel %vm15574_vm8, %v9657_v50, %v9658_v8  ;;  %v9665_v55 = vrot.slane %v16293_v13, 5  ;;  %v9672_v50 = vrot.slane %v16312_v33, 5  ;;  %v9408_v8 = vld [vmem:[#allocation2 + $0x144] sm:$0xe] }
 0x44a   :  { %v11899_v3 = vcombine.low %v9649_v62, %v9652_v5  ;;  %v9678_v33 = vrot.slane %v9676_v60, 4  ;;  %v11871_v46 = vrot.slane %v9408_v8, 9  ;;  %v11872_v62 = vrot.slane %v9409_v10, 9  ;;  %v9413_v8 = vld [vmem:[#allocation2 + $0x180] sm:$0xe] }
 0x44b   :  { %v9666_v9 = vsel %vm15574_vm8, %v9664_v22, %v9665_v55  ;;  %v9686_v37 = vrot.slane %v16352_v59, 5  ;;  %v9410_v22 = vld [vmem:[#allocation2 + $0x15c] sm:$0xe]  ;;  %v9693_v55 = vrot.slane %v16385_v21, 5  ;;  %v11876_v10 = vrot.slane %v9413_v8, 9 }
 0x44c   :  { %13454 = vmatmul.mubr.bf16.gmra.mrb[60].mxu1 %v11895_v58  ;;  %v11897_v58 = vcombine.low %v9635_v15, %v9638_v7  ;;  %v9669_v7 = vrot.slane %v14594_v4, 5  ;;  %v9406_v15 = vld [vmem:[#allocation2 + $0x12c] sm:$0xe]  ;;  %v9679_v4 = vrot.slane %v16327_v42, 5  ;;  %v9684_v42 = vsel %vm15574_vm8, %v11872_v62, %v9683_v1 }
 0x44d   :  { %13457 = vmatprep.mubr.bf16.mxu1 %v11896_v48  ;;  %v9405_v48 = vld [vmem:[#allocation2 + $0x120] sm:$0xe] }
 0x44e   :  { %v11868_v44 = vrot.slane %v9405_v48, 9  ;;  %v9671_v27 = vrot.slane %v9669_v7, 4  ;;  %v11870_v48 = vrot.slane %v9407_v2, 9 }
 0x450   :  { %v9656_v63 = vsel %vm15574_vm8, %v11868_v44, %v9655_v47  ;;  %v9673_v47 = vsel %vm15574_vm8, %v9671_v27, %v9672_v50  ;;  %v9670_v13 = vsel %vm15574_vm8, %v11870_v48, %v9669_v7  ;;  %v9411_v27 = vld [vmem:[#allocation2 + $0x168] sm:$0xe] }
 0x451   :  { %v11902_v5 = vcombine.low %v9670_v13, %v9673_v47  ;;  %v11874_v48 = vrot.slane %v9411_v27, 9  ;;  %v9711_v47 = vrot.slane %v16390_v36, 5 }
 0x454   :  { %13458 = vmatmul.mubr.bf16.gmra.mrb[0].mxu1 %v11897_v58  ;;  %v11900_v58 = vcombine.low %v9656_v63, %v9659_v34  ;;  %v9685_v34 = vrot.slane %v9683_v1, 4  ;;  %v9697_v63 = vrot.slane %v16348_v20, 5  ;;  %v9700_v20 = vrot.slane %v16392_v61, 5  ;;  %v14313_v1 = vld [vmem:[%s17092_s5 + $0x38] sm:$0xff]  }
 0x455   :  { %13461 = vmatprep.mubr.bf16.mxu1 %v11898_v43  ;;  %v11869_v43 = vrot.slane %v9406_v15, 9  ;;  %v9677_v15 = vsel %vm15574_vm8, %v11871_v46, %v9676_v60  ;;  %13503 = vmatprep.subr.bf16.mxu0 %v14313_v1 }
 0x456   :  { %v9687_v7 = vsel %vm15574_vm8, %v9685_v34, %v9686_v37  ;;  %v9698_v61 = vsel %vm15574_vm8, %v11874_v48, %v9697_v63  ;;  %13504 = vmatpush3.bf16.msra.mxu0 %v14313_v1  ;;  %v9714_v34 = vrot.slane %v16432_v26, 5 }
 0x457   :  { %v9663_v16 = vsel %vm15574_vm8, %v11869_v43, %v9662_v35  ;;  %v9680_v35 = vsel %vm15574_vm8, %v9678_v33, %v9679_v4  ;;  %v11904_v2 = vcombine.low %v9684_v42, %v9687_v7  ;;  %v9699_v43 = vrot.slane %v9697_v63, 4  ;;  %v9416_v7 = vld [vmem:[#allocation2 + $0x1a4] sm:$0xe] }
 0x458   :  { %v11901_v44 = vcombine.low %v9663_v16, %v9666_v9  ;;  %v9704_v9 = vrot.slane %v16375_v49, 5  ;;  %v9707_v33 = vrot.slane %v16405_v17, 5  ;;  %v9732_v17 = vrot.slane %v16448_v30, 5 }
 0x459   :  { %v9701_v60 = vsel %vm15574_vm8, %v9699_v43, %v9700_v20  ;;  %v11879_v26 = vrot.slane %v9416_v7, 9  ;;  %v17149_v42 = vcombine.low %v16194_v39, %v16198_v52 }
 0x45a   :  { %v11906_v13 = vcombine.low %v9698_v61, %v9701_v60  ;;  %v9706_v49 = vrot.slane %v9704_v9, 4  ;;  %v9734_v63 = vrot.slane %v9732_v17, 4 }
 0x45c   :  { %13462 = vmatmul.mubr.bf16.gmra.mrb[4].mxu1 %v11899_v3  ;;  %v9690_v3 = vrot.slane %v16337_v28, 5  ;;  %v11873_v28 = vrot.slane %v9410_v22, 9  ;;  %v9708_v46 = vsel %vm15574_vm8, %v9706_v49, %v9707_v33  ;;  %v9733_v22 = vsel %vm15574_vm8, %v11879_v26, %v9732_v17 }
 0x45d   :  { %13465 = vmatprep.mubr.bf16.mxu1 %v11900_v58  ;;  %v11903_v58 = vcombine.low %v9677_v15, %v9680_v35  ;;  %v9712_v35 = vsel %vm15574_vm8, %v11876_v10, %v9711_v47  ;;  %v9735_v15 = vrot.slane %v16472_v14, 5  ;;  %v16697_v14 = vld [vmem:[%s17093_s4] ss:$0 sm:$0xff] }
 0x45e   :  { %v9692_v59 = vrot.slane %v9690_v3, 4  ;;  %v9691_v21 = vsel %vm15574_vm8, %v11873_v28, %v9690_v3 }
 0x460   :  { %v9694_v50 = vsel %vm15574_vm8, %v9692_v59, %v9693_v55 }
 0x461   :  { %v11905_v16 = vcombine.low %v9691_v21, %v9694_v50 }
 0x464   :  { %13466 = vmatmul.mubr.bf16.gmra.mrb[8].mxu1 %v11901_v44  ;;  %v9412_v44 = vld [vmem:[#allocation2 + $0x174] sm:$0xe] }
 0x465   :  { %13469 = vmatprep.mubr.bf16.mxu1 %v11902_v5  ;;  %v9713_v5 = vrot.slane %v9711_v47, 4  ;;  %v11875_v36 = vrot.slane %v9412_v44, 9 }
 0x467   :  { %v9715_v4 = vsel %vm15574_vm8, %v9713_v5, %v9714_v34  ;;  %v9705_v62 = vsel %vm15574_vm8, %v11875_v36, %v9704_v9 }
 0x468   :  { %v11907_v37 = vcombine.low %v9705_v62, %v9708_v46  ;;  %v11908_v3 = vcombine.low %v9712_v35, %v9715_v4 }
 0x46c   :  { %13470 = vmatmul.mubr.bf16.gmra.mrb[12].mxu1 %v11903_v58  ;;  %v17148_v58 = vcombine.low %v16181_v40, %v16185_v29 }
 0x46d   :  { %13473 = vmatprep.mubr.bf16.mxu1 %v11904_v2  ;;  %v9736_v2 = vsel %vm15574_vm8, %v9734_v63, %v9735_v15 }
 0x46e   :  { %v11911_v30 = vcombine.low %v9733_v22, %v9736_v2 }
 0x474   :  { %13474 = vmatmul.mubr.bf16.gmra.mrb[16].mxu1 %v11905_v16  ;;  %v17150_v16 = vld [vmem:[#allocation35_spill] sm:$0xff] }
 0x475   :  { %13477 = vmatprep.mubr.bf16.mxu1 %v11906_v13 }
 0x47c   :  { %13478 = vmatmul.mubr.bf16.gmra.mrb[20].mxu1 %v11907_v37 }
 0x47d   :  { %13481 = vmatprep.mubr.bf16.mxu1 %v11908_v3 }
 0x484   :  { %13482 = vmatmul.mubr.bf16.gmra.mrb[24].mxu1 %v17148_v58 }
 0x485   :  { %13485 = vmatprep.mubr.bf16.mxu1 %v17149_v42 }
 0x48c   :  { %13486 = vmatmul.mubr.bf16.gmra.mrb[28].mxu1 %v11911_v30 }
 0x4e7   :  { %v13427_v59 = vpop.f32.mrb[32].mxu1 }
 0x4e8   :  { %v13585_v40 = vadd.f32 %v13427_v59, %v16403_v24  ;;  %v9963_v29 = vpop.f32.mrb[33].mxu1 }
 0x4e9   :  { %v13586_v39 = vadd.f32 %v9963_v29, %v16409_v11  ;;  %v13428_v52 = vpop.f32.mrb[34].mxu1 }
 0x4ea   :  { %v10291_v27 = vadd.f32 %v13585_v40, %v16697_v14  ;;  %v13587_v43 = vadd.f32 %v13428_v52, %v16412_v6  ;;  %v9966_v54 = vpop.f32.mrb[35].mxu1 }
 0x4eb   :  { %v10289_v28 = vadd.f32 %v13586_v39, %v16697_v14  ;;  %v13588_v55 = vadd.f32 %v9966_v54, %v16416_v45  ;;  %v17151_v45 = vld [vmem:[#allocation36_spill] sm:$0xff] }
 0x4ec   :  { %v10292_v48 = vadd.f32 %v13587_v43, %v16697_v14  ;;  %v10355_v50 = vmax.f32 %v10291_v27, 0.0 }
 0x4ed   :  { %v10290_v20 = vadd.f32 %v13588_v55, %v16697_v14  ;;  %v10353_v24 = vmax.f32 %v10289_v28, 0.0 }
 0x4ee   :  { %v10356_v9 = vmax.f32 %v10292_v48, 0.0 }
 0x4ef   :  { %v10354_v60 = vmax.f32 %v10290_v20, 0.0  ;;  %v13431_v47 = vpop.f32.mrb[36].mxu1 }
 0x4f0   :  { %v10418_v11 = vpack.c.bf16 %v10356_v9, %v10355_v50  ;;  %v13589_v1 = vadd.f32 %v13431_v47, %v16434_v19  ;;  %v9979_v21 = vpop.f32.mrb[37].mxu1 }
 0x4f1   :  { %v13590_v6 = vadd.f32 %v9979_v21, %v17150_v16  ;;  %v13432_v61 = vpop.f32.mrb[38].mxu1  ;;  %v10417_v44 = vpack.c.bf16 %v10354_v60, %v10353_v24 }
 0x4f2   :  { %v10295_v13 = vadd.f32 %v13589_v1, %v16697_v14  ;;  %v13591_v49 = vadd.f32 %v13432_v61, %v17151_v45  ;;  %v9982_v8 = vpop.f32.mrb[39].mxu1 }
 0x4f3   :  { %v10293_v5 = vadd.f32 %v13590_v6, %v16697_v14  ;;  %v13592_v36 = vadd.f32 %v9982_v8, %v16446_v53  ;;  %13505 = vmatprep.mubr.bf16.mxu0 %v10417_v44 }
 0x4f4   :  { %v10296_v33 = vadd.f32 %v13591_v49, %v16697_v14  ;;  %13506 = vmatmul.mubr.bf16.vlgmr.msra.gmra.mrb[128].mxu0 %v10418_v11  ;;  %v10359_v10 = vmax.f32 %v10295_v13, 0.0 }
 0x4f5   :  { %v10294_v19 = vadd.f32 %v13592_v36, %v16697_v14  ;;  %v10357_v46 = vmax.f32 %v10293_v5, 0.0 }
 0x4f6   :  { %v10360_v34 = vmax.f32 %v10296_v33, 0.0  ;;  %v17152_v33 = vld [vmem:[#allocation37_spill] sm:$0xff] }
 0x4f7   :  { %v10358_v4 = vmax.f32 %v10294_v19, 0.0  ;;  %v13435_v62 = vpop.f32.mrb[40].mxu1 }
 0x4f8   :  { %v13593_v37 = vadd.f32 %v13435_v62, %v16457_v56  ;;  %v9995_v35 = vpop.f32.mrb[41].mxu1  ;;  %v10420_v3 = vpack.c.bf16 %v10360_v34, %v10359_v10  ;;  %v17153_v34 = vld [vmem:[#allocation38_spill] sm:$0xff] }
 0x4f9   :  { %v13594_v17 = vadd.f32 %v9995_v35, %v16465_v23  ;;  %v13436_v7 = vpop.f32.mrb[42].mxu1  ;;  %v10419_v26 = vpack.c.bf16 %v10358_v4, %v10357_v46 }
 0x4fa   :  { %v10299_v53 = vadd.f32 %v13593_v37, %v16697_v14  ;;  %v13595_v63 = vadd.f32 %v13436_v7, %v16467_v18  ;;  %v9998_v15 = vpop.f32.mrb[43].mxu1  ;;  %v17154_v37 = vld [vmem:[#allocation39_spill] sm:$0xff]  ;;  %v17155_v7 = vld [vmem:[#allocation40_spill] sm:$0xff] }
 0x4fb   :  { %v10297_v58 = vadd.f32 %v13594_v17, %v16697_v14  ;;  %v13596_v42 = vadd.f32 %v9998_v15, %v16469_v31  ;;  %13509 = vmatprep.mubr.bf16.mxu0 %v10419_v26 }
 0x4fc   :  { %v10300_v22 = vadd.f32 %v13595_v63, %v16697_v14  ;;  %13510 = vmatmul.mubr.bf16.gmra.mrb[132].mxu0 %v10420_v3  ;;  %v10363_v2 = vmax.f32 %v10299_v53, 0.0 }
 0x4fd   :  { %v10298_v56 = vadd.f32 %v13596_v42, %v16697_v14  ;;  %v10361_v23 = vmax.f32 %v10297_v58, 0.0 }
 0x4fe   :  { %v10364_v30 = vmax.f32 %v10300_v22, 0.0 }
 0x4ff   :  { %v10362_v59 = vmax.f32 %v10298_v56, 0.0  ;;  %v13439_v40 = vpop.f32.mrb[44].mxu1 }
 0x500   :  { %v13597_v29 = vadd.f32 %v13439_v40, %v16479_v0  ;;  %v10011_v39 = vpop.f32.mrb[45].mxu1  ;;  %v10422_v18 = vpack.c.bf16 %v10364_v30, %v10363_v2  ;;  %v17156_v2 = vld [vmem:[#allocation41_spill] sm:$0xff]  ;;  %v17157_v40 = vld [vmem:[#allocation42_spill] sm:$0xff] }
 0x501   :  { %v13598_v52 = vadd.f32 %v10011_v39, %v16485_v57  ;;  %v13440_v27 = vpop.f32.mrb[46].mxu1  ;;  %v10421_v43 = vpack.c.bf16 %v10362_v59, %v10361_v23 }
 0x502   :  { %v10303_v31 = vadd.f32 %v13597_v29, %v16697_v14  ;;  %v13599_v54 = vadd.f32 %v13440_v27, %v16487_v51  ;;  %v10014_v28 = vpop.f32.mrb[47].mxu1  ;;  %v17158_v27 = vld [vmem:[#allocation43_spill] sm:$0xff] }
 0x503   :  { %v10301_v55 = vadd.f32 %v13598_v52, %v16697_v14  ;;  %v13600_v48 = vadd.f32 %v10014_v28, %v16489_v41  ;;  %13513 = vmatprep.mubr.bf16.mxu0 %v10421_v43  ;;  %v17159_v28 = vld [vmem:[#allocation44_spill] sm:$0xff] }
 0x504   :  { %v10304_v20 = vadd.f32 %v13599_v54, %v16697_v14  ;;  %13514 = vmatmul.mubr.bf16.gmra.mrb[136].mxu0 %v10422_v18  ;;  %v10367_v50 = vmax.f32 %v10303_v31, 0.0 }
 0x505   :  { %v10302_v0 = vadd.f32 %v13600_v48, %v16697_v14  ;;  %v10365_v57 = vmax.f32 %v10301_v55, 0.0 }
 0x506   :  { %v10368_v9 = vmax.f32 %v10304_v20, 0.0 }
 0x507   :  { %v10366_v24 = vmax.f32 %v10302_v0, 0.0  ;;  %v13443_v60 = vpop.f32.mrb[48].mxu1 }
 0x508   :  { %v13601_v47 = vadd.f32 %v13443_v60, %v16495_v12  ;;  %v10027_v11 = vpop.f32.mrb[49].mxu1  ;;  %v10424_v51 = vpack.c.bf16 %v10368_v9, %v10367_v50  ;;  %v17160_v60 = vld [vmem:[#allocation45_spill] sm:$0xff] }
 0x509   :  { %v13602_v1 = vadd.f32 %v10027_v11, %v16499_v25  ;;  %v13444_v21 = vpop.f32.mrb[50].mxu1  ;;  %v10423_v16 = vpack.c.bf16 %v10366_v24, %v10365_v57 }
 0x50a   :  { %v10307_v41 = vadd.f32 %v13601_v47, %v16697_v14  ;;  %v13603_v6 = vadd.f32 %v13444_v21, %v16501_v38  ;;  %v10030_v61 = vpop.f32.mrb[51].mxu1 }
 0x50b   :  { %v10305_v44 = vadd.f32 %v13602_v1, %v16697_v14  ;;  %v13604_v13 = vadd.f32 %v10030_v61, %v16505_v32  ;;  %13517 = vmatprep.mubr.bf16.mxu0 %v10423_v16  ;;  %v17161_v1 = vld [vmem:[#allocation46_spill] sm:$0xff]  ;;  %v17162_v61 = vld [vmem:[#allocation47_spill] sm:$0xff] }
 0x50c   :  { %v10308_v45 = vadd.f32 %v13603_v6, %v16697_v14  ;;  %13518 = vmatmul.mubr.bf16.gmra.mrb[140].mxu0 %v10424_v51  ;;  %v10371_v49 = vmax.f32 %v10307_v41, 0.0 }
 0x50d   :  { %v10306_v12 = vadd.f32 %v13604_v13, %v16697_v14  ;;  %v10369_v25 = vmax.f32 %v10305_v44, 0.0 }
 0x50e   :  { %v10372_v8 = vmax.f32 %v10308_v45, 0.0 }
 0x50f   :  { %v10370_v5 = vmax.f32 %v10306_v12, 0.0  ;;  %v13447_v36 = vpop.f32.mrb[52].mxu1  ;;  %v17163_v12 = vld [vmem:[#allocation48_spill] sm:$0xff] }
 0x510   :  { %v13605_v19 = vadd.f32 %v13447_v36, %v17152_v33  ;;  %v10043_v10 = vpop.f32.mrb[53].mxu1  ;;  %v10426_v38 = vpack.c.bf16 %v10372_v8, %v10371_v49 }
 0x511   :  { %v13606_v46 = vadd.f32 %v10043_v10, %v17153_v34  ;;  %v13448_v4 = vpop.f32.mrb[54].mxu1  ;;  %v10425_v62 = vpack.c.bf16 %v10370_v5, %v10369_v25 }
 0x512   :  { %v10311_v32 = vadd.f32 %v13605_v19, %v16697_v14  ;;  %v13607_v35 = vadd.f32 %v13448_v4, %v17154_v37  ;;  %v10046_v3 = vpop.f32.mrb[55].mxu1 }
 0x513   :  { %v10309_v17 = vadd.f32 %v13606_v46, %v16697_v14  ;;  %v13608_v26 = vadd.f32 %v10046_v3, %v17155_v7  ;;  %13521 = vmatprep.mubr.bf16.mxu0 %v10425_v62  ;;  %v17165_v62 = vld [vmem:[#allocation4_spill] sm:$0xff] }
 0x514   :  { %v10312_v53 = vadd.f32 %v13607_v35, %v16697_v14  ;;  %13522 = vmatmul.mubr.bf16.gmra.mrb[144].mxu0 %v10426_v38  ;;  %v10375_v15 = vmax.f32 %v10311_v32, 0.0  ;;  %v17164_v38 = vld [vmem:[#allocation3_spill] sm:$0xff] }
 0x515   :  { %v10310_v63 = vadd.f32 %v13608_v26, %v16697_v14  ;;  %v10373_v42 = vmax.f32 %v10309_v17, 0.0  ;;  %v17166_v17 = vld [vmem:[#allocation5_spill] sm:$0xff] }
 0x516   :  { %v10376_v58 = vmax.f32 %v10312_v53, 0.0 }
 0x517   :  { %v10374_v22 = vmax.f32 %v10310_v63, 0.0  ;;  %v13451_v56 = vpop.f32.mrb[56].mxu1  ;;  %v17167_v63 = vld [vmem:[#allocation6_spill] sm:$0xff] }
 0x518   :  { %v13609_v30 = vadd.f32 %v13451_v56, %v17156_v2  ;;  %v10059_v23 = vpop.f32.mrb[57].mxu1  ;;  %v10428_v59 = vpack.c.bf16 %v10376_v58, %v10375_v15 }
 0x519   :  { %v13610_v29 = vadd.f32 %v10059_v23, %v17157_v40  ;;  %v13452_v39 = vpop.f32.mrb[58].mxu1  ;;  %v10427_v18 = vpack.c.bf16 %v10374_v22, %v10373_v42 }
 0x51a   :  { %v10315_v52 = vadd.f32 %v13609_v30, %v16697_v14  ;;  %v13611_v43 = vadd.f32 %v13452_v39, %v17158_v27  ;;  %v10062_v31 = vpop.f32.mrb[59].mxu1 }
 0x51b   :  { %v10313_v54 = vadd.f32 %v13610_v29, %v16697_v14  ;;  %v13612_v55 = vadd.f32 %v10062_v31, %v17159_v28  ;;  %13525 = vmatprep.mubr.bf16.mxu0 %v10427_v18  ;;  %v17169_v18 = vld [vmem:[#allocation8_spill] sm:$0xff] }
 0x51c   :  { %v10316_v48 = vadd.f32 %v13611_v43, %v16697_v14  ;;  %13526 = vmatmul.mubr.bf16.gmra.mrb[148].mxu0 %v10428_v59  ;;  %v10379_v0 = vmax.f32 %v10315_v52, 0.0  ;;  %v17168_v59 = vld [vmem:[#allocation7_spill] sm:$0xff] }
 0x51d   :  { %v10314_v20 = vadd.f32 %v13612_v55, %v16697_v14  ;;  %v10377_v9 = vmax.f32 %v10313_v54, 0.0  ;;  %v17170_v54 = vld [vmem:[#allocation9_spill] sm:$0xff] }
 0x51e   :  { %v10380_v50 = vmax.f32 %v10316_v48, 0.0 }
 0x51f   :  { %v10378_v57 = vmax.f32 %v10314_v20, 0.0  ;;  %v13455_v24 = vpop.f32.mrb[60].mxu1  ;;  %v17171_v20 = vld [vmem:[#allocation10_spill] sm:$0xff] }
 0x520   :  { %v13613_v47 = vadd.f32 %v13455_v24, %v17160_v60  ;;  %v10075_v11 = vpop.f32.mrb[61].mxu1  ;;  %v10430_v51 = vpack.c.bf16 %v10380_v50, %v10379_v0 }
 0x521   :  { %v13614_v21 = vadd.f32 %v10075_v11, %v17161_v1  ;;  %v13456_v16 = vpop.f32.mrb[62].mxu1  ;;  %v10429_v41 = vpack.c.bf16 %v10378_v57, %v10377_v9 }
 0x522   :  { %v10319_v6 = vadd.f32 %v13613_v47, %v16697_v14  ;;  %v13615_v44 = vadd.f32 %v13456_v16, %v17162_v61  ;;  %v10078_v13 = vpop.f32.mrb[63].mxu1 }
 0x523   :  { %v10317_v45 = vadd.f32 %v13614_v21, %v16697_v14  ;;  %v13616_v49 = vadd.f32 %v10078_v13, %v17163_v12  ;;  %13529 = vmatprep.mubr.bf16.mxu0 %v10429_v41  ;;  %v17173_v41 = vld [vmem:[#allocation12_spill] sm:$0xff] }
 0x524   :  { %v10320_v8 = vadd.f32 %v13615_v44, %v16697_v14  ;;  %13530 = vmatmul.mubr.bf16.gmra.mrb[152].mxu0 %v10430_v51  ;;  %v10383_v5 = vmax.f32 %v10319_v6, 0.0  ;;  %v17172_v51 = vld [vmem:[#allocation11_spill] sm:$0xff] }
 0x525   :  { %v10318_v25 = vadd.f32 %v13616_v49, %v16697_v14  ;;  %v10381_v33 = vmax.f32 %v10317_v45, 0.0  ;;  %v17174_v45 = vld [vmem:[#allocation13_spill] sm:$0xff] }
 0x526   :  { %v10384_v36 = vmax.f32 %v10320_v8, 0.0 }
 0x527   :  { %v10382_v19 = vmax.f32 %v10318_v25, 0.0  ;;  %v13459_v10 = vpop.f32.mrb[0].mxu1  ;;  %v17175_v25 = vld [vmem:[#allocation14_spill] sm:$0xff] }
 0x528   :  { %v13617_v34 = vadd.f32 %v13459_v10, %v17164_v38  ;;  %v10091_v46 = vpop.f32.mrb[1].mxu1  ;;  %v10432_v4 = vpack.c.bf16 %v10384_v36, %v10383_v5 }
 0x529   :  { %v13618_v32 = vadd.f32 %v10091_v46, %v17165_v62  ;;  %v13460_v37 = vpop.f32.mrb[2].mxu1  ;;  %v10431_v35 = vpack.c.bf16 %v10382_v19, %v10381_v33 }
 0x52a   :  { %v10323_v3 = vadd.f32 %v13617_v34, %v16697_v14  ;;  %v13619_v7 = vadd.f32 %v13460_v37, %v17166_v17  ;;  %v10094_v26 = vpop.f32.mrb[3].mxu1 }
 0x52b   :  { %v10321_v53 = vadd.f32 %v13618_v32, %v16697_v14  ;;  %v13620_v15 = vadd.f32 %v10094_v26, %v17167_v63  ;;  %13533 = vmatprep.mubr.bf16.mxu0 %v10431_v35  ;;  %v17177_v35 = vld [vmem:[#allocation16_spill] sm:$0xff] }
 0x52c   :  { %v10324_v58 = vadd.f32 %v13619_v7, %v16697_v14  ;;  %13534 = vmatmul.mubr.bf16.gmra.mrb[156].mxu0 %v10432_v4  ;;  %v10387_v22 = vmax.f32 %v10323_v3, 0.0  ;;  %v17176_v4 = vld [vmem:[#allocation15_spill] sm:$0xff] }
 0x52d   :  { %v10322_v42 = vadd.f32 %v13620_v15, %v16697_v14  ;;  %v10385_v2 = vmax.f32 %v10321_v53, 0.0  ;;  %v17178_v53 = vld [vmem:[#allocation17_spill] sm:$0xff] }
 0x52e   :  { %v10388_v56 = vmax.f32 %v10324_v58, 0.0 }
 0x52f   :  { %v10386_v30 = vmax.f32 %v10322_v42, 0.0  ;;  %v13463_v23 = vpop.f32.mrb[4].mxu1  ;;  %v17179_v42 = vld [vmem:[#allocation18_spill] sm:$0xff] }
 0x530   :  { %v13621_v40 = vadd.f32 %v13463_v23, %v17168_v59  ;;  %v10107_v29 = vpop.f32.mrb[5].mxu1  ;;  %v10434_v39 = vpack.c.bf16 %v10388_v56, %v10387_v22 }
 0x531   :  { %v13622_v52 = vadd.f32 %v10107_v29, %v17169_v18  ;;  %v13464_v27 = vpop.f32.mrb[6].mxu1  ;;  %v10433_v43 = vpack.c.bf16 %v10386_v30, %v10385_v2 }
 0x532   :  { %v10327_v31 = vadd.f32 %v13621_v40, %v16697_v14  ;;  %v13623_v28 = vadd.f32 %v13464_v27, %v17170_v54  ;;  %v10110_v55 = vpop.f32.mrb[7].mxu1 }
 0x533   :  { %v10325_v48 = vadd.f32 %v13622_v52, %v16697_v14  ;;  %v13624_v0 = vadd.f32 %v10110_v55, %v17171_v20  ;;  %13537 = vmatprep.mubr.bf16.mxu0 %v10433_v43  ;;  %v17181_v43 = vld [vmem:[#allocation20_spill] sm:$0xff] }
 0x534   :  { %v10328_v50 = vadd.f32 %v13623_v28, %v16697_v14  ;;  %13538 = vmatmul.mubr.bf16.gmra.mrb[160].mxu0 %v10434_v39  ;;  %v10391_v57 = vmax.f32 %v10327_v31, 0.0  ;;  %v17180_v39 = vld [vmem:[#allocation19_spill] sm:$0xff] }
 0x535   :  { %v10326_v9 = vadd.f32 %v13624_v0, %v16697_v14  ;;  %v10389_v60 = vmax.f32 %v10325_v48, 0.0  ;;  %v17182_v48 = vld [vmem:[#allocation21_spill] sm:$0xff] }
 0x536   :  { %v10392_v24 = vmax.f32 %v10328_v50, 0.0 }
 0x537   :  { %v10390_v47 = vmax.f32 %v10326_v9, 0.0  ;;  %v13467_v11 = vpop.f32.mrb[8].mxu1  ;;  %v17183_v9 = vld [vmem:[#allocation22_spill] sm:$0xff] }
 0x538   :  { %v13625_v1 = vadd.f32 %v13467_v11, %v17172_v51  ;;  %v10123_v21 = vpop.f32.mrb[9].mxu1  ;;  %v10436_v16 = vpack.c.bf16 %v10392_v24, %v10391_v57 }
 0x539   :  { %v13626_v6 = vadd.f32 %v10123_v21, %v17173_v41  ;;  %v13468_v61 = vpop.f32.mrb[10].mxu1  ;;  %v10435_v44 = vpack.c.bf16 %v10390_v47, %v10389_v60 }
 0x53a   :  { %v10331_v13 = vadd.f32 %v13625_v1, %v16697_v14  ;;  %v13627_v12 = vadd.f32 %v13468_v61, %v17174_v45  ;;  %v10126_v49 = vpop.f32.mrb[11].mxu1 }
 0x53b   :  { %v10329_v8 = vadd.f32 %v13626_v6, %v16697_v14  ;;  %v13628_v5 = vadd.f32 %v10126_v49, %v17175_v25  ;;  %13541 = vmatprep.mubr.bf16.mxu0 %v10435_v44  ;;  %v17185_v44 = vld [vmem:[#allocation24_spill] sm:$0xff] }
 0x53c   :  { %v10332_v36 = vadd.f32 %v13627_v12, %v16697_v14  ;;  %13542 = vmatmul.mubr.bf16.gmra.mrb[164].mxu0 %v10436_v16  ;;  %v10395_v19 = vmax.f32 %v10331_v13, 0.0  ;;  %v17184_v16 = vld [vmem:[#allocation23_spill] sm:$0xff] }
 0x53d   :  { %v10330_v33 = vadd.f32 %v13628_v5, %v16697_v14  ;;  %v10393_v38 = vmax.f32 %v10329_v8, 0.0  ;;  %v17186_v8 = vld [vmem:[#allocation25_spill] sm:$0xff] }
 0x53e   :  { %v10396_v10 = vmax.f32 %v10332_v36, 0.0 }
 0x53f   :  { %v10394_v34 = vmax.f32 %v10330_v33, 0.0  ;;  %v13471_v46 = vpop.f32.mrb[12].mxu1  ;;  %v17187_v33 = vld [vmem:[#allocation26_spill] sm:$0xff] }
 0x540   :  { %v13629_v62 = vadd.f32 %v13471_v46, %v17176_v4  ;;  %v10139_v32 = vpop.f32.mrb[13].mxu1  ;;  %v10438_v37 = vpack.c.bf16 %v10396_v10, %v10395_v19 }
 0x541   :  { %v13630_v3 = vadd.f32 %v10139_v32, %v17177_v35  ;;  %v13472_v17 = vpop.f32.mrb[14].mxu1  ;;  %v10437_v7 = vpack.c.bf16 %v10394_v34, %v10393_v38 }
 0x542   :  { %v10335_v26 = vadd.f32 %v13629_v62, %v16697_v14  ;;  %v13631_v63 = vadd.f32 %v13472_v17, %v17178_v53  ;;  %v10142_v15 = vpop.f32.mrb[15].mxu1 }
 0x543   :  { %v10333_v58 = vadd.f32 %v13630_v3, %v16697_v14  ;;  %v13632_v22 = vadd.f32 %v10142_v15, %v17179_v42  ;;  %13545 = vmatprep.mubr.bf16.mxu0 %v10437_v7  ;;  %v17189_v7 = vld [vmem:[#allocation28_spill] sm:$0xff] }
 0x544   :  { %v10336_v56 = vadd.f32 %v13631_v63, %v16697_v14  ;;  %13546 = vmatmul.mubr.bf16.gmra.mrb[168].mxu0 %v10438_v37  ;;  %v10399_v30 = vmax.f32 %v10335_v26, 0.0  ;;  %v17188_v37 = vld [vmem:[#allocation27_spill] sm:$0xff] }
 0x545   :  { %v10334_v2 = vadd.f32 %v13632_v22, %v16697_v14  ;;  %v10397_v59 = vmax.f32 %v10333_v58, 0.0  ;;  %v17190_v58 = vld [vmem:[#allocation29_spill] sm:$0xff] }
 0x546   :  { %v10400_v23 = vmax.f32 %v10336_v56, 0.0 }
 0x547   :  { %v10398_v40 = vmax.f32 %v10334_v2, 0.0  ;;  %v13475_v29 = vpop.f32.mrb[16].mxu1  ;;  %v17191_v2 = vld [vmem:[#allocation30_spill] sm:$0xff] }
 0x548   :  { %v13633_v18 = vadd.f32 %v13475_v29, %v17180_v39  ;;  %v10155_v52 = vpop.f32.mrb[17].mxu1  ;;  %v10440_v27 = vpack.c.bf16 %v10400_v23, %v10399_v30 }
 0x549   :  { %v13634_v31 = vadd.f32 %v10155_v52, %v17181_v43  ;;  %v13476_v54 = vpop.f32.mrb[18].mxu1  ;;  %v10439_v28 = vpack.c.bf16 %v10398_v40, %v10397_v59 }
 0x54a   :  { %v10339_v55 = vadd.f32 %v13633_v18, %v16697_v14  ;;  %v13635_v20 = vadd.f32 %v13476_v54, %v17182_v48  ;;  %v10158_v0 = vpop.f32.mrb[19].mxu1 }
 0x54b   :  { %v10337_v50 = vadd.f32 %v13634_v31, %v16697_v14  ;;  %v13636_v57 = vadd.f32 %v10158_v0, %v17183_v9  ;;  %13549 = vmatprep.mubr.bf16.mxu0 %v10439_v28  ;;  %v17193_v28 = vld [vmem:[#allocation32_spill] sm:$0xff] }
 0x54c   :  { %v10340_v24 = vadd.f32 %v13635_v20, %v16697_v14  ;;  %13550 = vmatmul.mubr.bf16.gmra.mrb[172].mxu0 %v10440_v27  ;;  %v10403_v47 = vmax.f32 %v10339_v55, 0.0  ;;  %v17192_v27 = vld [vmem:[#allocation31_spill] sm:$0xff] }
 0x54d   :  { %v10338_v60 = vadd.f32 %v13636_v57, %v16697_v14  ;;  %v10401_v51 = vmax.f32 %v10337_v50, 0.0  ;;  %v17194_v50 = vld [vmem:[#allocation33_spill] sm:$0xff] }
 0x54e   :  { %v10404_v11 = vmax.f32 %v10340_v24, 0.0 }
 0x54f   :  { %v10402_v1 = vmax.f32 %v10338_v60, 0.0  ;;  %v13479_v21 = vpop.f32.mrb[20].mxu1  ;;  %v17195_v60 = vld [vmem:[#allocation34_spill] sm:$0xff] }
 0x550   :  { %v13637_v41 = vadd.f32 %v13479_v21, %v17184_v16  ;;  %v10171_v6 = vpop.f32.mrb[21].mxu1  ;;  %v10442_v61 = vpack.c.bf16 %v10404_v11, %v10403_v47 }
 0x551   :  { %v13638_v13 = vadd.f32 %v10171_v6, %v17185_v44  ;;  %v13480_v45 = vpop.f32.mrb[22].mxu1  ;;  %v10441_v12 = vpack.c.bf16 %v10402_v1, %v10401_v51  ;;  %v16830_v44 = vld [vmem:[%s17094_s6] ss:$0 sm:$0xff] }
 0x552   :  { %v10343_v49 = vadd.f32 %v13637_v41, %v16697_v14  ;;  %v13639_v25 = vadd.f32 %v13480_v45, %v17186_v8  ;;  %v10174_v5 = vpop.f32.mrb[23].mxu1 }
 0x553   :  { %v10341_v36 = vadd.f32 %v13638_v13, %v16697_v14  ;;  %v13640_v19 = vadd.f32 %v10174_v5, %v17187_v33  ;;  %13553 = vmatprep.mubr.bf16.mxu0 %v10441_v12  ;;  %v14595_v13 = vld [vmem:[%s17089_s0 + $0x8] sm:$0xff]  }
 0x554   :  { %v10344_v10 = vadd.f32 %v13639_v25, %v16697_v14  ;;  %13554 = vmatmul.mubr.bf16.gmra.mrb[176].mxu0 %v10442_v61  ;;  %v10407_v34 = vmax.f32 %v10343_v49, 0.0  ;;  %v10811_v45 = vunpack.c.l.bf16 %v14595_v13  ;;  %v10812_v5 = vunpack.c.h.bf16 %v14595_v13 }
 0x555   :  { %v10342_v38 = vadd.f32 %v13640_v19, %v16697_v14  ;;  %v10405_v4 = vmax.f32 %v10341_v36, 0.0 }
 0x556   :  { %v10408_v46 = vmax.f32 %v10344_v10, 0.0 }
 0x557   :  { %v10406_v62 = vmax.f32 %v10342_v38, 0.0  ;;  %v13483_v32 = vpop.f32.mrb[24].mxu1 }
 0x558   :  { %v13641_v35 = vadd.f32 %v13483_v32, %v17188_v37  ;;  %v10187_v3 = vpop.f32.mrb[25].mxu1  ;;  %v10444_v17 = vpack.c.bf16 %v10408_v46, %v10407_v34 }
 0x559   :  { %v13642_v26 = vadd.f32 %v10187_v3, %v17189_v7  ;;  %v13484_v53 = vpop.f32.mrb[26].mxu1  ;;  %v10443_v63 = vpack.c.bf16 %v10406_v62, %v10405_v4  ;;  %v14597_v3 = vld [vmem:[%s17089_s0 + $0x18] sm:$0xff]  }
 0x55a   :  { %v10347_v15 = vadd.f32 %v13641_v35, %v16697_v14  ;;  %v13643_v42 = vadd.f32 %v13484_v53, %v17190_v58  ;;  %v10190_v22 = vpop.f32.mrb[27].mxu1 }
 0x55b   :  { %v10345_v56 = vadd.f32 %v13642_v26, %v16697_v14  ;;  %v13644_v30 = vadd.f32 %v10190_v22, %v17191_v2  ;;  %13557 = vmatprep.mubr.bf16.mxu0 %v10443_v63  ;;  %v14598_v63 = vld [vmem:[%s17089_s0 + $0x10] sm:$0xff]  }
 0x55c   :  { %v10348_v23 = vadd.f32 %v13643_v42, %v16697_v14  ;;  %13558 = vmatmul.mubr.bf16.gmra.mrb[180].mxu0 %v10444_v17  ;;  %v10411_v40 = vmax.f32 %v10347_v15, 0.0  ;;  %v10815_v17 = vunpack.c.l.bf16 %v14597_v3  ;;  %v10813_v15 = vunpack.c.l.bf16 %v14598_v63 }
 0x55d   :  { %v10346_v59 = vadd.f32 %v13644_v30, %v16697_v14  ;;  %v10409_v39 = vmax.f32 %v10345_v56, 0.0  ;;  %v10816_v56 = vunpack.c.h.bf16 %v14597_v3 }
 0x55e   :  { %v10412_v29 = vmax.f32 %v10348_v23, 0.0 }
 0x55f   :  { %v10410_v18 = vmax.f32 %v10346_v59, 0.0  ;;  %v13487_v52 = vpop.f32.mrb[28].mxu1  ;;  %v10814_v59 = vunpack.c.h.bf16 %v14598_v63 }
 0x560   :  { %v13645_v43 = vadd.f32 %v13487_v52, %v17192_v27  ;;  %v10203_v31 = vpop.f32.mrb[29].mxu1  ;;  %v10446_v54 = vpack.c.bf16 %v10412_v29, %v10411_v40 }
 0x561   :  { %v13646_v55 = vadd.f32 %v10203_v31, %v17193_v28  ;;  %v13488_v48 = vpop.f32.mrb[30].mxu1  ;;  %v10445_v20 = vpack.c.bf16 %v10410_v18, %v10409_v39  ;;  %v14599_v28 = vld [vmem:[%s17089_s0 + $0x28] sm:$0xff]  }
 0x562   :  { %v10351_v0 = vadd.f32 %v13645_v43, %v16697_v14  ;;  %v13647_v9 = vadd.f32 %v13488_v48, %v17194_v50  ;;  %v10206_v57 = vpop.f32.mrb[31].mxu1  ;;  %v14600_v50 = vld [vmem:[%s17089_s0 + $0x20] sm:$0xff]  }
 0x563   :  { %v10349_v24 = vadd.f32 %v13646_v55, %v16697_v14  ;;  %v13648_v47 = vadd.f32 %v10206_v57, %v17195_v60  ;;  %13561 = vmatprep.mubr.bf16.mxu0 %v10445_v20  ;;  %v10819_v55 = vunpack.c.l.bf16 %v14599_v28 }
 0x564   :  { %v10352_v11 = vadd.f32 %v13647_v9, %v16697_v14  ;;  %13562 = vmatmul.mubr.bf16.gmra.mrb[184].mxu0 %v10446_v54  ;;  %v10415_v1 = vmax.f32 %v10351_v0, 0.0  ;;  %v10817_v9 = vunpack.c.l.bf16 %v14600_v50 }
 0x565   :  { %v10350_v51 = vadd.f32 %v13648_v47, %v16697_v14  ;;  %v10413_v16 = vmax.f32 %v10349_v24, 0.0  ;;  %v14596_v14 = vld [vmem:[%s17089_s0] sm:$0xff]   ;;  %v10820_v47 = vunpack.c.h.bf16 %v14599_v28 }
 0x566   :  { %v10416_v21 = vmax.f32 %v10352_v11, 0.0  ;;  %v10809_v12 = vunpack.c.l.bf16 %v14596_v14  ;;  %v10810_v36 = vunpack.c.h.bf16 %v14596_v14 }
 0x567   :  { %v10414_v41 = vmax.f32 %v10350_v51, 0.0 }
 0x568   :  { %v10448_v6 = vpack.c.bf16 %v10416_v21, %v10415_v1  ;;  %v10818_v21 = vunpack.c.h.bf16 %v14600_v50 }
 0x569   :  { %v10447_v61 = vpack.c.bf16 %v10414_v41, %v10413_v16 }
 0x56b   :  { %13565 = vmatprep.mubr.bf16.mxu0 %v10447_v61 }
 0x56c   :  { %13566 = vmatmul.mubr.bf16.gmra.mrb[188].mxu0 %v10448_v6 }
 0x5c7   :  { %v13507_v49 = vpop.f32.mrb[128].mxu0 }
 0x5c8   :  { %v10563_v8 = vadd.f32 %v13507_v49, %v16830_v44  ;;  %v10554_v25 = vpop.f32.mrb[129].mxu0 }
 0x5c9   :  { %v10555_v33 = vadd.f32 %v16830_v44, %v10554_v25  ;;  %v13508_v19 = vpop.f32.mrb[130].mxu0 }
 0x5ca   :  { %v10875_v10 = vadd.f32 %v10811_v45, %v10563_v8  ;;  %v10566_v38 = vadd.f32 %v13508_v19, %v16830_v44  ;;  %v10557_v34 = vpop.f32.mrb[131].mxu0  ;;  %v14601_v8 = vld [vmem:[%s17089_s0 + $0x38] sm:$0xff]   ;;  %v14602_v19 = vld [vmem:[%s17089_s0 + $0x30] sm:$0xff]  }
 0x5cb   :  { %v10873_v46 = vadd.f32 %v10809_v12, %v10555_v33  ;;  %v10558_v4 = vadd.f32 %v16830_v44, %v10557_v34  ;;  %v10823_v25 = vunpack.c.l.bf16 %v14601_v8 }
 0x5cc   :  { %v10876_v62 = vadd.f32 %v10812_v5, %v10566_v38  ;;  %v10939_v37 = vmax.f32 %v10875_v10, 0.0  ;;  %v10821_v10 = vunpack.c.l.bf16 %v14602_v19 }
 0x5cd   :  { %v10874_v32 = vadd.f32 %v10810_v36, %v10558_v4  ;;  %v10937_v7 = vmax.f32 %v10873_v46, 0.0  ;;  %v10824_v4 = vunpack.c.h.bf16 %v14601_v8 }
 0x5ce   :  { %v10940_v35 = vmax.f32 %v10876_v62, 0.0 }
 0x5cf   :  { %v10938_v26 = vmax.f32 %v10874_v32, 0.0  ;;  %v13511_v53 = vpop.f32.mrb[132].mxu0 }
 0x5d0   :  { %v12066_v58 = vpack.c.bf16 %v10940_v35, %v10939_v37  ;;  %v10579_v42 = vadd.f32 %v13511_v53, %v16830_v44  ;;  %v10570_v22 = vpop.f32.mrb[133].mxu0  ;;  %v10822_v35 = vunpack.c.h.bf16 %v14602_v19 }
 0x5d1   :  { %v12061_v2 = vpack.c.bf16 %v10938_v26, %v10937_v7  ;;  %v10571_v30 = vadd.f32 %v16830_v44, %v10570_v22  ;;  %v13512_v23 = vpop.f32.mrb[134].mxu0  ;;  %v14603_v22 = vld [vmem:[%s17089_s0 + $0x48] sm:$0xff]  }
 0x5d2   :  { %12218 = vst [vmem:[%s17095_s7 + $0x8] sm:$0xff] %v12066_v58   ;;  %v10879_v40 = vadd.f32 %v10815_v17, %v10579_v42  ;;  %v10582_v29 = vadd.f32 %v13512_v23, %v16830_v44  ;;  %v10573_v39 = vpop.f32.mrb[135].mxu0 }
 0x5d3   :  { %12062 = vst [vmem:[%s17095_s7] sm:$0xff] %v12061_v2   ;;  %v10877_v18 = vadd.f32 %v10813_v15, %v10571_v30  ;;  %v10574_v52 = vadd.f32 %v16830_v44, %v10573_v39 }
 0x5d4   :  { %v10880_v27 = vadd.f32 %v10816_v56, %v10582_v29  ;;  %v10943_v31 = vmax.f32 %v10879_v40, 0.0  ;;  %v10827_v56 = vunpack.c.l.bf16 %v14603_v22 }
 0x5d5   :  { %v10878_v43 = vadd.f32 %v10814_v59, %v10574_v52  ;;  %v10941_v48 = vmax.f32 %v10877_v18, 0.0  ;;  %v14604_v59 = vld [vmem:[%s17089_s0 + $0x40] sm:$0xff]   ;;  %v10828_v52 = vunpack.c.h.bf16 %v14603_v22 }
 0x5d6   :  { %v10944_v54 = vmax.f32 %v10880_v27, 0.0  ;;  %v10825_v40 = vunpack.c.l.bf16 %v14604_v59 }
 0x5d7   :  { %v10942_v20 = vmax.f32 %v10878_v43, 0.0  ;;  %v13515_v0 = vpop.f32.mrb[136].mxu0 }
 0x5d8   :  { %v12076_v57 = vpack.c.bf16 %v10944_v54, %v10943_v31  ;;  %v10595_v24 = vadd.f32 %v13515_v0, %v16830_v44  ;;  %v10586_v60 = vpop.f32.mrb[137].mxu0  ;;  %v10826_v54 = vunpack.c.h.bf16 %v14604_v59 }
 0x5d9   :  { %v12071_v11 = vpack.c.bf16 %v10942_v20, %v10941_v48  ;;  %v10587_v51 = vadd.f32 %v16830_v44, %v10586_v60  ;;  %v13516_v1 = vpop.f32.mrb[138].mxu0  ;;  %v14605_v60 = vld [vmem:[%s17089_s0 + $0x58] sm:$0xff]  }
 0x5da   :  { %12220 = vst [vmem:[%s17095_s7 + $0x18] sm:$0xff] %v12076_v57   ;;  %v10883_v16 = vadd.f32 %v10819_v55, %v10595_v24  ;;  %v10598_v41 = vadd.f32 %v13516_v1, %v16830_v44  ;;  %v10589_v6 = vpop.f32.mrb[139].mxu0 }
 0x5db   :  { %12219 = vst [vmem:[%s17095_s7 + $0x10] sm:$0xff] %v12071_v11   ;;  %v10881_v61 = vadd.f32 %v10817_v9, %v10587_v51  ;;  %v10590_v13 = vadd.f32 %v16830_v44, %v10589_v6 }
 0x5dc   :  { %v10884_v45 = vadd.f32 %v10820_v47, %v10598_v41  ;;  %v10947_v12 = vmax.f32 %v10883_v16, 0.0  ;;  %v10831_v47 = vunpack.c.l.bf16 %v14605_v60 }
 0x5dd   :  { %v10882_v14 = vadd.f32 %v10818_v21, %v10590_v13  ;;  %v10945_v5 = vmax.f32 %v10881_v61, 0.0  ;;  %v14606_v21 = vld [vmem:[%s17089_s0 + $0x50] sm:$0xff]   ;;  %v10832_v13 = vunpack.c.h.bf16 %v14605_v60 }
 0x5de   :  { %v10948_v49 = vmax.f32 %v10884_v45, 0.0  ;;  %v10829_v16 = vunpack.c.l.bf16 %v14606_v21 }
 0x5df   :  { %v10946_v36 = vmax.f32 %v10882_v14, 0.0  ;;  %v13519_v33 = vpop.f32.mrb[140].mxu0 }
 0x5e0   :  { %v12086_v38 = vpack.c.bf16 %v10948_v49, %v10947_v12  ;;  %v10611_v34 = vadd.f32 %v13519_v33, %v16830_v44  ;;  %v10602_v46 = vpop.f32.mrb[141].mxu0  ;;  %v10830_v49 = vunpack.c.h.bf16 %v14606_v21 }
 0x5e1   :  { %v12081_v62 = vpack.c.bf16 %v10946_v36, %v10945_v5  ;;  %v10603_v32 = vadd.f32 %v16830_v44, %v10602_v46  ;;  %v13520_v37 = vpop.f32.mrb[142].mxu0  ;;  %v14607_v46 = vld [vmem:[%s17089_s0 + $0x68] sm:$0xff]  }
 0x5e2   :  { %12222 = vst [vmem:[%s17095_s7 + $0x28] sm:$0xff] %v12086_v38   ;;  %v10887_v3 = vadd.f32 %v10823_v25, %v10611_v34  ;;  %v10614_v17 = vadd.f32 %v13520_v37, %v16830_v44  ;;  %v10605_v7 = vpop.f32.mrb[143].mxu0 }
 0x5e3   :  { %12221 = vst [vmem:[%s17095_s7 + $0x20] sm:$0xff] %v12081_v62   ;;  %v10885_v26 = vadd.f32 %v10821_v10, %v10603_v32  ;;  %v10606_v53 = vadd.f32 %v16830_v44, %v10605_v7 }
 0x5e4   :  { %v10888_v63 = vadd.f32 %v10824_v4, %v10614_v17  ;;  %v10951_v58 = vmax.f32 %v10887_v3, 0.0  ;;  %v10835_v4 = vunpack.c.l.bf16 %v14607_v46 }
 0x5e5   :  { %v10886_v15 = vadd.f32 %v10822_v35, %v10606_v53  ;;  %v10949_v2 = vmax.f32 %v10885_v26, 0.0  ;;  %v14608_v35 = vld [vmem:[%s17089_s0 + $0x60] sm:$0xff]   ;;  %v10836_v53 = vunpack.c.h.bf16 %v14607_v46 }
 0x5e6   :  { %v10952_v42 = vmax.f32 %v10888_v63, 0.0  ;;  %v10833_v3 = vunpack.c.l.bf16 %v14608_v35 }
 0x5e7   :  { %v10950_v30 = vmax.f32 %v10886_v15, 0.0  ;;  %v13523_v23 = vpop.f32.mrb[144].mxu0 }
 0x5e8   :  { %v12096_v29 = vpack.c.bf16 %v10952_v42, %v10951_v58  ;;  %v10627_v39 = vadd.f32 %v13523_v23, %v16830_v44  ;;  %v10618_v18 = vpop.f32.mrb[145].mxu0  ;;  %v10834_v42 = vunpack.c.h.bf16 %v14608_v35 }
 0x5e9   :  { %v12091_v27 = vpack.c.bf16 %v10950_v30, %v10949_v2  ;;  %v10619_v43 = vadd.f32 %v16830_v44, %v10618_v18  ;;  %v13524_v31 = vpop.f32.mrb[146].mxu0  ;;  %v14609_v18 = vld [vmem:[%s17089_s0 + $0x78] sm:$0xff]  }
 0x5ea   :  { %12224 = vst [vmem:[%s17095_s7 + $0x38] sm:$0xff] %v12096_v29   ;;  %v10891_v28 = vadd.f32 %v10827_v56, %v10627_v39  ;;  %v10630_v55 = vadd.f32 %v13524_v31, %v16830_v44  ;;  %v10621_v48 = vpop.f32.mrb[147].mxu0 }
 0x5eb   :  { %12223 = vst [vmem:[%s17095_s7 + $0x30] sm:$0xff] %v12091_v27   ;;  %v10889_v20 = vadd.f32 %v10825_v40, %v10619_v43  ;;  %v10622_v0 = vadd.f32 %v16830_v44, %v10621_v48 }
 0x5ec   :  { %v10892_v50 = vadd.f32 %v10828_v52, %v10630_v55  ;;  %v10955_v57 = vmax.f32 %v10891_v28, 0.0  ;;  %v10839_v52 = vunpack.c.l.bf16 %v14609_v18 }
 0x5ed   :  { %v10890_v9 = vadd.f32 %v10826_v54, %v10622_v0  ;;  %v10953_v11 = vmax.f32 %v10889_v20, 0.0  ;;  %v14610_v54 = vld [vmem:[%s17089_s0 + $0x70] sm:$0xff]   ;;  %v10840_v0 = vunpack.c.h.bf16 %v14609_v18 }
 0x5ee   :  { %v10956_v24 = vmax.f32 %v10892_v50, 0.0  ;;  %v10837_v28 = vunpack.c.l.bf16 %v14610_v54 }
 0x5ef   :  { %v10954_v51 = vmax.f32 %v10890_v9, 0.0  ;;  %v13527_v1 = vpop.f32.mrb[148].mxu0 }
 0x5f0   :  { %v12106_v41 = vpack.c.bf16 %v10956_v24, %v10955_v57  ;;  %v10643_v6 = vadd.f32 %v13527_v1, %v16830_v44  ;;  %v10634_v61 = vpop.f32.mrb[149].mxu0  ;;  %v10838_v24 = vunpack.c.h.bf16 %v14610_v54 }
 0x5f1   :  { %v12101_v45 = vpack.c.bf16 %v10954_v51, %v10953_v11  ;;  %v10635_v14 = vadd.f32 %v16830_v44, %v10634_v61  ;;  %v13528_v12 = vpop.f32.mrb[150].mxu0  ;;  %v14611_v61 = vld [vmem:[%s17089_s0 + $0x88] sm:$0xff]  }
 0x5f2   :  { %12226 = vst [vmem:[%s17095_s7 + $0x48] sm:$0xff] %v12106_v41   ;;  %v10895_v8 = vadd.f32 %v10831_v47, %v10643_v6  ;;  %v10646_v25 = vadd.f32 %v13528_v12, %v16830_v44  ;;  %v10637_v5 = vpop.f32.mrb[151].mxu0 }
 0x5f3   :  { %12225 = vst [vmem:[%s17095_s7 + $0x40] sm:$0xff] %v12101_v45   ;;  %v10893_v36 = vadd.f32 %v10829_v16, %v10635_v14  ;;  %v10638_v33 = vadd.f32 %v16830_v44, %v10637_v5 }
 0x5f4   :  { %v10896_v19 = vadd.f32 %v10832_v13, %v10646_v25  ;;  %v10959_v38 = vmax.f32 %v10895_v8, 0.0  ;;  %v10843_v13 = vunpack.c.l.bf16 %v14611_v61 }
 0x5f5   :  { %v10894_v10 = vadd.f32 %v10830_v49, %v10638_v33  ;;  %v10957_v62 = vmax.f32 %v10893_v36, 0.0  ;;  %v14612_v49 = vld [vmem:[%s17089_s0 + $0x80] sm:$0xff]   ;;  %v10844_v33 = vunpack.c.h.bf16 %v14611_v61 }
 0x5f6   :  { %v10960_v34 = vmax.f32 %v10896_v19, 0.0  ;;  %v10841_v8 = vunpack.c.l.bf16 %v14612_v49 }
 0x5f7   :  { %v10958_v32 = vmax.f32 %v10894_v10, 0.0  ;;  %v13531_v37 = vpop.f32.mrb[152].mxu0 }
 0x5f8   :  { %v12116_v17 = vpack.c.bf16 %v10960_v34, %v10959_v38  ;;  %v10659_v7 = vadd.f32 %v13531_v37, %v16830_v44  ;;  %v10650_v26 = vpop.f32.mrb[153].mxu0  ;;  %v10842_v34 = vunpack.c.h.bf16 %v14612_v49 }
 0x5f9   :  { %v12111_v63 = vpack.c.bf16 %v10958_v32, %v10957_v62  ;;  %v10651_v15 = vadd.f32 %v16830_v44, %v10650_v26  ;;  %v13532_v58 = vpop.f32.mrb[154].mxu0  ;;  %v14613_v26 = vld [vmem:[%s17089_s0 + $0x98] sm:$0xff]  }
 0x5fa   :  { %12228 = vst [vmem:[%s17095_s7 + $0x58] sm:$0xff] %v12116_v17   ;;  %v10899_v22 = vadd.f32 %v10835_v4, %v10659_v7  ;;  %v10662_v56 = vadd.f32 %v13532_v58, %v16830_v44  ;;  %v10653_v2 = vpop.f32.mrb[155].mxu0 }
 0x5fb   :  { %12227 = vst [vmem:[%s17095_s7 + $0x50] sm:$0xff] %v12111_v63   ;;  %v10897_v30 = vadd.f32 %v10833_v3, %v10651_v15  ;;  %v10654_v23 = vadd.f32 %v16830_v44, %v10653_v2 }
 0x5fc   :  { %v10900_v59 = vadd.f32 %v10836_v53, %v10662_v56  ;;  %v10963_v29 = vmax.f32 %v10899_v22, 0.0  ;;  %v10847_v53 = vunpack.c.l.bf16 %v14613_v26 }
 0x5fd   :  { %v10898_v40 = vadd.f32 %v10834_v42, %v10654_v23  ;;  %v10961_v27 = vmax.f32 %v10897_v30, 0.0  ;;  %v14614_v42 = vld [vmem:[%s17089_s0 + $0x90] sm:$0xff]   ;;  %v10848_v23 = vunpack.c.h.bf16 %v14613_v26 }
 0x5fe   :  { %v10964_v39 = vmax.f32 %v10900_v59, 0.0  ;;  %v10845_v22 = vunpack.c.l.bf16 %v14614_v42 }
 0x5ff   :  { %v10962_v43 = vmax.f32 %v10898_v40, 0.0  ;;  %v13535_v31 = vpop.f32.mrb[156].mxu0 }
 0x600   :  { %v12126_v55 = vpack.c.bf16 %v10964_v39, %v10963_v29  ;;  %v10675_v48 = vadd.f32 %v13535_v31, %v16830_v44  ;;  %v10666_v20 = vpop.f32.mrb[157].mxu0  ;;  %v10846_v39 = vunpack.c.h.bf16 %v14614_v42 }
 0x601   :  { %v12121_v50 = vpack.c.bf16 %v10962_v43, %v10961_v27  ;;  %v10667_v9 = vadd.f32 %v16830_v44, %v10666_v20  ;;  %v13536_v57 = vpop.f32.mrb[158].mxu0  ;;  %v14615_v20 = vld [vmem:[%s17089_s0 + $0xa8] sm:$0xff]  }
 0x602   :  { %12230 = vst [vmem:[%s17095_s7 + $0x68] sm:$0xff] %v12126_v55   ;;  %v10903_v60 = vadd.f32 %v10839_v52, %v10675_v48  ;;  %v10678_v47 = vadd.f32 %v13536_v57, %v16830_v44  ;;  %v10669_v11 = vpop.f32.mrb[159].mxu0 }
 0x603   :  { %12229 = vst [vmem:[%s17095_s7 + $0x60] sm:$0xff] %v12121_v50   ;;  %v10901_v51 = vadd.f32 %v10837_v28, %v10667_v9  ;;  %v10670_v1 = vadd.f32 %v16830_v44, %v10669_v11 }
 0x604   :  { %v10904_v21 = vadd.f32 %v10840_v0, %v10678_v47  ;;  %v10967_v41 = vmax.f32 %v10903_v60, 0.0  ;;  %v10851_v0 = vunpack.c.l.bf16 %v14615_v20 }
 0x605   :  { %v10902_v16 = vadd.f32 %v10838_v24, %v10670_v1  ;;  %v10965_v45 = vmax.f32 %v10901_v51, 0.0  ;;  %v14616_v24 = vld [vmem:[%s17089_s0 + $0xa0] sm:$0xff]   ;;  %v10852_v1 = vunpack.c.h.bf16 %v14615_v20 }
 0x606   :  { %v10968_v6 = vmax.f32 %v10904_v21, 0.0  ;;  %v10849_v60 = vunpack.c.l.bf16 %v14616_v24 }
 0x607   :  { %v10966_v14 = vmax.f32 %v10902_v16, 0.0  ;;  %v13539_v12 = vpop.f32.mrb[160].mxu0 }
 0x608   :  { %v12136_v25 = vpack.c.bf16 %v10968_v6, %v10967_v41  ;;  %v10691_v5 = vadd.f32 %v13539_v12, %v16830_v44  ;;  %v10682_v36 = vpop.f32.mrb[161].mxu0  ;;  %v10850_v6 = vunpack.c.h.bf16 %v14616_v24 }
 0x609   :  { %v12131_v19 = vpack.c.bf16 %v10966_v14, %v10965_v45  ;;  %v10683_v10 = vadd.f32 %v16830_v44, %v10682_v36  ;;  %v13540_v38 = vpop.f32.mrb[162].mxu0  ;;  %v14617_v36 = vld [vmem:[%s17089_s0 + $0xb8] sm:$0xff]  }
 0x60a   :  { %12232 = vst [vmem:[%s17095_s7 + $0x78] sm:$0xff] %v12136_v25   ;;  %v10907_v46 = vadd.f32 %v10843_v13, %v10691_v5  ;;  %v10694_v4 = vadd.f32 %v13540_v38, %v16830_v44  ;;  %v10685_v62 = vpop.f32.mrb[163].mxu0 }
 0x60b   :  { %12231 = vst [vmem:[%s17095_s7 + $0x70] sm:$0xff] %v12131_v19   ;;  %v10905_v32 = vadd.f32 %v10841_v8, %v10683_v10  ;;  %v10686_v37 = vadd.f32 %v16830_v44, %v10685_v62 }
 0x60c   :  { %v10908_v35 = vadd.f32 %v10844_v33, %v10694_v4  ;;  %v10971_v17 = vmax.f32 %v10907_v46, 0.0  ;;  %v10855_v33 = vunpack.c.l.bf16 %v14617_v36 }
 0x60d   :  { %v10906_v3 = vadd.f32 %v10842_v34, %v10686_v37  ;;  %v10969_v63 = vmax.f32 %v10905_v32, 0.0  ;;  %v14618_v34 = vld [vmem:[%s17089_s0 + $0xb0] sm:$0xff]   ;;  %v10856_v37 = vunpack.c.h.bf16 %v14617_v36 }
 0x60e   :  { %v10972_v7 = vmax.f32 %v10908_v35, 0.0  ;;  %v10853_v46 = vunpack.c.l.bf16 %v14618_v34 }
 0x60f   :  { %v10970_v15 = vmax.f32 %v10906_v3, 0.0  ;;  %v13543_v58 = vpop.f32.mrb[164].mxu0 }
 0x610   :  { %v12146_v56 = vpack.c.bf16 %v10972_v7, %v10971_v17  ;;  %v10707_v2 = vadd.f32 %v13543_v58, %v16830_v44  ;;  %v10698_v30 = vpop.f32.mrb[165].mxu0  ;;  %v10854_v7 = vunpack.c.h.bf16 %v14618_v34 }
 0x611   :  { %v12141_v59 = vpack.c.bf16 %v10970_v15, %v10969_v63  ;;  %v10699_v40 = vadd.f32 %v16830_v44, %v10698_v30  ;;  %v13544_v29 = vpop.f32.mrb[166].mxu0  ;;  %v14619_v30 = vld [vmem:[%s17089_s0 + $0xc8] sm:$0xff]  }
 0x612   :  { %12234 = vst [vmem:[%s17095_s7 + $0x88] sm:$0xff] %v12146_v56   ;;  %v10911_v18 = vadd.f32 %v10847_v53, %v10707_v2  ;;  %v10710_v52 = vadd.f32 %v13544_v29, %v16830_v44  ;;  %v10701_v27 = vpop.f32.mrb[167].mxu0 }
 0x613   :  { %12233 = vst [vmem:[%s17095_s7 + $0x80] sm:$0xff] %v12141_v59   ;;  %v10909_v43 = vadd.f32 %v10845_v22, %v10699_v40  ;;  %v10702_v31 = vadd.f32 %v16830_v44, %v10701_v27 }
 0x614   :  { %v10912_v54 = vadd.f32 %v10848_v23, %v10710_v52  ;;  %v10975_v55 = vmax.f32 %v10911_v18, 0.0  ;;  %v10859_v23 = vunpack.c.l.bf16 %v14619_v30 }
 0x615   :  { %v10910_v28 = vadd.f32 %v10846_v39, %v10702_v31  ;;  %v10973_v50 = vmax.f32 %v10909_v43, 0.0  ;;  %v14620_v39 = vld [vmem:[%s17089_s0 + $0xc0] sm:$0xff]   ;;  %v10860_v31 = vunpack.c.h.bf16 %v14619_v30 }
 0x616   :  { %v10976_v48 = vmax.f32 %v10912_v54, 0.0  ;;  %v10857_v18 = vunpack.c.l.bf16 %v14620_v39 }
 0x617   :  { %v10974_v9 = vmax.f32 %v10910_v28, 0.0  ;;  %v13547_v57 = vpop.f32.mrb[168].mxu0 }
 0x618   :  { %v12156_v47 = vpack.c.bf16 %v10976_v48, %v10975_v55  ;;  %v10723_v11 = vadd.f32 %v13547_v57, %v16830_v44  ;;  %v10714_v51 = vpop.f32.mrb[169].mxu0  ;;  %v10858_v48 = vunpack.c.h.bf16 %v14620_v39 }
 0x619   :  { %v12151_v21 = vpack.c.bf16 %v10974_v9, %v10973_v50  ;;  %v10715_v16 = vadd.f32 %v16830_v44, %v10714_v51  ;;  %v13548_v41 = vpop.f32.mrb[170].mxu0  ;;  %v14621_v51 = vld [vmem:[%s17089_s0 + $0xd8] sm:$0xff]  }
 0x61a   :  { %12236 = vst [vmem:[%s17095_s7 + $0x98] sm:$0xff] %v12156_v47   ;;  %v10915_v61 = vadd.f32 %v10851_v0, %v10723_v11  ;;  %v10726_v13 = vadd.f32 %v13548_v41, %v16830_v44  ;;  %v10717_v45 = vpop.f32.mrb[171].mxu0 }
 0x61b   :  { %12235 = vst [vmem:[%s17095_s7 + $0x90] sm:$0xff] %v12151_v21   ;;  %v10913_v14 = vadd.f32 %v10849_v60, %v10715_v16  ;;  %v10718_v12 = vadd.f32 %v16830_v44, %v10717_v45 }
 0x61c   :  { %v10916_v49 = vadd.f32 %v10852_v1, %v10726_v13  ;;  %v10979_v25 = vmax.f32 %v10915_v61, 0.0  ;;  %v10863_v1 = vunpack.c.l.bf16 %v14621_v51 }
 0x61d   :  { %v10914_v8 = vadd.f32 %v10850_v6, %v10718_v12  ;;  %v10977_v19 = vmax.f32 %v10913_v14, 0.0  ;;  %v14622_v6 = vld [vmem:[%s17089_s0 + $0xd0] sm:$0xff]   ;;  %v10864_v12 = vunpack.c.h.bf16 %v14621_v51 }
 0x61e   :  { %v10980_v5 = vmax.f32 %v10916_v49, 0.0  ;;  %v10861_v61 = vunpack.c.l.bf16 %v14622_v6 }
 0x61f   :  { %v10978_v10 = vmax.f32 %v10914_v8, 0.0  ;;  %v13551_v38 = vpop.f32.mrb[172].mxu0 }
 0x620   :  { %v12166_v4 = vpack.c.bf16 %v10980_v5, %v10979_v25  ;;  %v10739_v62 = vadd.f32 %v13551_v38, %v16830_v44  ;;  %v10730_v32 = vpop.f32.mrb[173].mxu0  ;;  %v10862_v5 = vunpack.c.h.bf16 %v14622_v6 }
 0x621   :  { %v12161_v35 = vpack.c.bf16 %v10978_v10, %v10977_v19  ;;  %v10731_v3 = vadd.f32 %v16830_v44, %v10730_v32  ;;  %v13552_v17 = vpop.f32.mrb[174].mxu0  ;;  %v14623_v32 = vld [vmem:[%s17089_s0 + $0xe8] sm:$0xff]  }
 0x622   :  { %12238 = vst [vmem:[%s17095_s7 + $0xa8] sm:$0xff] %v12166_v4   ;;  %v10919_v26 = vadd.f32 %v10855_v33, %v10739_v62  ;;  %v10742_v53 = vadd.f32 %v13552_v17, %v16830_v44  ;;  %v10733_v63 = vpop.f32.mrb[175].mxu0 }
 0x623   :  { %12237 = vst [vmem:[%s17095_s7 + $0xa0] sm:$0xff] %v12161_v35   ;;  %v10917_v15 = vadd.f32 %v10853_v46, %v10731_v3  ;;  %v10734_v58 = vadd.f32 %v16830_v44, %v10733_v63 }
 0x624   :  { %v10920_v42 = vadd.f32 %v10856_v37, %v10742_v53  ;;  %v10983_v56 = vmax.f32 %v10919_v26, 0.0  ;;  %v10867_v37 = vunpack.c.l.bf16 %v14623_v32 }
 0x625   :  { %v10918_v22 = vadd.f32 %v10854_v7, %v10734_v58  ;;  %v10981_v59 = vmax.f32 %v10917_v15, 0.0  ;;  %v14624_v7 = vld [vmem:[%s17089_s0 + $0xe0] sm:$0xff]   ;;  %v10868_v58 = vunpack.c.h.bf16 %v14623_v32 }
 0x626   :  { %v10984_v2 = vmax.f32 %v10920_v42, 0.0  ;;  %v10865_v26 = vunpack.c.l.bf16 %v14624_v7 }
 0x627   :  { %v10982_v40 = vmax.f32 %v10918_v22, 0.0  ;;  %v13555_v29 = vpop.f32.mrb[176].mxu0 }
 0x628   :  { %v12176_v52 = vpack.c.bf16 %v10984_v2, %v10983_v56  ;;  %v10755_v27 = vadd.f32 %v13555_v29, %v16830_v44  ;;  %v10746_v43 = vpop.f32.mrb[177].mxu0  ;;  %v10866_v2 = vunpack.c.h.bf16 %v14624_v7 }
 0x629   :  { %v12171_v54 = vpack.c.bf16 %v10982_v40, %v10981_v59  ;;  %v10747_v28 = vadd.f32 %v16830_v44, %v10746_v43  ;;  %v13556_v55 = vpop.f32.mrb[178].mxu0  ;;  %v14625_v43 = vld [vmem:[%s17089_s0 + $0xf8] sm:$0xff]  }
 0x62a   :  { %12240 = vst [vmem:[%s17095_s7 + $0xb8] sm:$0xff] %v12176_v52   ;;  %v10923_v20 = vadd.f32 %v10859_v23, %v10755_v27  ;;  %v10758_v0 = vadd.f32 %v13556_v55, %v16830_v44  ;;  %v10749_v50 = vpop.f32.mrb[179].mxu0 }
 0x62b   :  { %12239 = vst [vmem:[%s17095_s7 + $0xb0] sm:$0xff] %v12171_v54   ;;  %v10921_v9 = vadd.f32 %v10857_v18, %v10747_v28  ;;  %v10750_v57 = vadd.f32 %v16830_v44, %v10749_v50 }
 0x62c   :  { %v10924_v24 = vadd.f32 %v10860_v31, %v10758_v0  ;;  %v10987_v47 = vmax.f32 %v10923_v20, 0.0  ;;  %v10871_v31 = vunpack.c.l.bf16 %v14625_v43 }
 0x62d   :  { %v10922_v60 = vadd.f32 %v10858_v48, %v10750_v57  ;;  %v10985_v21 = vmax.f32 %v10921_v9, 0.0  ;;  %v14626_v48 = vld [vmem:[%s17089_s0 + $0xf0] sm:$0xff]   ;;  %v10872_v57 = vunpack.c.h.bf16 %v14625_v43 }
 0x62e   :  { %v10988_v11 = vmax.f32 %v10924_v24, 0.0  ;;  %v10869_v20 = vunpack.c.l.bf16 %v14626_v48 }
 0x62f   :  { %v10986_v16 = vmax.f32 %v10922_v60, 0.0  ;;  %v13559_v41 = vpop.f32.mrb[180].mxu0 }
 0x630   :  { %v12186_v13 = vpack.c.bf16 %v10988_v11, %v10987_v47  ;;  %v10771_v45 = vadd.f32 %v13559_v41, %v16830_v44  ;;  %v10762_v14 = vpop.f32.mrb[181].mxu0  ;;  %v10870_v11 = vunpack.c.h.bf16 %v14626_v48 }
 0x631   :  { %v12181_v49 = vpack.c.bf16 %v10986_v16, %v10985_v21  ;;  %v10763_v8 = vadd.f32 %v16830_v44, %v10762_v14  ;;  %v13560_v25 = vpop.f32.mrb[182].mxu0 }
 0x632   :  { %12242 = vst [vmem:[%s17095_s7 + $0xc8] sm:$0xff] %v12186_v13   ;;  %v10927_v36 = vadd.f32 %v10863_v1, %v10771_v45  ;;  %v10774_v33 = vadd.f32 %v13560_v25, %v16830_v44  ;;  %v10765_v19 = vpop.f32.mrb[183].mxu0 }
 0x633   :  { %12241 = vst [vmem:[%s17095_s7 + $0xc0] sm:$0xff] %v12181_v49   ;;  %v10925_v10 = vadd.f32 %v10861_v61, %v10763_v8  ;;  %v10766_v38 = vadd.f32 %v16830_v44, %v10765_v19 }
 0x634   :  { %v10928_v34 = vadd.f32 %v10864_v12, %v10774_v33  ;;  %v10991_v4 = vmax.f32 %v10927_v36, 0.0 }
 0x635   :  { %v10926_v46 = vadd.f32 %v10862_v5, %v10766_v38  ;;  %v10989_v35 = vmax.f32 %v10925_v10, 0.0 }
 0x636   :  { %v10992_v62 = vmax.f32 %v10928_v34, 0.0 }
 0x637   :  { %v10990_v3 = vmax.f32 %v10926_v46, 0.0  ;;  %v13563_v17 = vpop.f32.mrb[184].mxu0 }
 0x638   :  { %v12196_v53 = vpack.c.bf16 %v10992_v62, %v10991_v4  ;;  %v10787_v63 = vadd.f32 %v13563_v17, %v16830_v44  ;;  %v10778_v15 = vpop.f32.mrb[185].mxu0 }
 0x639   :  { %v12191_v42 = vpack.c.bf16 %v10990_v3, %v10989_v35  ;;  %v10779_v22 = vadd.f32 %v16830_v44, %v10778_v15  ;;  %v13564_v56 = vpop.f32.mrb[186].mxu0 }
 0x63a   :  { %12244 = vst [vmem:[%s17095_s7 + $0xd8] sm:$0xff] %v12196_v53   ;;  %v10931_v30 = vadd.f32 %v10867_v37, %v10787_v63  ;;  %v10790_v23 = vadd.f32 %v13564_v56, %v16830_v44  ;;  %v10781_v59 = vpop.f32.mrb[187].mxu0 }
 0x63b   :  { %12243 = vst [vmem:[%s17095_s7 + $0xd0] sm:$0xff] %v12191_v42   ;;  %v10929_v40 = vadd.f32 %v10865_v26, %v10779_v22  ;;  %v10782_v29 = vadd.f32 %v16830_v44, %v10781_v59 }
 0x63c   :  { %v10932_v39 = vadd.f32 %v10868_v58, %v10790_v23  ;;  %v10995_v52 = vmax.f32 %v10931_v30, 0.0 }
 0x63d   :  { %v10930_v18 = vadd.f32 %v10866_v2, %v10782_v29  ;;  %v10993_v54 = vmax.f32 %v10929_v40, 0.0 }
 0x63e   :  { %v10996_v27 = vmax.f32 %v10932_v39, 0.0 }
 0x63f   :  { %v10994_v28 = vmax.f32 %v10930_v18, 0.0  ;;  %v13567_v55 = vpop.f32.mrb[188].mxu0 }
 0x640   :  { %v12206_v0 = vpack.c.bf16 %v10996_v27, %v10995_v52  ;;  %v10803_v50 = vadd.f32 %v13567_v55, %v16830_v44  ;;  %v10794_v9 = vpop.f32.mrb[189].mxu0 }
 0x641   :  { %v12201_v24 = vpack.c.bf16 %v10994_v28, %v10993_v54  ;;  %v10795_v60 = vadd.f32 %v16830_v44, %v10794_v9  ;;  %v13568_v47 = vpop.f32.mrb[190].mxu0 }
 0x642   :  { %12246 = vst [vmem:[%s17095_s7 + $0xe8] sm:$0xff] %v12206_v0   ;;  %v10935_v51 = vadd.f32 %v10871_v31, %v10803_v50  ;;  %v10806_v1 = vadd.f32 %v13568_v47, %v16830_v44  ;;  %v10797_v21 = vpop.f32.mrb[191].mxu0 }
 0x643   :  { %12245 = vst [vmem:[%s17095_s7 + $0xe0] sm:$0xff] %v12201_v24   ;;  %v10933_v16 = vadd.f32 %v10869_v20, %v10795_v60  ;;  %v10798_v41 = vadd.f32 %v16830_v44, %v10797_v21 }
 0x644   :  { %v10936_v6 = vadd.f32 %v10872_v57, %v10806_v1  ;;  %v10999_v13 = vmax.f32 %v10935_v51, 0.0 }
 0x645   :  { %v10934_v61 = vadd.f32 %v10870_v11, %v10798_v41  ;;  %v10997_v14 = vmax.f32 %v10933_v16, 0.0 }
 0x646   :  { %v11000_v45 = vmax.f32 %v10936_v6, 0.0 }
 0x647   :  { %v10998_v12 = vmax.f32 %v10934_v61, 0.0 }
 0x648   :  { %v12216_v49 = vpack.c.bf16 %v11000_v45, %v10999_v13 }
 0x649   :  { %v12211_v8 = vpack.c.bf16 %v10998_v12, %v10997_v14 }
 0x64a   :  { %12248 = vst [vmem:[%s17095_s7 + $0xf8] sm:$0xff] %v12216_v49  }
 0x64b   :  { %12247 = vst [vmem:[%s17095_s7 + $0xf0] sm:$0xff] %v12211_v8  }

</bundles_post_ra>
